<compile_context>
chip_gen: v7x
topology: tpu7x:2x2x1
jax: 0.10.0
libtpu: 0.0.40
codegen_flags: <defaults>
</compile_context>

<pallas_src>
import functools

import numpy as np

import jax
import jax.numpy as jnp
from jax.experimental import pallas as pl
from jax.experimental.pallas import tpu as pltpu


_VMEM_LIMIT = 32 * 1024 * 1024


# ---------------------------------------------------------------------------
# Tiling helpers
# ---------------------------------------------------------------------------
def _batch_tile(B):
    """Images per conv grid step: largest of (8,4,2,1) dividing B with >=2 steps."""
    for tb in (8, 4, 2, 1):
        if B % tb == 0 and B // tb >= 2:
            return tb
    return B


def _m_tile(M):
    """Row block for the fc kernel (multiple of 8, >=2 grid steps when M is large)."""
    if M < 16:
        return M
    for bm in (128, 64, 32, 16, 8):
        if M % bm == 0 and M // bm >= 2:
            return bm
    return M


# ---------------------------------------------------------------------------
# Fused conv trunk kernel: conv1+bias+relu+pool -> conv2+bias+relu+pool
# ---------------------------------------------------------------------------
def _conv_stack_kernel(x_ref, wb1_ref, b1_ref, wb2_ref, b2_ref, o_ref, pad_ref, *, TB):
    # x_ref  : [TB, 34, 96]    f32  H-padded input, lane = w*3 + cin   (w in [0,32))
    # wb1_ref: [3, 96, 1024]   bf16 banded conv1 weight (one slab per kernel row dh)
    # b1_ref : [1, 1024]       f32  conv1 bias, tiled to the conv1 column order
    # wb2_ref: [3, 512, 1024]  bf16 banded conv2 weight
    # b2_ref : [1, 1024]       f32
    # o_ref  : [TB*8, 512]     f32  pooled conv2 features, lane = wq*64 + cout
    # pad_ref: [TB, 18, 512]   f32  VMEM scratch: H-zero-padded conv2 input

    # ---- conv1 + bias + ReLU: 3 banded MXU matmuls (K = 96) ------------------
    acc1 = jnp.zeros((TB * 32, 1024), jnp.float32)
    for dh in range(3):
        xs = x_ref[:, dh:dh + 32, :].reshape(TB * 32, 96).astype(jnp.bfloat16)
        acc1 = acc1 + jnp.dot(xs, wb1_ref[dh], preferred_element_type=jnp.float32)
    y1 = jnp.maximum(acc1 + b1_ref[...], 0.0)               # [TB*32, 1024]

    # ---- 2x2 max-pool #1: W-pool = lane-half max (even/odd-w column halves),
    #      H-pool = adjacent-row max.
    pw = jnp.maximum(y1[:, :512], y1[:, 512:])              # [TB*32, 512]
    a1 = pw.reshape(TB * 16, 2, 512).max(axis=1)            # [TB*16, 512]

    # ---- conv2 zero padding (H) in VMEM (no HBM round trip) ------------------
    zero_row = jnp.zeros((TB, 512), jnp.float32)
    pad_ref[:, 0, :] = zero_row
    pad_ref[:, 17, :] = zero_row
    pad_ref[:, 1:17, :] = a1.reshape(TB, 16, 512)

    # ---- conv2 + bias + ReLU: 3 banded MXU matmuls (K = 512) -----------------
    acc2 = jnp.zeros((TB * 16, 1024), jnp.float32)
    for dh in range(3):
        xs2 = pad_ref[:, dh:dh + 16, :].reshape(TB * 16, 512).astype(jnp.bfloat16)
        acc2 = acc2 + jnp.dot(xs2, wb2_ref[dh], preferred_element_type=jnp.float32)
    y2 = jnp.maximum(acc2 + b2_ref[...], 0.0)               # [TB*16, 1024]

    # ---- 2x2 max-pool #2 ------------------------------------------------------
    qw = jnp.maximum(y2[:, :512], y2[:, 512:])              # [TB*16, 512]
    o_ref[...] = qw.reshape(TB * 8, 2, 512).max(axis=1).astype(o_ref.dtype)


def conv_stack(x_pad, prep):
    """x_pad: [B, 34, 96] H-padded lane-folded input -> [B*8, 512] pooled features."""
    B = x_pad.shape[0]
    TB = _batch_tile(B)
    kernel = functools.partial(_conv_stack_kernel, TB=TB)
    return pl.pallas_call(
        kernel,
        out_shape=jax.ShapeDtypeStruct((B * 8, 512), jnp.float32),
        grid=(B // TB,),
        in_specs=[
            pl.BlockSpec((TB, 34, 96), lambda i: (i, 0, 0)),
            pl.BlockSpec((3, 96, 1024), lambda i: (0, 0, 0)),
            pl.BlockSpec((1, 1024), lambda i: (0, 0)),
            pl.BlockSpec((3, 512, 1024), lambda i: (0, 0, 0)),
            pl.BlockSpec((1, 1024), lambda i: (0, 0)),
        ],
        out_specs=pl.BlockSpec((TB * 8, 512), lambda i: (i, 0)),
        scratch_shapes=[pltpu.VMEM((TB, 18, 512), jnp.float32)],
        compiler_params=pltpu.CompilerParams(
            dimension_semantics=("parallel",),
            vmem_limit_bytes=_VMEM_LIMIT),
    )(x_pad, prep["wb1"], prep["b1"], prep["wb2"], prep["b2"])


# ---------------------------------------------------------------------------
# Fused fc1 + ReLU + fc2 kernel (weights stay resident in VMEM)
# ---------------------------------------------------------------------------
def _fc_fused_kernel(x_ref, w1_ref, b1_ref, w2_ref, b2_ref, o_ref):
    h = jnp.dot(x_ref[...].astype(jnp.bfloat16), w1_ref[...],
                preferred_element_type=jnp.float32)
    h = jnp.maximum(h + b1_ref[...], 0.0)
    o = jnp.dot(h.astype(jnp.bfloat16), w2_ref[...],
                preferred_element_type=jnp.float32) + b2_ref[...]
    o_ref[...] = o.astype(o_ref.dtype)


def fc_fused(x, w1, b1, w2, b2):
    """x:[M,K] @ w1:[K,N1] (+b1, ReLU) @ w2:[N1,N2] (+b2) -> [M,N2]."""
    M, K = x.shape
    N1 = w1.shape[1]
    N2 = w2.shape[1]
    bm = _m_tile(M)
    return pl.pallas_call(
        _fc_fused_kernel,
        out_shape=jax.ShapeDtypeStruct((M, N2), jnp.float32),
        grid=(M // bm,),
        in_specs=[
            pl.BlockSpec((bm, K), lambda i: (i, 0)),
            pl.BlockSpec((K, N1), lambda i: (0, 0)),
            pl.BlockSpec((1, N1), lambda i: (0, 0)),
            pl.BlockSpec((N1, N2), lambda i: (0, 0)),
            pl.BlockSpec((1, N2), lambda i: (0, 0)),
        ],
        out_specs=pl.BlockSpec((bm, N2), lambda i: (i, 0)),
        compiler_params=pltpu.CompilerParams(
            dimension_semantics=("parallel",),
            vmem_limit_bytes=_VMEM_LIMIT),
    )(x, w1, b1, w2, b2)


# ---------------------------------------------------------------------------
# Parameters: PyTorch-layout init + one-time kernel-layout preparation
# ---------------------------------------------------------------------------
def init_params(key):
    """Deterministic PyTorch-like uniform(-1/sqrt(fan_in), 1/sqrt(fan_in)) init."""
    def uni(k, shape, fan_in):
        bound = 1.0 / float(fan_in) ** 0.5
        return jax.random.uniform(k, shape, jnp.float32, -bound, bound)

    ks = jax.random.split(key, 8)
    return {
        "conv1_w": uni(ks[0], (32, 3, 3, 3), 3 * 9),          # OIHW (PyTorch layout)
        "conv1_b": uni(ks[1], (32,), 3 * 9),
        "conv2_w": uni(ks[2], (64, 32, 3, 3), 32 * 9),
        "conv2_b": uni(ks[3], (64,), 32 * 9),
        "fc1_w":   uni(ks[4], (256, 64 * 8 * 8), 64 * 8 * 8),  # [out, in]
        "fc1_b":   uni(ks[5], (256,), 64 * 8 * 8),
        "fc2_w":   uni(ks[6], (10, 256), 256),
        "fc2_b":   uni(ks[7], (10,), 256),
    }


def _banded_conv_weight(w_oihw, w_size):
    """Fold (kw, cin) taps and W zero-padding of a 3x3/pad-1/stride-1 conv into a
    banded matrix per kernel row dh: [3, W*Cin, W*Cout].  Output columns are
    permuted so even-w outputs occupy the lower lane half and odd-w the upper
    half, which turns the 2x2 W-pool into a lane-half maximum."""
    cout, cin, _, _ = w_oihw.shape
    half = (w_size // 2) * cout
    band = np.zeros((3, w_size * cin, w_size * cout), np.float32)
    for dh in range(3):
        for w in range(w_size):
            col0 = (w % 2) * half + (w // 2) * cout
            for dw in range(3):
                wi = w + dw - 1
                if 0 <= wi < w_size:
                    band[dh, wi * cin:(wi + 1) * cin, col0:col0 + cout] = \
                        w_oihw[:, :, dh, dw].T
    return band


def prepare_params(params):
    """One-time weight layout prep (NOT per forward): banded bf16 conv weights,
    tiled biases, fc1 columns permuted to the kernel's feature layout, fc2
    transposed + padded 10 -> 128."""
    c1 = np.asarray(params["conv1_w"], np.float32)            # [32, 3, 3, 3]
    c2 = np.asarray(params["conv2_w"], np.float32)            # [64, 32, 3, 3]
    wb1 = jnp.asarray(_banded_conv_weight(c1, 32), jnp.bfloat16)   # [3, 96, 1024]
    wb2 = jnp.asarray(_banded_conv_weight(c2, 16), jnp.bfloat16)   # [3, 512, 1024]
    b1 = jnp.asarray(np.tile(np.asarray(params["conv1_b"], np.float32), 32)
                     .reshape(1, 1024))
    b2 = jnp.asarray(np.tile(np.asarray(params["conv2_b"], np.float32), 16)
                     .reshape(1, 1024))

    # fc1_w is [256, 4096] with input index c*64 + h*8 + w (NCHW flatten).
    # Kernel features flatten as h*512 + w*64 + c -> permute columns, transpose.
    fc1 = np.asarray(params["fc1_w"], np.float32).reshape(256, 64, 8, 8)
    fc1 = np.transpose(fc1, (2, 3, 1, 0)).reshape(64 * 8 * 8, 256)
    fc1_w = jnp.asarray(fc1, jnp.bfloat16)
    fc1_b = jnp.asarray(np.asarray(params["fc1_b"], np.float32).reshape(1, 256))

    fc2 = np.asarray(params["fc2_w"], np.float32).T                        # [256, 10]
    fc2_w = jnp.asarray(np.pad(fc2, ((0, 0), (0, 118))), jnp.bfloat16)     # [256, 128]
    fc2_b = jnp.asarray(np.pad(np.asarray(params["fc2_b"], np.float32),
                               (0, 118)).reshape(1, 128))

    return {"wb1": wb1, "b1": b1, "wb2": wb2, "b2": b2,
            "fc1_w": fc1_w, "fc1_b": fc1_b, "fc2_w": fc2_w, "fc2_b": fc2_b}


# ---------------------------------------------------------------------------
# Forward pass (2 pallas_calls)
# ---------------------------------------------------------------------------
def simple_net_forward(x_nchw, prep):
    B = x_nchw.shape[0]
    # NCHW -> lane-folded [B, 32, 32*3], then H zero-pad -> [B, 34, 96].
    x = jnp.transpose(x_nchw, (0, 2, 3, 1)).astype(jnp.float32).reshape(B, 32, 96)
    x = jnp.pad(x, ((0, 0), (1, 1), (0, 0)))

    feats = conv_stack(x, prep)                  # [B*8, 512], lane = wq*64 + cout
    flat = feats.reshape(B, 64 * 8 * 8)          # free reshape; matches fc1 prep

    out = fc_fused(flat, prep["fc1_w"], prep["fc1_b"], prep["fc2_w"], prep["fc2_b"])
    return out[:, :10]                           # drop fc2's N padding


# ---------------------------------------------------------------------------
# Pure-JAX reference (PyTorch semantics) for correctness check
# ---------------------------------------------------------------------------
def reference_forward(x_nchw, params):
    hi = jax.lax.Precision.HIGHEST

    def conv(x, w, b):
        y = jax.lax.conv_general_dilated(
            x, w, (1, 1), ((1, 1), (1, 1)),
            dimension_numbers=("NCHW", "OIHW", "NCHW"), precision=hi)
        return y + b[None, :, None, None]

    def pool(x):
        return jax.lax.reduce_window(
            x, -jnp.inf, jax.lax.max, (1, 1, 2, 2), (1, 1, 2, 2), "VALID")

    y = jax.nn.relu(conv(x_nchw, params["conv1_w"], params["conv1_b"]))
    y = pool(y)
    y = jax.nn.relu(conv(y, params["conv2_w"], params["conv2_b"]))
    y = pool(y)
    flat = y.reshape(y.shape[0], -1)
    h = jax.nn.relu(jnp.dot(flat, params["fc1_w"].T, precision=hi) + params["fc1_b"])
    return jnp.dot(h, params["fc2_w"].T, precision=hi) + params["fc2_b"]


if __name__ == "__main__":
    key = jax.random.PRNGKey(0)
    kx, kp = jax.random.split(key)
    x = jax.random.normal(kx, (2, 3, 32, 32), jnp.float32)   # NCHW, batch=2
    params = init_params(kp)
    prep = prepare_params(params)        # one-time layout prep, not per forward

    fwd = jax.jit(simple_net_forward)
    out = jax.block_until_ready(fwd(x, prep))
    ref = jax.block_until_ready(reference_forward(x, params))

    assert out.shape == (2, 10), out.shape
    max_err = float(jnp.max(jnp.abs(out - ref)))
    # bf16 MXU operands with K up to 4096 -> expect ~1e-2 absolute error.
    assert max_err < 5e-2, f"mismatch vs reference: max abs err = {max_err}"

    print("KERNEL_OK")
</pallas_src>

<mosaic_0001>
module attributes {stable_mosaic.version = 11 : i64} {
  func.func @_conv_stack_kernel(%arg0: i32, %arg1: memref<1x34x96xf32, #tpu.memory_space<vmem>>, %arg2: memref<3x96x1024xbf16, #tpu.memory_space<vmem>>, %arg3: memref<1x1024xf32, #tpu.memory_space<vmem>>, %arg4: memref<3x512x1024xbf16, #tpu.memory_space<vmem>>, %arg5: memref<1x1024xf32, #tpu.memory_space<vmem>>, %arg6: memref<8x512xf32, #tpu.memory_space<vmem>>, %arg7: memref<1x18x512xf32, #tpu.memory_space<vmem>>) attributes {dimension_semantics = [#tpu.dimension_semantics<parallel>], iteration_bounds = array<i64: 2>, scalar_prefetch = 0 : i64, scratch_operands = 1 : i64, tpu.core_type = #tpu.core_type<tc>, window_params = [{transform_indices = @transform_0, window_bounds = array<i64: 1, 34, 96>}, {pipeline_mode = #tpu.pipeline_mode<synchronous>, transform_indices = @transform_1, window_bounds = array<i64: 3, 96, 1024>}, {pipeline_mode = #tpu.pipeline_mode<synchronous>, transform_indices = @transform_2, window_bounds = array<i64: 1, 1024>}, {pipeline_mode = #tpu.pipeline_mode<synchronous>, transform_indices = @transform_3, window_bounds = array<i64: 3, 512, 1024>}, {pipeline_mode = #tpu.pipeline_mode<synchronous>, transform_indices = @transform_4, window_bounds = array<i64: 1, 1024>}, {transform_indices = @transform_5, window_bounds = array<i64: 8, 512>}]} {
    %cst = arith.constant 0.000000e+00 : f32
    %0 = vector.broadcast %cst : f32 to vector<32x1024xf32>
    %c0 = arith.constant 0 : index
    %c0_0 = arith.constant 0 : index
    %c0_1 = arith.constant 0 : index
    %1 = vector.load %arg1[%c0, %c0_0, %c0_1] : memref<1x34x96xf32, #tpu.memory_space<vmem>>, vector<1x32x96xf32>
    %2 = vector.shape_cast %1 : vector<1x32x96xf32> to vector<32x96xf32>
    %3 = arith.truncf %2 : vector<32x96xf32> to vector<32x96xbf16>
    %c0_2 = arith.constant 0 : index
    %c0_3 = arith.constant 0 : index
    %c0_4 = arith.constant 0 : index
    %4 = vector.load %arg2[%c0_2, %c0_3, %c0_4] : memref<3x96x1024xbf16, #tpu.memory_space<vmem>>, vector<1x96x1024xbf16>
    %5 = vector.shape_cast %4 : vector<1x96x1024xbf16> to vector<96x1024xbf16>
    %cst_5 = arith.constant dense<0.000000e+00> : vector<32x1024xf32>
    %6 = tpu.matmul %3, %5, %cst_5 {dimension_numbers = #tpu.dot_dimension_numbers<[1], [0], [0], [1], [0, 0, 1, 1], [], []>} : vector<32x96xbf16>, vector<96x1024xbf16>, vector<32x1024xf32> -> vector<32x1024xf32>
    %7 = arith.addf %0, %6 : vector<32x1024xf32>
    %c0_6 = arith.constant 0 : index
    %c1 = arith.constant 1 : index
    %c0_7 = arith.constant 0 : index
    %8 = vector.load %arg1[%c0_6, %c1, %c0_7] : memref<1x34x96xf32, #tpu.memory_space<vmem>>, vector<1x32x96xf32>
    %9 = vector.shape_cast %8 : vector<1x32x96xf32> to vector<32x96xf32>
    %10 = arith.truncf %9 : vector<32x96xf32> to vector<32x96xbf16>
    %c1_8 = arith.constant 1 : index
    %c0_9 = arith.constant 0 : index
    %c0_10 = arith.constant 0 : index
    %11 = vector.load %arg2[%c1_8, %c0_9, %c0_10] : memref<3x96x1024xbf16, #tpu.memory_space<vmem>>, vector<1x96x1024xbf16>
    %12 = vector.shape_cast %11 : vector<1x96x1024xbf16> to vector<96x1024xbf16>
    %cst_11 = arith.constant dense<0.000000e+00> : vector<32x1024xf32>
    %13 = tpu.matmul %10, %12, %cst_11 {dimension_numbers = #tpu.dot_dimension_numbers<[1], [0], [0], [1], [0, 0, 1, 1], [], []>} : vector<32x96xbf16>, vector<96x1024xbf16>, vector<32x1024xf32> -> vector<32x1024xf32>
    %14 = arith.addf %7, %13 : vector<32x1024xf32>
    %c0_12 = arith.constant 0 : index
    %c2 = arith.constant 2 : index
    %c0_13 = arith.constant 0 : index
    %15 = vector.load %arg1[%c0_12, %c2, %c0_13] : memref<1x34x96xf32, #tpu.memory_space<vmem>>, vector<1x32x96xf32>
    %16 = vector.shape_cast %15 : vector<1x32x96xf32> to vector<32x96xf32>
    %17 = arith.truncf %16 : vector<32x96xf32> to vector<32x96xbf16>
    %c2_14 = arith.constant 2 : index
    %c0_15 = arith.constant 0 : index
    %c0_16 = arith.constant 0 : index
    %18 = vector.load %arg2[%c2_14, %c0_15, %c0_16] : memref<3x96x1024xbf16, #tpu.memory_space<vmem>>, vector<1x96x1024xbf16>
    %19 = vector.shape_cast %18 : vector<1x96x1024xbf16> to vector<96x1024xbf16>
    %cst_17 = arith.constant dense<0.000000e+00> : vector<32x1024xf32>
    %20 = tpu.matmul %17, %19, %cst_17 {dimension_numbers = #tpu.dot_dimension_numbers<[1], [0], [0], [1], [0, 0, 1, 1], [], []>} : vector<32x96xbf16>, vector<96x1024xbf16>, vector<32x1024xf32> -> vector<32x1024xf32>
    %21 = arith.addf %14, %20 : vector<32x1024xf32>
    %c0_18 = arith.constant 0 : index
    %c0_19 = arith.constant 0 : index
    %22 = vector.load %arg3[%c0_18, %c0_19] : memref<1x1024xf32, #tpu.memory_space<vmem>>, vector<1x1024xf32>
    %23 = vector.broadcast %22 : vector<1x1024xf32> to vector<32x1024xf32>
    %24 = arith.addf %21, %23 : vector<32x1024xf32>
    %cst_20 = arith.constant 0.000000e+00 : f32
    %25 = vector.broadcast %cst_20 : f32 to vector<32x1024xf32>
    %26 = arith.maximumf %24, %25 : vector<32x1024xf32>
    %27 = vector.extract_strided_slice %26 {offsets = [0, 0], sizes = [32, 512], strides = [1, 1]} : vector<32x1024xf32> to vector<32x512xf32>
    %28 = vector.extract_strided_slice %26 {offsets = [0, 512], sizes = [32, 512], strides = [1, 1]} : vector<32x1024xf32> to vector<32x512xf32>
    %29 = arith.maximumf %27, %28 : vector<32x512xf32>
    %30 = vector.shape_cast %29 : vector<32x512xf32> to vector<16x2x512xf32>
    %cst_21 = arith.constant dense<0xFF800000> : vector<16x512xf32>
    %31 = vector.multi_reduction <maximumf>, %30, %cst_21 [1] : vector<16x2x512xf32> to vector<16x512xf32>
    %cst_22 = arith.constant 0.000000e+00 : f32
    %32 = vector.broadcast %cst_22 : f32 to vector<1x512xf32>
    %c0_23 = arith.constant 0 : index
    %c0_24 = arith.constant 0 : index
    %c0_25 = arith.constant 0 : index
    %33 = vector.load %arg7[%c0_23, %c0_24, %c0_25] : memref<1x18x512xf32, #tpu.memory_space<vmem>>, vector<1x1x512xf32>
    %34 = vector.shape_cast %33 : vector<1x1x512xf32> to vector<1x512xf32>
    %35 = vector.shape_cast %32 : vector<1x512xf32> to vector<1x1x512xf32>
    tpu.vector_store %arg7[%c0_23, %c0_24, %c0_25], %35 {strides = array<i32>} : memref<1x18x512xf32, #tpu.memory_space<vmem>>, vector<1x1x512xf32>,
    %c0_26 = arith.constant 0 : index
    %c17 = arith.constant 17 : index
    %c0_27 = arith.constant 0 : index
    %36 = vector.load %arg7[%c0_26, %c17, %c0_27] : memref<1x18x512xf32, #tpu.memory_space<vmem>>, vector<1x1x512xf32>
    %37 = vector.shape_cast %36 : vector<1x1x512xf32> to vector<1x512xf32>
    %38 = vector.shape_cast %32 : vector<1x512xf32> to vector<1x1x512xf32>
    tpu.vector_store %arg7[%c0_26, %c17, %c0_27], %38 {strides = array<i32>} : memref<1x18x512xf32, #tpu.memory_space<vmem>>, vector<1x1x512xf32>,
    %39 = vector.shape_cast %31 : vector<16x512xf32> to vector<1x16x512xf32>
    %c0_28 = arith.constant 0 : index
    %c1_29 = arith.constant 1 : index
    %c0_30 = arith.constant 0 : index
    %40 = vector.load %arg7[%c0_28, %c1_29, %c0_30] : memref<1x18x512xf32, #tpu.memory_space<vmem>>, vector<1x16x512xf32>
    tpu.vector_store %arg7[%c0_28, %c1_29, %c0_30], %39 {strides = array<i32>} : memref<1x18x512xf32, #tpu.memory_space<vmem>>, vector<1x16x512xf32>,
    %cst_31 = arith.constant 0.000000e+00 : f32
    %41 = vector.broadcast %cst_31 : f32 to vector<16x1024xf32>
    %c0_32 = arith.constant 0 : index
    %c0_33 = arith.constant 0 : index
    %c0_34 = arith.constant 0 : index
    %42 = vector.load %arg7[%c0_32, %c0_33, %c0_34] : memref<1x18x512xf32, #tpu.memory_space<vmem>>, vector<1x16x512xf32>
    %43 = vector.shape_cast %42 : vector<1x16x512xf32> to vector<16x512xf32>
    %44 = arith.truncf %43 : vector<16x512xf32> to vector<16x512xbf16>
    %c0_35 = arith.constant 0 : index
    %c0_36 = arith.constant 0 : index
    %c0_37 = arith.constant 0 : index
    %45 = vector.load %arg4[%c0_35, %c0_36, %c0_37] : memref<3x512x1024xbf16, #tpu.memory_space<vmem>>, vector<1x512x1024xbf16>
    %46 = vector.shape_cast %45 : vector<1x512x1024xbf16> to vector<512x1024xbf16>
    %cst_38 = arith.constant dense<0.000000e+00> : vector<16x1024xf32>
    %47 = tpu.matmul %44, %46, %cst_38 {dimension_numbers = #tpu.dot_dimension_numbers<[1], [0], [0], [1], [0, 0, 1, 1], [], []>} : vector<16x512xbf16>, vector<512x1024xbf16>, vector<16x1024xf32> -> vector<16x1024xf32>
    %48 = arith.addf %41, %47 : vector<16x1024xf32>
    %c0_39 = arith.constant 0 : index
    %c1_40 = arith.constant 1 : index
    %c0_41 = arith.constant 0 : index
    %49 = vector.load %arg7[%c0_39, %c1_40, %c0_41] : memref<1x18x512xf32, #tpu.memory_space<vmem>>, vector<1x16x512xf32>
    %50 = vector.shape_cast %49 : vector<1x16x512xf32> to vector<16x512xf32>
    %51 = arith.truncf %50 : vector<16x512xf32> to vector<16x512xbf16>
    %c1_42 = arith.constant 1 : index
    %c0_43 = arith.constant 0 : index
    %c0_44 = arith.constant 0 : index
    %52 = vector.load %arg4[%c1_42, %c0_43, %c0_44] : memref<3x512x1024xbf16, #tpu.memory_space<vmem>>, vector<1x512x1024xbf16>
    %53 = vector.shape_cast %52 : vector<1x512x1024xbf16> to vector<512x1024xbf16>
    %cst_45 = arith.constant dense<0.000000e+00> : vector<16x1024xf32>
    %54 = tpu.matmul %51, %53, %cst_45 {dimension_numbers = #tpu.dot_dimension_numbers<[1], [0], [0], [1], [0, 0, 1, 1], [], []>} : vector<16x512xbf16>, vector<512x1024xbf16>, vector<16x1024xf32> -> vector<16x1024xf32>
    %55 = arith.addf %48, %54 : vector<16x1024xf32>
    %c0_46 = arith.constant 0 : index
    %c2_47 = arith.constant 2 : index
    %c0_48 = arith.constant 0 : index
    %56 = vector.load %arg7[%c0_46, %c2_47, %c0_48] : memref<1x18x512xf32, #tpu.memory_space<vmem>>, vector<1x16x512xf32>
    %57 = vector.shape_cast %56 : vector<1x16x512xf32> to vector<16x512xf32>
    %58 = arith.truncf %57 : vector<16x512xf32> to vector<16x512xbf16>
    %c2_49 = arith.constant 2 : index
    %c0_50 = arith.constant 0 : index
    %c0_51 = arith.constant 0 : index
    %59 = vector.load %arg4[%c2_49, %c0_50, %c0_51] : memref<3x512x1024xbf16, #tpu.memory_space<vmem>>, vector<1x512x1024xbf16>
    %60 = vector.shape_cast %59 : vector<1x512x1024xbf16> to vector<512x1024xbf16>
    %cst_52 = arith.constant dense<0.000000e+00> : vector<16x1024xf32>
    %61 = tpu.matmul %58, %60, %cst_52 {dimension_numbers = #tpu.dot_dimension_numbers<[1], [0], [0], [1], [0, 0, 1, 1], [], []>} : vector<16x512xbf16>, vector<512x1024xbf16>, vector<16x1024xf32> -> vector<16x1024xf32>
    %62 = arith.addf %55, %61 : vector<16x1024xf32>
    %c0_53 = arith.constant 0 : index
    %c0_54 = arith.constant 0 : index
    %63 = vector.load %arg5[%c0_53, %c0_54] : memref<1x1024xf32, #tpu.memory_space<vmem>>, vector<1x1024xf32>
    %64 = vector.broadcast %63 : vector<1x1024xf32> to vector<16x1024xf32>
    %65 = arith.addf %62, %64 : vector<16x1024xf32>
    %cst_55 = arith.constant 0.000000e+00 : f32
    %66 = vector.broadcast %cst_55 : f32 to vector<16x1024xf32>
    %67 = arith.maximumf %65, %66 : vector<16x1024xf32>
    %68 = vector.extract_strided_slice %67 {offsets = [0, 0], sizes = [16, 512], strides = [1, 1]} : vector<16x1024xf32> to vector<16x512xf32>
    %69 = vector.extract_strided_slice %67 {offsets = [0, 512], sizes = [16, 512], strides = [1, 1]} : vector<16x1024xf32> to vector<16x512xf32>
    %70 = arith.maximumf %68, %69 : vector<16x512xf32>
    %71 = vector.shape_cast %70 : vector<16x512xf32> to vector<8x2x512xf32>
    %cst_56 = arith.constant dense<0xFF800000> : vector<8x512xf32>
    %72 = vector.multi_reduction <maximumf>, %71, %cst_56 [1] : vector<8x2x512xf32> to vector<8x512xf32>
    %c0_57 = arith.constant 0 : index
    %c0_58 = arith.constant 0 : index
    %73 = vector.load %arg6[%c0_57, %c0_58] : memref<8x512xf32, #tpu.memory_space<vmem>>, vector<8x512xf32>
    tpu.vector_store %arg6[%c0_57, %c0_58], %72 {strides = array<i32>} : memref<8x512xf32, #tpu.memory_space<vmem>>, vector<8x512xf32>,
    return
  }
  func.func @transform_0(%arg0: i32) -> (i32, i32, i32) {
    %c0_i32 = arith.constant 0 : i32
    %c0_i32_0 = arith.constant 0 : i32
    %c0_i32_1 = arith.constant 0 : i32
    return %arg0, %c0_i32, %c0_i32_0 : i32, i32, i32
  }
  func.func @transform_1(%arg0: i32) -> (i32, i32, i32) {
    %c0_i32 = arith.constant 0 : i32
    %c0_i32_0 = arith.constant 0 : i32
    %c0_i32_1 = arith.constant 0 : i32
    %c0_i32_2 = arith.constant 0 : i32
    return %c0_i32, %c0_i32_0, %c0_i32_1 : i32, i32, i32
  }
  func.func @transform_2(%arg0: i32) -> (i32, i32) {
    %c0_i32 = arith.constant 0 : i32
    %c0_i32_0 = arith.constant 0 : i32
    %c0_i32_1 = arith.constant 0 : i32
    return %c0_i32, %c0_i32_0 : i32, i32
  }
  func.func @transform_3(%arg0: i32) -> (i32, i32, i32) {
    %c0_i32 = arith.constant 0 : i32
    %c0_i32_0 = arith.constant 0 : i32
    %c0_i32_1 = arith.constant 0 : i32
    %c0_i32_2 = arith.constant 0 : i32
    return %c0_i32, %c0_i32_0, %c0_i32_1 : i32, i32, i32
  }
  func.func @transform_4(%arg0: i32) -> (i32, i32) {
    %c0_i32 = arith.constant 0 : i32
    %c0_i32_0 = arith.constant 0 : i32
    %c0_i32_1 = arith.constant 0 : i32
    return %c0_i32, %c0_i32_0 : i32, i32
  }
  func.func @transform_5(%arg0: i32) -> (i32, i32) {
    %c0_i32 = arith.constant 0 : i32
    %c0_i32_0 = arith.constant 0 : i32
    return %arg0, %c0_i32 : i32, i32
  }
}

module attributes {stable_mosaic.version = 11 : i64} {
  func.func @_fc_fused_kernel(%arg0: i32, %arg1: memref<2x4096xf32, #tpu.memory_space<vmem>>, %arg2: memref<4096x256xbf16, #tpu.memory_space<vmem>>, %arg3: memref<1x256xf32, #tpu.memory_space<vmem>>, %arg4: memref<256x128xbf16, #tpu.memory_space<vmem>>, %arg5: memref<1x128xf32, #tpu.memory_space<vmem>>, %arg6: memref<2x128xf32, #tpu.memory_space<vmem>>) attributes {dimension_semantics = [#tpu.dimension_semantics<parallel>], iteration_bounds = array<i64: 1>, scalar_prefetch = 0 : i64, scratch_operands = 0 : i64, tpu.core_type = #tpu.core_type<tc>, window_params = [{transform_indices = @transform_0, window_bounds = array<i64: 2, 4096>}, {pipeline_mode = #tpu.pipeline_mode<synchronous>, transform_indices = @transform_1, window_bounds = array<i64: 4096, 256>}, {pipeline_mode = #tpu.pipeline_mode<synchronous>, transform_indices = @transform_2, window_bounds = array<i64: 1, 256>}, {pipeline_mode = #tpu.pipeline_mode<synchronous>, transform_indices = @transform_3, window_bounds = array<i64: 256, 128>}, {pipeline_mode = #tpu.pipeline_mode<synchronous>, transform_indices = @transform_4, window_bounds = array<i64: 1, 128>}, {transform_indices = @transform_5, window_bounds = array<i64: 2, 128>}]} {
    %c0 = arith.constant 0 : index
    %c0_0 = arith.constant 0 : index
    %0 = vector.load %arg1[%c0, %c0_0] : memref<2x4096xf32, #tpu.memory_space<vmem>>, vector<2x4096xf32>
    %1 = arith.truncf %0 : vector<2x4096xf32> to vector<2x4096xbf16>
    %c0_1 = arith.constant 0 : index
    %c0_2 = arith.constant 0 : index
    %2 = vector.load %arg2[%c0_1, %c0_2] : memref<4096x256xbf16, #tpu.memory_space<vmem>>, vector<4096x256xbf16>
    %cst = arith.constant dense<0.000000e+00> : vector<2x256xf32>
    %3 = tpu.matmul %1, %2, %cst {dimension_numbers = #tpu.dot_dimension_numbers<[1], [0], [0], [1], [0, 0, 1, 1], [], []>} : vector<2x4096xbf16>, vector<4096x256xbf16>, vector<2x256xf32> -> vector<2x256xf32>
    %c0_3 = arith.constant 0 : index
    %c0_4 = arith.constant 0 : index
    %4 = vector.load %arg3[%c0_3, %c0_4] : memref<1x256xf32, #tpu.memory_space<vmem>>, vector<1x256xf32>
    %5 = vector.broadcast %4 : vector<1x256xf32> to vector<2x256xf32>
    %6 = arith.addf %3, %5 : vector<2x256xf32>
    %cst_5 = arith.constant 0.000000e+00 : f32
    %7 = vector.broadcast %cst_5 : f32 to vector<2x256xf32>
    %8 = arith.maximumf %6, %7 : vector<2x256xf32>
    %9 = arith.truncf %8 : vector<2x256xf32> to vector<2x256xbf16>
    %c0_6 = arith.constant 0 : index
    %c0_7 = arith.constant 0 : index
    %10 = vector.load %arg4[%c0_6, %c0_7] : memref<256x128xbf16, #tpu.memory_space<vmem>>, vector<256x128xbf16>
    %cst_8 = arith.constant dense<0.000000e+00> : vector<2x128xf32>
    %11 = tpu.matmul %9, %10, %cst_8 {dimension_numbers = #tpu.dot_dimension_numbers<[1], [0], [0], [1], [0, 0, 1, 1], [], []>} : vector<2x256xbf16>, vector<256x128xbf16>, vector<2x128xf32> -> vector<2x128xf32>
    %c0_9 = arith.constant 0 : index
    %c0_10 = arith.constant 0 : index
    %12 = vector.load %arg5[%c0_9, %c0_10] : memref<1x128xf32, #tpu.memory_space<vmem>>, vector<1x128xf32>
    %13 = vector.broadcast %12 : vector<1x128xf32> to vector<2x128xf32>
    %14 = arith.addf %11, %13 : vector<2x128xf32>
    %c0_11 = arith.constant 0 : index
    %c0_12 = arith.constant 0 : index
    %15 = vector.load %arg6[%c0_11, %c0_12] : memref<2x128xf32, #tpu.memory_space<vmem>>, vector<2x128xf32>
    tpu.vector_store %arg6[%c0_11, %c0_12], %14 {strides = array<i32>} : memref<2x128xf32, #tpu.memory_space<vmem>>, vector<2x128xf32>,
    return
  }
  func.func @transform_0(%arg0: i32) -> (i32, i32) {
    %c0_i32 = arith.constant 0 : i32
    %c0_i32_0 = arith.constant 0 : i32
    return %arg0, %c0_i32 : i32, i32
  }
  func.func @transform_1(%arg0: i32) -> (i32, i32) {
    %c0_i32 = arith.constant 0 : i32
    %c0_i32_0 = arith.constant 0 : i32
    %c0_i32_1 = arith.constant 0 : i32
    return %c0_i32, %c0_i32_0 : i32, i32
  }
  func.func @transform_2(%arg0: i32) -> (i32, i32) {
    %c0_i32 = arith.constant 0 : i32
    %c0_i32_0 = arith.constant 0 : i32
    %c0_i32_1 = arith.constant 0 : i32
    return %c0_i32, %c0_i32_0 : i32, i32
  }
  func.func @transform_3(%arg0: i32) -> (i32, i32) {
    %c0_i32 = arith.constant 0 : i32
    %c0_i32_0 = arith.constant 0 : i32
    %c0_i32_1 = arith.constant 0 : i32
    return %c0_i32, %c0_i32_0 : i32, i32
  }
  func.func @transform_4(%arg0: i32) -> (i32, i32) {
    %c0_i32 = arith.constant 0 : i32
    %c0_i32_0 = arith.constant 0 : i32
    %c0_i32_1 = arith.constant 0 : i32
    return %c0_i32, %c0_i32_0 : i32, i32
  }
  func.func @transform_5(%arg0: i32) -> (i32, i32) {
    %c0_i32 = arith.constant 0 : i32
    %c0_i32_0 = arith.constant 0 : i32
    return %arg0, %c0_i32 : i32, i32
  }
}

</mosaic_0001>

<bundles_post_ra>
// kernel: simple_net_forward.3
= control target key start
LH: loop header
LB: loop body
LE: loop exit
PB: predicated region body
PF: predicated region fallthrough
CT: control target
= control target key end

     0   :  { %v5601_v36 = vmov 1983009808   ;;  %v42_v38 = vlaneseq  ;;  %s7402_s0 = inlined_call_operand.vmem [shape: f32[2,4096], index: 0, kind: input, shape index: {}]   ;;  %s7403_s1 = inlined_call_operand.vmem [shape: bf16[4096,256], index: 1, kind: input, shape index: {}]   ;;  %s7404_s2 = inlined_call_operand.vmem [shape: f32[1,256], index: 2, kind: input, shape index: {}]   ;;  %s7405_s3 = inlined_call_operand.vmem [shape: bf16[256,128], index: 3, kind: input, shape index: {}]   ;;  %s7406_s4 = inlined_call_operand.vmem [shape: f32[1,128], index: 4, kind: input, shape index: {}]   ;;  %s7407_s5 = inlined_call_operand.hbm [shape: f32[2,128], index: 5, kind: output, shape index: {}]  }
   0x1   :  { %v4785_v0 = vld [vmem:[%s7403_s1 + $0x4] ss:$8 sps:$4 sm:$0xff]   ;;  %v4789_v2 = vld [vmem:[%s7403_s1] ss:$8 sps:$4 sm:$0xff]   ;;  %v4791_v4 = vld [vmem:[%s7403_s1 + $0x14] ss:$8 sps:$4 sm:$0xff]   ;;  %v40_v37 = vunpack.c.l.s4 %v5601_v36 }
   0x2   :  { %v4787_v1 = vld [vmem:[%s7403_s1 + $0x804] ss:$8 sps:$4 sm:$0xff]   ;;  %3322 = vmatprep.subr.bf16.mxu1 %v4785_v0  ;;  %v4790_v3 = vld [vmem:[%s7403_s1 + $0x800] ss:$8 sps:$4 sm:$0xff]   ;;  %v4793_v5 = vld [vmem:[%s7403_s1 + $0x814] ss:$8 sps:$4 sm:$0xff]  }
   0x3   :  { %3650 = vmatprep.subr.bf16.mxu0 %v4787_v1  ;;  %3323 = vmatpush1.bf16.msra.mxu1 %v4789_v2  ;;  %v4795_v6 = vld [vmem:[%s7403_s1 + $0x10] ss:$8 sps:$4 sm:$0xff]   ;;  %v4797_v8 = vld [vmem:[%s7403_s1 + $0x24] ss:$8 sps:$4 sm:$0xff]   ;;  %v4801_v10 = vld [vmem:[%s7403_s1 + $0x20] ss:$8 sps:$4 sm:$0xff]   ;;  %v41_v42 = vunpack.c.0.s8 %v40_v37 }
   0x4   :  { %3651 = vmatpush1.bf16.msra.mxu0 %v4790_v3  ;;  %3324 = vmatprep.subr.bf16.mxu1 %v4791_v4  ;;  %v4796_v7 = vld [vmem:[%s7403_s1 + $0x810] ss:$8 sps:$4 sm:$0xff]   ;;  %v4799_v9 = vld [vmem:[%s7403_s1 + $0x824] ss:$8 sps:$4 sm:$0xff]   ;;  %v4802_v11 = vld [vmem:[%s7403_s1 + $0x820] ss:$8 sps:$4 sm:$0xff]  }
   0x5   :  { %3652 = vmatprep.subr.bf16.mxu0 %v4793_v5  ;;  %v4803_v12 = vld [vmem:[%s7403_s1 + $0x34] ss:$8 sps:$4 sm:$0xff]   ;;  %v4807_v14 = vld [vmem:[%s7403_s1 + $0x30] ss:$8 sps:$4 sm:$0xff]   ;;  %v4809_v16 = vld [vmem:[%s7403_s1 + $0x44] ss:$8 sps:$4 sm:$0xff]  }
   0x6   :  { %v4805_v13 = vld [vmem:[%s7403_s1 + $0x834] ss:$8 sps:$4 sm:$0xff]   ;;  %v4808_v15 = vld [vmem:[%s7403_s1 + $0x830] ss:$8 sps:$4 sm:$0xff]   ;;  %v4811_v17 = vld [vmem:[%s7403_s1 + $0x844] ss:$8 sps:$4 sm:$0xff]  }
   0x7   :  { %3325 = vmatpush1.bf16.msra.mxu1 %v4795_v6  ;;  %v4813_v18 = vld [vmem:[%s7403_s1 + $0x40] ss:$8 sps:$4 sm:$0xff]   ;;  %v4815_v20 = vld [vmem:[%s7403_s1 + $0x54] ss:$8 sps:$4 sm:$0xff]   ;;  %v4819_v22 = vld [vmem:[%s7403_s1 + $0x50] ss:$8 sps:$4 sm:$0xff]  }
   0x8   :  { %3653 = vmatpush1.bf16.msra.mxu0 %v4796_v7  ;;  %3326 = vmatprep.subr.bf16.mxu1 %v4797_v8  ;;  %v4814_v19 = vld [vmem:[%s7403_s1 + $0x840] ss:$8 sps:$4 sm:$0xff]   ;;  %v4817_v21 = vld [vmem:[%s7403_s1 + $0x854] ss:$8 sps:$4 sm:$0xff]   ;;  %v4820_v23 = vld [vmem:[%s7403_s1 + $0x850] ss:$8 sps:$4 sm:$0xff]  }
   0x9   :  { %3654 = vmatprep.subr.bf16.mxu0 %v4799_v9  ;;  %v4821_v24 = vld [vmem:[%s7403_s1 + $0x64] ss:$8 sps:$4 sm:$0xff]   ;;  %v4825_v26 = vld [vmem:[%s7403_s1 + $0x60] ss:$8 sps:$4 sm:$0xff]   ;;  %v4827_v28 = vld [vmem:[%s7403_s1 + $0x74] ss:$8 sps:$4 sm:$0xff]  }
   0xa   :  { %v4823_v25 = vld [vmem:[%s7403_s1 + $0x864] ss:$8 sps:$4 sm:$0xff]   ;;  %v4826_v27 = vld [vmem:[%s7403_s1 + $0x860] ss:$8 sps:$4 sm:$0xff]   ;;  %v4829_v29 = vld [vmem:[%s7403_s1 + $0x874] ss:$8 sps:$4 sm:$0xff]  }
   0xb   :  { %3327 = vmatpush1.bf16.msra.mxu1 %v4801_v10  ;;  %v4831_v30 = vld [vmem:[%s7403_s1 + $0x70] ss:$8 sps:$4 sm:$0xff]   ;;  %v4833_v32 = vld [vmem:[%s7403_s1 + $0x84] ss:$8 sps:$4 sm:$0xff]   ;;  %v4837_v34 = vld [vmem:[%s7403_s1 + $0x80] ss:$8 sps:$4 sm:$0xff]  }
   0xc   :  { %3655 = vmatpush1.bf16.msra.mxu0 %v4802_v11  ;;  %3328 = vmatprep.subr.bf16.mxu1 %v4803_v12  ;;  %v4832_v31 = vld [vmem:[%s7403_s1 + $0x870] ss:$8 sps:$4 sm:$0xff]   ;;  %v4835_v33 = vld [vmem:[%s7403_s1 + $0x884] ss:$8 sps:$4 sm:$0xff]   ;;  %v4838_v35 = vld [vmem:[%s7403_s1 + $0x880] ss:$8 sps:$4 sm:$0xff]  }
   0xd   :  { %3656 = vmatprep.subr.bf16.mxu0 %v4805_v13  ;;  %v4839_v39 = vld [vmem:[%s7403_s1 + $0x94] ss:$8 sps:$4 sm:$0xff]   ;;  %v4843_v41 = vld [vmem:[%s7403_s1 + $0x90] ss:$8 sps:$4 sm:$0xff]   ;;  %v5750_v43 = vshrl.u32 %v42_v38, 7  ;;  %v22_v52 = vld [vmem:[%s7402_s0] sm:$0xff] }
   0xe   :  { %v4841_v40 = vld [vmem:[%s7403_s1 + $0x894] ss:$8 sps:$4 sm:$0xff]   ;;  %v4844_v44 = vld [vmem:[%s7403_s1 + $0x890] ss:$8 sps:$4 sm:$0xff]   ;;  %v4845_v45 = vld [vmem:[%s7403_s1 + $0xa4] ss:$8 sps:$4 sm:$0xff]   ;;  %v38_v8 = vcombine.high %v22_v52, %v22_v52 }
   0xf   :  { %3329 = vmatpush1.bf16.msra.mxu1 %v4807_v14  ;;  %v4847_v46 = vld [vmem:[%s7403_s1 + $0x8a4] ss:$8 sps:$4 sm:$0xff]   ;;  %v4849_v47 = vld [vmem:[%s7403_s1 + $0xa0] ss:$8 sps:$4 sm:$0xff]   ;;  %v5768_v49 = vsub.s32 %v41_v42, %v5750_v43  ;;  %v4851_v50 = vld [vmem:[%s7403_s1 + $0xb4] ss:$8 sps:$4 sm:$0xff]  }
  0x10   :  { %3657 = vmatpush1.bf16.msra.mxu0 %v4808_v15  ;;  %3330 = vmatprep.subr.bf16.mxu1 %v4809_v16  ;;  %v4850_v48 = vld [vmem:[%s7403_s1 + $0x8a0] ss:$8 sps:$4 sm:$0xff]   ;;  %v4853_v51 = vld [vmem:[%s7403_s1 + $0x8b4] ss:$8 sps:$4 sm:$0xff]   ;;  %v4855_v53 = vld [vmem:[%s7403_s1 + $0xb0] ss:$8 sps:$4 sm:$0xff]  }
  0x11   :  { %3658 = vmatprep.subr.bf16.mxu0 %v4811_v17  ;;  %v5783_v54 = vrot.slane %v22_v52, %v5768_v49  ;;  %v4856_v55 = vld [vmem:[%s7403_s1 + $0x8b0] ss:$8 sps:$4 sm:$0xff]   ;;  %v26_v56 = vld [vmem:[%s7402_s0 + $0x20] sm:$0xff]  ;;  %v4863_v1 = vld [vmem:[%s7403_s1 + $0xd4] ss:$8 sps:$4 sm:$0xff]   ;;  %v5837_v14 = vrot.slane %v38_v8, %v5768_v49 }
  0x12   :  { %v4857_v57 = vld [vmem:[%s7403_s1 + $0xc4] ss:$8 sps:$4 sm:$0xff]   ;;  %v113_v60 = vrot.slane %v26_v56, %v5768_v49  ;;  %v4861_v63 = vld [vmem:[%s7403_s1 + $0xc0] ss:$8 sps:$4 sm:$0xff]   ;;  %v4865_v2 = vld [vmem:[%s7403_s1 + $0x8d4] ss:$8 sps:$4 sm:$0xff]   ;;  %v106_v9 = vcombine.high %v26_v56, %v26_v56 }
  0x13   :  { %3331 = vmatpush1.bf16.msra.mxu1 %v4813_v18  ;;  %v4859_v58 = vld [vmem:[%s7403_s1 + $0x8c4] ss:$8 sps:$4 sm:$0xff]   ;;  %v53_v59 = vcombine.high %v5783_v54, %v5783_v54  ;;  %v4862_v0 = vld [vmem:[%s7403_s1 + $0x8c0] ss:$8 sps:$4 sm:$0xff]   ;;  %v4867_v4 = vld [vmem:[%s7403_s1 + $0xd0] ss:$8 sps:$4 sm:$0xff]  }
  0x14   :  { %3659 = vmatpush1.bf16.msra.mxu0 %v4814_v19  ;;  %3332 = vmatprep.subr.bf16.mxu1 %v4815_v20  ;;  %v121_v62 = vcombine.high %v113_v60, %v113_v60  ;;  %v4868_v5 = vld [vmem:[%s7403_s1 + $0x8d0] ss:$8 sps:$4 sm:$0xff]   ;;  %v4869_v6 = vld [vmem:[%s7403_s1 + $0xe4] ss:$8 sps:$4 sm:$0xff]   ;;  %v4873_v10 = vld [vmem:[%s7403_s1 + $0xe0] ss:$8 sps:$4 sm:$0xff]   ;;  %v5840_v15 = vrot.slane %v106_v9, %v5768_v49  ;;  %v54_v20 = vcombine.high %v5837_v14, %v5837_v14 }
  0x15   :  { %3660 = vmatprep.subr.bf16.mxu0 %v4817_v21  ;;  %v207_v61 = vpack.c.bf16 %v53_v59, %v53_v59  ;;  %v4871_v7 = vld [vmem:[%s7403_s1 + $0x8e4] ss:$8 sps:$4 sm:$0xff]   ;;  %v4874_v11 = vld [vmem:[%s7403_s1 + $0x8e0] ss:$8 sps:$4 sm:$0xff]   ;;  %v4875_v12 = vld [vmem:[%s7403_s1 + $0xf4] ss:$8 sps:$4 sm:$0xff]  }
  0x16   :  { %v223_v3 = vpack.c.bf16 %v121_v62, %v121_v62  ;;  %v4877_v13 = vld [vmem:[%s7403_s1 + $0x8f4] ss:$8 sps:$4 sm:$0xff]   ;;  %v4879_v16 = vld [vmem:[%s7403_s1 + $0xf0] ss:$8 sps:$4 sm:$0xff]   ;;  %v4884_v18 = vld [vmem:[%s7403_s1 + $0x104] ss:$8 sps:$4 sm:$0xff]   ;;  %v122_v21 = vcombine.high %v5840_v15, %v5840_v15 }
  0x17   :  { %3333 = vmatpush1.bf16.msra.mxu1 %v4819_v22  ;;  %3354 = vmatprep.mubr.bf16.mxu1 %v207_v61  ;;  %v4880_v17 = vld [vmem:[%s7403_s1 + $0x8f0] ss:$8 sps:$4 sm:$0xff]   ;;  %v4888_v19 = vld [vmem:[%s7403_s1 + $0x904] ss:$8 sps:$4 sm:$0xff]   ;;  %v206_v22 = vpack.c.bf16 %v5783_v54, %v5783_v54  ;;  %v4903_v36 = vld [vmem:[%s7403_s1 + $0x134] ss:$8 sps:$4 sm:$0xff]  }
  0x18   :  { %3661 = vmatpush1.bf16.msra.mxu0 %v4820_v23  ;;  %3334 = vmatprep.subr.bf16.mxu1 %v4821_v24  ;;  %v222_v23 = vpack.c.bf16 %v113_v60, %v113_v60  ;;  %v4882_v24 = vld [vmem:[%s7403_s1 + $0x100] ss:$8 sps:$4 sm:$0xff]   ;;  %v4906_v37 = vld [vmem:[%s7403_s1 + $0x934] ss:$8 sps:$4 sm:$0xff]   ;;  %v4901_v38 = vld [vmem:[%s7403_s1 + $0x130] ss:$8 sps:$4 sm:$0xff]  }
  0x19   :  { %3662 = vmatprep.subr.bf16.mxu0 %v4823_v25  ;;  %3682 = vmatprep.mubr.bf16.mxu0 %v223_v3  ;;  %v4886_v25 = vld [vmem:[%s7403_s1 + $0x900] ss:$8 sps:$4 sm:$0xff]   ;;  %v4927_v54 = vld [vmem:[%s7403_s1 + $0x174] ss:$8 sps:$4 sm:$0xff]   ;;  %v4925_v56 = vld [vmem:[%s7403_s1 + $0x170] ss:$8 sps:$4 sm:$0xff]  }
  0x1a   :  { %v4907_v42 = vld [vmem:[%s7403_s1 + $0x140] ss:$8 sps:$4 sm:$0xff]   ;;  %v4936_v59 = vld [vmem:[%s7403_s1 + $0x984] ss:$8 sps:$4 sm:$0xff]   ;;  %v4939_v62 = vld [vmem:[%s7403_s1 + $0x194] ss:$8 sps:$4 sm:$0xff]  }
  0x1b   :  { %3335 = vmatpush1.bf16.msra.mxu1 %v4825_v26  ;;  %v4891_v26 = vld [vmem:[%s7403_s1 + $0x114] ss:$8 sps:$4 sm:$0xff]   ;;  %v4919_v52 = vld [vmem:[%s7403_s1 + $0x160] ss:$8 sps:$4 sm:$0xff]   ;;  %v4948_v3 = vld [vmem:[%s7403_s1 + $0x9a4] ss:$8 sps:$4 sm:$0xff]  }
  0x1c   :  { %3663 = vmatpush1.bf16.msra.mxu0 %v4826_v27  ;;  %3336 = vmatprep.subr.bf16.mxu1 %v4827_v28  ;;  %v4894_v27 = vld [vmem:[%s7403_s1 + $0x914] ss:$8 sps:$4 sm:$0xff]   ;;  %v209_v28 = vpack.c.bf16 %v54_v20, %v54_v20  ;;  %v4931_v60 = vld [vmem:[%s7403_s1 + $0x180] ss:$8 sps:$4 sm:$0xff]   ;;  %v4949_v8 = vld [vmem:[%s7403_s1 + $0x1b0] ss:$8 sps:$4 sm:$0xff]  }
  0x1d   :  { %3664 = vmatprep.subr.bf16.mxu0 %v4829_v29  ;;  %v225_v29 = vpack.c.bf16 %v122_v21, %v122_v21  ;;  %v4934_v61 = vld [vmem:[%s7403_s1 + $0x980] ss:$8 sps:$4 sm:$0xff]   ;;  %v4952_v9 = vld [vmem:[%s7403_s1 + $0x9b0] ss:$8 sps:$4 sm:$0xff]   ;;  %v4969_v20 = vld [vmem:[%s7403_s1 + $0x1e4] ss:$8 sps:$4 sm:$0xff]  }
  0x1e   :  { %v4972_v21 = vld [vmem:[%s7403_s1 + $0x9e4] ss:$8 sps:$4 sm:$0xff]  }
  0x1f   :  { %3337 = vmatpush1.bf16.msra.mxu1 %v4831_v30  ;;  %v4889_v30 = vld [vmem:[%s7403_s1 + $0x110] ss:$8 sps:$4 sm:$0xff]  }
  0x20   :  { %3665 = vmatpush1.bf16.msra.mxu0 %v4832_v31  ;;  %3338 = vmatprep.subr.bf16.mxu1 %v4833_v32  ;;  %v4892_v31 = vld [vmem:[%s7403_s1 + $0x910] ss:$8 sps:$4 sm:$0xff]   ;;  %v4897_v32 = vld [vmem:[%s7403_s1 + $0x124] ss:$8 sps:$4 sm:$0xff]  }
  0x21   :  { %3666 = vmatprep.subr.bf16.mxu0 %v4835_v33  ;;  %v4900_v33 = vld [vmem:[%s7403_s1 + $0x924] ss:$8 sps:$4 sm:$0xff]  }
  0x23   :  { %3339 = vmatpush1.bf16.msra.mxu1 %v4837_v34  ;;  %v4895_v34 = vld [vmem:[%s7403_s1 + $0x120] ss:$8 sps:$4 sm:$0xff]  }
  0x24   :  { %3667 = vmatpush1.bf16.msra.mxu0 %v4838_v35  ;;  %3340 = vmatprep.subr.bf16.mxu1 %v4839_v39  ;;  %v4898_v35 = vld [vmem:[%s7403_s1 + $0x920] ss:$8 sps:$4 sm:$0xff]   ;;  %v4904_v39 = vld [vmem:[%s7403_s1 + $0x930] ss:$8 sps:$4 sm:$0xff]  }
  0x25   :  { %3668 = vmatprep.subr.bf16.mxu0 %v4841_v40  ;;  %v4909_v40 = vld [vmem:[%s7403_s1 + $0x144] ss:$8 sps:$4 sm:$0xff]  }
  0x27   :  { %3341 = vmatpush1.bf16.msra.mxu1 %v4843_v41  ;;  %v4912_v41 = vld [vmem:[%s7403_s1 + $0x944] ss:$8 sps:$4 sm:$0xff]  }
  0x28   :  { %3669 = vmatpush1.bf16.msra.mxu0 %v4844_v44  ;;  %3342 = vmatprep.subr.bf16.mxu1 %v4845_v45  ;;  %v4910_v44 = vld [vmem:[%s7403_s1 + $0x940] ss:$8 sps:$4 sm:$0xff]   ;;  %v4915_v45 = vld [vmem:[%s7403_s1 + $0x154] ss:$8 sps:$4 sm:$0xff]  }
  0x29   :  { %3670 = vmatprep.subr.bf16.mxu0 %v4847_v46  ;;  %v4918_v46 = vld [vmem:[%s7403_s1 + $0x954] ss:$8 sps:$4 sm:$0xff]  }
  0x2b   :  { %3343 = vmatpush1.bf16.msra.mxu1 %v4849_v47  ;;  %v4913_v47 = vld [vmem:[%s7403_s1 + $0x150] ss:$8 sps:$4 sm:$0xff]  }
  0x2c   :  { %3671 = vmatpush1.bf16.msra.mxu0 %v4850_v48  ;;  %3344 = vmatprep.subr.bf16.mxu1 %v4851_v50  ;;  %v4916_v48 = vld [vmem:[%s7403_s1 + $0x950] ss:$8 sps:$4 sm:$0xff]   ;;  %v4921_v50 = vld [vmem:[%s7403_s1 + $0x164] ss:$8 sps:$4 sm:$0xff]  }
  0x2d   :  { %3672 = vmatprep.subr.bf16.mxu0 %v4853_v51  ;;  %v4924_v51 = vld [vmem:[%s7403_s1 + $0x964] ss:$8 sps:$4 sm:$0xff]  }
  0x2f   :  { %3345 = vmatpush1.bf16.msra.mxu1 %v4855_v53  ;;  %v4922_v53 = vld [vmem:[%s7403_s1 + $0x960] ss:$8 sps:$4 sm:$0xff]  }
  0x30   :  { %3673 = vmatpush1.bf16.msra.mxu0 %v4856_v55  ;;  %3346 = vmatprep.subr.bf16.mxu1 %v4857_v57  ;;  %v4930_v55 = vld [vmem:[%s7403_s1 + $0x974] ss:$8 sps:$4 sm:$0xff]   ;;  %v4928_v57 = vld [vmem:[%s7403_s1 + $0x970] ss:$8 sps:$4 sm:$0xff]  }
  0x31   :  { %3674 = vmatprep.subr.bf16.mxu0 %v4859_v58  ;;  %v4933_v58 = vld [vmem:[%s7403_s1 + $0x184] ss:$8 sps:$4 sm:$0xff]  }
  0x33   :  { %3347 = vmatpush1.bf16.msra.mxu1 %v4861_v63  ;;  %v4942_v63 = vld [vmem:[%s7403_s1 + $0x994] ss:$8 sps:$4 sm:$0xff]  }
  0x34   :  { %3675 = vmatpush1.bf16.msra.mxu0 %v4862_v0  ;;  %3348 = vmatprep.subr.bf16.mxu1 %v4863_v1  ;;  %v4937_v0 = vld [vmem:[%s7403_s1 + $0x190] ss:$8 sps:$4 sm:$0xff]  }
  0x35   :  { %3676 = vmatprep.subr.bf16.mxu0 %v4865_v2  ;;  %v4940_v1 = vld [vmem:[%s7403_s1 + $0x990] ss:$8 sps:$4 sm:$0xff]   ;;  %v4945_v2 = vld [vmem:[%s7403_s1 + $0x1a4] ss:$8 sps:$4 sm:$0xff]  }
  0x37   :  { %3349 = vmatpush1.bf16.msra.mxu1 %v4867_v4  ;;  %v4943_v4 = vld [vmem:[%s7403_s1 + $0x1a0] ss:$8 sps:$4 sm:$0xff]  }
  0x38   :  { %3677 = vmatpush1.bf16.msra.mxu0 %v4868_v5  ;;  %3350 = vmatprep.subr.bf16.mxu1 %v4869_v6  ;;  %v4946_v5 = vld [vmem:[%s7403_s1 + $0x9a0] ss:$8 sps:$4 sm:$0xff]   ;;  %v4951_v6 = vld [vmem:[%s7403_s1 + $0x1b4] ss:$8 sps:$4 sm:$0xff]  }
  0x39   :  { %3678 = vmatprep.subr.bf16.mxu0 %v4871_v7  ;;  %v4954_v7 = vld [vmem:[%s7403_s1 + $0x9b4] ss:$8 sps:$4 sm:$0xff]  }
  0x3b   :  { %3351 = vmatpush1.bf16.msra.mxu1 %v4873_v10  ;;  %v4957_v10 = vld [vmem:[%s7403_s1 + $0x1c4] ss:$8 sps:$4 sm:$0xff]  }
  0x3c   :  { %3679 = vmatpush1.bf16.msra.mxu0 %v4874_v11  ;;  %3352 = vmatprep.subr.bf16.mxu1 %v4875_v12  ;;  %v4960_v11 = vld [vmem:[%s7403_s1 + $0x9c4] ss:$8 sps:$4 sm:$0xff]   ;;  %v4955_v12 = vld [vmem:[%s7403_s1 + $0x1c0] ss:$8 sps:$4 sm:$0xff]  }
  0x3d   :  { %3680 = vmatprep.subr.bf16.mxu0 %v4877_v13  ;;  %v4958_v13 = vld [vmem:[%s7403_s1 + $0x9c0] ss:$8 sps:$4 sm:$0xff]  }
  0x3f   :  { %3353 = vmatpush1.bf16.msra.mxu1 %v4879_v16  ;;  %v4963_v16 = vld [vmem:[%s7403_s1 + $0x1d4] ss:$8 sps:$4 sm:$0xff]  }
  0x40   :  { %3681 = vmatpush1.bf16.msra.mxu0 %v4880_v17  ;;  %3363 = vmatprep.subr.bf16.mxu1 %v4884_v18  ;;  %v4966_v17 = vld [vmem:[%s7403_s1 + $0x9d4] ss:$8 sps:$4 sm:$0xff]   ;;  %v4961_v18 = vld [vmem:[%s7403_s1 + $0x1d0] ss:$8 sps:$4 sm:$0xff]  }
  0x41   :  { %3691 = vmatprep.subr.bf16.mxu0 %v4888_v19  ;;  %v4964_v19 = vld [vmem:[%s7403_s1 + $0x9d0] ss:$8 sps:$4 sm:$0xff]  }
  0x42   :  { %3355 = vmatmul.mubr.bf16.vlgmr.msra.gmra.mrb[0].mxu1 %v206_v22  ;;  %v4967_v22 = vld [vmem:[%s7403_s1 + $0x1e0] ss:$8 sps:$4 sm:$0xff]  }
  0x43   :  { %3683 = vmatmul.mubr.bf16.vlgmr.msra.gmra.mrb[0].mxu0 %v222_v23  ;;  %3364 = vmatpush1.bf16.msra.mxu1 %v4882_v24  ;;  %v4970_v23 = vld [vmem:[%s7403_s1 + $0x9e0] ss:$8 sps:$4 sm:$0xff]   ;;  %v4975_v24 = vld [vmem:[%s7403_s1 + $0x1f4] ss:$8 sps:$4 sm:$0xff]  }
  0x44   :  { %3692 = vmatpush1.bf16.msra.mxu0 %v4886_v25  ;;  %3365 = vmatprep.subr.bf16.mxu1 %v4891_v26  ;;  %v4978_v25 = vld [vmem:[%s7403_s1 + $0x9f4] ss:$8 sps:$4 sm:$0xff]   ;;  %v4973_v26 = vld [vmem:[%s7403_s1 + $0x1f0] ss:$8 sps:$4 sm:$0xff]  }
  0x45   :  { %3693 = vmatprep.subr.bf16.mxu0 %v4894_v27  ;;  %3395 = vmatprep.mubr.bf16.mxu1 %v209_v28  ;;  %v4976_v27 = vld [vmem:[%s7403_s1 + $0x9f0] ss:$8 sps:$4 sm:$0xff]   ;;  %v4981_v28 = vld [vmem:[%s7403_s1 + $0x204] ss:$8 sps:$4 sm:$0xff]  }
  0x46   :  { %3723 = vmatprep.mubr.bf16.mxu0 %v225_v29  ;;  %v4984_v29 = vld [vmem:[%s7403_s1 + $0xa04] ss:$8 sps:$4 sm:$0xff]  }
  0x47   :  { %3366 = vmatpush1.bf16.msra.mxu1 %v4889_v30  ;;  %v4979_v30 = vld [vmem:[%s7403_s1 + $0x200] ss:$8 sps:$4 sm:$0xff]  }
  0x48   :  { %3694 = vmatpush1.bf16.msra.mxu0 %v4892_v31  ;;  %3367 = vmatprep.subr.bf16.mxu1 %v4897_v32  ;;  %v208_v31 = vpack.c.bf16 %v5837_v14, %v5837_v14  ;;  %v224_v32 = vpack.c.bf16 %v5840_v15, %v5840_v15  ;;  %v4990_v14 = vld [vmem:[%s7403_s1 + $0xa14] ss:$8 sps:$4 sm:$0xff]  }
  0x49   :  { %3695 = vmatprep.subr.bf16.mxu0 %v4900_v33  ;;  %v4982_v33 = vld [vmem:[%s7403_s1 + $0xa00] ss:$8 sps:$4 sm:$0xff]  }
  0x4b   :  { %3368 = vmatpush1.bf16.msra.mxu1 %v4895_v34  ;;  %v4987_v34 = vld [vmem:[%s7403_s1 + $0x214] ss:$8 sps:$4 sm:$0xff]  }
  0x4c   :  { %3696 = vmatpush1.bf16.msra.mxu0 %v4898_v35  ;;  %3369 = vmatprep.subr.bf16.mxu1 %v4903_v36  ;;  %v6068_v35 = vld [vmem:[%s7402_s0 + $0x8] sm:$0xff] }
  0x4d   :  { %3697 = vmatprep.subr.bf16.mxu0 %v4906_v37  ;;  %v6075_v15 = vrot.slane %v6068_v35, %v5768_v49  ;;  %v6080_v36 = vld [vmem:[%s7402_s0 + $0x28] sm:$0xff]  ;;  %v4985_v37 = vld [vmem:[%s7403_s1 + $0x210] ss:$8 sps:$4 sm:$0xff]  }
  0x4f   :  { %3370 = vmatpush1.bf16.msra.mxu1 %v4901_v38  ;;  %v4988_v38 = vld [vmem:[%s7403_s1 + $0xa10] ss:$8 sps:$4 sm:$0xff]  }
  0x50   :  { %3698 = vmatpush1.bf16.msra.mxu0 %v4904_v39  ;;  %3371 = vmatprep.subr.bf16.mxu1 %v4909_v40  ;;  %v70_v39 = vcombine.high %v6075_v15, %v6075_v15  ;;  %v6092_v40 = vrot.slane %v6080_v36, %v5768_v49 }
  0x51   :  { %3699 = vmatprep.subr.bf16.mxu0 %v4912_v41  ;;  %v4993_v41 = vld [vmem:[%s7403_s1 + $0x224] ss:$8 sps:$4 sm:$0xff]  }
  0x53   :  { %3372 = vmatpush1.bf16.msra.mxu1 %v4907_v42  ;;  %v4996_v42 = vld [vmem:[%s7403_s1 + $0xa24] ss:$8 sps:$4 sm:$0xff]  }
  0x54   :  { %3700 = vmatpush1.bf16.msra.mxu0 %v4910_v44  ;;  %3373 = vmatprep.subr.bf16.mxu1 %v4915_v45  ;;  %v211_v44 = vpack.c.bf16 %v70_v39, %v70_v39  ;;  %v138_v45 = vcombine.high %v6092_v40, %v6092_v40  ;;  %v5071_v39 = vld [vmem:[%s7403_s1 + $0x2f4] ss:$8 sps:$4 sm:$0xff]  }
  0x55   :  { %3701 = vmatprep.subr.bf16.mxu0 %v4918_v46  ;;  %v4991_v46 = vld [vmem:[%s7403_s1 + $0x220] ss:$8 sps:$4 sm:$0xff]  }
  0x57   :  { %3374 = vmatpush1.bf16.msra.mxu1 %v4913_v47  ;;  %v4994_v47 = vld [vmem:[%s7403_s1 + $0xa20] ss:$8 sps:$4 sm:$0xff]  }
  0x58   :  { %3702 = vmatpush1.bf16.msra.mxu0 %v4916_v48  ;;  %3375 = vmatprep.subr.bf16.mxu1 %v4921_v50  ;;  %v227_v48 = vpack.c.bf16 %v138_v45, %v138_v45  ;;  %v4999_v50 = vld [vmem:[%s7403_s1 + $0x234] ss:$8 sps:$4 sm:$0xff]   ;;  %v5077_v45 = vld [vmem:[%s7403_s1 + $0x304] ss:$8 sps:$4 sm:$0xff]  }
  0x59   :  { %3703 = vmatprep.subr.bf16.mxu0 %v4924_v51  ;;  %v5002_v51 = vld [vmem:[%s7403_s1 + $0xa34] ss:$8 sps:$4 sm:$0xff]  }
  0x5b   :  { %3376 = vmatpush1.bf16.msra.mxu1 %v4919_v52  ;;  %v4997_v52 = vld [vmem:[%s7403_s1 + $0x230] ss:$8 sps:$4 sm:$0xff]  }
  0x5c   :  { %3704 = vmatpush1.bf16.msra.mxu0 %v4922_v53  ;;  %3377 = vmatprep.subr.bf16.mxu1 %v4927_v54  ;;  %v5000_v53 = vld [vmem:[%s7403_s1 + $0xa30] ss:$8 sps:$4 sm:$0xff]   ;;  %v5005_v54 = vld [vmem:[%s7403_s1 + $0x244] ss:$8 sps:$4 sm:$0xff]  }
  0x5d   :  { %3705 = vmatprep.subr.bf16.mxu0 %v4930_v55  ;;  %v5008_v55 = vld [vmem:[%s7403_s1 + $0xa44] ss:$8 sps:$4 sm:$0xff]  }
  0x5f   :  { %3378 = vmatpush1.bf16.msra.mxu1 %v4925_v56  ;;  %v5003_v56 = vld [vmem:[%s7403_s1 + $0x240] ss:$8 sps:$4 sm:$0xff]  }
  0x60   :  { %3706 = vmatpush1.bf16.msra.mxu0 %v4928_v57  ;;  %3379 = vmatprep.subr.bf16.mxu1 %v4933_v58  ;;  %v5006_v57 = vld [vmem:[%s7403_s1 + $0xa40] ss:$8 sps:$4 sm:$0xff]   ;;  %v5011_v58 = vld [vmem:[%s7403_s1 + $0x254] ss:$8 sps:$4 sm:$0xff]  }
  0x61   :  { %3707 = vmatprep.subr.bf16.mxu0 %v4936_v59  ;;  %v5014_v59 = vld [vmem:[%s7403_s1 + $0xa54] ss:$8 sps:$4 sm:$0xff]  }
  0x63   :  { %3380 = vmatpush1.bf16.msra.mxu1 %v4931_v60  ;;  %v5009_v60 = vld [vmem:[%s7403_s1 + $0x250] ss:$8 sps:$4 sm:$0xff]  }
  0x64   :  { %3708 = vmatpush1.bf16.msra.mxu0 %v4934_v61  ;;  %3381 = vmatprep.subr.bf16.mxu1 %v4939_v62  ;;  %v5012_v61 = vld [vmem:[%s7403_s1 + $0xa50] ss:$8 sps:$4 sm:$0xff]   ;;  %v5017_v62 = vld [vmem:[%s7403_s1 + $0x264] ss:$8 sps:$4 sm:$0xff]  }
  0x65   :  { %3709 = vmatprep.subr.bf16.mxu0 %v4942_v63  ;;  %v5020_v63 = vld [vmem:[%s7403_s1 + $0xa64] ss:$8 sps:$4 sm:$0xff]  }
  0x67   :  { %3382 = vmatpush1.bf16.msra.mxu1 %v4937_v0  ;;  %v5015_v0 = vld [vmem:[%s7403_s1 + $0x260] ss:$8 sps:$4 sm:$0xff]  }
  0x68   :  { %3710 = vmatpush1.bf16.msra.mxu0 %v4940_v1  ;;  %3383 = vmatprep.subr.bf16.mxu1 %v4945_v2  ;;  %v5018_v1 = vld [vmem:[%s7403_s1 + $0xa60] ss:$8 sps:$4 sm:$0xff]   ;;  %v5023_v2 = vld [vmem:[%s7403_s1 + $0x274] ss:$8 sps:$4 sm:$0xff]  }
  0x69   :  { %3711 = vmatprep.subr.bf16.mxu0 %v4948_v3  ;;  %v5026_v3 = vld [vmem:[%s7403_s1 + $0xa74] ss:$8 sps:$4 sm:$0xff]  }
  0x6b   :  { %3384 = vmatpush1.bf16.msra.mxu1 %v4943_v4  ;;  %v5021_v4 = vld [vmem:[%s7403_s1 + $0x270] ss:$8 sps:$4 sm:$0xff]  }
  0x6c   :  { %3712 = vmatpush1.bf16.msra.mxu0 %v4946_v5  ;;  %3385 = vmatprep.subr.bf16.mxu1 %v4951_v6  ;;  %v5024_v5 = vld [vmem:[%s7403_s1 + $0xa70] ss:$8 sps:$4 sm:$0xff]   ;;  %v5029_v6 = vld [vmem:[%s7403_s1 + $0x284] ss:$8 sps:$4 sm:$0xff]  }
  0x6d   :  { %3713 = vmatprep.subr.bf16.mxu0 %v4954_v7  ;;  %v5032_v7 = vld [vmem:[%s7403_s1 + $0xa84] ss:$8 sps:$4 sm:$0xff]  }
  0x6f   :  { %3386 = vmatpush1.bf16.msra.mxu1 %v4949_v8  ;;  %v5027_v8 = vld [vmem:[%s7403_s1 + $0x280] ss:$8 sps:$4 sm:$0xff]  }
  0x70   :  { %3714 = vmatpush1.bf16.msra.mxu0 %v4952_v9  ;;  %3387 = vmatprep.subr.bf16.mxu1 %v4957_v10  ;;  %v5030_v9 = vld [vmem:[%s7403_s1 + $0xa80] ss:$8 sps:$4 sm:$0xff]   ;;  %v5035_v10 = vld [vmem:[%s7403_s1 + $0x294] ss:$8 sps:$4 sm:$0xff]  }
  0x71   :  { %3715 = vmatprep.subr.bf16.mxu0 %v4960_v11  ;;  %v5038_v11 = vld [vmem:[%s7403_s1 + $0xa94] ss:$8 sps:$4 sm:$0xff]  }
  0x73   :  { %3388 = vmatpush1.bf16.msra.mxu1 %v4955_v12  ;;  %v5033_v12 = vld [vmem:[%s7403_s1 + $0x290] ss:$8 sps:$4 sm:$0xff]  }
  0x74   :  { %3716 = vmatpush1.bf16.msra.mxu0 %v4958_v13  ;;  %3389 = vmatprep.subr.bf16.mxu1 %v4963_v16  ;;  %v5036_v13 = vld [vmem:[%s7403_s1 + $0xa90] ss:$8 sps:$4 sm:$0xff]   ;;  %v5041_v16 = vld [vmem:[%s7403_s1 + $0x2a4] ss:$8 sps:$4 sm:$0xff]  }
  0x75   :  { %3717 = vmatprep.subr.bf16.mxu0 %v4966_v17  ;;  %v5044_v17 = vld [vmem:[%s7403_s1 + $0xaa4] ss:$8 sps:$4 sm:$0xff]  }
  0x77   :  { %3390 = vmatpush1.bf16.msra.mxu1 %v4961_v18  ;;  %v5039_v18 = vld [vmem:[%s7403_s1 + $0x2a0] ss:$8 sps:$4 sm:$0xff]  }
  0x78   :  { %3718 = vmatpush1.bf16.msra.mxu0 %v4964_v19  ;;  %3391 = vmatprep.subr.bf16.mxu1 %v4969_v20  ;;  %v5042_v19 = vld [vmem:[%s7403_s1 + $0xaa0] ss:$8 sps:$4 sm:$0xff]   ;;  %v5047_v20 = vld [vmem:[%s7403_s1 + $0x2b4] ss:$8 sps:$4 sm:$0xff]  }
  0x79   :  { %3719 = vmatprep.subr.bf16.mxu0 %v4972_v21  ;;  %v5050_v21 = vld [vmem:[%s7403_s1 + $0xab4] ss:$8 sps:$4 sm:$0xff]  }
  0x7b   :  { %3392 = vmatpush1.bf16.msra.mxu1 %v4967_v22  ;;  %v5045_v22 = vld [vmem:[%s7403_s1 + $0x2b0] ss:$8 sps:$4 sm:$0xff]  }
  0x7c   :  { %3720 = vmatpush1.bf16.msra.mxu0 %v4970_v23  ;;  %3393 = vmatprep.subr.bf16.mxu1 %v4975_v24  ;;  %v5048_v23 = vld [vmem:[%s7403_s1 + $0xab0] ss:$8 sps:$4 sm:$0xff]   ;;  %v5053_v24 = vld [vmem:[%s7403_s1 + $0x2c4] ss:$8 sps:$4 sm:$0xff]  }
  0x7d   :  { %3721 = vmatprep.subr.bf16.mxu0 %v4978_v25  ;;  %v5056_v25 = vld [vmem:[%s7403_s1 + $0xac4] ss:$8 sps:$4 sm:$0xff]  }
  0x7f   :  { %3394 = vmatpush1.bf16.msra.mxu1 %v4973_v26  ;;  %v5051_v26 = vld [vmem:[%s7403_s1 + $0x2c0] ss:$8 sps:$4 sm:$0xff]  }
  0x80   :  { %3722 = vmatpush1.bf16.msra.mxu0 %v4976_v27  ;;  %3404 = vmatprep.subr.bf16.mxu1 %v4981_v28  ;;  %v5054_v27 = vld [vmem:[%s7403_s1 + $0xac0] ss:$8 sps:$4 sm:$0xff]   ;;  %v5059_v28 = vld [vmem:[%s7403_s1 + $0x2d4] ss:$8 sps:$4 sm:$0xff]  }
  0x81   :  { %3732 = vmatprep.subr.bf16.mxu0 %v4984_v29  ;;  %v5062_v29 = vld [vmem:[%s7403_s1 + $0xad4] ss:$8 sps:$4 sm:$0xff]  }
  0x82   :  { %3396 = vmatmul.mubr.bf16.vlgmr.msra.gmra.mrb[0].mxu1 %v208_v31  ;;  %v5060_v31 = vld [vmem:[%s7403_s1 + $0xad0] ss:$8 sps:$4 sm:$0xff]  }
  0x83   :  { %3724 = vmatmul.mubr.bf16.vlgmr.msra.gmra.mrb[0].mxu0 %v224_v32  ;;  %3405 = vmatpush1.bf16.msra.mxu1 %v4979_v30  ;;  %v5057_v30 = vld [vmem:[%s7403_s1 + $0x2d0] ss:$8 sps:$4 sm:$0xff]   ;;  %v5065_v32 = vld [vmem:[%s7403_s1 + $0x2e4] ss:$8 sps:$4 sm:$0xff]  }
  0x84   :  { %3733 = vmatpush1.bf16.msra.mxu0 %v4982_v33  ;;  %3406 = vmatprep.subr.bf16.mxu1 %v4987_v34  ;;  %v5068_v33 = vld [vmem:[%s7403_s1 + $0xae4] ss:$8 sps:$4 sm:$0xff]   ;;  %v55_v34 = vcombine.high %v6068_v35, %v6068_v35  ;;  %v5074_v35 = vld [vmem:[%s7403_s1 + $0xaf4] ss:$8 sps:$4 sm:$0xff]  }
  0x85   :  { %3734 = vmatprep.subr.bf16.mxu0 %v4990_v14  ;;  %3436 = vmatprep.mubr.bf16.mxu1 %v211_v44  ;;  %v123_v14 = vcombine.high %v6080_v36, %v6080_v36  ;;  %v5072_v44 = vld [vmem:[%s7403_s1 + $0xaf0] ss:$8 sps:$4 sm:$0xff]  }
  0x86   :  { %3764 = vmatprep.mubr.bf16.mxu0 %v227_v48  ;;  %v6263_v36 = vrot.slane %v55_v34, %v5768_v49  ;;  %v5141_v34 = vld [vmem:[%s7403_s1 + $0x3b0] ss:$8 sps:$4 sm:$0xff]  }
  0x87   :  { %3407 = vmatpush1.bf16.msra.mxu1 %v4985_v37  ;;  %v5063_v37 = vld [vmem:[%s7403_s1 + $0x2e0] ss:$8 sps:$4 sm:$0xff]  }
  0x88   :  { %3735 = vmatpush1.bf16.msra.mxu0 %v4988_v38  ;;  %3408 = vmatprep.subr.bf16.mxu1 %v4993_v41  ;;  %v5066_v38 = vld [vmem:[%s7403_s1 + $0xae0] ss:$8 sps:$4 sm:$0xff]   ;;  %v6266_v41 = vrot.slane %v123_v14, %v5768_v49  ;;  %v5144_v14 = vld [vmem:[%s7403_s1 + $0xbb0] ss:$8 sps:$4 sm:$0xff]  }
  0x89   :  { %3736 = vmatprep.subr.bf16.mxu0 %v4996_v42  ;;  %v5069_v42 = vld [vmem:[%s7403_s1 + $0x2f0] ss:$8 sps:$4 sm:$0xff]  }
  0x8a   :  { %v139_v48 = vcombine.high %v6266_v41, %v6266_v41 }
  0x8b   :  { %3409 = vmatpush1.bf16.msra.mxu1 %v4991_v46  ;;  %v5080_v46 = vld [vmem:[%s7403_s1 + $0xb04] ss:$8 sps:$4 sm:$0xff]  }
  0x8c   :  { %3737 = vmatpush1.bf16.msra.mxu0 %v4994_v47  ;;  %3410 = vmatprep.subr.bf16.mxu1 %v4999_v50  ;;  %v71_v47 = vcombine.high %v6263_v36, %v6263_v36  ;;  %v5075_v50 = vld [vmem:[%s7403_s1 + $0x300] ss:$8 sps:$4 sm:$0xff]  }
  0x8d   :  { %3738 = vmatprep.subr.bf16.mxu0 %v5002_v51  ;;  %v5078_v51 = vld [vmem:[%s7403_s1 + $0xb00] ss:$8 sps:$4 sm:$0xff]  }
  0x8f   :  { %3411 = vmatpush1.bf16.msra.mxu1 %v4997_v52  ;;  %v210_v52 = vpack.c.bf16 %v6075_v15, %v6075_v15  ;;  %v5081_v15 = vld [vmem:[%s7403_s1 + $0x310] ss:$8 sps:$4 sm:$0xff]  }
  0x90   :  { %3739 = vmatpush1.bf16.msra.mxu0 %v5000_v53  ;;  %3412 = vmatprep.subr.bf16.mxu1 %v5005_v54  ;;  %v226_v53 = vpack.c.bf16 %v6092_v40, %v6092_v40  ;;  %v5083_v54 = vld [vmem:[%s7403_s1 + $0x314] ss:$8 sps:$4 sm:$0xff]   ;;  %v5084_v40 = vld [vmem:[%s7403_s1 + $0xb10] ss:$8 sps:$4 sm:$0xff]  }
  0x91   :  { %3740 = vmatprep.subr.bf16.mxu0 %v5008_v55  ;;  %v5086_v55 = vld [vmem:[%s7403_s1 + $0xb14] ss:$8 sps:$4 sm:$0xff]  }
  0x93   :  { %3413 = vmatpush1.bf16.msra.mxu1 %v5003_v56  ;;  %v213_v56 = vpack.c.bf16 %v71_v47, %v71_v47  ;;  %v5161_v47 = vld [vmem:[%s7403_s1 + $0x3e4] ss:$8 sps:$4 sm:$0xff]  }
  0x94   :  { %3741 = vmatpush1.bf16.msra.mxu0 %v5006_v57  ;;  %3414 = vmatprep.subr.bf16.mxu1 %v5011_v58  ;;  %v229_v57 = vpack.c.bf16 %v139_v48, %v139_v48  ;;  %v5089_v58 = vld [vmem:[%s7403_s1 + $0x324] ss:$8 sps:$4 sm:$0xff]  }
  0x95   :  { %3742 = vmatprep.subr.bf16.mxu0 %v5014_v59  ;;  %v5092_v59 = vld [vmem:[%s7403_s1 + $0xb24] ss:$8 sps:$4 sm:$0xff]  }
  0x96   :  { %v5164_v48 = vld [vmem:[%s7403_s1 + $0xbe4] ss:$8 sps:$4 sm:$0xff]  }
  0x97   :  { %3415 = vmatpush1.bf16.msra.mxu1 %v5009_v60  ;;  %v5087_v60 = vld [vmem:[%s7403_s1 + $0x320] ss:$8 sps:$4 sm:$0xff]  }
  0x98   :  { %3743 = vmatpush1.bf16.msra.mxu0 %v5012_v61  ;;  %3416 = vmatprep.subr.bf16.mxu1 %v5017_v62  ;;  %v5090_v61 = vld [vmem:[%s7403_s1 + $0xb20] ss:$8 sps:$4 sm:$0xff]   ;;  %v5095_v62 = vld [vmem:[%s7403_s1 + $0x334] ss:$8 sps:$4 sm:$0xff]  }
  0x99   :  { %3744 = vmatprep.subr.bf16.mxu0 %v5020_v63  ;;  %v5098_v63 = vld [vmem:[%s7403_s1 + $0xb34] ss:$8 sps:$4 sm:$0xff]  }
  0x9b   :  { %3417 = vmatpush1.bf16.msra.mxu1 %v5015_v0  ;;  %v5093_v0 = vld [vmem:[%s7403_s1 + $0x330] ss:$8 sps:$4 sm:$0xff]  }
  0x9c   :  { %3745 = vmatpush1.bf16.msra.mxu0 %v5018_v1  ;;  %3418 = vmatprep.subr.bf16.mxu1 %v5023_v2  ;;  %v5096_v1 = vld [vmem:[%s7403_s1 + $0xb30] ss:$8 sps:$4 sm:$0xff]   ;;  %v5101_v2 = vld [vmem:[%s7403_s1 + $0x344] ss:$8 sps:$4 sm:$0xff]  }
  0x9d   :  { %3746 = vmatprep.subr.bf16.mxu0 %v5026_v3  ;;  %v5104_v3 = vld [vmem:[%s7403_s1 + $0xb44] ss:$8 sps:$4 sm:$0xff]  }
  0x9f   :  { %3419 = vmatpush1.bf16.msra.mxu1 %v5021_v4  ;;  %v5099_v4 = vld [vmem:[%s7403_s1 + $0x340] ss:$8 sps:$4 sm:$0xff]  }
  0xa0   :  { %3747 = vmatpush1.bf16.msra.mxu0 %v5024_v5  ;;  %3420 = vmatprep.subr.bf16.mxu1 %v5029_v6  ;;  %v5102_v5 = vld [vmem:[%s7403_s1 + $0xb40] ss:$8 sps:$4 sm:$0xff]   ;;  %v5107_v6 = vld [vmem:[%s7403_s1 + $0x354] ss:$8 sps:$4 sm:$0xff]  }
  0xa1   :  { %3748 = vmatprep.subr.bf16.mxu0 %v5032_v7  ;;  %v5110_v7 = vld [vmem:[%s7403_s1 + $0xb54] ss:$8 sps:$4 sm:$0xff]  }
  0xa3   :  { %3421 = vmatpush1.bf16.msra.mxu1 %v5027_v8  ;;  %v5105_v8 = vld [vmem:[%s7403_s1 + $0x350] ss:$8 sps:$4 sm:$0xff]  }
  0xa4   :  { %3749 = vmatpush1.bf16.msra.mxu0 %v5030_v9  ;;  %3422 = vmatprep.subr.bf16.mxu1 %v5035_v10  ;;  %v5108_v9 = vld [vmem:[%s7403_s1 + $0xb50] ss:$8 sps:$4 sm:$0xff]   ;;  %v5113_v10 = vld [vmem:[%s7403_s1 + $0x364] ss:$8 sps:$4 sm:$0xff]  }
  0xa5   :  { %3750 = vmatprep.subr.bf16.mxu0 %v5038_v11  ;;  %v5116_v11 = vld [vmem:[%s7403_s1 + $0xb64] ss:$8 sps:$4 sm:$0xff]  }
  0xa7   :  { %3423 = vmatpush1.bf16.msra.mxu1 %v5033_v12  ;;  %v5111_v12 = vld [vmem:[%s7403_s1 + $0x360] ss:$8 sps:$4 sm:$0xff]  }
  0xa8   :  { %3751 = vmatpush1.bf16.msra.mxu0 %v5036_v13  ;;  %3424 = vmatprep.subr.bf16.mxu1 %v5041_v16  ;;  %v5114_v13 = vld [vmem:[%s7403_s1 + $0xb60] ss:$8 sps:$4 sm:$0xff]   ;;  %v5119_v16 = vld [vmem:[%s7403_s1 + $0x374] ss:$8 sps:$4 sm:$0xff]  }
  0xa9   :  { %3752 = vmatprep.subr.bf16.mxu0 %v5044_v17  ;;  %v5122_v17 = vld [vmem:[%s7403_s1 + $0xb74] ss:$8 sps:$4 sm:$0xff]  }
  0xab   :  { %3425 = vmatpush1.bf16.msra.mxu1 %v5039_v18  ;;  %v5117_v18 = vld [vmem:[%s7403_s1 + $0x370] ss:$8 sps:$4 sm:$0xff]  }
  0xac   :  { %3753 = vmatpush1.bf16.msra.mxu0 %v5042_v19  ;;  %3426 = vmatprep.subr.bf16.mxu1 %v5047_v20  ;;  %v5120_v19 = vld [vmem:[%s7403_s1 + $0xb70] ss:$8 sps:$4 sm:$0xff]   ;;  %v5125_v20 = vld [vmem:[%s7403_s1 + $0x384] ss:$8 sps:$4 sm:$0xff]  }
  0xad   :  { %3754 = vmatprep.subr.bf16.mxu0 %v5050_v21  ;;  %v5128_v21 = vld [vmem:[%s7403_s1 + $0xb84] ss:$8 sps:$4 sm:$0xff]  }
  0xaf   :  { %3427 = vmatpush1.bf16.msra.mxu1 %v5045_v22  ;;  %v5123_v22 = vld [vmem:[%s7403_s1 + $0x380] ss:$8 sps:$4 sm:$0xff]  }
  0xb0   :  { %3755 = vmatpush1.bf16.msra.mxu0 %v5048_v23  ;;  %3428 = vmatprep.subr.bf16.mxu1 %v5053_v24  ;;  %v5126_v23 = vld [vmem:[%s7403_s1 + $0xb80] ss:$8 sps:$4 sm:$0xff]   ;;  %v5131_v24 = vld [vmem:[%s7403_s1 + $0x394] ss:$8 sps:$4 sm:$0xff]  }
  0xb1   :  { %3756 = vmatprep.subr.bf16.mxu0 %v5056_v25  ;;  %v5134_v25 = vld [vmem:[%s7403_s1 + $0xb94] ss:$8 sps:$4 sm:$0xff]  }
  0xb3   :  { %3429 = vmatpush1.bf16.msra.mxu1 %v5051_v26  ;;  %v5129_v26 = vld [vmem:[%s7403_s1 + $0x390] ss:$8 sps:$4 sm:$0xff]  }
  0xb4   :  { %3757 = vmatpush1.bf16.msra.mxu0 %v5054_v27  ;;  %3430 = vmatprep.subr.bf16.mxu1 %v5059_v28  ;;  %v5132_v27 = vld [vmem:[%s7403_s1 + $0xb90] ss:$8 sps:$4 sm:$0xff]   ;;  %v5137_v28 = vld [vmem:[%s7403_s1 + $0x3a4] ss:$8 sps:$4 sm:$0xff]  }
  0xb5   :  { %3758 = vmatprep.subr.bf16.mxu0 %v5062_v29  ;;  %v5140_v29 = vld [vmem:[%s7403_s1 + $0xba4] ss:$8 sps:$4 sm:$0xff]  }
  0xb7   :  { %3431 = vmatpush1.bf16.msra.mxu1 %v5057_v30  ;;  %v5135_v30 = vld [vmem:[%s7403_s1 + $0x3a0] ss:$8 sps:$4 sm:$0xff]  }
  0xb8   :  { %3759 = vmatpush1.bf16.msra.mxu0 %v5060_v31  ;;  %3432 = vmatprep.subr.bf16.mxu1 %v5065_v32  ;;  %v5138_v31 = vld [vmem:[%s7403_s1 + $0xba0] ss:$8 sps:$4 sm:$0xff]   ;;  %v5143_v32 = vld [vmem:[%s7403_s1 + $0x3b4] ss:$8 sps:$4 sm:$0xff]  }
  0xb9   :  { %3760 = vmatprep.subr.bf16.mxu0 %v5068_v33  ;;  %v5146_v33 = vld [vmem:[%s7403_s1 + $0xbb4] ss:$8 sps:$4 sm:$0xff]  }
  0xbb   :  { %3433 = vmatpush1.bf16.msra.mxu1 %v5063_v37  ;;  %v5149_v37 = vld [vmem:[%s7403_s1 + $0x3c4] ss:$8 sps:$4 sm:$0xff]  }
  0xbc   :  { %3761 = vmatpush1.bf16.msra.mxu0 %v5066_v38  ;;  %3434 = vmatprep.subr.bf16.mxu1 %v5071_v39  ;;  %v5152_v38 = vld [vmem:[%s7403_s1 + $0xbc4] ss:$8 sps:$4 sm:$0xff]   ;;  %v5147_v39 = vld [vmem:[%s7403_s1 + $0x3c0] ss:$8 sps:$4 sm:$0xff]  }
  0xbd   :  { %3762 = vmatprep.subr.bf16.mxu0 %v5074_v35  ;;  %v5150_v35 = vld [vmem:[%s7403_s1 + $0xbc0] ss:$8 sps:$4 sm:$0xff]  }
  0xbf   :  { %3435 = vmatpush1.bf16.msra.mxu1 %v5069_v42  ;;  %v5155_v42 = vld [vmem:[%s7403_s1 + $0x3d4] ss:$8 sps:$4 sm:$0xff]  }
  0xc0   :  { %3763 = vmatpush1.bf16.msra.mxu0 %v5072_v44  ;;  %3445 = vmatprep.subr.bf16.mxu1 %v5077_v45  ;;  %v5158_v44 = vld [vmem:[%s7403_s1 + $0xbd4] ss:$8 sps:$4 sm:$0xff]   ;;  %v5153_v45 = vld [vmem:[%s7403_s1 + $0x3d0] ss:$8 sps:$4 sm:$0xff]  }
  0xc1   :  { %3773 = vmatprep.subr.bf16.mxu0 %v5080_v46  ;;  %v5156_v46 = vld [vmem:[%s7403_s1 + $0xbd0] ss:$8 sps:$4 sm:$0xff]  }
  0xc2   :  { %3437 = vmatmul.mubr.bf16.vlgmr.msra.gmra.mrb[0].mxu1 %v210_v52  ;;  %v5159_v52 = vld [vmem:[%s7403_s1 + $0x3e0] ss:$8 sps:$4 sm:$0xff]  }
  0xc3   :  { %3765 = vmatmul.mubr.bf16.vlgmr.msra.gmra.mrb[0].mxu0 %v226_v53  ;;  %3446 = vmatpush1.bf16.msra.mxu1 %v5075_v50  ;;  %v6459_v50 = vld [vmem:[%s7402_s0 + $0x10] sm:$0xff]  ;;  %v5162_v53 = vld [vmem:[%s7403_s1 + $0xbe0] ss:$8 sps:$4 sm:$0xff]  }
  0xc4   :  { %3774 = vmatpush1.bf16.msra.mxu0 %v5078_v51  ;;  %3447 = vmatprep.subr.bf16.mxu1 %v5083_v54  ;;  %v6464_v51 = vld [vmem:[%s7402_s0 + $0x30] sm:$0xff] }
  0xc5   :  { %3775 = vmatprep.subr.bf16.mxu0 %v5086_v55  ;;  %3477 = vmatprep.mubr.bf16.mxu1 %v213_v56  ;;  %v5167_v54 = vld [vmem:[%s7403_s1 + $0x3f4] ss:$8 sps:$4 sm:$0xff]   ;;  %v6480_v56 = vrot.slane %v6459_v50, %v5768_v49 }
  0xc6   :  { %3805 = vmatprep.mubr.bf16.mxu0 %v229_v57  ;;  %v5170_v55 = vld [vmem:[%s7403_s1 + $0xbf4] ss:$8 sps:$4 sm:$0xff]   ;;  %v6484_v57 = vrot.slane %v6464_v51, %v5768_v49 }
  0xc7   :  { %3448 = vmatpush1.bf16.msra.mxu1 %v5081_v15  ;;  %v5165_v15 = vld [vmem:[%s7403_s1 + $0x3f0] ss:$8 sps:$4 sm:$0xff]  }
  0xc8   :  { %3776 = vmatpush1.bf16.msra.mxu0 %v5084_v40  ;;  %3449 = vmatprep.subr.bf16.mxu1 %v5089_v58  ;;  %v5168_v40 = vld [vmem:[%s7403_s1 + $0xbf0] ss:$8 sps:$4 sm:$0xff]   ;;  %v5174_v58 = vld [vmem:[%s7403_s1 + $0x404] ss:$8 sps:$4 sm:$0xff]  }
  0xc9   :  { %3777 = vmatprep.subr.bf16.mxu0 %v5092_v59  ;;  %v5178_v59 = vld [vmem:[%s7403_s1 + $0xc04] ss:$8 sps:$4 sm:$0xff]  }
  0xcb   :  { %3450 = vmatpush1.bf16.msra.mxu1 %v5087_v60  ;;  %v87_v60 = vcombine.high %v6480_v56, %v6480_v56 }
  0xcc   :  { %3778 = vmatpush1.bf16.msra.mxu0 %v5090_v61  ;;  %3451 = vmatprep.subr.bf16.mxu1 %v5095_v62  ;;  %v155_v61 = vcombine.high %v6484_v57, %v6484_v57  ;;  %v212_v62 = vpack.c.bf16 %v6263_v36, %v6263_v36  ;;  %v5184_v36 = vld [vmem:[%s7403_s1 + $0xc14] ss:$8 sps:$4 sm:$0xff]  }
  0xcd   :  { %3779 = vmatprep.subr.bf16.mxu0 %v5098_v63  ;;  %v228_v63 = vpack.c.bf16 %v6266_v41, %v6266_v41  ;;  %v215_v41 = vpack.c.bf16 %v87_v60, %v87_v60  ;;  %v5251_v60 = vld [vmem:[%s7403_s1 + $0x4d0] ss:$8 sps:$4 sm:$0xff]  }
  0xcf   :  { %3452 = vmatpush1.bf16.msra.mxu1 %v5093_v0  ;;  %v5172_v0 = vld [vmem:[%s7403_s1 + $0x400] ss:$8 sps:$4 sm:$0xff]  }
  0xd0   :  { %3780 = vmatpush1.bf16.msra.mxu0 %v5096_v1  ;;  %3453 = vmatprep.subr.bf16.mxu1 %v5101_v2  ;;  %v5176_v1 = vld [vmem:[%s7403_s1 + $0xc00] ss:$8 sps:$4 sm:$0xff]   ;;  %v5181_v2 = vld [vmem:[%s7403_s1 + $0x414] ss:$8 sps:$4 sm:$0xff]  }
  0xd1   :  { %3781 = vmatprep.subr.bf16.mxu0 %v5104_v3  ;;  %v231_v3 = vpack.c.bf16 %v155_v61, %v155_v61  ;;  %v5254_v61 = vld [vmem:[%s7403_s1 + $0xcd0] ss:$8 sps:$4 sm:$0xff]  }
  0xd3   :  { %3454 = vmatpush1.bf16.msra.mxu1 %v5099_v4  ;;  %v5179_v4 = vld [vmem:[%s7403_s1 + $0x410] ss:$8 sps:$4 sm:$0xff]  }
  0xd4   :  { %3782 = vmatpush1.bf16.msra.mxu0 %v5102_v5  ;;  %3455 = vmatprep.subr.bf16.mxu1 %v5107_v6  ;;  %v5182_v5 = vld [vmem:[%s7403_s1 + $0xc10] ss:$8 sps:$4 sm:$0xff]   ;;  %v5187_v6 = vld [vmem:[%s7403_s1 + $0x424] ss:$8 sps:$4 sm:$0xff]  }
  0xd5   :  { %3783 = vmatprep.subr.bf16.mxu0 %v5110_v7  ;;  %v5190_v7 = vld [vmem:[%s7403_s1 + $0xc24] ss:$8 sps:$4 sm:$0xff]  }
  0xd7   :  { %3456 = vmatpush1.bf16.msra.mxu1 %v5105_v8  ;;  %v5185_v8 = vld [vmem:[%s7403_s1 + $0x420] ss:$8 sps:$4 sm:$0xff]  }
  0xd8   :  { %3784 = vmatpush1.bf16.msra.mxu0 %v5108_v9  ;;  %3457 = vmatprep.subr.bf16.mxu1 %v5113_v10  ;;  %v5188_v9 = vld [vmem:[%s7403_s1 + $0xc20] ss:$8 sps:$4 sm:$0xff]   ;;  %v5193_v10 = vld [vmem:[%s7403_s1 + $0x434] ss:$8 sps:$4 sm:$0xff]  }
  0xd9   :  { %3785 = vmatprep.subr.bf16.mxu0 %v5116_v11  ;;  %v5196_v11 = vld [vmem:[%s7403_s1 + $0xc34] ss:$8 sps:$4 sm:$0xff]  }
  0xdb   :  { %3458 = vmatpush1.bf16.msra.mxu1 %v5111_v12  ;;  %v5191_v12 = vld [vmem:[%s7403_s1 + $0x430] ss:$8 sps:$4 sm:$0xff]  }
  0xdc   :  { %3786 = vmatpush1.bf16.msra.mxu0 %v5114_v13  ;;  %3459 = vmatprep.subr.bf16.mxu1 %v5119_v16  ;;  %v5194_v13 = vld [vmem:[%s7403_s1 + $0xc30] ss:$8 sps:$4 sm:$0xff]   ;;  %v5199_v16 = vld [vmem:[%s7403_s1 + $0x444] ss:$8 sps:$4 sm:$0xff]  }
  0xdd   :  { %3787 = vmatprep.subr.bf16.mxu0 %v5122_v17  ;;  %v5202_v17 = vld [vmem:[%s7403_s1 + $0xc44] ss:$8 sps:$4 sm:$0xff]  }
  0xdf   :  { %3460 = vmatpush1.bf16.msra.mxu1 %v5117_v18  ;;  %v5197_v18 = vld [vmem:[%s7403_s1 + $0x440] ss:$8 sps:$4 sm:$0xff]  }
  0xe0   :  { %3788 = vmatpush1.bf16.msra.mxu0 %v5120_v19  ;;  %3461 = vmatprep.subr.bf16.mxu1 %v5125_v20  ;;  %v5200_v19 = vld [vmem:[%s7403_s1 + $0xc40] ss:$8 sps:$4 sm:$0xff]   ;;  %v5205_v20 = vld [vmem:[%s7403_s1 + $0x454] ss:$8 sps:$4 sm:$0xff]  }
  0xe1   :  { %3789 = vmatprep.subr.bf16.mxu0 %v5128_v21  ;;  %v5208_v21 = vld [vmem:[%s7403_s1 + $0xc54] ss:$8 sps:$4 sm:$0xff]  }
  0xe3   :  { %3462 = vmatpush1.bf16.msra.mxu1 %v5123_v22  ;;  %v5203_v22 = vld [vmem:[%s7403_s1 + $0x450] ss:$8 sps:$4 sm:$0xff]  }
  0xe4   :  { %3790 = vmatpush1.bf16.msra.mxu0 %v5126_v23  ;;  %3463 = vmatprep.subr.bf16.mxu1 %v5131_v24  ;;  %v5206_v23 = vld [vmem:[%s7403_s1 + $0xc50] ss:$8 sps:$4 sm:$0xff]   ;;  %v5211_v24 = vld [vmem:[%s7403_s1 + $0x464] ss:$8 sps:$4 sm:$0xff]  }
  0xe5   :  { %3791 = vmatprep.subr.bf16.mxu0 %v5134_v25  ;;  %v5214_v25 = vld [vmem:[%s7403_s1 + $0xc64] ss:$8 sps:$4 sm:$0xff]  }
  0xe7   :  { %3464 = vmatpush1.bf16.msra.mxu1 %v5129_v26  ;;  %v5209_v26 = vld [vmem:[%s7403_s1 + $0x460] ss:$8 sps:$4 sm:$0xff]  }
  0xe8   :  { %3792 = vmatpush1.bf16.msra.mxu0 %v5132_v27  ;;  %3465 = vmatprep.subr.bf16.mxu1 %v5137_v28  ;;  %v5212_v27 = vld [vmem:[%s7403_s1 + $0xc60] ss:$8 sps:$4 sm:$0xff]   ;;  %v5217_v28 = vld [vmem:[%s7403_s1 + $0x474] ss:$8 sps:$4 sm:$0xff]  }
  0xe9   :  { %3793 = vmatprep.subr.bf16.mxu0 %v5140_v29  ;;  %v5220_v29 = vld [vmem:[%s7403_s1 + $0xc74] ss:$8 sps:$4 sm:$0xff]  }
  0xeb   :  { %3466 = vmatpush1.bf16.msra.mxu1 %v5135_v30  ;;  %v5215_v30 = vld [vmem:[%s7403_s1 + $0x470] ss:$8 sps:$4 sm:$0xff]  }
  0xec   :  { %3794 = vmatpush1.bf16.msra.mxu0 %v5138_v31  ;;  %3467 = vmatprep.subr.bf16.mxu1 %v5143_v32  ;;  %v5218_v31 = vld [vmem:[%s7403_s1 + $0xc70] ss:$8 sps:$4 sm:$0xff]   ;;  %v5223_v32 = vld [vmem:[%s7403_s1 + $0x484] ss:$8 sps:$4 sm:$0xff]  }
  0xed   :  { %3795 = vmatprep.subr.bf16.mxu0 %v5146_v33  ;;  %v5226_v33 = vld [vmem:[%s7403_s1 + $0xc84] ss:$8 sps:$4 sm:$0xff]  }
  0xef   :  { %3468 = vmatpush1.bf16.msra.mxu1 %v5141_v34  ;;  %v5221_v34 = vld [vmem:[%s7403_s1 + $0x480] ss:$8 sps:$4 sm:$0xff]  }
  0xf0   :  { %3796 = vmatpush1.bf16.msra.mxu0 %v5144_v14  ;;  %3469 = vmatprep.subr.bf16.mxu1 %v5149_v37  ;;  %v5224_v14 = vld [vmem:[%s7403_s1 + $0xc80] ss:$8 sps:$4 sm:$0xff]   ;;  %v5229_v37 = vld [vmem:[%s7403_s1 + $0x494] ss:$8 sps:$4 sm:$0xff]  }
  0xf1   :  { %3797 = vmatprep.subr.bf16.mxu0 %v5152_v38  ;;  %v5232_v38 = vld [vmem:[%s7403_s1 + $0xc94] ss:$8 sps:$4 sm:$0xff]  }
  0xf3   :  { %3470 = vmatpush1.bf16.msra.mxu1 %v5147_v39  ;;  %v5227_v39 = vld [vmem:[%s7403_s1 + $0x490] ss:$8 sps:$4 sm:$0xff]  }
  0xf4   :  { %3798 = vmatpush1.bf16.msra.mxu0 %v5150_v35  ;;  %3471 = vmatprep.subr.bf16.mxu1 %v5155_v42  ;;  %v5230_v35 = vld [vmem:[%s7403_s1 + $0xc90] ss:$8 sps:$4 sm:$0xff]   ;;  %v5235_v42 = vld [vmem:[%s7403_s1 + $0x4a4] ss:$8 sps:$4 sm:$0xff]  }
  0xf5   :  { %3799 = vmatprep.subr.bf16.mxu0 %v5158_v44  ;;  %v5238_v44 = vld [vmem:[%s7403_s1 + $0xca4] ss:$8 sps:$4 sm:$0xff]  }
  0xf7   :  { %3472 = vmatpush1.bf16.msra.mxu1 %v5153_v45  ;;  %v5233_v45 = vld [vmem:[%s7403_s1 + $0x4a0] ss:$8 sps:$4 sm:$0xff]  }
  0xf8   :  { %3800 = vmatpush1.bf16.msra.mxu0 %v5156_v46  ;;  %3473 = vmatprep.subr.bf16.mxu1 %v5161_v47  ;;  %v5236_v46 = vld [vmem:[%s7403_s1 + $0xca0] ss:$8 sps:$4 sm:$0xff]   ;;  %v5241_v47 = vld [vmem:[%s7403_s1 + $0x4b4] ss:$8 sps:$4 sm:$0xff]  }
  0xf9   :  { %3801 = vmatprep.subr.bf16.mxu0 %v5164_v48  ;;  %v5244_v48 = vld [vmem:[%s7403_s1 + $0xcb4] ss:$8 sps:$4 sm:$0xff]  }
  0xfb   :  { %3474 = vmatpush1.bf16.msra.mxu1 %v5159_v52  ;;  %v5239_v52 = vld [vmem:[%s7403_s1 + $0x4b0] ss:$8 sps:$4 sm:$0xff]  }
  0xfc   :  { %3802 = vmatpush1.bf16.msra.mxu0 %v5162_v53  ;;  %3475 = vmatprep.subr.bf16.mxu1 %v5167_v54  ;;  %v5242_v53 = vld [vmem:[%s7403_s1 + $0xcb0] ss:$8 sps:$4 sm:$0xff]   ;;  %v5247_v54 = vld [vmem:[%s7403_s1 + $0x4c4] ss:$8 sps:$4 sm:$0xff]  }
  0xfd   :  { %3803 = vmatprep.subr.bf16.mxu0 %v5170_v55  ;;  %v5250_v55 = vld [vmem:[%s7403_s1 + $0xcc4] ss:$8 sps:$4 sm:$0xff]  }
  0xff   :  { %3476 = vmatpush1.bf16.msra.mxu1 %v5165_v15  ;;  %v5245_v15 = vld [vmem:[%s7403_s1 + $0x4c0] ss:$8 sps:$4 sm:$0xff]  }
 0x100   :  { %3804 = vmatpush1.bf16.msra.mxu0 %v5168_v40  ;;  %3486 = vmatprep.subr.bf16.mxu1 %v5174_v58  ;;  %v5248_v40 = vld [vmem:[%s7403_s1 + $0xcc0] ss:$8 sps:$4 sm:$0xff]   ;;  %v5253_v58 = vld [vmem:[%s7403_s1 + $0x4d4] ss:$8 sps:$4 sm:$0xff]  }
 0x101   :  { %3814 = vmatprep.subr.bf16.mxu0 %v5178_v59  ;;  %v5256_v59 = vld [vmem:[%s7403_s1 + $0xcd4] ss:$8 sps:$4 sm:$0xff]  }
 0x102   :  { %3478 = vmatmul.mubr.bf16.vlgmr.msra.gmra.mrb[0].mxu1 %v212_v62  ;;  %v5259_v62 = vld [vmem:[%s7403_s1 + $0x4e4] ss:$8 sps:$4 sm:$0xff]  }
 0x103   :  { %3806 = vmatmul.mubr.bf16.vlgmr.msra.gmra.mrb[0].mxu0 %v228_v63  ;;  %3487 = vmatpush1.bf16.msra.mxu1 %v5172_v0  ;;  %v5262_v63 = vld [vmem:[%s7403_s1 + $0xce4] ss:$8 sps:$4 sm:$0xff]   ;;  %v72_v0 = vcombine.high %v6459_v50, %v6459_v50  ;;  %v5268_v50 = vld [vmem:[%s7403_s1 + $0xcf4] ss:$8 sps:$4 sm:$0xff]  }
 0x104   :  { %3815 = vmatpush1.bf16.msra.mxu0 %v5176_v1  ;;  %3488 = vmatprep.subr.bf16.mxu1 %v5181_v2  ;;  %v140_v1 = vcombine.high %v6464_v51, %v6464_v51  ;;  %v5257_v2 = vld [vmem:[%s7403_s1 + $0x4e0] ss:$8 sps:$4 sm:$0xff]  }
 0x105   :  { %3816 = vmatprep.subr.bf16.mxu0 %v5184_v36  ;;  %3518 = vmatprep.mubr.bf16.mxu1 %v215_v41  ;;  %v5260_v36 = vld [vmem:[%s7403_s1 + $0xce0] ss:$8 sps:$4 sm:$0xff]   ;;  %v5265_v41 = vld [vmem:[%s7403_s1 + $0x4f4] ss:$8 sps:$4 sm:$0xff]   ;;  %v6691_v51 = vrot.slane %v72_v0, %v5768_v49 }
 0x106   :  { %3846 = vmatprep.mubr.bf16.mxu0 %v231_v3  ;;  %v6694_v3 = vrot.slane %v140_v1, %v5768_v49 }
 0x107   :  { %3489 = vmatpush1.bf16.msra.mxu1 %v5179_v4  ;;  %v5263_v4 = vld [vmem:[%s7403_s1 + $0x4f0] ss:$8 sps:$4 sm:$0xff]  }
 0x108   :  { %3817 = vmatpush1.bf16.msra.mxu0 %v5182_v5  ;;  %3490 = vmatprep.subr.bf16.mxu1 %v5187_v6  ;;  %v5266_v5 = vld [vmem:[%s7403_s1 + $0xcf0] ss:$8 sps:$4 sm:$0xff]   ;;  %v5271_v6 = vld [vmem:[%s7403_s1 + $0x504] ss:$8 sps:$4 sm:$0xff]  }
 0x109   :  { %3818 = vmatprep.subr.bf16.mxu0 %v5190_v7  ;;  %v5274_v7 = vld [vmem:[%s7403_s1 + $0xd04] ss:$8 sps:$4 sm:$0xff]  }
 0x10b   :  { %3491 = vmatpush1.bf16.msra.mxu1 %v5185_v8  ;;  %v88_v8 = vcombine.high %v6691_v51, %v6691_v51 }
 0x10c   :  { %3819 = vmatpush1.bf16.msra.mxu0 %v5188_v9  ;;  %3492 = vmatprep.subr.bf16.mxu1 %v5193_v10  ;;  %v156_v9 = vcombine.high %v6694_v3, %v6694_v3  ;;  %v214_v10 = vpack.c.bf16 %v6480_v56, %v6480_v56  ;;  %v5280_v56 = vld [vmem:[%s7403_s1 + $0xd14] ss:$8 sps:$4 sm:$0xff]  }
 0x10d   :  { %3820 = vmatprep.subr.bf16.mxu0 %v5196_v11  ;;  %v230_v11 = vpack.c.bf16 %v6484_v57, %v6484_v57  ;;  %v217_v57 = vpack.c.bf16 %v88_v8, %v88_v8 }
 0x10f   :  { %3493 = vmatpush1.bf16.msra.mxu1 %v5191_v12  ;;  %v5269_v12 = vld [vmem:[%s7403_s1 + $0x500] ss:$8 sps:$4 sm:$0xff]  }
 0x110   :  { %3821 = vmatpush1.bf16.msra.mxu0 %v5194_v13  ;;  %3494 = vmatprep.subr.bf16.mxu1 %v5199_v16  ;;  %v5272_v13 = vld [vmem:[%s7403_s1 + $0xd00] ss:$8 sps:$4 sm:$0xff]   ;;  %v5277_v16 = vld [vmem:[%s7403_s1 + $0x514] ss:$8 sps:$4 sm:$0xff]  }
 0x111   :  { %3822 = vmatprep.subr.bf16.mxu0 %v5202_v17  ;;  %v233_v17 = vpack.c.bf16 %v156_v9, %v156_v9 }
 0x113   :  { %3495 = vmatpush1.bf16.msra.mxu1 %v5197_v18  ;;  %v5275_v18 = vld [vmem:[%s7403_s1 + $0x510] ss:$8 sps:$4 sm:$0xff]  }
 0x114   :  { %3823 = vmatpush1.bf16.msra.mxu0 %v5200_v19  ;;  %3496 = vmatprep.subr.bf16.mxu1 %v5205_v20  ;;  %v5278_v19 = vld [vmem:[%s7403_s1 + $0xd10] ss:$8 sps:$4 sm:$0xff]   ;;  %v5283_v20 = vld [vmem:[%s7403_s1 + $0x524] ss:$8 sps:$4 sm:$0xff]  }
 0x115   :  { %3824 = vmatprep.subr.bf16.mxu0 %v5208_v21  ;;  %v5286_v21 = vld [vmem:[%s7403_s1 + $0xd24] ss:$8 sps:$4 sm:$0xff]  }
 0x117   :  { %3497 = vmatpush1.bf16.msra.mxu1 %v5203_v22  ;;  %v5281_v22 = vld [vmem:[%s7403_s1 + $0x520] ss:$8 sps:$4 sm:$0xff]  }
 0x118   :  { %3825 = vmatpush1.bf16.msra.mxu0 %v5206_v23  ;;  %3498 = vmatprep.subr.bf16.mxu1 %v5211_v24  ;;  %v5284_v23 = vld [vmem:[%s7403_s1 + $0xd20] ss:$8 sps:$4 sm:$0xff]   ;;  %v5289_v24 = vld [vmem:[%s7403_s1 + $0x534] ss:$8 sps:$4 sm:$0xff]  }
 0x119   :  { %3826 = vmatprep.subr.bf16.mxu0 %v5214_v25  ;;  %v5292_v25 = vld [vmem:[%s7403_s1 + $0xd34] ss:$8 sps:$4 sm:$0xff]  }
 0x11b   :  { %3499 = vmatpush1.bf16.msra.mxu1 %v5209_v26  ;;  %v5287_v26 = vld [vmem:[%s7403_s1 + $0x530] ss:$8 sps:$4 sm:$0xff]  }
 0x11c   :  { %3827 = vmatpush1.bf16.msra.mxu0 %v5212_v27  ;;  %3500 = vmatprep.subr.bf16.mxu1 %v5217_v28  ;;  %v5290_v27 = vld [vmem:[%s7403_s1 + $0xd30] ss:$8 sps:$4 sm:$0xff]   ;;  %v5295_v28 = vld [vmem:[%s7403_s1 + $0x544] ss:$8 sps:$4 sm:$0xff]  }
 0x11d   :  { %3828 = vmatprep.subr.bf16.mxu0 %v5220_v29  ;;  %v5298_v29 = vld [vmem:[%s7403_s1 + $0xd44] ss:$8 sps:$4 sm:$0xff]  }
 0x11f   :  { %3501 = vmatpush1.bf16.msra.mxu1 %v5215_v30  ;;  %v5293_v30 = vld [vmem:[%s7403_s1 + $0x540] ss:$8 sps:$4 sm:$0xff]  }
 0x120   :  { %3829 = vmatpush1.bf16.msra.mxu0 %v5218_v31  ;;  %3502 = vmatprep.subr.bf16.mxu1 %v5223_v32  ;;  %v5296_v31 = vld [vmem:[%s7403_s1 + $0xd40] ss:$8 sps:$4 sm:$0xff]   ;;  %v5301_v32 = vld [vmem:[%s7403_s1 + $0x554] ss:$8 sps:$4 sm:$0xff]  }
 0x121   :  { %3830 = vmatprep.subr.bf16.mxu0 %v5226_v33  ;;  %v5304_v33 = vld [vmem:[%s7403_s1 + $0xd54] ss:$8 sps:$4 sm:$0xff]  }
 0x123   :  { %3503 = vmatpush1.bf16.msra.mxu1 %v5221_v34  ;;  %v5299_v34 = vld [vmem:[%s7403_s1 + $0x550] ss:$8 sps:$4 sm:$0xff]  }
 0x124   :  { %3831 = vmatpush1.bf16.msra.mxu0 %v5224_v14  ;;  %3504 = vmatprep.subr.bf16.mxu1 %v5229_v37  ;;  %v5302_v14 = vld [vmem:[%s7403_s1 + $0xd50] ss:$8 sps:$4 sm:$0xff]  }
 0x125   :  { %3832 = vmatprep.subr.bf16.mxu0 %v5232_v38 }
 0x127   :  { %3505 = vmatpush1.bf16.msra.mxu1 %v5227_v39 }
 0x128   :  { %3833 = vmatpush1.bf16.msra.mxu0 %v5230_v35  ;;  %3506 = vmatprep.subr.bf16.mxu1 %v5235_v42 }
 0x129   :  { %3834 = vmatprep.subr.bf16.mxu0 %v5238_v44 }
 0x12b   :  { %3507 = vmatpush1.bf16.msra.mxu1 %v5233_v45 }
 0x12c   :  { %3835 = vmatpush1.bf16.msra.mxu0 %v5236_v46  ;;  %3508 = vmatprep.subr.bf16.mxu1 %v5241_v47 }
 0x12d   :  { %3836 = vmatprep.subr.bf16.mxu0 %v5244_v48 }
 0x12f   :  { %3509 = vmatpush1.bf16.msra.mxu1 %v5239_v52 }
 0x130   :  { %3837 = vmatpush1.bf16.msra.mxu0 %v5242_v53  ;;  %3510 = vmatprep.subr.bf16.mxu1 %v5247_v54 }
 0x131   :  { %3838 = vmatprep.subr.bf16.mxu0 %v5250_v55 }
 0x133   :  { %3511 = vmatpush1.bf16.msra.mxu1 %v5245_v15 }
 0x134   :  { %3839 = vmatpush1.bf16.msra.mxu0 %v5248_v40  ;;  %3512 = vmatprep.subr.bf16.mxu1 %v5253_v58 }
 0x135   :  { %3840 = vmatprep.subr.bf16.mxu0 %v5256_v59 }
 0x137   :  { %3513 = vmatpush1.bf16.msra.mxu1 %v5251_v60 }
 0x138   :  { %3841 = vmatpush1.bf16.msra.mxu0 %v5254_v61  ;;  %3514 = vmatprep.subr.bf16.mxu1 %v5259_v62 }
 0x139   :  { %3842 = vmatprep.subr.bf16.mxu0 %v5262_v63 }
 0x13b   :  { %3515 = vmatpush1.bf16.msra.mxu1 %v5257_v2 }
 0x13c   :  { %3843 = vmatpush1.bf16.msra.mxu0 %v5260_v36  ;;  %3516 = vmatprep.subr.bf16.mxu1 %v5265_v41 }
 0x13d   :  { %3844 = vmatprep.subr.bf16.mxu0 %v5268_v50 }
 0x13f   :  { %3517 = vmatpush1.bf16.msra.mxu1 %v5263_v4 }
 0x140   :  { %3845 = vmatpush1.bf16.msra.mxu0 %v5266_v5  ;;  %3527 = vmatprep.subr.bf16.mxu1 %v5271_v6 }
 0x141   :  { %3855 = vmatprep.subr.bf16.mxu0 %v5274_v7 }
 0x142   :  { %3519 = vmatmul.mubr.bf16.vlgmr.msra.gmra.mrb[0].mxu1 %v214_v10 }
 0x143   :  { %3847 = vmatmul.mubr.bf16.vlgmr.msra.gmra.mrb[0].mxu0 %v230_v11  ;;  %3528 = vmatpush1.bf16.msra.mxu1 %v5269_v12 }
 0x144   :  { %3856 = vmatpush1.bf16.msra.mxu0 %v5272_v13  ;;  %3529 = vmatprep.subr.bf16.mxu1 %v5277_v16 }
 0x145   :  { %3857 = vmatprep.subr.bf16.mxu0 %v5280_v56  ;;  %3559 = vmatprep.mubr.bf16.mxu1 %v217_v57 }
 0x146   :  { %3887 = vmatprep.mubr.bf16.mxu0 %v233_v17 }
 0x147   :  { %3530 = vmatpush1.bf16.msra.mxu1 %v5275_v18 }
 0x148   :  { %3858 = vmatpush1.bf16.msra.mxu0 %v5278_v19  ;;  %3531 = vmatprep.subr.bf16.mxu1 %v5283_v20 }
 0x149   :  { %3859 = vmatprep.subr.bf16.mxu0 %v5286_v21 }
 0x14b   :  { %3532 = vmatpush1.bf16.msra.mxu1 %v5281_v22 }
 0x14c   :  { %3860 = vmatpush1.bf16.msra.mxu0 %v5284_v23  ;;  %3533 = vmatprep.subr.bf16.mxu1 %v5289_v24 }
 0x14d   :  { %3861 = vmatprep.subr.bf16.mxu0 %v5292_v25 }
 0x14f   :  { %3534 = vmatpush1.bf16.msra.mxu1 %v5287_v26 }
 0x150   :  { %3862 = vmatpush1.bf16.msra.mxu0 %v5290_v27  ;;  %3535 = vmatprep.subr.bf16.mxu1 %v5295_v28 }
 0x151   :  { %3863 = vmatprep.subr.bf16.mxu0 %v5298_v29 }
 0x153   :  { %3536 = vmatpush1.bf16.msra.mxu1 %v5293_v30 }
 0x154   :  { %3864 = vmatpush1.bf16.msra.mxu0 %v5296_v31 }
 0x155   :  { %10 = vsyncpa [#allocation3], 0  ;;  %3537 = vmatprep.subr.bf16.mxu1 %v5301_v32  ;;  %3865 = vmatprep.subr.bf16.mxu0 %v5304_v33  ;;  %v5307_v37 = vld [vmem:[%s7403_s1 + $0x564] ss:$8 sps:$4 sm:$0xff]   ;;  %v5305_v39 = vld [vmem:[%s7403_s1 + $0x560] ss:$8 sps:$4 sm:$0xff]   ;;  %v216_v24 = vpack.c.bf16 %v6691_v51, %v6691_v51  ;;  %v232_v25 = vpack.c.bf16 %v6694_v3, %v6694_v3 }
 0x156   :  { %v5310_v38 = vld [vmem:[%s7403_s1 + $0xd64] ss:$8 sps:$4 sm:$0xff]   ;;  %v5308_v35 = vld [vmem:[%s7403_s1 + $0xd60] ss:$8 sps:$4 sm:$0xff]   ;;  %v5313_v42 = vld [vmem:[%s7403_s1 + $0x574] ss:$8 sps:$4 sm:$0xff]  }
 0x157   :  { %3538 = vmatpush1.bf16.msra.mxu1 %v5299_v34  ;;  %v5316_v44 = vld [vmem:[%s7403_s1 + $0xd74] ss:$8 sps:$4 sm:$0xff]   ;;  %v5311_v45 = vld [vmem:[%s7403_s1 + $0x570] ss:$8 sps:$4 sm:$0xff]   ;;  %v5319_v47 = vld [vmem:[%s7403_s1 + $0x584] ss:$8 sps:$4 sm:$0xff]  }
 0x158   :  { %3866 = vmatpush1.bf16.msra.mxu0 %v5302_v14  ;;  %3539 = vmatprep.subr.bf16.mxu1 %v5307_v37  ;;  %v5314_v46 = vld [vmem:[%s7403_s1 + $0xd70] ss:$8 sps:$4 sm:$0xff]   ;;  %v5322_v48 = vld [vmem:[%s7403_s1 + $0xd84] ss:$8 sps:$4 sm:$0xff]   ;;  %v5317_v52 = vld [vmem:[%s7403_s1 + $0x580] ss:$8 sps:$4 sm:$0xff]  }
 0x159   :  { %3867 = vmatprep.subr.bf16.mxu0 %v5310_v38  ;;  %v5320_v53 = vld [vmem:[%s7403_s1 + $0xd80] ss:$8 sps:$4 sm:$0xff]   ;;  %v5325_v54 = vld [vmem:[%s7403_s1 + $0x594] ss:$8 sps:$4 sm:$0xff]   ;;  %v5323_v15 = vld [vmem:[%s7403_s1 + $0x590] ss:$8 sps:$4 sm:$0xff]  }
 0x15a   :  { %v5328_v55 = vld [vmem:[%s7403_s1 + $0xd94] ss:$8 sps:$4 sm:$0xff]   ;;  %v5326_v40 = vld [vmem:[%s7403_s1 + $0xd90] ss:$8 sps:$4 sm:$0xff]   ;;  %v5331_v58 = vld [vmem:[%s7403_s1 + $0x5a4] ss:$8 sps:$4 sm:$0xff]  }
 0x15b   :  { %3540 = vmatpush1.bf16.msra.mxu1 %v5305_v39  ;;  %v5334_v59 = vld [vmem:[%s7403_s1 + $0xda4] ss:$8 sps:$4 sm:$0xff]   ;;  %v5329_v60 = vld [vmem:[%s7403_s1 + $0x5a0] ss:$8 sps:$4 sm:$0xff]   ;;  %v5337_v62 = vld [vmem:[%s7403_s1 + $0x5b4] ss:$8 sps:$4 sm:$0xff]  }
 0x15c   :  { %3868 = vmatpush1.bf16.msra.mxu0 %v5308_v35  ;;  %3541 = vmatprep.subr.bf16.mxu1 %v5313_v42  ;;  %v5332_v61 = vld [vmem:[%s7403_s1 + $0xda0] ss:$8 sps:$4 sm:$0xff]   ;;  %v5340_v63 = vld [vmem:[%s7403_s1 + $0xdb4] ss:$8 sps:$4 sm:$0xff]   ;;  %v5335_v0 = vld [vmem:[%s7403_s1 + $0x5b0] ss:$8 sps:$4 sm:$0xff]  }
 0x15d   :  { %3869 = vmatprep.subr.bf16.mxu0 %v5316_v44  ;;  %v5338_v1 = vld [vmem:[%s7403_s1 + $0xdb0] ss:$8 sps:$4 sm:$0xff]   ;;  %v5343_v2 = vld [vmem:[%s7403_s1 + $0x5c4] ss:$8 sps:$4 sm:$0xff]   ;;  %v5341_v41 = vld [vmem:[%s7403_s1 + $0x5c0] ss:$8 sps:$4 sm:$0xff]  }
 0x15e   :  { %v5346_v36 = vld [vmem:[%s7403_s1 + $0xdc4] ss:$8 sps:$4 sm:$0xff]   ;;  %v5344_v50 = vld [vmem:[%s7403_s1 + $0xdc0] ss:$8 sps:$4 sm:$0xff]   ;;  %v5349_v4 = vld [vmem:[%s7403_s1 + $0x5d4] ss:$8 sps:$4 sm:$0xff]  }
 0x15f   :  { %3542 = vmatpush1.bf16.msra.mxu1 %v5311_v45  ;;  %v5352_v5 = vld [vmem:[%s7403_s1 + $0xdd4] ss:$8 sps:$4 sm:$0xff]   ;;  %v5347_v6 = vld [vmem:[%s7403_s1 + $0x5d0] ss:$8 sps:$4 sm:$0xff]   ;;  %v5355_v8 = vld [vmem:[%s7403_s1 + $0x5e4] ss:$8 sps:$4 sm:$0xff]  }
 0x160   :  { %3870 = vmatpush1.bf16.msra.mxu0 %v5314_v46  ;;  %3543 = vmatprep.subr.bf16.mxu1 %v5319_v47  ;;  %v5350_v7 = vld [vmem:[%s7403_s1 + $0xdd0] ss:$8 sps:$4 sm:$0xff]   ;;  %v5358_v9 = vld [vmem:[%s7403_s1 + $0xde4] ss:$8 sps:$4 sm:$0xff]   ;;  %v5353_v12 = vld [vmem:[%s7403_s1 + $0x5e0] ss:$8 sps:$4 sm:$0xff]  }
 0x161   :  { %3871 = vmatprep.subr.bf16.mxu0 %v5322_v48  ;;  %v6887_v10 = vld [vmem:[%s7402_s0 + $0x18] sm:$0xff]  ;;  %v5356_v13 = vld [vmem:[%s7403_s1 + $0xde0] ss:$8 sps:$4 sm:$0xff]   ;;  %v5368_v20 = vld [vmem:[%s7403_s1 + $0x604] ss:$8 sps:$4 sm:$0xff]   ;;  %s5602_s28 = smov [#allocation2]  }
 0x162   :  { %v6892_v11 = vld [vmem:[%s7402_s0 + $0x38] sm:$0xff]  ;;  %v6908_v57 = vrot.slane %v6887_v10, %v5768_v49  ;;  %v5372_v21 = vld [vmem:[%s7403_s1 + $0xe04] ss:$8 sps:$4 sm:$0xff]   ;;  %v5366_v26 = vld [vmem:[%s7403_s1 + $0x600] ss:$8 sps:$4 sm:$0xff]   ;;  %s4164_s29 = sshll.u32 %s5602_s28, 4  ;;  %s4165_s29 = int_to_ptr.vmem [resolvable:$true] %s4164_s29 }
 0x163   :  { %3544 = vmatpush1.bf16.msra.mxu1 %v5317_v52  ;;  %v5361_v16 = vld [vmem:[%s7403_s1 + $0x5f4] ss:$8 sps:$4 sm:$0xff]   ;;  %v6912_v17 = vrot.slane %v6892_v11, %v5768_v49  ;;  %v5359_v18 = vld [vmem:[%s7403_s1 + $0x5f0] ss:$8 sps:$4 sm:$0xff]   ;;  %v5370_v27 = vld [vmem:[%s7403_s1 + $0xe00] ss:$8 sps:$4 sm:$0xff]   ;;  %p5582_p1 = scmp.lt.s32.totalorder %s4165_s29, %s4165_s29 }
 0x164   :  { %3872 = vmatpush1.bf16.msra.mxu0 %v5320_v53  ;;  %3545 = vmatprep.subr.bf16.mxu1 %v5325_v54  ;;  %v5364_v56 = vld [vmem:[%s7403_s1 + $0xdf4] ss:$8 sps:$4 sm:$0xff]   ;;  %v5362_v19 = vld [vmem:[%s7403_s1 + $0xdf0] ss:$8 sps:$4 sm:$0xff]   ;;  %v104_v22 = vcombine.high %v6908_v57, %v6908_v57  ;;  %v5381_v32 = vld [vmem:[%s7403_s1 + $0x624] ss:$8 sps:$4 sm:$0xff]  }
 0x165   :  { %3873 = vmatprep.subr.bf16.mxu0 %v5328_v55  ;;  %v172_v23 = vcombine.high %v6912_v17, %v6912_v17  ;;  %v5375_v28 = vld [vmem:[%s7403_s1 + $0x614] ss:$8 sps:$4 sm:$0xff]   ;;  %v5373_v30 = vld [vmem:[%s7403_s1 + $0x610] ss:$8 sps:$4 sm:$0xff]   ;;  %v5384_v33 = vld [vmem:[%s7403_s1 + $0xe24] ss:$8 sps:$4 sm:$0xff]  }
 0x166   :  { %v5378_v51 = vld [vmem:[%s7403_s1 + $0xe14] ss:$8 sps:$4 sm:$0xff]   ;;  %v219_v3 = vpack.c.bf16 %v104_v22, %v104_v22  ;;  %v5376_v31 = vld [vmem:[%s7403_s1 + $0xe10] ss:$8 sps:$4 sm:$0xff]   ;;  %v5379_v34 = vld [vmem:[%s7403_s1 + $0x620] ss:$8 sps:$4 sm:$0xff]  }
 0x167   :  { %3546 = vmatpush1.bf16.msra.mxu1 %v5323_v15  ;;  %v235_v29 = vpack.c.bf16 %v172_v23, %v172_v23  ;;  %v5382_v14 = vld [vmem:[%s7403_s1 + $0xe20] ss:$8 sps:$4 sm:$0xff]   ;;  %v5387_v37 = vld [vmem:[%s7403_s1 + $0x634] ss:$8 sps:$4 sm:$0xff]   ;;  %v5385_v39 = vld [vmem:[%s7403_s1 + $0x630] ss:$8 sps:$4 sm:$0xff]  }
 0x168   :  { %3874 = vmatpush1.bf16.msra.mxu0 %v5326_v40  ;;  %3547 = vmatprep.subr.bf16.mxu1 %v5331_v58  ;;  %v5390_v38 = vld [vmem:[%s7403_s1 + $0xe34] ss:$8 sps:$4 sm:$0xff]   ;;  %v5388_v35 = vld [vmem:[%s7403_s1 + $0xe30] ss:$8 sps:$4 sm:$0xff]   ;;  %v5393_v42 = vld [vmem:[%s7403_s1 + $0x644] ss:$8 sps:$4 sm:$0xff]  }
 0x169   :  { %3875 = vmatprep.subr.bf16.mxu0 %v5334_v59  ;;  %v5396_v44 = vld [vmem:[%s7403_s1 + $0xe44] ss:$8 sps:$4 sm:$0xff]   ;;  %v5391_v45 = vld [vmem:[%s7403_s1 + $0x640] ss:$8 sps:$4 sm:$0xff]   ;;  %v5399_v47 = vld [vmem:[%s7403_s1 + $0x654] ss:$8 sps:$4 sm:$0xff]  }
 0x16a   :  { %v5394_v46 = vld [vmem:[%s7403_s1 + $0xe40] ss:$8 sps:$4 sm:$0xff]   ;;  %v5402_v48 = vld [vmem:[%s7403_s1 + $0xe54] ss:$8 sps:$4 sm:$0xff]   ;;  %v5397_v52 = vld [vmem:[%s7403_s1 + $0x650] ss:$8 sps:$4 sm:$0xff]  }
 0x16b   :  { %3548 = vmatpush1.bf16.msra.mxu1 %v5329_v60  ;;  %v5400_v53 = vld [vmem:[%s7403_s1 + $0xe50] ss:$8 sps:$4 sm:$0xff]   ;;  %v5405_v54 = vld [vmem:[%s7403_s1 + $0x664] ss:$8 sps:$4 sm:$0xff]   ;;  %v5403_v15 = vld [vmem:[%s7403_s1 + $0x660] ss:$8 sps:$4 sm:$0xff]  }
 0x16c   :  { %3876 = vmatpush1.bf16.msra.mxu0 %v5332_v61  ;;  %3549 = vmatprep.subr.bf16.mxu1 %v5337_v62  ;;  %v5408_v55 = vld [vmem:[%s7403_s1 + $0xe64] ss:$8 sps:$4 sm:$0xff]   ;;  %v5406_v40 = vld [vmem:[%s7403_s1 + $0xe60] ss:$8 sps:$4 sm:$0xff]   ;;  %v5411_v58 = vld [vmem:[%s7403_s1 + $0x674] ss:$8 sps:$4 sm:$0xff]  }
 0x16d   :  { %3877 = vmatprep.subr.bf16.mxu0 %v5340_v63  ;;  %v5414_v59 = vld [vmem:[%s7403_s1 + $0xe74] ss:$8 sps:$4 sm:$0xff]   ;;  %v5409_v60 = vld [vmem:[%s7403_s1 + $0x670] ss:$8 sps:$4 sm:$0xff]   ;;  %v5417_v62 = vld [vmem:[%s7403_s1 + $0x684] ss:$8 sps:$4 sm:$0xff]  }
 0x16e   :  { %v5412_v61 = vld [vmem:[%s7403_s1 + $0xe70] ss:$8 sps:$4 sm:$0xff]   ;;  %v5420_v63 = vld [vmem:[%s7403_s1 + $0xe84] ss:$8 sps:$4 sm:$0xff]   ;;  %s5577_s30 = scalar_lea.vmem %s4165_s29, 32 }
 0x16f   :  { %3550 = vmatpush1.bf16.msra.mxu1 %v5335_v0  ;;  %v5415_v0 = vld [vmem:[%s7403_s1 + $0x680] ss:$8 sps:$4 sm:$0xff]   ;;  %v5445_v22 = vld [vmem:[%s7403_s1 + $0x6d0] ss:$8 sps:$4 sm:$0xff]   ;;  %p5578_p0 = scmp.ne.s32.totalorder %s4165_s29, %s5577_s30  ;;  %p5583_p2 = scmp.lt.s32.totalorder %s5577_s30, %s5577_s30 }
 0x170   :  { %3878 = vmatpush1.bf16.msra.mxu0 %v5338_v1  ;;  %3551 = vmatprep.subr.bf16.mxu1 %v5343_v2  ;;  %v5418_v1 = vld [vmem:[%s7403_s1 + $0xe80] ss:$8 sps:$4 sm:$0xff]   ;;  %v5423_v2 = vld [vmem:[%s7403_s1 + $0x694] ss:$8 sps:$4 sm:$0xff]   ;;  %v5448_v23 = vld [vmem:[%s7403_s1 + $0xed0] ss:$8 sps:$4 sm:$0xff]  }
 0x171   :  { %3879 = vmatprep.subr.bf16.mxu0 %v5346_v36  ;;  %v5426_v36 = vld [vmem:[%s7403_s1 + $0xe94] ss:$8 sps:$4 sm:$0xff]   ;;  %p5584_p3 = por %p5583_p2, %p5582_p1 }
 0x173   :  { %3552 = vmatpush1.bf16.msra.mxu1 %v5341_v41  ;;  %v5421_v41 = vld [vmem:[%s7403_s1 + $0x690] ss:$8 sps:$4 sm:$0xff]   ;;  %p5585_p4 = pnand %p5584_p3, %p5578_p0 }
 0x174   :  { %3880 = vmatpush1.bf16.msra.mxu0 %v5344_v50  ;;  %3553 = vmatprep.subr.bf16.mxu1 %v5349_v4  ;;  %v5424_v50 = vld [vmem:[%s7403_s1 + $0xe90] ss:$8 sps:$4 sm:$0xff]   ;;  %v5429_v4 = vld [vmem:[%s7403_s1 + $0x6a4] ss:$8 sps:$4 sm:$0xff]  }
 0x175   :  { %3881 = vmatprep.subr.bf16.mxu0 %v5352_v5  ;;  %v5432_v5 = vld [vmem:[%s7403_s1 + $0xea4] ss:$8 sps:$4 sm:$0xff]  }
 0x177   :  { %3554 = vmatpush1.bf16.msra.mxu1 %v5347_v6  ;;  %v5427_v6 = vld [vmem:[%s7403_s1 + $0x6a0] ss:$8 sps:$4 sm:$0xff]  }
 0x178   :  { %3882 = vmatpush1.bf16.msra.mxu0 %v5350_v7  ;;  %3555 = vmatprep.subr.bf16.mxu1 %v5355_v8  ;;  %v5430_v7 = vld [vmem:[%s7403_s1 + $0xea0] ss:$8 sps:$4 sm:$0xff]   ;;  %v5435_v8 = vld [vmem:[%s7403_s1 + $0x6b4] ss:$8 sps:$4 sm:$0xff]  }
 0x179   :  { %3883 = vmatprep.subr.bf16.mxu0 %v5358_v9  ;;  %v5438_v9 = vld [vmem:[%s7403_s1 + $0xeb4] ss:$8 sps:$4 sm:$0xff]  }
 0x17b   :  { %3556 = vmatpush1.bf16.msra.mxu1 %v5353_v12  ;;  %v5433_v12 = vld [vmem:[%s7403_s1 + $0x6b0] ss:$8 sps:$4 sm:$0xff]  }
 0x17c   :  { %3884 = vmatpush1.bf16.msra.mxu0 %v5356_v13  ;;  %3557 = vmatprep.subr.bf16.mxu1 %v5361_v16  ;;  %v5436_v13 = vld [vmem:[%s7403_s1 + $0xeb0] ss:$8 sps:$4 sm:$0xff]   ;;  %v5441_v16 = vld [vmem:[%s7403_s1 + $0x6c4] ss:$8 sps:$4 sm:$0xff]  }
 0x17d   :  { %3885 = vmatprep.subr.bf16.mxu0 %v5364_v56  ;;  %v5444_v56 = vld [vmem:[%s7403_s1 + $0xec4] ss:$8 sps:$4 sm:$0xff]  }
 0x17f   :  { %3558 = vmatpush1.bf16.msra.mxu1 %v5359_v18  ;;  %v5439_v18 = vld [vmem:[%s7403_s1 + $0x6c0] ss:$8 sps:$4 sm:$0xff]  }
 0x180   :  { %3886 = vmatpush1.bf16.msra.mxu0 %v5362_v19  ;;  %3568 = vmatprep.subr.bf16.mxu1 %v5368_v20  ;;  %v5442_v19 = vld [vmem:[%s7403_s1 + $0xec0] ss:$8 sps:$4 sm:$0xff]   ;;  %v5447_v20 = vld [vmem:[%s7403_s1 + $0x6d4] ss:$8 sps:$4 sm:$0xff]  }
 0x181   :  { %3896 = vmatprep.subr.bf16.mxu0 %v5372_v21  ;;  %v5450_v21 = vld [vmem:[%s7403_s1 + $0xed4] ss:$8 sps:$4 sm:$0xff]  }
 0x182   :  { %3560 = vmatmul.mubr.bf16.vlgmr.msra.gmra.mrb[0].mxu1 %v216_v24  ;;  %v5453_v24 = vld [vmem:[%s7403_s1 + $0x6e4] ss:$8 sps:$4 sm:$0xff]  }
 0x183   :  { %3888 = vmatmul.mubr.bf16.vlgmr.msra.gmra.mrb[0].mxu0 %v232_v25  ;;  %3569 = vmatpush1.bf16.msra.mxu1 %v5366_v26  ;;  %v5456_v25 = vld [vmem:[%s7403_s1 + $0xee4] ss:$8 sps:$4 sm:$0xff]   ;;  %v89_v26 = vcombine.high %v6887_v10, %v6887_v10  ;;  %v5462_v10 = vld [vmem:[%s7403_s1 + $0xef4] ss:$8 sps:$4 sm:$0xff]  }
 0x184   :  { %3897 = vmatpush1.bf16.msra.mxu0 %v5370_v27  ;;  %3570 = vmatprep.subr.bf16.mxu1 %v5375_v28  ;;  %v157_v27 = vcombine.high %v6892_v11, %v6892_v11  ;;  %v5451_v28 = vld [vmem:[%s7403_s1 + $0x6e0] ss:$8 sps:$4 sm:$0xff]  }
 0x185   :  { %3898 = vmatprep.subr.bf16.mxu0 %v5378_v51  ;;  %3600 = vmatprep.mubr.bf16.mxu1 %v219_v3  ;;  %v5454_v51 = vld [vmem:[%s7403_s1 + $0xee0] ss:$8 sps:$4 sm:$0xff]   ;;  %v5459_v3 = vld [vmem:[%s7403_s1 + $0x6f4] ss:$8 sps:$4 sm:$0xff]   ;;  %v7119_v11 = vrot.slane %v89_v26, %v5768_v49  ;;  %v5532_v26 = vld [vmem:[%s7403_s1 + $0xfb0] ss:$8 sps:$4 sm:$0xff]  }
 0x186   :  { %3928 = vmatprep.mubr.bf16.mxu0 %v235_v29  ;;  %v7122_v29 = vrot.slane %v157_v27, %v5768_v49  ;;  %v5468_v49 = vld [vmem:[%s7403_s1 + $0xf04] ss:$8 sps:$4 sm:$0xff]  }
 0x187   :  { %3571 = vmatpush1.bf16.msra.mxu1 %v5373_v30  ;;  %v5457_v30 = vld [vmem:[%s7403_s1 + $0x6f0] ss:$8 sps:$4 sm:$0xff]   ;;  %v5537_v27 = vld [vmem:[%s7403_s1 + $0x7c4] ss:$8 sps:$4 sm:$0xff]  }
 0x188   :  { %3899 = vmatpush1.bf16.msra.mxu0 %v5376_v31  ;;  %3572 = vmatprep.subr.bf16.mxu1 %v5381_v32  ;;  %v5460_v31 = vld [vmem:[%s7403_s1 + $0xef0] ss:$8 sps:$4 sm:$0xff]   ;;  %v5465_v32 = vld [vmem:[%s7403_s1 + $0x704] ss:$8 sps:$4 sm:$0xff]  }
 0x189   :  { %3900 = vmatprep.subr.bf16.mxu0 %v5384_v33  ;;  %v105_v33 = vcombine.high %v7119_v11, %v7119_v11 }
 0x18b   :  { %3573 = vmatpush1.bf16.msra.mxu1 %v5379_v34  ;;  %v173_v34 = vcombine.high %v7122_v29, %v7122_v29 }
 0x18c   :  { %3901 = vmatpush1.bf16.msra.mxu0 %v5382_v14  ;;  %3574 = vmatprep.subr.bf16.mxu1 %v5387_v37  ;;  %v218_v14 = vpack.c.bf16 %v6908_v57, %v6908_v57  ;;  %v234_v37 = vpack.c.bf16 %v6912_v17, %v6912_v17  ;;  %v5474_v57 = vld [vmem:[%s7403_s1 + $0xf14] ss:$8 sps:$4 sm:$0xff]   ;;  %v221_v17 = vpack.c.bf16 %v105_v33, %v105_v33  ;;  %v5552_v33 = vld [vmem:[%s7403_s1 + $0xfe4] ss:$8 sps:$4 sm:$0xff]  }
 0x18d   :  { %3902 = vmatprep.subr.bf16.mxu0 %v5390_v38  ;;  %v5463_v38 = vld [vmem:[%s7403_s1 + $0x700] ss:$8 sps:$4 sm:$0xff]  }
 0x18f   :  { %3575 = vmatpush1.bf16.msra.mxu1 %v5385_v39  ;;  %v5466_v39 = vld [vmem:[%s7403_s1 + $0xf00] ss:$8 sps:$4 sm:$0xff]  }
 0x190   :  { %3903 = vmatpush1.bf16.msra.mxu0 %v5388_v35  ;;  %3576 = vmatprep.subr.bf16.mxu1 %v5393_v42  ;;  %v5471_v35 = vld [vmem:[%s7403_s1 + $0x714] ss:$8 sps:$4 sm:$0xff]   ;;  %v237_v42 = vpack.c.bf16 %v173_v34, %v173_v34  ;;  %v5547_v34 = vld [vmem:[%s7403_s1 + $0x7e0] ss:$8 sps:$4 sm:$0xff]  }
 0x191   :  { %3904 = vmatprep.subr.bf16.mxu0 %v5396_v44  ;;  %v5469_v44 = vld [vmem:[%s7403_s1 + $0x710] ss:$8 sps:$4 sm:$0xff]  }
 0x193   :  { %3577 = vmatpush1.bf16.msra.mxu1 %v5391_v45  ;;  %v5472_v45 = vld [vmem:[%s7403_s1 + $0xf10] ss:$8 sps:$4 sm:$0xff]  }
 0x194   :  { %3905 = vmatpush1.bf16.msra.mxu0 %v5394_v46  ;;  %3578 = vmatprep.subr.bf16.mxu1 %v5399_v47  ;;  %v5477_v46 = vld [vmem:[%s7403_s1 + $0x724] ss:$8 sps:$4 sm:$0xff]  }
 0x195   :  { %3906 = vmatprep.subr.bf16.mxu0 %v5402_v48  ;;  %v5480_v47 = vld [vmem:[%s7403_s1 + $0xf24] ss:$8 sps:$4 sm:$0xff]   ;;  %v5475_v48 = vld [vmem:[%s7403_s1 + $0x720] ss:$8 sps:$4 sm:$0xff]  }
 0x197   :  { %3579 = vmatpush1.bf16.msra.mxu1 %v5397_v52  ;;  %v5478_v52 = vld [vmem:[%s7403_s1 + $0xf20] ss:$8 sps:$4 sm:$0xff]  }
 0x198   :  { %3907 = vmatpush1.bf16.msra.mxu0 %v5400_v53  ;;  %3580 = vmatprep.subr.bf16.mxu1 %v5405_v54  ;;  %v5483_v53 = vld [vmem:[%s7403_s1 + $0x734] ss:$8 sps:$4 sm:$0xff]  }
 0x199   :  { %3908 = vmatprep.subr.bf16.mxu0 %v5408_v55  ;;  %v5486_v54 = vld [vmem:[%s7403_s1 + $0xf34] ss:$8 sps:$4 sm:$0xff]   ;;  %v5481_v55 = vld [vmem:[%s7403_s1 + $0x730] ss:$8 sps:$4 sm:$0xff]  }
 0x19b   :  { %3581 = vmatpush1.bf16.msra.mxu1 %v5403_v15  ;;  %v5484_v15 = vld [vmem:[%s7403_s1 + $0xf30] ss:$8 sps:$4 sm:$0xff]  }
 0x19c   :  { %3909 = vmatpush1.bf16.msra.mxu0 %v5406_v40  ;;  %3582 = vmatprep.subr.bf16.mxu1 %v5411_v58  ;;  %v5489_v40 = vld [vmem:[%s7403_s1 + $0x744] ss:$8 sps:$4 sm:$0xff]  }
 0x19d   :  { %3910 = vmatprep.subr.bf16.mxu0 %v5414_v59  ;;  %v5492_v58 = vld [vmem:[%s7403_s1 + $0xf44] ss:$8 sps:$4 sm:$0xff]   ;;  %v5487_v59 = vld [vmem:[%s7403_s1 + $0x740] ss:$8 sps:$4 sm:$0xff]  }
 0x19f   :  { %3583 = vmatpush1.bf16.msra.mxu1 %v5409_v60  ;;  %v5490_v60 = vld [vmem:[%s7403_s1 + $0xf40] ss:$8 sps:$4 sm:$0xff]  }
 0x1a0   :  { %3911 = vmatpush1.bf16.msra.mxu0 %v5412_v61  ;;  %3584 = vmatprep.subr.bf16.mxu1 %v5417_v62  ;;  %v5495_v61 = vld [vmem:[%s7403_s1 + $0x754] ss:$8 sps:$4 sm:$0xff]  }
 0x1a1   :  { %3912 = vmatprep.subr.bf16.mxu0 %v5420_v63  ;;  %v5498_v62 = vld [vmem:[%s7403_s1 + $0xf54] ss:$8 sps:$4 sm:$0xff]   ;;  %v5493_v63 = vld [vmem:[%s7403_s1 + $0x750] ss:$8 sps:$4 sm:$0xff]  }
 0x1a3   :  { %3585 = vmatpush1.bf16.msra.mxu1 %v5415_v0  ;;  %v5496_v0 = vld [vmem:[%s7403_s1 + $0xf50] ss:$8 sps:$4 sm:$0xff]  }
 0x1a4   :  { %3913 = vmatpush1.bf16.msra.mxu0 %v5418_v1  ;;  %3586 = vmatprep.subr.bf16.mxu1 %v5423_v2  ;;  %v5501_v1 = vld [vmem:[%s7403_s1 + $0x764] ss:$8 sps:$4 sm:$0xff]  }
 0x1a5   :  { %3914 = vmatprep.subr.bf16.mxu0 %v5426_v36  ;;  %v5504_v2 = vld [vmem:[%s7403_s1 + $0xf64] ss:$8 sps:$4 sm:$0xff]   ;;  %v5499_v36 = vld [vmem:[%s7403_s1 + $0x760] ss:$8 sps:$4 sm:$0xff]  }
 0x1a7   :  { %3587 = vmatpush1.bf16.msra.mxu1 %v5421_v41  ;;  %v5502_v41 = vld [vmem:[%s7403_s1 + $0xf60] ss:$8 sps:$4 sm:$0xff]  }
 0x1a8   :  { %3915 = vmatpush1.bf16.msra.mxu0 %v5424_v50  ;;  %3588 = vmatprep.subr.bf16.mxu1 %v5429_v4  ;;  %v5507_v50 = vld [vmem:[%s7403_s1 + $0x774] ss:$8 sps:$4 sm:$0xff]  }
 0x1a9   :  { %3916 = vmatprep.subr.bf16.mxu0 %v5432_v5  ;;  %v5510_v4 = vld [vmem:[%s7403_s1 + $0xf74] ss:$8 sps:$4 sm:$0xff]   ;;  %v5505_v5 = vld [vmem:[%s7403_s1 + $0x770] ss:$8 sps:$4 sm:$0xff]  }
 0x1ab   :  { %3589 = vmatpush1.bf16.msra.mxu1 %v5427_v6  ;;  %v5508_v6 = vld [vmem:[%s7403_s1 + $0xf70] ss:$8 sps:$4 sm:$0xff]  }
 0x1ac   :  { %3917 = vmatpush1.bf16.msra.mxu0 %v5430_v7  ;;  %3590 = vmatprep.subr.bf16.mxu1 %v5435_v8  ;;  %v5513_v7 = vld [vmem:[%s7403_s1 + $0x784] ss:$8 sps:$4 sm:$0xff]  }
 0x1ad   :  { %3918 = vmatprep.subr.bf16.mxu0 %v5438_v9  ;;  %v5516_v8 = vld [vmem:[%s7403_s1 + $0xf84] ss:$8 sps:$4 sm:$0xff]   ;;  %v5511_v9 = vld [vmem:[%s7403_s1 + $0x780] ss:$8 sps:$4 sm:$0xff]  }
 0x1af   :  { %3591 = vmatpush1.bf16.msra.mxu1 %v5433_v12  ;;  %v5514_v12 = vld [vmem:[%s7403_s1 + $0xf80] ss:$8 sps:$4 sm:$0xff]  }
 0x1b0   :  { %3919 = vmatpush1.bf16.msra.mxu0 %v5436_v13  ;;  %3592 = vmatprep.subr.bf16.mxu1 %v5441_v16  ;;  %v5519_v13 = vld [vmem:[%s7403_s1 + $0x794] ss:$8 sps:$4 sm:$0xff]  }
 0x1b1   :  { %3920 = vmatprep.subr.bf16.mxu0 %v5444_v56  ;;  %v5522_v16 = vld [vmem:[%s7403_s1 + $0xf94] ss:$8 sps:$4 sm:$0xff]   ;;  %v5517_v56 = vld [vmem:[%s7403_s1 + $0x790] ss:$8 sps:$4 sm:$0xff]  }
 0x1b3   :  { %3593 = vmatpush1.bf16.msra.mxu1 %v5439_v18  ;;  %v5520_v18 = vld [vmem:[%s7403_s1 + $0xf90] ss:$8 sps:$4 sm:$0xff]  }
 0x1b4   :  { %3921 = vmatpush1.bf16.msra.mxu0 %v5442_v19  ;;  %3594 = vmatprep.subr.bf16.mxu1 %v5447_v20  ;;  %v5525_v19 = vld [vmem:[%s7403_s1 + $0x7a4] ss:$8 sps:$4 sm:$0xff]  }
 0x1b5   :  { %3922 = vmatprep.subr.bf16.mxu0 %v5450_v21  ;;  %v5528_v20 = vld [vmem:[%s7403_s1 + $0xfa4] ss:$8 sps:$4 sm:$0xff]   ;;  %v5523_v21 = vld [vmem:[%s7403_s1 + $0x7a0] ss:$8 sps:$4 sm:$0xff]  }
 0x1b7   :  { %3595 = vmatpush1.bf16.msra.mxu1 %v5445_v22  ;;  %v5526_v22 = vld [vmem:[%s7403_s1 + $0xfa0] ss:$8 sps:$4 sm:$0xff]  }
 0x1b8   :  { %3923 = vmatpush1.bf16.msra.mxu0 %v5448_v23  ;;  %3596 = vmatprep.subr.bf16.mxu1 %v5453_v24  ;;  %v5531_v23 = vld [vmem:[%s7403_s1 + $0x7b4] ss:$8 sps:$4 sm:$0xff]  }
 0x1b9   :  { %3924 = vmatprep.subr.bf16.mxu0 %v5456_v25  ;;  %v5534_v24 = vld [vmem:[%s7403_s1 + $0xfb4] ss:$8 sps:$4 sm:$0xff]   ;;  %v5529_v25 = vld [vmem:[%s7403_s1 + $0x7b0] ss:$8 sps:$4 sm:$0xff]  }
 0x1bb   :  { %3597 = vmatpush1.bf16.msra.mxu1 %v5451_v28  ;;  %v5540_v28 = vld [vmem:[%s7403_s1 + $0xfc4] ss:$8 sps:$4 sm:$0xff]  }
 0x1bc   :  { %3925 = vmatpush1.bf16.msra.mxu0 %v5454_v51  ;;  %3598 = vmatprep.subr.bf16.mxu1 %v5459_v3  ;;  %v5535_v51 = vld [vmem:[%s7403_s1 + $0x7c0] ss:$8 sps:$4 sm:$0xff]  }
 0x1bd   :  { %3926 = vmatprep.subr.bf16.mxu0 %v5462_v10  ;;  %v5538_v3 = vld [vmem:[%s7403_s1 + $0xfc0] ss:$8 sps:$4 sm:$0xff]   ;;  %v5543_v10 = vld [vmem:[%s7403_s1 + $0x7d4] ss:$8 sps:$4 sm:$0xff]  }
 0x1bf   :  { %3599 = vmatpush1.bf16.msra.mxu1 %v5457_v30  ;;  %v5546_v30 = vld [vmem:[%s7403_s1 + $0xfd4] ss:$8 sps:$4 sm:$0xff]  }
 0x1c0   :  { %3927 = vmatpush1.bf16.msra.mxu0 %v5460_v31  ;;  %3609 = vmatprep.subr.bf16.mxu1 %v5465_v32  ;;  %v5541_v31 = vld [vmem:[%s7403_s1 + $0x7d0] ss:$8 sps:$4 sm:$0xff]  }
 0x1c1   :  { %3937 = vmatprep.subr.bf16.mxu0 %v5468_v49  ;;  %v5544_v32 = vld [vmem:[%s7403_s1 + $0xfd0] ss:$8 sps:$4 sm:$0xff]   ;;  %v5549_v49 = vld [vmem:[%s7403_s1 + $0x7e4] ss:$8 sps:$4 sm:$0xff]  }
 0x1c2   :  { %3601 = vmatmul.mubr.bf16.vlgmr.msra.gmra.mrb[0].mxu1 %v218_v14  ;;  %v5550_v14 = vld [vmem:[%s7403_s1 + $0xfe0] ss:$8 sps:$4 sm:$0xff]  }
 0x1c3   :  { %3929 = vmatmul.mubr.bf16.vlgmr.msra.gmra.mrb[0].mxu0 %v234_v37  ;;  %3610 = vmatpush1.bf16.msra.mxu1 %v5463_v38  ;;  %v5555_v37 = vld [vmem:[%s7403_s1 + $0x7f4] ss:$8 sps:$4 sm:$0xff]  }
 0x1c4   :  { %3938 = vmatpush1.bf16.msra.mxu0 %v5466_v39  ;;  %3611 = vmatprep.subr.bf16.mxu1 %v5471_v35  ;;  %v5558_v38 = vld [vmem:[%s7403_s1 + $0xff4] ss:$8 sps:$4 sm:$0xff]   ;;  %v5553_v39 = vld [vmem:[%s7403_s1 + $0x7f0] ss:$8 sps:$4 sm:$0xff]  }
 0x1c5   :  { %3939 = vmatprep.subr.bf16.mxu0 %v5474_v57  ;;  %3641 = vmatprep.mubr.bf16.mxu1 %v221_v17  ;;  %v5556_v35 = vld [vmem:[%s7403_s1 + $0xff0] ss:$8 sps:$4 sm:$0xff]   ;;  %v5561_v57 = vld [vmem:[%s7405_s3 + $0x40] sm:$0xff]   ;;  %v220_v17 = vpack.c.bf16 %v7119_v11, %v7119_v11  ;;  %v5564_v11 = vld [vmem:[%s7405_s3 + $0x8] sm:$0xff]  }
 0x1c6   :  { %3969 = vmatprep.mubr.bf16.mxu0 %v237_v42  ;;  %v236_v42 = vpack.c.bf16 %v7122_v29, %v7122_v29  ;;  %v5565_v29 = vld [vmem:[%s7405_s3 + $0x50] sm:$0xff]  }
 0x1c7   :  { %3612 = vmatpush1.bf16.msra.mxu1 %v5469_v44  ;;  %v5562_v44 = vld [vmem:[%s7405_s3] sm:$0xff]  }
 0x1c8   :  { %3940 = vmatpush1.bf16.msra.mxu0 %v5472_v45  ;;  %3613 = vmatprep.subr.bf16.mxu1 %v5477_v46  ;;  %v5563_v45 = vld [vmem:[%s7405_s3 + $0x48] sm:$0xff]   ;;  %v5566_v46 = vld [vmem:[%s7405_s3 + $0x10] sm:$0xff]  }
 0x1c9   :  { %3941 = vmatprep.subr.bf16.mxu0 %v5480_v47  ;;  %v5567_v47 = vld [vmem:[%s7405_s3 + $0x58] sm:$0xff]  }
 0x1cb   :  { %3614 = vmatpush1.bf16.msra.mxu1 %v5475_v48  ;;  %v5568_v48 = vld [vmem:[%s7405_s3 + $0x18] sm:$0xff]  }
 0x1cc   :  { %3942 = vmatpush1.bf16.msra.mxu0 %v5478_v52  ;;  %3615 = vmatprep.subr.bf16.mxu1 %v5483_v53  ;;  %v5569_v52 = vld [vmem:[%s7405_s3 + $0x60] sm:$0xff]  }
 0x1cd   :  { %3943 = vmatprep.subr.bf16.mxu0 %v5486_v54  ;;  %v5570_v53 = vld [vmem:[%s7405_s3 + $0x20] sm:$0xff]   ;;  %v5571_v54 = vld [vmem:[%s7405_s3 + $0x68] sm:$0xff]  }
 0x1cf   :  { %3616 = vmatpush1.bf16.msra.mxu1 %v5481_v55  ;;  %v5572_v55 = vld [vmem:[%s7405_s3 + $0x28] sm:$0xff]  }
 0x1d0   :  { %3944 = vmatpush1.bf16.msra.mxu0 %v5484_v15  ;;  %3617 = vmatprep.subr.bf16.mxu1 %v5489_v40  ;;  %v5573_v15 = vld [vmem:[%s7405_s3 + $0x70] sm:$0xff]  }
 0x1d1   :  { %3945 = vmatprep.subr.bf16.mxu0 %v5492_v58  ;;  %v5574_v40 = vld [vmem:[%s7405_s3 + $0x30] sm:$0xff]   ;;  %v5575_v58 = vld [vmem:[%s7405_s3 + $0x78] sm:$0xff]  }
 0x1d3   :  { %3618 = vmatpush1.bf16.msra.mxu1 %v5487_v59  ;;  %v5576_v59 = vld [vmem:[%s7405_s3 + $0x38] sm:$0xff]  }
 0x1d4   :  { %3946 = vmatpush1.bf16.msra.mxu0 %v5490_v60  ;;  %3619 = vmatprep.subr.bf16.mxu1 %v5495_v61  ;;  %v754_v60 = vsub.s32 0, %v5750_v43  ;;  %v750_v61 = vld [vmem:[%s7404_s2] sm:$0x3] }
 0x1d5   :  { %3947 = vmatprep.subr.bf16.mxu0 %v5498_v62  ;;  %v758_v62 = vsub.s32 1, %v5750_v43 }
 0x1d7   :  { %3620 = vmatpush1.bf16.msra.mxu1 %v5493_v63  ;;  %v755_v63 = vrot.slane %v750_v61, %v754_v60 }
 0x1d8   :  { %3948 = vmatpush1.bf16.msra.mxu0 %v5496_v0  ;;  %3621 = vmatprep.subr.bf16.mxu1 %v5501_v1  ;;  %v759_v0 = vrot.slane %v750_v61, %v758_v62 }
 0x1d9   :  { %3949 = vmatprep.subr.bf16.mxu0 %v5504_v2 }
 0x1db   :  { %3622 = vmatpush1.bf16.msra.mxu1 %v5499_v36 }
 0x1dc   :  { %3950 = vmatpush1.bf16.msra.mxu0 %v5502_v41  ;;  %3623 = vmatprep.subr.bf16.mxu1 %v5507_v50 }
 0x1dd   :  { %3951 = vmatprep.subr.bf16.mxu0 %v5510_v4 }
 0x1df   :  { %3624 = vmatpush1.bf16.msra.mxu1 %v5505_v5 }
 0x1e0   :  { %3952 = vmatpush1.bf16.msra.mxu0 %v5508_v6  ;;  %3625 = vmatprep.subr.bf16.mxu1 %v5513_v7 }
 0x1e1   :  { %3953 = vmatprep.subr.bf16.mxu0 %v5516_v8 }
 0x1e3   :  { %3626 = vmatpush1.bf16.msra.mxu1 %v5511_v9 }
 0x1e4   :  { %3954 = vmatpush1.bf16.msra.mxu0 %v5514_v12  ;;  %3627 = vmatprep.subr.bf16.mxu1 %v5519_v13 }
 0x1e5   :  { %3955 = vmatprep.subr.bf16.mxu0 %v5522_v16 }
 0x1e7   :  { %3628 = vmatpush1.bf16.msra.mxu1 %v5517_v56 }
 0x1e8   :  { %3956 = vmatpush1.bf16.msra.mxu0 %v5520_v18  ;;  %3629 = vmatprep.subr.bf16.mxu1 %v5525_v19 }
 0x1e9   :  { %3957 = vmatprep.subr.bf16.mxu0 %v5528_v20  ;;  %v4684_v20 = vld [vmem:[%s7406_s4] ss:$0 sm:$0xff] }
 0x1eb   :  { %3630 = vmatpush1.bf16.msra.mxu1 %v5523_v21 }
 0x1ec   :  { %3958 = vmatpush1.bf16.msra.mxu0 %v5526_v22  ;;  %3631 = vmatprep.subr.bf16.mxu1 %v5531_v23 }
 0x1ed   :  { %3959 = vmatprep.subr.bf16.mxu0 %v5534_v24 }
 0x1ef   :  { %3632 = vmatpush1.bf16.msra.mxu1 %v5529_v25 }
 0x1f0   :  { %3960 = vmatpush1.bf16.msra.mxu0 %v5532_v26  ;;  %3633 = vmatprep.subr.bf16.mxu1 %v5537_v27 }
 0x1f1   :  { %3961 = vmatprep.subr.bf16.mxu0 %v5540_v28 }
 0x1f3   :  { %3634 = vmatpush1.bf16.msra.mxu1 %v5535_v51 }
 0x1f4   :  { %3962 = vmatpush1.bf16.msra.mxu0 %v5538_v3  ;;  %3635 = vmatprep.subr.bf16.mxu1 %v5543_v10 }
 0x1f5   :  { %3963 = vmatprep.subr.bf16.mxu0 %v5546_v30 }
 0x1f7   :  { %3636 = vmatpush1.bf16.msra.mxu1 %v5541_v31 }
 0x1f8   :  { %3964 = vmatpush1.bf16.msra.mxu0 %v5544_v32  ;;  %3637 = vmatprep.subr.bf16.mxu1 %v5549_v49 }
 0x1f9   :  { %3965 = vmatprep.subr.bf16.mxu0 %v5552_v33 }
 0x1fb   :  { %3638 = vmatpush1.bf16.msra.mxu1 %v5547_v34 }
 0x1fc   :  { %3966 = vmatpush1.bf16.msra.mxu0 %v5550_v14  ;;  %3639 = vmatprep.subr.bf16.mxu1 %v5555_v37 }
 0x1fd   :  { %3967 = vmatprep.subr.bf16.mxu0 %v5558_v38 }
 0x1ff   :  { %3640 = vmatpush1.bf16.msra.mxu1 %v5553_v39 }
 0x200   :  { %3968 = vmatpush1.bf16.msra.mxu0 %v5556_v35  ;;  %4701 = vmatprep.subr.bf16.mxu1 %v5561_v57 }
 0x202   :  { %3642 = vmatmul.mubr.bf16.vlgmr.msra.gmra.mrb[0].mxu1 %v220_v17 }
 0x203   :  { %3970 = vmatmul.mubr.bf16.vlgmr.msra.gmra.mrb[0].mxu0 %v236_v42  ;;  %4702 = vmatpush3.bf16.msra.mxu1 %v5562_v44 }
 0x204   :  { %4703 = vmatprep.subr.bf16.mxu1 %v5563_v45 }
 0x207   :  { %4704 = vmatpush3.bf16.msra.mxu1 %v5564_v11 }
 0x208   :  { %4705 = vmatprep.subr.bf16.mxu1 %v5565_v29 }
 0x20b   :  { %4706 = vmatpush3.bf16.msra.mxu1 %v5566_v46 }
 0x20c   :  { %4707 = vmatprep.subr.bf16.mxu1 %v5567_v47 }
 0x20f   :  { %4708 = vmatpush3.bf16.msra.mxu1 %v5568_v48 }
 0x210   :  { %4709 = vmatprep.subr.bf16.mxu1 %v5569_v52 }
 0x213   :  { %4710 = vmatpush3.bf16.msra.mxu1 %v5570_v53 }
 0x214   :  { %4711 = vmatprep.subr.bf16.mxu1 %v5571_v54 }
 0x217   :  { %4712 = vmatpush3.bf16.msra.mxu1 %v5572_v55 }
 0x218   :  { %4713 = vmatprep.subr.bf16.mxu1 %v5573_v15 }
 0x21b   :  { %4714 = vmatpush3.bf16.msra.mxu1 %v5574_v40 }
 0x21c   :  { %4715 = vmatprep.subr.bf16.mxu1 %v5575_v58 }
 0x21f   :  { %4716 = vmatpush3.bf16.msra.mxu1 %v5576_v59 }
 0x2d5   :  { %v3643_v1 = vpop.f32.mrb[0].mxu1 }
 0x2d6   :  { %v3971_v2 = vpop.f32.mrb[0].mxu0  ;;  %v4723_v36 = vadd.f32 %v3643_v1, %v755_v63  ;;  %v3645_v41 = vpop.f32.mrb[1].mxu1 }
 0x2d7   :  { %v3973_v50 = vpop.f32.mrb[1].mxu0  ;;  %v4725_v4 = vadd.f32 %v3645_v41, %v759_v0  ;;  %v3647_v5 = vpop.f32.mrb[2].mxu1 }
 0x2d8   :  { %v3975_v6 = vpop.f32.mrb[2].mxu0  ;;  %v4724_v7 = vadd.f32 %v4723_v36, %v3971_v2  ;;  %v3648_v8 = vpop.f32.mrb[3].mxu1 }
 0x2d9   :  { %v3976_v9 = vpop.f32.mrb[3].mxu0  ;;  %v4726_v12 = vadd.f32 %v4725_v4, %v3973_v50 }
 0x2da   :  { %v3978_v13 = vmax.f32 %v4724_v7, 0.0 }
 0x2db   :  { %v3979_v16 = vmax.f32 %v4726_v12, 0.0 }
 0x2dc   :  { %v3980_v18 = vpack.c.bf16 %v3978_v13, %v3978_v13 }
 0x2dd   :  { %v3981_v56 = vpack.c.bf16 %v3979_v16, %v3979_v16 }
 0x2df   :  { %4149 = vmatprep.mubr.bf16.mxu1 %v3981_v56 }
 0x2e0   :  { %4150 = vmatmul.mubr.bf16.vlgmr.msra.gmra.mrb[4].mxu1 %v3980_v18 }
 0x3b3   :  { %v4717_v43 = vpop.f32.mrb[4].mxu1 }
 0x3b4   :  { %v4718_v19 = vpop.f32.mrb[5].mxu1 }
 0x3b5   :  { %v4719_v21 = vadd.f32 %v4718_v19, %v4717_v43  ;;  %v4720_v22 = vpop.f32.mrb[6].mxu1 }
 0x3b6   :  { %v4721_v23 = vpop.f32.mrb[7].mxu1 }
 0x3b7   :  { %v4152_v24 = vadd.f32 %v4719_v21, %v4684_v20 }
 0x3b9   :  { %4157 = vst [vmem:[#allocation2] sm:$0x3] %v4152_v24 }
 0x3ba   :  { %5588 = shalt.err (!%p5585_p4)
}
 0x3bb   :  { %s5589_s8 = scalar_lea.hbm %s7407_s5, 32 }
 0x3bc   :  { %p5590_p5 = scmp.ne.s32.totalorder %s7407_s5, %s5589_s8  ;;  %p5593_p6 = scmp.lt.u32.totalorder %s5589_s8, %s7407_s5 }
 0x3be   :  { %p5595_p7 = pnand %p5593_p6, %p5590_p5 }
 0x3c0   :  { %5598 = shalt.err (!%p5595_p7)
}
 0x3c1   :  { %4167 = dma.vmem_to_hbm [thread:$0]  %s4165_s29, 32, %s7407_s5, [#allocation3]  }
 0x3c2   :  { %5599 = dma.done.wait [#allocation3], 32  }
 0x3c3   :  { %5600 = vsyncadd [#allocation3], 4294967264 }
 0x3c4   :  { %4171 = vsyncpa [#allocation3], 1 }

// kernel: simple_net_forward.2
= control target key start
LH: loop header
LB: loop body
LE: loop exit
PB: predicated region body
PF: predicated region fallthrough
CT: control target
= control target key end

     0   :  { %10 = vsyncpa [#allocation4], 0  ;;  %s12064_s0 = inlined_call_operand.vmem [shape: f32[2,34,96], index: 0, kind: input, shape index: {}]   ;;  %s12065_s1 = inlined_call_operand.hbm [shape: bf16[3,96,1024], index: 1, kind: input, shape index: {}]   ;;  %s12066_s2 = inlined_call_operand.hbm [shape: f32[1,1024], index: 2, kind: input, shape index: {}]   ;;  %s12067_s3 = inlined_call_operand.hbm [shape: bf16[3,512,1024], index: 3, kind: input, shape index: {}]   ;;  %s12068_s4 = inlined_call_operand.hbm [shape: f32[1,1024], index: 4, kind: input, shape index: {}]   ;;  %s12069_s5 = inlined_call_operand.vmem [shape: f32[16,512], index: 5, kind: output, shape index: {}]  }
   0x1   :  { %11 = vsyncpa [#allocation6], 0 }
   0x2   :  { %12 = vsyncpa [#allocation9], 0  ;;  %s10929_s18 = smov 0  }
   0x3 LB: > { %s10890_s19 = smov [#allocation5]   ;;  %s10935_s21 = sadd.s32 4294967295, %s10888_s18   ;;  %s10888_s18 = sphi %s10929_s18, %s18_s18  }
   0x4   : > { %s185_s20 = sshll.u32 %s10890_s19, 4  ;;  %p9575_p0 = scmp.ge.s32.totalorder %s10888_s18, 1  ;;  %s10940_s20 = int_to_ptr.vmem [resolvable:$true] %s185_s20 }
   0x5   : > { %p159_p1 = scmp.lt.s32.totalorder %s10888_s18, 3  ;;  %p12070_p2 = scmp.eq.s32.totalorder %s10935_s21, 0 }
   0x6   : > { %s10891_s23 = smov [#allocation3]   ;;  %s10892_s26 = smov [#allocation7]  }
   0x7   : > { %p10942_p3 = pnand %p9575_p0, %p159_p1  ;;  %s171_s24 = sshll.u32 %s10891_s23, 4  ;;  %s10948_s24 = int_to_ptr.vmem [resolvable:$true] %s171_s24 }
   0x8   : > { %s195_s27 = sshll.u32 %s10892_s26, 4  ;;  %s10893_s28 = smov [#allocation8]   ;;  %s10956_s27 = int_to_ptr.vmem [resolvable:$true] %s195_s27 }
   0x9   : > { %s12085_s22 = scalar_select %p10942_p3, 1, 0 }
   0xa   : > { %p10713_p4 = pneg %p10942_p3  ;;  %s10958_s29 = sshll.u32 %s10893_s28, 4  ;;  %s210_s29 = int_to_ptr.vmem [resolvable:$true] %s10958_s29 }
   0xb   : > { %s10758_s7 = scalar_lea.hbm %s12066_s2, 128 }
   0xc   : > { %p10952_p5 = pnand %p12070_p2, %p10713_p4  ;;  %p10759_p6 = scmp.ne.s32.totalorder %s12066_s2, %s10758_s7 }
   0xd   : > { %p10765_p10 = scmp.lt.u32.totalorder %s10758_s7, %s12066_s2 }
   0xe   : > { %p10968_p7 = pneg %p10952_p5 }
  0x10   : > { %p10761_p8 = pnand %p10968_p7, %p10759_p6 }
  0x12   : > { %p10762_p9 = pneg %p10761_p8 }
  0x14   : > { %p10767_p11 = pnand %p10765_p10, %p10762_p9 }
  0x16   : > { %10770 = shalt.err (!%p10767_p11)
}
  0x17   : > { %s10771_s13 = scalar_lea.vmem %s10940_s20, 128  ;;  %p10779_p1 = scmp.lt.s32.totalorder %s10940_s20, %s10940_s20 }
  0x18   : > { %p10772_p12 = scmp.ne.s32.totalorder %s10940_s20, %s10771_s13  ;;  %p10780_p4 = scmp.lt.s32.totalorder %s10771_s13, %s10771_s13 }
  0x1a   : > { %p10774_p13 = pnand %p10772_p12, %p10968_p7  ;;  %p10781_p6 = por %p10780_p4, %p10779_p1 }
  0x1c   : > { %p10775_p0 = pneg %p10774_p13 }
  0x1e   : > { %p10782_p8 = pnand %p10781_p6, %p10775_p0 }
  0x20   : > { %10785 = shalt.err (!%p10782_p8)
}
  0x21   : > { %10719 = dma.hbm_to_vmem [thread:$0]  (!%p10952_p5), %s12066_s2, 128, %s10940_s20, [#allocation6]  }
  0x22   : > { %s10786_s19 = scalar_lea.hbm %s12065_s1, 18432 }
  0x23   : > { %p10787_p9 = scmp.ne.s32.totalorder %s12065_s1, %s10786_s19  ;;  %p10793_p12 = scmp.lt.u32.totalorder %s10786_s19, %s12065_s1 }
  0x25   : > { %p10789_p10 = pnand %p10787_p9, %p10968_p7 }
  0x27   : > { %p10790_p11 = pneg %p10789_p10 }
  0x29   : > { %p10795_p13 = pnand %p10793_p12, %p10790_p11 }
  0x2b   : > { %10798 = shalt.err (!%p10795_p13)
}
  0x2c   : > { %s10799_s20 = scalar_lea.vmem %s10948_s24, 18432  ;;  %p10807_p6 = scmp.lt.s32.totalorder %s10948_s24, %s10948_s24 }
  0x2d   : > { %p10800_p0 = scmp.ne.s32.totalorder %s10948_s24, %s10799_s20  ;;  %p10808_p8 = scmp.lt.s32.totalorder %s10799_s20, %s10799_s20 }
  0x2f   : > { %p10802_p1 = pnand %p10800_p0, %p10968_p7  ;;  %p10809_p9 = por %p10808_p8, %p10807_p6 }
  0x31   : > { %p10803_p4 = pneg %p10802_p1 }
  0x33   : > { %p10810_p10 = pnand %p10809_p9, %p10803_p4 }
  0x35   : > { %10813 = shalt.err (!%p10810_p10)
}
  0x36   : > { %s10894_s6 = smov 512   ;;  %s10895_s7 = smov 32  }
  0x37   : > { %10716 = dma.hbm_to_vmem [thread:$0]  (!%p10952_p5), %s12065_s1, 18432, %s10948_s24, [#allocation4], %s10894_s6, %s10894_s6, %s10895_s7  }
  0x38   : > { %s10814_s13 = scalar_lea.hbm %s12067_s3, 98304 }
  0x39   : > { %p10815_p11 = scmp.ne.s32.totalorder %s12067_s3, %s10814_s13  ;;  %p10821_p0 = scmp.lt.u32.totalorder %s10814_s13, %s12067_s3 }
  0x3b   : > { %p10817_p12 = pnand %p10815_p11, %p10968_p7 }
  0x3d   : > { %p10818_p13 = pneg %p10817_p12 }
  0x3f   : > { %p10823_p1 = pnand %p10821_p0, %p10818_p13 }
  0x41   : > { %10826 = shalt.err (!%p10823_p1)
}
  0x42   : > { %s10827_s24 = scalar_lea.vmem %s10956_s27, 98304  ;;  %p10835_p9 = scmp.lt.s32.totalorder %s10956_s27, %s10956_s27 }
  0x43   : > { %p10828_p4 = scmp.ne.s32.totalorder %s10956_s27, %s10827_s24  ;;  %p10836_p10 = scmp.lt.s32.totalorder %s10827_s24, %s10827_s24 }
  0x45   : > { %p10830_p6 = pnand %p10828_p4, %p10968_p7  ;;  %p10837_p11 = por %p10836_p10, %p10835_p9 }
  0x47   : > { %p10831_p8 = pneg %p10830_p6 }
  0x49   : > { %p10838_p12 = pnand %p10837_p11, %p10831_p8 }
  0x4b   : > { %10841 = shalt.err (!%p10838_p12)
}
  0x4c   : > { %10722 = dma.hbm_to_vmem [thread:$0]  (!%p10952_p5), %s12067_s3, 98304, %s10956_s27, [#allocation6], %s10894_s6, %s10894_s6, %s10895_s7  }
  0x4d   : > { %s10842_s30 = scalar_lea.hbm %s12068_s4, 128 }
  0x4e   : > { %p10843_p13 = scmp.ne.s32.totalorder %s12068_s4, %s10842_s30  ;;  %p10849_p4 = scmp.lt.u32.totalorder %s10842_s30, %s12068_s4 }
  0x50   : > { %p10845_p0 = pnand %p10843_p13, %p10968_p7 }
  0x52   : > { %p10846_p1 = pneg %p10845_p0 }
  0x54   : > { %p10851_p6 = pnand %p10849_p4, %p10846_p1 }
  0x56   : > { %10854 = shalt.err (!%p10851_p6)
}
  0x57   : > { %s10855_s12 = scalar_lea.vmem %s210_s29, 128  ;;  %p10863_p11 = scmp.lt.s32.totalorder %s210_s29, %s210_s29 }
  0x58   : > { %p10856_p8 = scmp.ne.s32.totalorder %s210_s29, %s10855_s12  ;;  %p10864_p12 = scmp.lt.s32.totalorder %s10855_s12, %s10855_s12 }
  0x5a   : > { %p10858_p9 = pnand %p10856_p8, %p10968_p7  ;;  %p10865_p2 = por %p10864_p12, %p10863_p11 }
  0x5c   : > { %p10859_p10 = pneg %p10858_p9 }
  0x5e   : > { %p10866_p3 = pnand %p10865_p2, %p10859_p10 }
  0x60   : > { %10869 = shalt.err (!%p10866_p3)
}
  0x61   : > { %10725 = dma.hbm_to_vmem [thread:$0]  (!%p10952_p5), %s12068_s4, 128, %s210_s29, [#allocation9]  }
  0x62   : > { %p12088_p13 = scmp.ne.s32.totalorder %s12085_s22, 0 }
  0x64   : > { %230 = sbr.rel (%p12088_p13) target bundleno = 1708 (0x6ac), region = 40 }
  0x6b   : > { %p12089_p0 = scmp.eq.s32.totalorder %s10935_s21, 0 }
  0x6d   : > { %10875 = dma.done.wait (%p12089_p0), [#allocation4], 18432   ;;  %p12090_p7 = pmov %p12089_p0 }
  0x6e   : > { %p12091_p1 = pmov %p12089_p0 }
  0x6f   : > { %10877 = vsyncadd (%p12090_p7), [#allocation4], 4294948864 }
  0x70   : > { %10879 = dma.done.wait (%p12091_p1), [#allocation6], 98432   ;;  %p12092_p2 = pmov %p12089_p0 }
  0x71   : > { %p12093_p3 = pmov %p12089_p0 }
  0x72   : > { %10881 = vsyncadd (%p12092_p2), [#allocation6], 4294868864 }
  0x73   : > { %10883 = dma.done.wait (%p12093_p3), [#allocation9], 128   ;;  %p12094_p5 = pmov %p12089_p0 }
  0x74   : > { %v10896_v0 = vmov 0   ;;  %v342_v1 = vld [vmem:[#allocation3 + $0x180] sm:$0xff]  ;;  %v343_v3 = vld [vmem:[#allocation3 + $0x188] sm:$0xff]  ;;  %p270_p4 = scmp.lt.s32.totalorder %s10935_s21, 1  ;;  %v344_v47 = vld [vmem:[#allocation3 + $0x190] sm:$0xff]  ;;  %vm630_vm0 = vcmask 785408  }
  0x75   : > { %10885 = vsyncadd (%p12094_p5), [#allocation9], 4294967168  ;;  %669 = vmatprep.mubr.bf16.mxu0 %v10896_v0  ;;  %722 = vmatprep.mubr.bf16.mxu1 %v10896_v0  ;;  %v346_v2 = vld [vmem:[#allocation3 + $0x1a0] sm:$0xff]  ;;  %v347_v5 = vld [vmem:[#allocation3 + $0x1a8] sm:$0xff]  ;;  %vm2470_vm1 = vcmask 1041408   ;;  %vm2992_vm2 = vcmask 1042434  }
  0x76   : > { %v9590_v4 = vcombine.high %v342_v1, %v346_v2  ;;  %v9589_v6 = vcombine.low %v342_v1, %v346_v2  ;;  %v350_v7 = vld [vmem:[#allocation3 + $0x1c0] sm:$0xff]  ;;  %v9592_v9 = vcombine.high %v343_v3, %v347_v5  ;;  %v9591_v10 = vcombine.low %v343_v3, %v347_v5  ;;  %v351_v12 = vld [vmem:[#allocation3 + $0x1c8] sm:$0xff]  ;;  %s12127_s21 = smov (!%p270_p4, %s10935_s21), 1  ;;  %v348_v48 = vld [vmem:[#allocation3 + $0x1b0] sm:$0xff] }
  0x77   : > { %v354_v8 = vld [vmem:[#allocation3 + $0x1e0] sm:$0xff]  ;;  %v355_v13 = vld [vmem:[#allocation3 + $0x1e8] sm:$0xff]  ;;  %s10696_s22 = smul.u32 40, %s12127_s21  ;;  %v345_v49 = vld [vmem:[#allocation3 + $0x198] sm:$0xff]  ;;  %v9594_v55 = vcombine.high %v344_v47, %v348_v48  ;;  %v9593_v62 = vcombine.low %v344_v47, %v348_v48  ;;  %vm2994_vm3 = vcmask 1043459   ;;  %vm2996_vm4 = vcmask 1044484  }
  0x78   : > { %v9598_v11 = vcombine.high %v350_v7, %v354_v8  ;;  %v358_v14 = vld [vmem:[#allocation3 + $0x200] sm:$0xff]  ;;  %637 = vmatprep.subr.bf16.mxu0 %v9590_v4  ;;  %v9600_v15 = vcombine.high %v351_v12, %v355_v13  ;;  %v359_v17 = vld [vmem:[#allocation3 + $0x208] sm:$0xff]  ;;  %690 = vmatprep.subr.bf16.mxu1 %v9592_v9  ;;  %v9597_v19 = vcombine.low %v350_v7, %v354_v8  ;;  %v349_v50 = vld [vmem:[#allocation3 + $0x1b8] sm:$0xff]  ;;  %vm2998_vm5 = vcmask 1045509   ;;  %s10551_s7 = sshll.u32 %s12127_s21, 5 }
  0x79   : > { %v362_v16 = vld [vmem:[#allocation3 + $0x220] sm:$0xff]  ;;  %v363_v18 = vld [vmem:[#allocation3 + $0x228] sm:$0xff]  ;;  %638 = vmatpush1.bf16.msra.mxu0 %v9589_v6  ;;  %691 = vmatpush1.bf16.msra.mxu1 %v9591_v10  ;;  %v9599_v20 = vcombine.low %v351_v12, %v355_v13  ;;  %s11078_s10 = scalar_lea.vmem %s12064_s0, %s10696_s22  ;;  %v9596_v56 = vcombine.high %v345_v49, %v349_v50  ;;  %v352_v57 = vld [vmem:[#allocation3 + $0x1d0] sm:$0xff]  ;;  %v9595_v63 = vcombine.low %v345_v49, %v349_v50  ;;  %vm3000_vm6 = vcmask 1046534   ;;  %s279_s15 = scalar_lea.vmem %s12069_s5, %s10551_s7 }
  0x7a   : > { %639 = vmatprep.subr.bf16.mxu0 %v9598_v11  ;;  %v9606_v21 = vcombine.high %v358_v14, %v362_v16  ;;  %692 = vmatprep.subr.bf16.mxu1 %v9600_v15  ;;  %v9608_v22 = vcombine.high %v359_v17, %v363_v18  ;;  %v366_v23 = vld [vmem:[#allocation3 + $0x240] sm:$0xff]  ;;  %v367_v25 = vld [vmem:[#allocation3 + $0x248] sm:$0xff]  ;;  %v9605_v27 = vcombine.low %v358_v14, %v362_v16  ;;  %v356_v58 = vld [vmem:[#allocation3 + $0x1f0] sm:$0xff]  ;;  %vm3002_vm7 = vcmask 1047559  }
  0x7b   : > { %v370_v24 = vld [vmem:[#allocation3 + $0x260] sm:$0xff]  ;;  %v371_v26 = vld [vmem:[#allocation3 + $0x268] sm:$0xff]  ;;  %v9607_v28 = vcombine.low %v359_v17, %v363_v18  ;;  %v353_v60 = vld [vmem:[#allocation3 + $0x1d8] sm:$0xff]  ;;  %v9602_v1 = vcombine.high %v352_v57, %v356_v58  ;;  %v9601_v7 = vcombine.low %v352_v57, %v356_v58  ;;  %vm3022_vm8 = vcmask 1041409  }
  0x7c   : > { %v9614_v29 = vcombine.high %v366_v23, %v370_v24  ;;  %v9616_v30 = vcombine.high %v367_v25, %v371_v26  ;;  %v374_v31 = vld [vmem:[#allocation3 + $0x280] sm:$0xff]  ;;  %v375_v33 = vld [vmem:[#allocation3 + $0x288] sm:$0xff]  ;;  %v9613_v35 = vcombine.low %v366_v23, %v370_v24  ;;  %v9615_v36 = vcombine.low %v367_v25, %v371_v26  ;;  %v357_v61 = vld [vmem:[#allocation3 + $0x1f8] sm:$0xff] }
  0x7d   : > { %640 = vmatpush1.bf16.msra.mxu0 %v9597_v19  ;;  %693 = vmatpush1.bf16.msra.mxu1 %v9599_v20  ;;  %v378_v32 = vld [vmem:[#allocation3 + $0x2a0] sm:$0xff]  ;;  %v379_v34 = vld [vmem:[#allocation3 + $0x2a8] sm:$0xff]  ;;  %v9604_v2 = vcombine.high %v353_v60, %v357_v61  ;;  %v360_v3 = vld [vmem:[#allocation3 + $0x210] sm:$0xff]  ;;  %v9603_v10 = vcombine.low %v353_v60, %v357_v61  ;;  %vm3616_vm10 = vsmask.f32 7424  ;;  %vm7198_vm11 = vcmask 1046528  }
  0x7e   : > { %641 = vmatprep.subr.bf16.mxu0 %v9606_v21  ;;  %694 = vmatprep.subr.bf16.mxu1 %v9608_v22  ;;  %v9622_v37 = vcombine.high %v374_v31, %v378_v32  ;;  %v9624_v38 = vcombine.high %v375_v33, %v379_v34  ;;  %v382_v39 = vld [vmem:[#allocation3 + $0x2c0] sm:$0xff]  ;;  %v383_v41 = vld [vmem:[#allocation3 + $0x2c8] sm:$0xff]  ;;  %v9621_v43 = vcombine.low %v374_v31, %v378_v32  ;;  %v364_v4 = vld [vmem:[#allocation3 + $0x230] sm:$0xff] }
  0x7f   : > { %v386_v40 = vld [vmem:[#allocation3 + $0x2e0] sm:$0xff]  ;;  %v387_v42 = vld [vmem:[#allocation3 + $0x2e8] sm:$0xff]  ;;  %v9623_v44 = vcombine.low %v375_v33, %v379_v34  ;;  %v361_v5 = vld [vmem:[#allocation3 + $0x218] sm:$0xff]  ;;  %v9610_v11 = vcombine.high %v360_v3, %v364_v4  ;;  %v9609_v18 = vcombine.low %v360_v3, %v364_v4 }
  0x80   : > { %v9630_v45 = vcombine.high %v382_v39, %v386_v40  ;;  %v9632_v46 = vcombine.high %v383_v41, %v387_v42  ;;  %v9629_v51 = vcombine.low %v382_v39, %v386_v40  ;;  %v335_v52 = vld [vmem:[%s11078_s10 + $0x1] sm:$0xff]  ;;  %v336_v53 = vld [vmem:[%s11078_s10 + $0x9] sm:$0xff]  ;;  %v9631_v54 = vcombine.low %v383_v41, %v387_v42  ;;  %v365_v6 = vld [vmem:[#allocation3 + $0x238] sm:$0xff] }
  0x81   : > { %642 = vmatpush1.bf16.msra.mxu0 %v9605_v27  ;;  %695 = vmatpush1.bf16.msra.mxu1 %v9607_v28  ;;  %v11082_v59 = vpack.c.bf16 %v336_v53, %v335_v52  ;;  %v337_v8 = vld [vmem:[%s11078_s10 + $0x11] sm:$0xff]  ;;  %v338_v9 = vld [vmem:[%s11078_s10 + $0x19] sm:$0xff]  ;;  %v9612_v12 = vcombine.high %v361_v5, %v365_v6  ;;  %v9611_v19 = vcombine.low %v361_v5, %v365_v6  ;;  %v288_v40 = vld [vmem:[#allocation3 + $0x8] sm:$0xff] }
  0x82   : > { %643 = vmatprep.subr.bf16.mxu0 %v9614_v29  ;;  %696 = vmatprep.subr.bf16.mxu1 %v9616_v30  ;;  %v368_v13 = vld [vmem:[#allocation3 + $0x250] sm:$0xff]  ;;  %v369_v15 = vld [vmem:[#allocation3 + $0x258] sm:$0xff]  ;;  %v11092_v17 = vpack.c.bf16 %v338_v9, %v337_v8  ;;  %v291_v39 = vld [vmem:[#allocation3 + $0x20] sm:$0xff] }
  0x83   : > { %v372_v14 = vld [vmem:[#allocation3 + $0x270] sm:$0xff]  ;;  %v373_v16 = vld [vmem:[#allocation3 + $0x278] sm:$0xff]  ;;  %v292_v41 = vld [vmem:[#allocation3 + $0x28] sm:$0xff] }
  0x84   : > { %v9618_v20 = vcombine.high %v368_v13, %v372_v14  ;;  %v9620_v21 = vcombine.high %v369_v15, %v373_v16  ;;  %v376_v22 = vld [vmem:[#allocation3 + $0x290] sm:$0xff]  ;;  %v377_v24 = vld [vmem:[#allocation3 + $0x298] sm:$0xff]  ;;  %v9617_v26 = vcombine.low %v368_v13, %v372_v14  ;;  %v9619_v27 = vcombine.low %v369_v15, %v373_v16  ;;  %v299_v47 = vld [vmem:[#allocation3 + $0x60] sm:$0xff] }
  0x85   : > { %644 = vmatpush1.bf16.msra.mxu0 %v9613_v35  ;;  %697 = vmatpush1.bf16.msra.mxu1 %v9615_v36  ;;  %v380_v23 = vld [vmem:[#allocation3 + $0x2b0] sm:$0xff]  ;;  %v381_v25 = vld [vmem:[#allocation3 + $0x2b8] sm:$0xff]  ;;  %v296_v48 = vld [vmem:[#allocation3 + $0x48] sm:$0xff] }
  0x86   : > { %645 = vmatprep.subr.bf16.mxu0 %v9622_v37  ;;  %698 = vmatprep.subr.bf16.mxu1 %v9624_v38  ;;  %v9626_v28 = vcombine.high %v376_v22, %v380_v23  ;;  %v9628_v29 = vcombine.high %v377_v24, %v381_v25  ;;  %v384_v30 = vld [vmem:[#allocation3 + $0x2d0] sm:$0xff]  ;;  %v385_v32 = vld [vmem:[#allocation3 + $0x2d8] sm:$0xff]  ;;  %v9625_v34 = vcombine.low %v376_v22, %v380_v23  ;;  %v287_v38 = vld [vmem:[#allocation3] sm:$0xff] }
  0x87   : > { %v388_v31 = vld [vmem:[#allocation3 + $0x2f0] sm:$0xff]  ;;  %v389_v33 = vld [vmem:[#allocation3 + $0x2f8] sm:$0xff]  ;;  %v9627_v35 = vcombine.low %v377_v24, %v381_v25  ;;  %v300_v49 = vld [vmem:[#allocation3 + $0x68] sm:$0xff]  ;;  %v9645_v50 = vcombine.low %v287_v38, %v291_v39 }
  0x88   : > { %v9634_v36 = vcombine.high %v384_v30, %v388_v31  ;;  %v9636_v37 = vcombine.high %v385_v32, %v389_v33  ;;  %v9633_v42 = vcombine.low %v384_v30, %v388_v31  ;;  %v9656_v53 = vcombine.high %v296_v48, %v300_v49  ;;  %v308_v57 = vld [vmem:[#allocation3 + $0xa8] sm:$0xff]  ;;  %v323_v8 = vld [vmem:[#allocation3 + $0x120] sm:$0xff]  ;;  %v289_v23 = vld [vmem:[#allocation3 + $0x10] sm:$0xff] }
  0x89   : > { %646 = vmatpush1.bf16.msra.mxu0 %v9621_v43  ;;  %699 = vmatpush1.bf16.msra.mxu1 %v9623_v44  ;;  %v9635_v43 = vcombine.low %v385_v32, %v389_v33  ;;  %v9646_v44 = vcombine.high %v287_v38, %v291_v39  ;;  %v9655_v60 = vcombine.low %v296_v48, %v300_v49  ;;  %v316_v3 = vld [vmem:[#allocation3 + $0xe8] sm:$0xff]  ;;  %v327_v15 = vld [vmem:[#allocation3 + $0x140] sm:$0xff]  ;;  %v293_v24 = vld [vmem:[#allocation3 + $0x30] sm:$0xff] }
  0x8a   : > { %647 = vmatprep.subr.bf16.mxu0 %v9630_v45  ;;  %700 = vmatprep.subr.bf16.mxu1 %v9632_v46  ;;  %v9648_v45 = vcombine.high %v288_v40, %v292_v41  ;;  %v295_v46 = vld [vmem:[#allocation3 + $0x40] sm:$0xff]  ;;  %v320_v9 = vld [vmem:[#allocation3 + $0x108] sm:$0xff]  ;;  %v290_v25 = vld [vmem:[#allocation3 + $0x18] sm:$0xff]  ;;  %v9650_v31 = vcombine.high %v289_v23, %v293_v24  ;;  %v9649_v38 = vcombine.low %v289_v23, %v293_v24 }
  0x8b   : > { %v9654_v52 = vcombine.high %v295_v46, %v299_v47  ;;  %v9653_v58 = vcombine.low %v295_v46, %v299_v47  ;;  %v331_v16 = vld [vmem:[#allocation3 + $0x160] sm:$0xff]  ;;  %v297_v33 = vld [vmem:[#allocation3 + $0x50] sm:$0xff]  ;;  %v284_v48 = vld [vmem:[%s11078_s10 + $0x18] sm:$0xff] }
  0x8c   : > { %v283_v47 = vld [vmem:[%s11078_s10 + $0x10] sm:$0xff]  ;;  %v1326_v23 = vld [vmem:[#allocation3 + $0x360] sm:$0xff]  ;;  %v1323_v24 = vld [vmem:[#allocation3 + $0x348] sm:$0xff] }
  0x8d   : > { %648 = vmatpush1.bf16.msra.mxu0 %v9629_v51  ;;  %701 = vmatpush1.bf16.msra.mxu1 %v9631_v54  ;;  %v9647_v51 = vcombine.low %v288_v40, %v292_v41  ;;  %v303_v54 = vld [vmem:[#allocation3 + $0x80] sm:$0xff] }
  0x8e   : > { %743 = vmatprep.subr.bf16.mxu0 %v9594_v55  ;;  %796 = vmatprep.subr.bf16.mxu1 %v9596_v56  ;;  %v307_v55 = vld [vmem:[#allocation3 + $0xa0] sm:$0xff]  ;;  %v304_v56 = vld [vmem:[#allocation3 + $0x88] sm:$0xff] }
  0x8f   : > { %v9662_v61 = vcombine.high %v303_v54, %v307_v55  ;;  %v9661_v4 = vcombine.low %v303_v54, %v307_v55  ;;  %v314_v54 = vld [vmem:[#allocation3 + $0xd8] sm:$0xff] }
  0x90   : > { %9637 = vmatmul.mubr.msk.bf16.vlgmr.msra.gmra.mrb[0].mxu0 %vm630_vm0, %v11082_v59  ;;  %9639 = vmatmul.mubr.msk.bf16.vlgmr.msra.gmra.mrb[0].mxu1 %vm630_vm0, %v11082_v59  ;;  %v318_v55 = vld [vmem:[#allocation3 + $0xf8] sm:$0xff] }
  0x91   : > { %744 = vmatpush1.bf16.msra.mxu0 %v9593_v62  ;;  %797 = vmatpush1.bf16.msra.mxu1 %v9595_v63  ;;  %v9664_v62 = vcombine.high %v304_v56, %v308_v57  ;;  %v311_v63 = vld [vmem:[#allocation3 + $0xc0] sm:$0xff] }
  0x92   : > { %745 = vmatprep.subr.bf16.mxu0 %v9602_v1  ;;  %798 = vmatprep.subr.bf16.mxu1 %v9604_v2  ;;  %v315_v1 = vld [vmem:[#allocation3 + $0xe0] sm:$0xff]  ;;  %v312_v2 = vld [vmem:[#allocation3 + $0xc8] sm:$0xff] }
  0x93   : > { %679 = vmatprep.mubr.bf16.mxu0 %v10896_v0  ;;  %732 = vmatprep.mubr.bf16.mxu1 %v10896_v0  ;;  %v9670_v5 = vcombine.high %v311_v63, %v315_v1  ;;  %v9672_v6 = vcombine.high %v312_v2, %v316_v3 }
  0x95   : > { %746 = vmatpush1.bf16.msra.mxu0 %v9601_v7  ;;  %799 = vmatpush1.bf16.msra.mxu1 %v9603_v10  ;;  %v319_v7 = vld [vmem:[#allocation3 + $0x100] sm:$0xff]  ;;  %v324_v10 = vld [vmem:[#allocation3 + $0x128] sm:$0xff] }
  0x96   : > { %747 = vmatprep.subr.bf16.mxu0 %v9610_v11  ;;  %800 = vmatprep.subr.bf16.mxu1 %v9612_v12  ;;  %v9669_v11 = vcombine.low %v311_v63, %v315_v1  ;;  %v9671_v12 = vcombine.low %v312_v2, %v316_v3  ;;  %v9678_v13 = vcombine.high %v319_v7, %v323_v8  ;;  %v325_v63 = vld [vmem:[#allocation3 + $0x130] sm:$0xff]  ;;  %v322_v1 = vld [vmem:[#allocation3 + $0x118] sm:$0xff] }
  0x97   : > { %v9680_v14 = vcombine.high %v320_v9, %v324_v10  ;;  %v326_v2 = vld [vmem:[#allocation3 + $0x138] sm:$0xff] }
  0x98   : > { %9638 = vmatmul.mubr.msk.bf16.gmra.mrb[4].mxu0 %vm630_vm0, %v11092_v17  ;;  %9640 = vmatmul.mubr.msk.bf16.gmra.mrb[4].mxu1 %vm630_vm0, %v11092_v17 }
  0x99   : > { %748 = vmatpush1.bf16.msra.mxu0 %v9609_v18  ;;  %801 = vmatpush1.bf16.msra.mxu1 %v9611_v19  ;;  %v328_v18 = vld [vmem:[#allocation3 + $0x148] sm:$0xff] }
  0x9a   : > { %749 = vmatprep.subr.bf16.mxu0 %v9618_v20  ;;  %802 = vmatprep.subr.bf16.mxu1 %v9620_v21  ;;  %v332_v19 = vld [vmem:[#allocation3 + $0x168] sm:$0xff]  ;;  %v9677_v20 = vcombine.low %v319_v7, %v323_v8  ;;  %v9686_v21 = vcombine.high %v327_v15, %v331_v16  ;;  %v333_v7 = vld [vmem:[#allocation3 + $0x170] sm:$0xff]  ;;  %v330_v8 = vld [vmem:[#allocation3 + $0x158] sm:$0xff] }
  0x9b   : > { %775 = vmatprep.mubr.bf16.mxu0 %v10896_v0  ;;  %828 = vmatprep.mubr.bf16.mxu1 %v10896_v0  ;;  %v9688_v22 = vcombine.high %v328_v18, %v332_v19  ;;  %v9687_v30 = vcombine.low %v328_v18, %v332_v19  ;;  %v1319_v18 = vld [vmem:[#allocation3 + $0x328] sm:$0xff] }
  0x9d   : > { %750 = vmatpush1.bf16.msra.mxu0 %v9617_v26  ;;  %803 = vmatpush1.bf16.msra.mxu1 %v9619_v27  ;;  %v294_v26 = vld [vmem:[#allocation3 + $0x38] sm:$0xff]  ;;  %v9685_v27 = vcombine.low %v327_v15, %v331_v16  ;;  %v1318_v15 = vld [vmem:[#allocation3 + $0x320] sm:$0xff]  ;;  %v1315_v16 = vld [vmem:[#allocation3 + $0x308] sm:$0xff] }
  0x9e   : > { %751 = vmatprep.subr.bf16.mxu0 %v9626_v28  ;;  %804 = vmatprep.subr.bf16.mxu1 %v9628_v29  ;;  %v281_v28 = vld [vmem:[%s11078_s10] sm:$0xff]  ;;  %v282_v29 = vld [vmem:[%s11078_s10 + $0x8] sm:$0xff]  ;;  %v9652_v32 = vcombine.high %v290_v25, %v294_v26  ;;  %v9651_v39 = vcombine.low %v290_v25, %v294_v26 }
  0x9f   : > { %v1327_v25 = vld [vmem:[#allocation3 + $0x368] sm:$0xff] }
  0xa1   : > { %752 = vmatpush1.bf16.msra.mxu0 %v9625_v34  ;;  %805 = vmatpush1.bf16.msra.mxu1 %v9627_v35  ;;  %v301_v34 = vld [vmem:[#allocation3 + $0x70] sm:$0xff]  ;;  %v11114_v35 = vpack.c.bf16 %v282_v29, %v281_v28  ;;  %v9712_v29 = vcombine.high %v1323_v24, %v1327_v25 }
  0xa2   : > { %753 = vmatprep.subr.bf16.mxu0 %v9634_v36  ;;  %806 = vmatprep.subr.bf16.mxu1 %v9636_v37  ;;  %v298_v36 = vld [vmem:[#allocation3 + $0x58] sm:$0xff]  ;;  %v9658_v40 = vcombine.high %v297_v33, %v301_v34  ;;  %v9657_v46 = vcombine.low %v297_v33, %v301_v34  ;;  %v1335_v33 = vld [vmem:[#allocation3 + $0x3a8] sm:$0xff] }
  0xa3   : > { %v302_v37 = vld [vmem:[#allocation3 + $0x78] sm:$0xff] }
  0xa4   : > { %v9660_v41 = vcombine.high %v298_v36, %v302_v37  ;;  %v9659_v49 = vcombine.low %v298_v36, %v302_v37  ;;  %v9711_v36 = vcombine.low %v1323_v24, %v1327_v25  ;;  %v1310_v24 = vld [vmem:[%s11078_s10 + $0x1a] sm:$0xff] }
  0xa5   : > { %754 = vmatpush1.bf16.msra.mxu0 %v9633_v42  ;;  %807 = vmatpush1.bf16.msra.mxu1 %v9635_v43  ;;  %v305_v42 = vld [vmem:[#allocation3 + $0x90] sm:$0xff] }
  0xa6   : > { %1095 = vmatprep.subr.bf16.mxu0 %v9646_v44  ;;  %1148 = vmatprep.subr.bf16.mxu1 %v9648_v45  ;;  %v309_v43 = vld [vmem:[#allocation3 + $0xb0] sm:$0xff]  ;;  %v306_v44 = vld [vmem:[#allocation3 + $0x98] sm:$0xff] }
  0xa7   : > { %v310_v45 = vld [vmem:[#allocation3 + $0xb8] sm:$0xff] }
  0xa8   : > { %9641 = vmatmul.mubr.msk.bf16.vlgmr.msra.gmra.mrb[8].mxu0 %vm630_vm0, %v11082_v59  ;;  %9643 = vmatmul.mubr.msk.bf16.vlgmr.msra.gmra.mrb[8].mxu1 %vm630_vm0, %v11082_v59  ;;  %v9663_v59 = vcombine.low %v304_v56, %v308_v57  ;;  %v11124_v56 = vpack.c.bf16 %v284_v48, %v283_v47  ;;  %v9665_v57 = vcombine.low %v305_v42, %v309_v43  ;;  %v1350_v47 = vld [vmem:[#allocation3 + $0x420] sm:$0xff]  ;;  %v1347_v48 = vld [vmem:[#allocation3 + $0x408] sm:$0xff] }
  0xa9   : > { %1096 = vmatpush1.bf16.msra.mxu0 %v9645_v50  ;;  %1149 = vmatpush1.bf16.msra.mxu1 %v9647_v51  ;;  %v9666_v50 = vcombine.high %v305_v42, %v309_v43  ;;  %v9668_v51 = vcombine.high %v306_v44, %v310_v45  ;;  %v1343_v42 = vld [vmem:[#allocation3 + $0x3e8] sm:$0xff] }
  0xaa   : > { %1097 = vmatprep.subr.bf16.mxu0 %v9654_v52  ;;  %1150 = vmatprep.subr.bf16.mxu1 %v9656_v53  ;;  %v313_v52 = vld [vmem:[#allocation3 + $0xd0] sm:$0xff] }
  0xab   : > { %785 = vmatprep.mubr.bf16.mxu0 %v10896_v0  ;;  %838 = vmatprep.mubr.bf16.mxu1 %v10896_v0  ;;  %v317_v53 = vld [vmem:[#allocation3 + $0xf0] sm:$0xff] }
  0xac   : > { %v9673_v3 = vcombine.low %v313_v52, %v317_v53 }
  0xad   : > { %1098 = vmatpush1.bf16.msra.mxu0 %v9653_v58  ;;  %1151 = vmatpush1.bf16.msra.mxu1 %v9655_v60  ;;  %v9667_v58 = vcombine.low %v306_v44, %v310_v45  ;;  %v9674_v60 = vcombine.high %v313_v52, %v317_v53 }
  0xae   : > { %1099 = vmatprep.subr.bf16.mxu0 %v9662_v61  ;;  %1152 = vmatprep.subr.bf16.mxu1 %v9664_v62  ;;  %v9676_v61 = vcombine.high %v314_v54, %v318_v55  ;;  %v321_v62 = vld [vmem:[#allocation3 + $0x110] sm:$0xff] }
  0xb0   : > { %9642 = vmatmul.mubr.msk.bf16.gmra.mrb[12].mxu0 %vm630_vm0, %v11092_v17  ;;  %9644 = vmatmul.mubr.msk.bf16.gmra.mrb[12].mxu1 %vm630_vm0, %v11092_v17  ;;  %v9679_v17 = vcombine.low %v320_v9, %v324_v10  ;;  %v334_v9 = vld [vmem:[#allocation3 + $0x178] sm:$0xff]  ;;  %v9681_v10 = vcombine.low %v321_v62, %v325_v63 }
  0xb1   : > { %1100 = vmatpush1.bf16.msra.mxu0 %v9661_v4  ;;  %1153 = vmatpush1.bf16.msra.mxu1 %v9663_v59  ;;  %v9675_v4 = vcombine.low %v314_v54, %v318_v55  ;;  %v9682_v59 = vcombine.high %v321_v62, %v325_v63  ;;  %v1354_v54 = vld [vmem:[#allocation3 + $0x440] sm:$0xff]  ;;  %v1316_v63 = vld [vmem:[#allocation3 + $0x310] sm:$0xff] }
  0xb2   : > { %1101 = vmatprep.subr.bf16.mxu0 %v9670_v5  ;;  %1154 = vmatprep.subr.bf16.mxu1 %v9672_v6  ;;  %v9684_v5 = vcombine.high %v322_v1, %v326_v2  ;;  %v329_v6 = vld [vmem:[#allocation3 + $0x150] sm:$0xff]  ;;  %v1358_v55 = vld [vmem:[#allocation3 + $0x460] sm:$0xff] }
  0xb3   : > { %1127 = vmatprep.mubr.bf16.mxu0 %v10896_v0  ;;  %1180 = vmatprep.mubr.bf16.mxu1 %v10896_v0  ;;  %v9689_v19 = vcombine.low %v329_v6, %v333_v7 }
  0xb5   : > { %1102 = vmatpush1.bf16.msra.mxu0 %v9669_v11  ;;  %1155 = vmatpush1.bf16.msra.mxu1 %v9671_v12  ;;  %v9683_v11 = vcombine.low %v322_v1, %v326_v2  ;;  %v9690_v12 = vcombine.high %v329_v6, %v333_v7  ;;  %v1320_v1 = vld [vmem:[#allocation3 + $0x330] sm:$0xff]  ;;  %v1317_v2 = vld [vmem:[#allocation3 + $0x318] sm:$0xff] }
  0xb6   : > { %1103 = vmatprep.subr.bf16.mxu0 %v9678_v13  ;;  %1156 = vmatprep.subr.bf16.mxu1 %v9680_v14  ;;  %v9692_v13 = vcombine.high %v330_v8, %v334_v9  ;;  %v1314_v14 = vld [vmem:[#allocation3 + $0x300] sm:$0xff]  ;;  %v9706_v7 = vcombine.high %v1316_v63, %v1320_v1 }
  0xb7   : > { %v9701_v26 = vcombine.low %v1314_v14, %v1318_v15 }
  0xb9   : > { %1104 = vmatpush1.bf16.msra.mxu0 %v9677_v20  ;;  %1157 = vmatpush1.bf16.msra.mxu1 %v9679_v17  ;;  %v9691_v20 = vcombine.low %v330_v8, %v334_v9  ;;  %v9702_v17 = vcombine.high %v1314_v14, %v1318_v15  ;;  %v1324_v9 = vld [vmem:[#allocation3 + $0x350] sm:$0xff]  ;;  %v9705_v14 = vcombine.low %v1316_v63, %v1320_v1  ;;  %v3368_v1 = vld [vmem:[#allocation7 + $0x840] sm:$0xff] }
  0xba   : > { %1105 = vmatprep.subr.bf16.mxu0 %v9686_v21  ;;  %1158 = vmatprep.subr.bf16.mxu1 %v9688_v22  ;;  %v9704_v21 = vcombine.high %v1315_v16, %v1319_v18  ;;  %v1322_v22 = vld [vmem:[#allocation3 + $0x340] sm:$0xff] }
  0xbb   : > { %v9710_v28 = vcombine.high %v1322_v22, %v1326_v23  ;;  %v9709_v34 = vcombine.low %v1322_v22, %v1326_v23  ;;  %v1309_v23 = vld [vmem:[%s11078_s10 + $0x12] sm:$0xff] }
  0xbd   : > { %1106 = vmatpush1.bf16.msra.mxu0 %v9685_v27  ;;  %1159 = vmatpush1.bf16.msra.mxu1 %v9687_v30  ;;  %v9703_v27 = vcombine.low %v1315_v16, %v1319_v18  ;;  %v1330_v30 = vld [vmem:[#allocation3 + $0x380] sm:$0xff] }
  0xbe   : > { %1201 = vmatprep.subr.bf16.mxu0 %v9650_v31  ;;  %1254 = vmatprep.subr.bf16.mxu1 %v9652_v32  ;;  %v1334_v31 = vld [vmem:[#allocation3 + $0x3a0] sm:$0xff]  ;;  %v1331_v32 = vld [vmem:[#allocation3 + $0x388] sm:$0xff] }
  0xbf   : > { %v9718_v37 = vcombine.high %v1330_v30, %v1334_v31  ;;  %v9717_v43 = vcombine.low %v1330_v30, %v1334_v31  ;;  %v1312_v30 = vpack.c.bf16 %v1310_v24, %v1309_v23  ;;  %v1341_v31 = vld [vmem:[#allocation3 + $0x3d8] sm:$0xff] }
  0xc0   : > { %9693 = vmatmul.mubr.msk.bf16.vlgmr.msra.gmra.mrb[0].mxu0 %vm630_vm0, %v11114_v35  ;;  %9695 = vmatmul.mubr.msk.bf16.vlgmr.msra.gmra.mrb[0].mxu1 %vm630_vm0, %v11114_v35 }
  0xc1   : > { %1202 = vmatpush1.bf16.msra.mxu0 %v9649_v38  ;;  %1255 = vmatpush1.bf16.msra.mxu1 %v9651_v39  ;;  %v9720_v38 = vcombine.high %v1331_v32, %v1335_v33  ;;  %v1338_v39 = vld [vmem:[#allocation3 + $0x3c0] sm:$0xff] }
  0xc2   : > { %1203 = vmatprep.subr.bf16.mxu0 %v9658_v40  ;;  %1256 = vmatprep.subr.bf16.mxu1 %v9660_v41  ;;  %v1342_v40 = vld [vmem:[#allocation3 + $0x3e0] sm:$0xff]  ;;  %v1339_v41 = vld [vmem:[#allocation3 + $0x3c8] sm:$0xff] }
  0xc3   : > { %1137 = vmatprep.mubr.bf16.mxu0 %v10896_v0  ;;  %1190 = vmatprep.mubr.bf16.mxu1 %v10896_v0  ;;  %v9726_v44 = vcombine.high %v1338_v39, %v1342_v40  ;;  %v9728_v45 = vcombine.high %v1339_v41, %v1343_v42 }
  0xc5   : > { %1204 = vmatpush1.bf16.msra.mxu0 %v9657_v46  ;;  %1257 = vmatpush1.bf16.msra.mxu1 %v9659_v49  ;;  %v1346_v46 = vld [vmem:[#allocation3 + $0x400] sm:$0xff]  ;;  %v1351_v49 = vld [vmem:[#allocation3 + $0x428] sm:$0xff] }
  0xc6   : > { %1205 = vmatprep.subr.bf16.mxu0 %v9666_v50  ;;  %1258 = vmatprep.subr.bf16.mxu1 %v9668_v51  ;;  %v9725_v50 = vcombine.low %v1338_v39, %v1342_v40  ;;  %v9727_v51 = vcombine.low %v1339_v41, %v1343_v42  ;;  %v9734_v52 = vcombine.high %v1346_v46, %v1350_v47  ;;  %v1352_v39 = vld [vmem:[#allocation3 + $0x430] sm:$0xff]  ;;  %v1349_v40 = vld [vmem:[#allocation3 + $0x418] sm:$0xff] }
  0xc7   : > { %v9736_v53 = vcombine.high %v1347_v48, %v1351_v49  ;;  %v1353_v41 = vld [vmem:[#allocation3 + $0x438] sm:$0xff] }
  0xc8   : > { %9694 = vmatmul.mubr.msk.bf16.gmra.mrb[4].mxu0 %vm630_vm0, %v11124_v56  ;;  %9696 = vmatmul.mubr.msk.bf16.gmra.mrb[4].mxu1 %vm630_vm0, %v11124_v56 }
  0xc9   : > { %1206 = vmatpush1.bf16.msra.mxu0 %v9665_v57  ;;  %1259 = vmatpush1.bf16.msra.mxu1 %v9667_v58  ;;  %v1355_v57 = vld [vmem:[#allocation3 + $0x448] sm:$0xff] }
  0xca   : > { %1207 = vmatprep.subr.bf16.mxu0 %v9674_v60  ;;  %1260 = vmatprep.subr.bf16.mxu1 %v9676_v61  ;;  %v1359_v58 = vld [vmem:[#allocation3 + $0x468] sm:$0xff]  ;;  %v9733_v60 = vcombine.low %v1346_v46, %v1350_v47  ;;  %v9742_v61 = vcombine.high %v1354_v54, %v1358_v55  ;;  %v1360_v46 = vld [vmem:[#allocation3 + $0x470] sm:$0xff]  ;;  %v1357_v47 = vld [vmem:[#allocation3 + $0x458] sm:$0xff] }
  0xcb   : > { %1233 = vmatprep.mubr.bf16.mxu0 %v10896_v0  ;;  %1286 = vmatprep.mubr.bf16.mxu1 %v10896_v0  ;;  %v9744_v62 = vcombine.high %v1355_v57, %v1359_v58  ;;  %v9743_v6 = vcombine.low %v1355_v57, %v1359_v58  ;;  %v3364_v57 = vld [vmem:[#allocation7 + $0x820] sm:$0xff]  ;;  %v3361_v58 = vld [vmem:[#allocation7 + $0x808] sm:$0xff] }
  0xcd   : > { %1208 = vmatpush1.bf16.msra.mxu0 %v9673_v3  ;;  %1261 = vmatpush1.bf16.msra.mxu1 %v9675_v4  ;;  %v1321_v3 = vld [vmem:[#allocation3 + $0x338] sm:$0xff]  ;;  %v9741_v4 = vcombine.low %v1354_v54, %v1358_v55  ;;  %v3360_v55 = vld [vmem:[#allocation7 + $0x800] sm:$0xff] }
  0xce   : > { %1209 = vmatprep.subr.bf16.mxu0 %v9682_v59  ;;  %1262 = vmatprep.subr.bf16.mxu1 %v9684_v5  ;;  %v1307_v59 = vld [vmem:[%s11078_s10 + $0x2] sm:$0xff]  ;;  %v1308_v5 = vld [vmem:[%s11078_s10 + $0xa] sm:$0xff]  ;;  %v9708_v8 = vcombine.high %v1317_v2, %v1321_v3  ;;  %v9707_v15 = vcombine.low %v1317_v2, %v1321_v3 }
  0xcf   : > { %v3372_v2 = vld [vmem:[#allocation7 + $0x860] sm:$0xff]  ;;  %v3369_v3 = vld [vmem:[#allocation7 + $0x848] sm:$0xff] }
  0xd1   : > { %1210 = vmatpush1.bf16.msra.mxu0 %v9681_v10  ;;  %1263 = vmatpush1.bf16.msra.mxu1 %v9683_v11  ;;  %v1328_v10 = vld [vmem:[#allocation3 + $0x370] sm:$0xff]  ;;  %v11146_v11 = vpack.c.bf16 %v1308_v5, %v1307_v59  ;;  %v9781_v59 = vcombine.low %v3368_v1, %v3372_v2 }
  0xd2   : > { %1211 = vmatprep.subr.bf16.mxu0 %v9690_v12  ;;  %1264 = vmatprep.subr.bf16.mxu1 %v9692_v13  ;;  %v1325_v12 = vld [vmem:[#allocation3 + $0x358] sm:$0xff]  ;;  %v9714_v16 = vcombine.high %v1324_v9, %v1328_v10  ;;  %v9713_v22 = vcombine.low %v1324_v9, %v1328_v10  ;;  %v3377_v9 = vld [vmem:[#allocation7 + $0x888] sm:$0xff] }
  0xd3   : > { %v1329_v13 = vld [vmem:[#allocation3 + $0x378] sm:$0xff] }
  0xd4   : > { %v9716_v18 = vcombine.high %v1325_v12, %v1329_v13  ;;  %v9715_v25 = vcombine.low %v1325_v12, %v1329_v13 }
  0xd5   : > { %1212 = vmatpush1.bf16.msra.mxu0 %v9689_v19  ;;  %1265 = vmatpush1.bf16.msra.mxu1 %v9691_v20  ;;  %v1332_v19 = vld [vmem:[#allocation3 + $0x390] sm:$0xff] }
  0xd6   : > { %1608 = vmatprep.subr.bf16.mxu0 %v9702_v17  ;;  %1661 = vmatprep.subr.bf16.mxu1 %v9704_v21  ;;  %v1336_v20 = vld [vmem:[#allocation3 + $0x3b0] sm:$0xff]  ;;  %v1333_v17 = vld [vmem:[#allocation3 + $0x398] sm:$0xff] }
  0xd7   : > { %v1337_v21 = vld [vmem:[#allocation3 + $0x3b8] sm:$0xff] }
  0xd8   : > { %9697 = vmatmul.mubr.msk.bf16.vlgmr.msra.gmra.mrb[8].mxu0 %vm630_vm0, %v11114_v35  ;;  %9699 = vmatmul.mubr.msk.bf16.vlgmr.msra.gmra.mrb[8].mxu1 %vm630_vm0, %v11114_v35  ;;  %v9719_v35 = vcombine.low %v1331_v32, %v1335_v33  ;;  %v1345_v32 = vld [vmem:[#allocation3 + $0x3f8] sm:$0xff]  ;;  %v9721_v33 = vcombine.low %v1332_v19, %v1336_v20 }
  0xd9   : > { %1609 = vmatpush1.bf16.msra.mxu0 %v9701_v26  ;;  %1662 = vmatpush1.bf16.msra.mxu1 %v9703_v27  ;;  %v9722_v26 = vcombine.high %v1332_v19, %v1336_v20  ;;  %v9724_v27 = vcombine.high %v1333_v17, %v1337_v21 }
  0xda   : > { %1610 = vmatprep.subr.bf16.mxu0 %v9710_v28  ;;  %1663 = vmatprep.subr.bf16.mxu1 %v9712_v29  ;;  %v1340_v28 = vld [vmem:[#allocation3 + $0x3d0] sm:$0xff] }
  0xdb   : > { %1243 = vmatprep.mubr.bf16.mxu0 %v10896_v0  ;;  %1296 = vmatprep.mubr.bf16.mxu1 %v10896_v0  ;;  %v1344_v29 = vld [vmem:[#allocation3 + $0x3f0] sm:$0xff] }
  0xdc   : > { %v9729_v42 = vcombine.low %v1340_v28, %v1344_v29 }
  0xdd   : > { %1611 = vmatpush1.bf16.msra.mxu0 %v9709_v34  ;;  %1664 = vmatpush1.bf16.msra.mxu1 %v9711_v36  ;;  %v9723_v34 = vcombine.low %v1333_v17, %v1337_v21  ;;  %v9730_v36 = vcombine.high %v1340_v28, %v1344_v29 }
  0xde   : > { %1612 = vmatprep.subr.bf16.mxu0 %v9718_v37  ;;  %1665 = vmatprep.subr.bf16.mxu1 %v9720_v38  ;;  %v9732_v37 = vcombine.high %v1341_v31, %v1345_v32  ;;  %v1348_v38 = vld [vmem:[#allocation3 + $0x410] sm:$0xff] }
  0xe0   : > { %9698 = vmatmul.mubr.msk.bf16.gmra.mrb[12].mxu0 %vm630_vm0, %v11124_v56  ;;  %9700 = vmatmul.mubr.msk.bf16.gmra.mrb[12].mxu1 %vm630_vm0, %v11124_v56  ;;  %v9735_v56 = vcombine.low %v1347_v48, %v1351_v49  ;;  %v1361_v48 = vld [vmem:[#allocation3 + $0x478] sm:$0xff]  ;;  %v9737_v49 = vcombine.low %v1348_v38, %v1352_v39 }
  0xe1   : > { %1613 = vmatpush1.bf16.msra.mxu0 %v9717_v43  ;;  %1666 = vmatpush1.bf16.msra.mxu1 %v9719_v35  ;;  %v9731_v43 = vcombine.low %v1341_v31, %v1345_v32  ;;  %v9738_v35 = vcombine.high %v1348_v38, %v1352_v39  ;;  %v9747_v54 = vcombine.low %v1357_v47, %v1361_v48 }
  0xe2   : > { %1614 = vmatprep.subr.bf16.mxu0 %v9726_v44  ;;  %1667 = vmatprep.subr.bf16.mxu1 %v9728_v45  ;;  %v9740_v44 = vcombine.high %v1349_v40, %v1353_v41  ;;  %v1356_v45 = vld [vmem:[#allocation3 + $0x450] sm:$0xff] }
  0xe3   : > { %1640 = vmatprep.mubr.bf16.mxu0 %v10896_v0  ;;  %1693 = vmatprep.mubr.bf16.mxu1 %v10896_v0 }
  0xe5   : > { %1615 = vmatpush1.bf16.msra.mxu0 %v9725_v50  ;;  %1668 = vmatpush1.bf16.msra.mxu1 %v9727_v51  ;;  %v9739_v50 = vcombine.low %v1349_v40, %v1353_v41  ;;  %v9746_v51 = vcombine.high %v1356_v45, %v1360_v46 }
  0xe6   : > { %1616 = vmatprep.subr.bf16.mxu0 %v9734_v52  ;;  %1669 = vmatprep.subr.bf16.mxu1 %v9736_v53  ;;  %v9748_v52 = vcombine.high %v1357_v47, %v1361_v48  ;;  %v9745_v53 = vcombine.low %v1356_v45, %v1360_v46 }
  0xe9   : > { %1617 = vmatpush1.bf16.msra.mxu0 %v9733_v60  ;;  %1670 = vmatpush1.bf16.msra.mxu1 %v9735_v56  ;;  %v9773_v60 = vcombine.low %v3360_v55, %v3364_v57  ;;  %v9774_v56 = vcombine.high %v3360_v55, %v3364_v57 }
  0xea   : > { %1618 = vmatprep.subr.bf16.mxu0 %v9742_v61  ;;  %1671 = vmatprep.subr.bf16.mxu1 %v9744_v62  ;;  %v3365_v61 = vld [vmem:[#allocation7 + $0x828] sm:$0xff] }
  0xeb   : > { %v9775_v62 = vcombine.low %v3361_v58, %v3365_v61  ;;  %v9776_v63 = vcombine.high %v3361_v58, %v3365_v61 }
  0xed   : > { %1619 = vmatpush1.bf16.msra.mxu0 %v9741_v4  ;;  %1672 = vmatpush1.bf16.msra.mxu1 %v9743_v6  ;;  %v3373_v4 = vld [vmem:[#allocation7 + $0x868] sm:$0xff] }
  0xee   : > { %1714 = vmatprep.subr.bf16.mxu0 %v9706_v7  ;;  %1767 = vmatprep.subr.bf16.mxu1 %v9708_v8  ;;  %v9783_v5 = vcombine.low %v3369_v3, %v3373_v4  ;;  %v9784_v6 = vcombine.high %v3369_v3, %v3373_v4  ;;  %v3376_v7 = vld [vmem:[#allocation7 + $0x880] sm:$0xff] }
  0xef   : > { %v3380_v8 = vld [vmem:[#allocation7 + $0x8a0] sm:$0xff] }
  0xf0   : > { %9749 = vmatmul.mubr.msk.bf16.vlgmr.msra.gmra.mrb[0].mxu0 %vm630_vm0, %v11146_v11  ;;  %9751 = vmatmul.mubr.msk.bf16.vlgmr.msra.gmra.mrb[0].mxu1 %vm630_vm0, %v11146_v11  ;;  %v9790_v10 = vcombine.high %v3376_v7, %v3380_v8  ;;  %v9789_v12 = vcombine.low %v3376_v7, %v3380_v8 }
  0xf1   : > { %1715 = vmatpush1.bf16.msra.mxu0 %v9705_v14  ;;  %1768 = vmatpush1.bf16.msra.mxu1 %v9707_v15  ;;  %v12080_v15 = vlaneseq }
  0xf2   : > { %1716 = vmatprep.subr.bf16.mxu0 %v9714_v16  ;;  %1769 = vmatprep.subr.bf16.mxu1 %v9716_v18 }
  0xf3   : > { %1650 = vmatprep.mubr.bf16.mxu0 %v10896_v0  ;;  %1703 = vmatprep.mubr.bf16.mxu1 %v10896_v0  ;;  %v11169_v16 = vshrl.u32 %v12080_v15, 7 }
  0xf5   : > { %1717 = vmatpush1.bf16.msra.mxu0 %v9713_v22  ;;  %1770 = vmatpush1.bf16.msra.mxu1 %v9715_v25  ;;  %12095 = vst [vmem:[#allocation13_spill] sm:$0xff] %v11169_v16  ;;  %v12079_v22 = vsub.s32 0, %v11169_v16  ;;  %v1852_v25 = vld [vmem:[#allocation5] sm:$0xff]  ;;  %v12076_v29 = vsub.s32 3, %v11169_v16  ;;  %v12074_v55 = vsub.s32 5, %v11169_v16  ;;  %v12072_v58 = vsub.s32 7, %v11169_v16 }
  0xf6   : > { %1718 = vmatprep.subr.bf16.mxu0 %v9722_v26  ;;  %1771 = vmatprep.subr.bf16.mxu1 %v9724_v27  ;;  %v12078_v26 = vsub.s32 2, %v11169_v16  ;;  %v12077_v27 = vsub.s32 1, %v11169_v16 }
  0xf8   : > { %9750 = vmatmul.mubr.msk.bf16.gmra.mrb[4].mxu0 %vm630_vm0, %v1312_v30  ;;  %9752 = vmatmul.mubr.msk.bf16.gmra.mrb[4].mxu1 %vm630_vm0, %v1312_v30  ;;  %v1865_v31 = vrot.slane %v1852_v25, %v12078_v26  ;;  %v1861_v32 = vrot.slane %v1852_v25, %v12077_v27 }
  0xf9   : > { %1719 = vmatpush1.bf16.msra.mxu0 %v9721_v33  ;;  %1772 = vmatpush1.bf16.msra.mxu1 %v9723_v34  ;;  %v1869_v34 = vrot.slane %v1852_v25, %v12076_v29 }
  0xfa   : > { %1720 = vmatprep.subr.bf16.mxu0 %v9730_v36  ;;  %1773 = vmatprep.subr.bf16.mxu1 %v9732_v37 }
  0xfb   : > { %1746 = vmatprep.mubr.bf16.mxu0 %v10896_v0  ;;  %1799 = vmatprep.mubr.bf16.mxu1 %v10896_v0 }
  0xfd   : > { %1721 = vmatpush1.bf16.msra.mxu0 %v9729_v42  ;;  %1774 = vmatpush1.bf16.msra.mxu1 %v9731_v43 }
  0xfe   : > { %1722 = vmatprep.subr.bf16.mxu0 %v9738_v35  ;;  %1775 = vmatprep.subr.bf16.mxu1 %v9740_v44 }
 0x101   : > { %1723 = vmatpush1.bf16.msra.mxu0 %v9737_v49  ;;  %1776 = vmatpush1.bf16.msra.mxu1 %v9739_v50  ;;  %v10897_v50 = vmov 1983009808  }
 0x102   : > { %1724 = vmatprep.subr.bf16.mxu0 %v9746_v51  ;;  %1777 = vmatprep.subr.bf16.mxu1 %v9748_v52  ;;  %v1995_v51 = vunpack.c.l.s4 %v10897_v50  ;;  %v12075_v52 = vsub.s32 4, %v11169_v16 }
 0x104   : > { %v1996_v57 = vunpack.c.0.s8 %v1995_v51  ;;  %v11205_v3 = vrot.slane %v1852_v25, %v12075_v52 }
 0x105   : > { %1725 = vmatpush1.bf16.msra.mxu0 %v9745_v53  ;;  %1778 = vmatpush1.bf16.msra.mxu1 %v9747_v54  ;;  %v12073_v53 = vsub.s32 6, %v11169_v16 }
 0x106   : > { %4949 = vmatprep.subr.bf16.mxu0 %v9774_v56  ;;  %5035 = vmatprep.subr.bf16.mxu1 %v9776_v63 }
 0x108   : > { %9753 = vmatmul.mubr.msk.bf16.vlgmr.msra.gmra.mrb[8].mxu0 %vm630_vm0, %v11146_v11  ;;  %9755 = vmatmul.mubr.msk.bf16.vlgmr.msra.gmra.mrb[8].mxu1 %vm630_vm0, %v11146_v11  ;;  %v3381_v11 = vld [vmem:[#allocation7 + $0x8a8] sm:$0xff] }
 0x109   : > { %1756 = vmatprep.mubr.bf16.mxu0 %v10896_v0  ;;  %1809 = vmatprep.mubr.bf16.mxu1 %v10896_v0  ;;  %v9782_v0 = vcombine.high %v3368_v1, %v3372_v2  ;;  %v9791_v13 = vcombine.low %v3377_v9, %v3381_v11  ;;  %v9792_v14 = vcombine.high %v3377_v9, %v3381_v11 }
 0x10a   : > { %4950 = vmatpush1.bf16.msra.mxu0 %v9773_v60  ;;  %5036 = vmatpush1.bf16.msra.mxu1 %v9775_v62 }
 0x10b   : > { %4951 = vmatprep.subr.bf16.mxu0 %v9782_v0  ;;  %5037 = vmatprep.subr.bf16.mxu1 %v9784_v6  ;;  %v11209_v0 = vrot.slane %v1852_v25, %v12073_v53  ;;  %v11220_v6 = vrot.slane %v1852_v25, %v12072_v58 }
 0x10e   : > { %4952 = vmatpush1.bf16.msra.mxu0 %v9781_v59  ;;  %5038 = vmatpush1.bf16.msra.mxu1 %v9783_v5  ;;  %v11213_v59 = vrot.slane %v1852_v25, %v12074_v55  ;;  %v11216_v5 = vsub.s32 %v1996_v57, %v11169_v16 }
 0x10f   : > { %4953 = vmatprep.subr.bf16.mxu0 %v9790_v10  ;;  %5039 = vmatprep.subr.bf16.mxu1 %v9792_v14 }
 0x110   : > { %9754 = vmatmul.mubr.msk.bf16.gmra.mrb[12].mxu0 %vm630_vm0, %v1312_v30  ;;  %9756 = vmatmul.mubr.msk.bf16.gmra.mrb[12].mxu1 %vm630_vm0, %v1312_v30  ;;  %v1857_v30 = vrot.slane %v1852_v25, %v12079_v22 }
 0x112   : > { %4954 = vmatpush1.bf16.msra.mxu0 %v9789_v12  ;;  %5040 = vmatpush1.bf16.msra.mxu1 %v9791_v13 }
 0x1c3   : > { %v1642_v18 = vpop.f32.mrb[0].mxu0  ;;  %v1695_v19 = vpop.f32.mrb[0].mxu1 }
 0x1c4   : > { %v1644_v20 = vpop.f32.mrb[1].mxu0  ;;  %v1697_v17 = vpop.f32.mrb[1].mxu1  ;;  %v1894_v54 = vadd.f32 %v1857_v30, %v1642_v18  ;;  %v1896_v60 = vadd.f32 %v1865_v31, %v1695_v19 }
 0x1c5   : > { %v1646_v21 = vpop.f32.mrb[2].mxu0  ;;  %v1699_v23 = vpop.f32.mrb[2].mxu1  ;;  %v1895_v56 = vadd.f32 %v1861_v32, %v1644_v20  ;;  %v1897_v61 = vadd.f32 %v1869_v34, %v1697_v17 }
 0x1c6   : > { %v1648_v24 = vpop.f32.mrb[3].mxu0  ;;  %v1701_v28 = vpop.f32.mrb[3].mxu1  ;;  %v1902_v62 = vadd.f32 %v1857_v30, %v1646_v21  ;;  %v1904_v63 = vadd.f32 %v1865_v31, %v1699_v23  ;;  %v1926_v4 = vmax.f32 %v1894_v54, 0.0  ;;  %v1928_v7 = vmax.f32 %v1896_v60, 0.0 }
 0x1c7   : > { %v1903_v1 = vadd.f32 %v1861_v32, %v1648_v24  ;;  %v1905_v2 = vadd.f32 %v1869_v34, %v1701_v28  ;;  %v1927_v8 = vmax.f32 %v1895_v56, 0.0  ;;  %v1929_v9 = vmax.f32 %v1897_v61, 0.0 }
 0x1c8   : > { %v1934_v10 = vmax.f32 %v1902_v62, 0.0  ;;  %v1936_v11 = vmax.f32 %v1904_v63, 0.0 }
 0x1c9   : > { %v1935_v12 = vmax.f32 %v1903_v1, 0.0  ;;  %v1937_v13 = vmax.f32 %v1905_v2, 0.0 }
 0x1cb   : > { %v1652_v33 = vpop.f32.mrb[4].mxu0  ;;  %v1705_v37 = vpop.f32.mrb[4].mxu1 }
 0x1cc   : > { %v11183_v36 = vadd.f32 %v1857_v30, %v1652_v33  ;;  %v1654_v38 = vpop.f32.mrb[5].mxu0  ;;  %v11185_v39 = vadd.f32 %v1865_v31, %v1705_v37  ;;  %v1707_v41 = vpop.f32.mrb[5].mxu1 }
 0x1cd   : > { %v11187_v40 = vadd.f32 %v1861_v32, %v1654_v38  ;;  %v1656_v42 = vpop.f32.mrb[6].mxu0  ;;  %v11189_v43 = vadd.f32 %v1869_v34, %v1707_v41  ;;  %v1709_v44 = vpop.f32.mrb[6].mxu1 }
 0x1ce   : > { %v11191_v35 = vadd.f32 %v1857_v30, %v1656_v42  ;;  %v1658_v45 = vpop.f32.mrb[7].mxu0  ;;  %v11193_v46 = vadd.f32 %v1865_v31, %v1709_v44  ;;  %v1711_v48 = vpop.f32.mrb[7].mxu1 }
 0x1cf   : > { %v11195_v47 = vadd.f32 %v1861_v32, %v1658_v45  ;;  %v11197_v49 = vadd.f32 %v1869_v34, %v1711_v48 }
 0x1d1   : > { %12096 = vst [vmem:[#allocation14_spill] sm:$0xff] %v11195_v47  ;;  %12097 = vst [vmem:[#allocation15_spill] sm:$0xff] %v11197_v49 }
 0x1db   : > { %v1748_v18 = vpop.f32.mrb[8].mxu0  ;;  %v1801_v23 = vpop.f32.mrb[8].mxu1 }
 0x1dc   : > { %v1898_v21 = vadd.f32 %v11205_v3, %v1748_v18  ;;  %v1750_v24 = vpop.f32.mrb[9].mxu0  ;;  %v1900_v30 = vadd.f32 %v11209_v0, %v1801_v23  ;;  %v1803_v32 = vpop.f32.mrb[9].mxu1 }
 0x1dd   : > { %v1899_v31 = vadd.f32 %v11213_v59, %v1750_v24  ;;  %v1752_v33 = vpop.f32.mrb[10].mxu0  ;;  %v1901_v38 = vadd.f32 %v11220_v6, %v1803_v32  ;;  %v1805_v42 = vpop.f32.mrb[10].mxu1 }
 0x1de   : > { %v1930_v37 = vmax.f32 %v1898_v21, 0.0  ;;  %v1906_v41 = vadd.f32 %v11205_v3, %v1752_v33  ;;  %v1754_v44 = vpop.f32.mrb[11].mxu0  ;;  %v1932_v45 = vmax.f32 %v1900_v30, 0.0  ;;  %v1908_v50 = vadd.f32 %v11209_v0, %v1805_v42  ;;  %v1807_v54 = vpop.f32.mrb[11].mxu1 }
 0x1df   : > { %v1931_v48 = vmax.f32 %v1899_v31, 0.0  ;;  %v1907_v51 = vadd.f32 %v11213_v59, %v1754_v44  ;;  %v1933_v60 = vmax.f32 %v1901_v38, 0.0  ;;  %v1909_v61 = vadd.f32 %v11220_v6, %v1807_v54 }
 0x1e0   : > { %v1958_v57 = vmax.f32 %v1926_v4, %v1930_v37  ;;  %v1938_v56 = vmax.f32 %v1906_v41, 0.0  ;;  %v1960_v62 = vmax.f32 %v1928_v7, %v1932_v45  ;;  %v1940_v1 = vmax.f32 %v1908_v50, 0.0 }
 0x1e1   : > { %v1959_v63 = vmax.f32 %v1927_v8, %v1931_v48  ;;  %v1939_v2 = vmax.f32 %v1907_v51, 0.0  ;;  %v1961_v21 = vmax.f32 %v1929_v9, %v1933_v60  ;;  %v1941_v24 = vmax.f32 %v1909_v61, 0.0 }
 0x1e2   : > { %v1962_v23 = vmax.f32 %v1934_v10, %v1938_v56  ;;  %v11238_v32 = vmax.f32 %v1936_v11, %v1940_v1 }
 0x1e3   : > { %v1990_v30 = vcombine.low %v1958_v57, %v1959_v63  ;;  %v1991_v31 = vcombine.high %v1958_v57, %v1959_v63  ;;  %v1963_v33 = vmax.f32 %v1935_v12, %v1939_v2  ;;  %v1758_v4 = vpop.f32.mrb[12].mxu0  ;;  %v1992_v37 = vcombine.low %v1960_v62, %v1961_v21  ;;  %v1811_v8 = vpop.f32.mrb[12].mxu1 }
 0x1e4   : > { %v1993_v38 = vcombine.high %v1960_v62, %v1961_v21  ;;  %v11240_v41 = vmax.f32 %v1937_v13, %v1941_v24  ;;  %v11243_v7 = vadd.f32 %v11205_v3, %v1758_v4  ;;  %v11245_v42 = vpop.f32.mrb[13].mxu0  ;;  %v11249_v11 = vpop.f32.mrb[13].mxu1  ;;  %v11271_v62 = vadd.f32 %v11209_v0, %v1811_v8 }
 0x1e5   : > { %v2000_v9 = vrot.slane %v1990_v30, %v11216_v5  ;;  %v2007_v10 = vrot.slane %v1991_v31, %v11216_v5  ;;  %v2026_v44 = vcombine.low %v1962_v23, %v1963_v33  ;;  %v2027_v45 = vcombine.high %v1962_v23, %v1963_v33  ;;  %v11251_v12 = vpop.f32.mrb[14].mxu0  ;;  %v11259_v54 = vpop.f32.mrb[14].mxu1 }
 0x1e6   : > { %v2014_v48 = vrot.slane %v1992_v37, %v11216_v5  ;;  %v2021_v13 = vrot.slane %v1993_v38, %v11216_v5  ;;  %v11261_v57 = vpop.f32.mrb[15].mxu0  ;;  %v11273_v63 = vpop.f32.mrb[15].mxu1 }
 0x1e7   : > { %v11264_v60 = vrot.slane %v2026_v44, %v11216_v5  ;;  %v11267_v56 = vrot.slane %v2027_v45, %v11216_v5 }
 0x1e8   : > { %v2022_v1 = vcombine.low %v2000_v9, %v2014_v48  ;;  %v2023_v2 = vcombine.high %v2000_v9, %v2014_v48  ;;  %v2024_v21 = vcombine.low %v2007_v10, %v2021_v13  ;;  %v2025_v23 = vcombine.high %v2007_v10, %v2021_v13 }
 0x1e9   : > { %v9757_v24 = vcombine.low %v2014_v48, %v2014_v48  ;;  %v9758_v30 = vcombine.high %v2014_v48, %v2014_v48  ;;  %v9759_v31 = vcombine.low %v2021_v13, %v2021_v13  ;;  %v9760_v33 = vcombine.high %v2021_v13, %v2021_v13 }
 0x1ea   : > { %v2141_v4 = vrot.slane %v2022_v1, %v11216_v5  ;;  %v2158_v37 = vrot.slane %v2023_v2, %v11216_v5  ;;  %v11278_v38 = vrot.slane %v2024_v21, %v11216_v5  ;;  %v11281_v8 = vrot.slane %v2025_v23, %v11216_v5 }
 0x1eb   : > { %v2148_v44 = vrot.slane %v9757_v24, %v11216_v5  ;;  %v2165_v9 = vrot.slane %v9758_v30, %v11216_v5  ;;  %v11286_v10 = vrot.slane %v9759_v31, %v11216_v5  ;;  %v11289_v45 = vrot.slane %v9760_v33, %v11216_v5 }
 0x1ec   : > { %v2149_v48 = vcombine.high %v2141_v4, %v2141_v4  ;;  %v2166_v13 = vcombine.high %v2158_v37, %v2158_v37  ;;  %v2183_v1 = vcombine.high %v11278_v38, %v11278_v38  ;;  %v2471_v31 = vsel %vm2470_vm1, %v2141_v4, -inf }
 0x1ed   : > { %v2150_v21 = vcombine.high %v2148_v44, %v2148_v44  ;;  %v2167_v23 = vcombine.high %v2165_v9, %v2165_v9  ;;  %v2485_v58 = vsel %vm2470_vm1, %v2148_v44, -inf  ;;  %v2499_v53 = vsel %vm2470_vm1, %v2158_v37, -inf }
 0x1ee   : > { %v2478_v33 = vsel %vm2470_vm1, %v2149_v48, -inf  ;;  %v2472_v55 = vrot.slane %v2471_v31, 4  ;;  %v2486_v29 = vrot.slane %v2485_v58, 4  ;;  %v2500_v22 = vrot.slane %v2499_v53, 4 }
 0x1ef   : > { %v2479_v52 = vrot.slane %v2478_v33, 4  ;;  %v2492_v27 = vsel %vm2470_vm1, %v2150_v21, -inf  ;;  %v2506_v15 = vsel %vm2470_vm1, %v2166_v13, -inf  ;;  %v2513_v18 = vsel %vm2470_vm1, %v2165_v9, -inf }
 0x1f0   : > { %v2493_v26 = vrot.slane %v2492_v27, 4  ;;  %v2473_v34 = vmax.f32 %v2471_v31, %v2472_v55  ;;  %v2487_v4 = vmax.f32 %v2485_v58, %v2486_v29  ;;  %v2507_v25 = vrot.slane %v2506_v15, 4 }
 0x1f1   : > { %v2480_v28 = vmax.f32 %v2478_v33, %v2479_v52  ;;  %v2501_v17 = vmax.f32 %v2499_v53, %v2500_v22  ;;  %v2514_v44 = vrot.slane %v2513_v18, 4  ;;  %v2520_v37 = vsel %vm2470_vm1, %v2167_v23, -inf }
 0x1f2   : > { %v2494_v48 = vmax.f32 %v2492_v27, %v2493_v26  ;;  %v2474_v20 = vrot.slane %v2473_v34, 2  ;;  %v2488_v14 = vrot.slane %v2487_v4, 2  ;;  %v2508_v61 = vmax.f32 %v2506_v15, %v2507_v25 }
 0x1f3   : > { %v2481_v19 = vrot.slane %v2480_v28, 2  ;;  %v2502_v51 = vrot.slane %v2501_v17, 2  ;;  %v2515_v50 = vmax.f32 %v2513_v18, %v2514_v44  ;;  %v2521_v30 = vrot.slane %v2520_v37, 4 }
 0x1f4   : > { %v2495_v21 = vrot.slane %v2494_v48, 2  ;;  %v2475_v13 = vmax.f32 %v2473_v34, %v2474_v20  ;;  %v2489_v9 = vmax.f32 %v2487_v4, %v2488_v14  ;;  %v2509_v55 = vrot.slane %v2508_v61, 2 }
 0x1f5   : > { %v2482_v2 = vmax.f32 %v2480_v28, %v2481_v19  ;;  %v2503_v29 = vmax.f32 %v2501_v17, %v2502_v51  ;;  %v2516_v58 = vrot.slane %v2515_v50, 2  ;;  %v2522_v26 = vmax.f32 %v2520_v37, %v2521_v30 }
 0x1f6   : > { %v2496_v52 = vmax.f32 %v2494_v48, %v2495_v21  ;;  %v2476_v22 = vrot.slane %v2475_v13, 1  ;;  %v2490_v53 = vrot.slane %v2489_v9, 1  ;;  %v2510_v23 = vmax.f32 %v2508_v61, %v2509_v55 }
 0x1f7   : > { %v2483_v27 = vrot.slane %v2482_v2, 1  ;;  %v2504_v33 = vrot.slane %v2503_v29, 1  ;;  %v2517_v24 = vmax.f32 %v2515_v50, %v2516_v58  ;;  %v2523_v15 = vrot.slane %v2522_v26, 2 }
 0x1f8   : > { %v2497_v31 = vrot.slane %v2496_v52, 1  ;;  %v11307_v25 = vmax.f32 %v2475_v13, %v2476_v22  ;;  %v11311_v20 = vmax.f32 %v2489_v9, %v2490_v53  ;;  %v2511_v14 = vrot.slane %v2510_v23, 1 }
 0x1f9   : > { %v11309_v18 = vmax.f32 %v2482_v2, %v2483_v27  ;;  %v2505_v17 = vmax.f32 %v2503_v29, %v2504_v33  ;;  %v2518_v28 = vrot.slane %v2517_v24, 1  ;;  %v2524_v34 = vmax.f32 %v2522_v26, %v2523_v15 }
 0x1fa   : > { %v11313_v19 = vmax.f32 %v2496_v52, %v2497_v31  ;;  %v2512_v51 = vmax.f32 %v2510_v23, %v2511_v14  ;;  %v2527_v61 = vsel %vm2470_vm1, %v11278_v38, -inf  ;;  %v2534_v30 = vsel %vm2470_vm1, %v2183_v1, -inf }
 0x1fb   : > { %v2541_v50 = vsel %vm2470_vm1, %v11286_v10, -inf  ;;  %v2519_v4 = vmax.f32 %v2517_v24, %v2518_v28  ;;  %v2525_v2 = vrot.slane %v2524_v34, 1  ;;  %v2528_v48 = vrot.slane %v2527_v61, 4 }
 0x1fc   : > { %v2535_v44 = vrot.slane %v2534_v30, 4  ;;  %v2542_v37 = vrot.slane %v2541_v50, 4  ;;  %v12098_v21 = vcombine.high %v11286_v10, %v11286_v10  ;;  %v2555_v9 = vsel %vm2470_vm1, %v11281_v8, -inf }
 0x1fd   : > { %v12099_v38 = vcombine.high %v11281_v8, %v11281_v8  ;;  %v2526_v55 = vmax.f32 %v2524_v34, %v2525_v2  ;;  %v2529_v24 = vmax.f32 %v2527_v61, %v2528_v48  ;;  %v2556_v26 = vrot.slane %v2555_v9, 4 }
 0x1fe   : > { %v2548_v13 = vsel %vm2470_vm1, %v12098_v21, -inf  ;;  %v2536_v52 = vmax.f32 %v2534_v30, %v2535_v44  ;;  %v2543_v58 = vmax.f32 %v2541_v50, %v2542_v37  ;;  %v2569_v10 = vsel %vm2470_vm1, %v11289_v45, -inf }
 0x1ff   : > { %v2562_v1 = vsel %vm2470_vm1, %v12099_v38, -inf  ;;  %v2549_v29 = vrot.slane %v2548_v13, 4  ;;  %v2530_v27 = vrot.slane %v2529_v24, 2  ;;  %v2570_v31 = vrot.slane %v2569_v10, 4 }
 0x200   : > { %v2563_v22 = vrot.slane %v2562_v1, 4  ;;  %v2537_v53 = vrot.slane %v2536_v52, 2  ;;  %v2544_v8 = vrot.slane %v2543_v58, 2  ;;  %v2557_v33 = vmax.f32 %v2555_v9, %v2556_v26 }
 0x201   : > { %v2550_v23 = vmax.f32 %v2548_v13, %v2549_v29  ;;  %v12100_v14 = vcombine.high %v11289_v45, %v11289_v45  ;;  %v2531_v34 = vmax.f32 %v2529_v24, %v2530_v27  ;;  %v2571_v50 = vmax.f32 %v2569_v10, %v2570_v31 }
 0x202   : > { %v2564_v15 = vmax.f32 %v2562_v1, %v2563_v22  ;;  %v2538_v61 = vmax.f32 %v2536_v52, %v2537_v53  ;;  %v2545_v2 = vmax.f32 %v2543_v58, %v2544_v8  ;;  %v2558_v48 = vrot.slane %v2557_v33, 2 }
 0x203   : > { %v2576_v28 = vsel %vm2470_vm1, %v12100_v14, -inf  ;;  %v2551_v30 = vrot.slane %v2550_v23, 2  ;;  %v2532_v21 = vrot.slane %v2531_v34, 1  ;;  %v2572_v29 = vrot.slane %v2571_v50, 2 }
 0x204   : > { %v2565_v44 = vrot.slane %v2564_v15, 2  ;;  %v2577_v37 = vrot.slane %v2576_v28, 4  ;;  %v2539_v13 = vrot.slane %v2538_v61, 1  ;;  %v2546_v16 = vrot.slane %v2545_v2, 1 }
 0x205   : > { %v2552_v38 = vmax.f32 %v2550_v23, %v2551_v30  ;;  %v2559_v9 = vmax.f32 %v2557_v33, %v2558_v48  ;;  %v2533_v22 = vmax.f32 %v2531_v34, %v2532_v21  ;;  %v2573_v14 = vmax.f32 %v2571_v50, %v2572_v29 }
 0x206   : > { %v2566_v1 = vmax.f32 %v2564_v15, %v2565_v44  ;;  %v2578_v26 = vmax.f32 %v2576_v28, %v2577_v37  ;;  %v2540_v45 = vmax.f32 %v2538_v61, %v2539_v13  ;;  %v2547_v24 = vmax.f32 %v2545_v2, %v2546_v16 }
 0x207   : > { %v2553_v49 = vrot.slane %v2552_v38, 1  ;;  %v2560_v52 = vrot.slane %v2559_v9, 1  ;;  %v2574_v53 = vrot.slane %v2573_v14, 1  ;;  %v2993_v31 = vsel %vm2992_vm2, %v2505_v17, %v11307_v25 }
 0x208   : > { %v2567_v27 = vrot.slane %v2566_v1, 1  ;;  %v2579_v10 = vrot.slane %v2578_v26, 2  ;;  %v3004_v23 = vsel %vm2992_vm2, %v2512_v51, %v11309_v18  ;;  %v2995_v28 = vsel %vm2994_vm3, %v2533_v22, %v2993_v31 }
 0x209   : > { %v2554_v58 = vmax.f32 %v2552_v38, %v2553_v49  ;;  %v2561_v8 = vmax.f32 %v2559_v9, %v2560_v52  ;;  %v2575_v34 = vmax.f32 %v2573_v14, %v2574_v53  ;;  %v3005_v61 = vsel %vm2994_vm3, %v2540_v45, %v3004_v23 }
 0x20a   : > { %v2568_v33 = vmax.f32 %v2566_v1, %v2567_v27  ;;  %v2580_v15 = vmax.f32 %v2578_v26, %v2579_v10  ;;  %v3010_v16 = vsel %vm2992_vm2, %v2519_v4, %v11311_v20  ;;  %v3016_v49 = vsel %vm2992_vm2, %v2526_v55, %v11313_v19 }
 0x20b   : > { %v11347_v25 = vsel %vm2996_vm4, %v2561_v8, %v2995_v28  ;;  %v3011_v17 = vsel %vm2994_vm3, %v2547_v24, %v3010_v16  ;;  %v3017_v50 = vsel %vm2994_vm3, %v2554_v58, %v3016_v49  ;;  %v12101_v20 = vcombine.low %v11238_v32, %v11240_v41 }
 0x20c   : > { %v2581_v30 = vrot.slane %v2580_v15, 1  ;;  %v11350_v18 = vsel %vm2996_vm4, %v2568_v33, %v3005_v61  ;;  %v11354_v51 = vsel %vm2996_vm4, %v2575_v34, %v3011_v17  ;;  %v12102_v19 = vcombine.high %v11238_v32, %v11240_v41 }
 0x20d   : > { %v2050_v4 = vrot.slane %v12101_v20, %v11216_v5  ;;  %v12103_v48 = vmax.f32 %v11243_v7, 0.0  ;;  %v12104_v44 = vmax.f32 %v11183_v36, 0.0  ;;  %v11374_v13 = vadd.f32 %v11213_v59, %v11245_v42 }
 0x20e   : > { %v2057_v55 = vrot.slane %v12102_v19, %v11216_v5  ;;  %v2582_v2 = vmax.f32 %v2580_v15, %v2581_v30 }
 0x20f   : > { %v11369_v37 = vmax.f32 %v12104_v44, %v12103_v48  ;;  %v2058_v38 = vcombine.low %v11264_v60, %v2050_v4  ;;  %v2059_v29 = vcombine.high %v11264_v60, %v2050_v4  ;;  %v9761_v36 = vcombine.low %v2050_v4, %v2050_v4 }
 0x210   : > { %v2060_v32 = vcombine.low %v11267_v56, %v2057_v55  ;;  %v2061_v41 = vcombine.high %v11267_v56, %v2057_v55  ;;  %v11381_v7 = vsel %vm2996_vm4, %v2582_v2, %v3017_v50  ;;  %v9762_v9 = vcombine.high %v2050_v4, %v2050_v4 }
 0x211   : > { %v9763_v1 = vcombine.low %v2057_v55, %v2057_v55  ;;  %v2209_v26 = vrot.slane %v2058_v38, %v11216_v5  ;;  %v2226_v22 = vrot.slane %v2059_v29, %v11216_v5  ;;  %v9764_v45 = vcombine.high %v2057_v55, %v2057_v55 }
 0x212   : > { %v11386_v42 = vrot.slane %v2060_v32, %v11216_v5  ;;  %v2216_v60 = vrot.slane %v9761_v36, %v11216_v5  ;;  %v2233_v14 = vrot.slane %v9762_v9, %v11216_v5  ;;  %v11394_v24 = vrot.slane %v2061_v41, %v11216_v5 }
 0x213   : > { %v11391_v56 = vrot.slane %v9763_v1, %v11216_v5  ;;  %v2217_v52 = vcombine.high %v2209_v26, %v2209_v26  ;;  %v2234_v27 = vcombine.high %v2226_v22, %v2226_v22  ;;  %v11399_v58 = vrot.slane %v9764_v45, %v11216_v5 }
 0x214   : > { %v2251_v10 = vcombine.high %v11386_v42, %v11386_v42  ;;  %v2218_v53 = vcombine.high %v2216_v60, %v2216_v60  ;;  %v2235_v31 = vcombine.high %v2233_v14, %v2233_v14  ;;  %v2268_v8 = vcombine.high %v11394_v24, %v11394_v24 }
 0x215   : > { %v2252_v23 = vcombine.high %v11391_v56, %v11391_v56  ;;  %v2583_v15 = vsel %vm2470_vm1, %v2209_v26, -inf  ;;  %v2590_v28 = vsel %vm2470_vm1, %v2217_v52, -inf  ;;  %v2597_v34 = vsel %vm2470_vm1, %v2216_v60, -inf }
 0x216   : > { %v2584_v61 = vrot.slane %v2583_v15, 4  ;;  %v2591_v16 = vrot.slane %v2590_v28, 4  ;;  %v2598_v49 = vrot.slane %v2597_v34, 4  ;;  %v2604_v30 = vsel %vm2470_vm1, %v2218_v53, -inf }
 0x217   : > { %v2605_v17 = vrot.slane %v2604_v30, 4  ;;  %v2611_v50 = vsel %vm2470_vm1, %v2226_v22, -inf  ;;  %v2618_v20 = vsel %vm2470_vm1, %v2234_v27, -inf  ;;  %v2625_v4 = vsel %vm2470_vm1, %v2233_v14, -inf }
 0x218   : > { %v2585_v19 = vmax.f32 %v2583_v15, %v2584_v61  ;;  %v2592_v55 = vmax.f32 %v2590_v28, %v2591_v16  ;;  %v2599_v2 = vmax.f32 %v2597_v34, %v2598_v49  ;;  %v2612_v48 = vrot.slane %v2611_v50, 4 }
 0x219   : > { %v2606_v44 = vmax.f32 %v2604_v30, %v2605_v17  ;;  %v2619_v38 = vrot.slane %v2618_v20, 4  ;;  %v2626_v29 = vrot.slane %v2625_v4, 4  ;;  %v2632_v32 = vsel %vm2470_vm1, %v2235_v31, -inf }
 0x21a   : > { %v2586_v41 = vrot.slane %v2585_v19, 2  ;;  %v2593_v36 = vrot.slane %v2592_v55, 2  ;;  %v2600_v9 = vrot.slane %v2599_v2, 2  ;;  %v2613_v1 = vmax.f32 %v2611_v50, %v2612_v48 }
 0x21b   : > { %v2607_v26 = vrot.slane %v2606_v44, 2  ;;  %v2620_v45 = vmax.f32 %v2618_v20, %v2619_v38  ;;  %v2627_v22 = vmax.f32 %v2625_v4, %v2626_v29  ;;  %v2633_v60 = vrot.slane %v2632_v32, 4 }
 0x21c   : > { %v2587_v52 = vmax.f32 %v2585_v19, %v2586_v41  ;;  %v2594_v27 = vmax.f32 %v2592_v55, %v2593_v36  ;;  %v2601_v14 = vmax.f32 %v2599_v2, %v2600_v9  ;;  %v2614_v53 = vrot.slane %v2613_v1, 2 }
 0x21d   : > { %v2608_v15 = vmax.f32 %v2606_v44, %v2607_v26  ;;  %v2621_v28 = vrot.slane %v2620_v45, 2  ;;  %v2628_v34 = vrot.slane %v2627_v22, 2  ;;  %v2634_v61 = vmax.f32 %v2632_v32, %v2633_v60 }
 0x21e   : > { %v2588_v16 = vrot.slane %v2587_v52, 1  ;;  %v2595_v49 = vrot.slane %v2594_v27, 1  ;;  %v2602_v30 = vrot.slane %v2601_v14, 1  ;;  %v2615_v31 = vmax.f32 %v2613_v1, %v2614_v53 }
 0x21f   : > { %v2609_v17 = vrot.slane %v2608_v15, 1  ;;  %v2622_v21 = vmax.f32 %v2620_v45, %v2621_v28  ;;  %v2629_v33 = vmax.f32 %v2627_v22, %v2628_v34  ;;  %v2635_v50 = vrot.slane %v2634_v61, 2 }
 0x220   : > { %v11415_v48 = vmax.f32 %v2587_v52, %v2588_v16  ;;  %v11417_v20 = vmax.f32 %v2594_v27, %v2595_v49  ;;  %v11419_v4 = vmax.f32 %v2601_v14, %v2602_v30  ;;  %v2616_v19 = vrot.slane %v2615_v31, 1 }
 0x221   : > { %v11421_v55 = vmax.f32 %v2608_v15, %v2609_v17  ;;  %v2623_v2 = vrot.slane %v2622_v21, 1  ;;  %v2630_v44 = vrot.slane %v2629_v33, 1  ;;  %v2636_v38 = vmax.f32 %v2634_v61, %v2635_v50 }
 0x222   : > { %v2617_v29 = vmax.f32 %v2615_v31, %v2616_v19  ;;  %v2639_v32 = vsel %vm2470_vm1, %v11386_v42, -inf  ;;  %v2646_v41 = vsel %vm2470_vm1, %v2251_v10, -inf  ;;  %v2653_v36 = vsel %vm2470_vm1, %v11391_v56, -inf }
 0x223   : > { %v2624_v9 = vmax.f32 %v2622_v21, %v2623_v2  ;;  %v11428_v1 = vmax.f32 %v2629_v33, %v2630_v44  ;;  %v2637_v26 = vrot.slane %v2636_v38, 1  ;;  %v2640_v45 = vrot.slane %v2639_v32, 4 }
 0x224   : > { %v2647_v22 = vrot.slane %v2646_v41, 4  ;;  %v2654_v60 = vrot.slane %v2653_v36, 4  ;;  %v2660_v52 = vsel %vm2470_vm1, %v2252_v23, -inf  ;;  %v2667_v42 = vsel %vm2470_vm1, %v11394_v24, -inf }
 0x225   : > { %v11436_v10 = vmax.f32 %v2636_v38, %v2637_v26  ;;  %v2641_v27 = vmax.f32 %v2639_v32, %v2640_v45  ;;  %v2661_v14 = vrot.slane %v2660_v52, 4  ;;  %v2668_v21 = vrot.slane %v2667_v42, 4 }
 0x226   : > { %v2648_v33 = vmax.f32 %v2646_v41, %v2647_v22  ;;  %v2655_v53 = vmax.f32 %v2653_v36, %v2654_v60  ;;  %v2674_v15 = vsel %vm2470_vm1, %v2268_v8, -inf  ;;  %v2681_v56 = vsel %vm2470_vm1, %v11399_v58, -inf }
 0x227   : > { %v2642_v23 = vrot.slane %v2641_v27, 2  ;;  %v2662_v28 = vmax.f32 %v2660_v52, %v2661_v14  ;;  %v2669_v34 = vmax.f32 %v2667_v42, %v2668_v21  ;;  %v2675_v61 = vrot.slane %v2674_v15, 4 }
 0x228   : > { %v2649_v16 = vrot.slane %v2648_v33, 2  ;;  %v2656_v49 = vrot.slane %v2655_v53, 2  ;;  %v2682_v30 = vrot.slane %v2681_v56, 4  ;;  %v12105_v31 = vcombine.high %v11399_v58, %v11399_v58 }
 0x229   : > { %v2643_v50 = vmax.f32 %v2641_v27, %v2642_v23  ;;  %v2663_v24 = vrot.slane %v2662_v28, 2  ;;  %v2670_v19 = vrot.slane %v2669_v34, 2  ;;  %v2676_v8 = vmax.f32 %v2674_v15, %v2675_v61 }
 0x22a   : > { %v2688_v17 = vsel %vm2470_vm1, %v12105_v31, -inf  ;;  %v2650_v2 = vmax.f32 %v2648_v33, %v2649_v16  ;;  %v2657_v44 = vmax.f32 %v2655_v53, %v2656_v49  ;;  %v2683_v38 = vmax.f32 %v2681_v56, %v2682_v30 }
 0x22b   : > { %v2689_v32 = vrot.slane %v2688_v17, 4  ;;  %v2644_v41 = vrot.slane %v2643_v50, 1  ;;  %v2664_v36 = vmax.f32 %v2662_v28, %v2663_v24  ;;  %v2671_v26 = vmax.f32 %v2669_v34, %v2670_v19 }
 0x22c   : > { %v2677_v45 = vrot.slane %v2676_v8, 2  ;;  %v2651_v22 = vrot.slane %v2650_v2, 1  ;;  %v2658_v60 = vrot.slane %v2657_v44, 1  ;;  %v2684_v52 = vrot.slane %v2683_v38, 2 }
 0x22d   : > { %v2690_v42 = vmax.f32 %v2688_v17, %v2689_v32  ;;  %v2645_v14 = vmax.f32 %v2643_v50, %v2644_v41  ;;  %v2665_v58 = vrot.slane %v2664_v36, 1  ;;  %v2672_v21 = vrot.slane %v2671_v26, 1 }
 0x22e   : > { %v2678_v31 = vmax.f32 %v2676_v8, %v2677_v45  ;;  %v2652_v27 = vmax.f32 %v2650_v2, %v2651_v22  ;;  %v2659_v23 = vmax.f32 %v2657_v44, %v2658_v60  ;;  %v2685_v47 = vmax.f32 %v2683_v38, %v2684_v52  ;;  %v3384_v8 = vld [vmem:[#allocation7 + $0x8c0] sm:$0xff]  ;;  %v3385_v45 = vld [vmem:[#allocation7 + $0x8c8] sm:$0xff] }
 0x22f   : > { %v2691_v15 = vrot.slane %v2690_v42, 2  ;;  %v2666_v33 = vmax.f32 %v2664_v36, %v2665_v58  ;;  %v11448_v53 = vmax.f32 %v2671_v26, %v2672_v21  ;;  %v2999_v28 = vsel %vm2998_vm5, %v11415_v48, %v11347_v25  ;;  %v3388_v2 = vld [vmem:[#allocation7 + $0x8e0] sm:$0xff]  ;;  %v3389_v22 = vld [vmem:[#allocation7 + $0x8e8] sm:$0xff]  ;;  %v12112_v21 = vld [vmem:[#allocation14_spill] sm:$0xff] }
 0x230   : > { %v2679_v56 = vrot.slane %v2678_v31, 1  ;;  %v2686_v34 = vrot.slane %v2685_v47, 1  ;;  %v3001_v16 = vsel %vm3000_vm6, %v2617_v29, %v2999_v28  ;;  %v3007_v49 = vsel %vm2998_vm5, %v11417_v20, %v11350_v18  ;;  %v11513_v28 = vld [vmem:[#allocation7 + $0x908] sm:$0xff] }
 0x231   : > { %v2692_v61 = vmax.f32 %v2690_v42, %v2691_v15  ;;  %v3003_v17 = vsel %vm3002_vm7, %v2645_v14, %v3001_v16  ;;  %v3008_v50 = vsel %vm3000_vm6, %v2624_v9, %v3007_v49  ;;  %v3013_v24 = vsel %vm2998_vm5, %v11419_v4, %v11354_v51  ;;  %v3392_v42 = vld [vmem:[#allocation7 + $0x900] sm:$0xff]  ;;  %v12114_v15 = vld [vmem:[#allocation15_spill] sm:$0xff] }
 0x232   : > { %v11457_v30 = vmax.f32 %v2678_v31, %v2679_v56  ;;  %v11464_v19 = vmax.f32 %v2685_v47, %v2686_v34  ;;  %v3009_v48 = vsel %vm3002_vm7, %v2652_v27, %v3008_v50  ;;  %v3014_v29 = vsel %vm3000_vm6, %v11428_v1, %v3013_v24  ;;  %3063 = vst [vmem:[#allocation2] sm:$0xfe] %v3003_v17  ;;  %v3396_v14 = vld [vmem:[#allocation7 + $0x920] sm:$0xff]  ;;  %v11515_v34 = vld [vmem:[#allocation7 + $0x928] sm:$0xff] }
 0x233   : > { %v2693_v25 = vrot.slane %v2692_v61, 1  ;;  %v3015_v18 = vsel %vm3002_vm7, %v2659_v23, %v3014_v29  ;;  %v3019_v20 = vsel %vm2998_vm5, %v11421_v55, %v11381_v7  ;;  %3064 = vst [vmem:[#allocation2 + $0x8] sm:$0xfe] %v3009_v48  ;;  %v12106_v9 = vmax.f32 %v11271_v62, 0.0 }
 0x234   : > { %v12107_v51 = vmax.f32 %v11185_v39, 0.0  ;;  %v1947_v4 = vmax.f32 %v11374_v13, 0.0  ;;  %v3020_v1 = vsel %vm3000_vm6, %v11436_v10, %v3019_v20  ;;  %3065 = vst [vmem:[#allocation2 + $0x10] sm:$0xfe] %v3015_v18  ;;  %v1917_v38 = vadd.f32 %v11220_v6, %v11249_v11 }
 0x235   : > { %v11478_v44 = vmax.f32 %v2692_v61, %v2693_v25  ;;  %v1922_v7 = vadd.f32 %v11205_v3, %v11251_v12  ;;  %v3021_v62 = vsel %vm3002_vm7, %v2666_v33, %v3020_v1  ;;  %v12108_v39 = vmax.f32 %v11187_v40, 0.0 }
 0x236   : > { %v1968_v47 = vmax.f32 %v12107_v51, %v12106_v9  ;;  %v1924_v13 = vadd.f32 %v11209_v0, %v11259_v54  ;;  %v1923_v32 = vadd.f32 %v11213_v59, %v11261_v57  ;;  %3066 = vst [vmem:[#allocation2 + $0x18] sm:$0xfe] %v3021_v62  ;;  %v1949_v10 = vmax.f32 %v1917_v38, 0.0 }
 0x237   : > { %v1967_v55 = vmax.f32 %v12108_v39, %v1947_v4  ;;  %v1954_v41 = vmax.f32 %v1922_v7, 0.0  ;;  %v1925_v11 = vadd.f32 %v11220_v6, %v11273_v63  ;;  %v9797_v36 = vcombine.low %v3384_v8, %v3388_v2 }
 0x238   : > { %v1956_v26 = vmax.f32 %v1924_v13, 0.0  ;;  %v1955_v40 = vmax.f32 %v1923_v32, 0.0  ;;  %v12109_v0 = vmax.f32 %v11189_v43, 0.0  ;;  %v12110_v59 = vmax.f32 %v11191_v35, 0.0 }
 0x239   : > { %v2062_v3 = vcombine.low %v11369_v37, %v1967_v55  ;;  %v2063_v12 = vcombine.high %v11369_v37, %v1967_v55  ;;  %v1957_v60 = vmax.f32 %v1925_v11, 0.0  ;;  %v9798_v52 = vcombine.high %v3384_v8, %v3388_v2 }
 0x23a   : > { %v1969_v54 = vmax.f32 %v12109_v0, %v1949_v10  ;;  %v1970_v57 = vmax.f32 %v12110_v59, %v1954_v41  ;;  %v12111_v37 = vmax.f32 %v11193_v46, 0.0  ;;  %v12113_v31 = vmax.f32 %v12112_v21, 0.0 }
 0x23b   : > { %v2072_v6 = vrot.slane %v2062_v3, %v11216_v5  ;;  %v2079_v63 = vrot.slane %v2063_v12, %v11216_v5  ;;  %v12115_v35 = vmax.f32 %v12114_v15, 0.0  ;;  %4955 = vmatprep.subr.bf16.mxu0 %v9798_v52  ;;  %v9799_v56 = vcombine.low %v3385_v45, %v3389_v22 }
 0x23c   : > { %v11505_v58 = vmax.f32 %v12111_v37, %v1956_v26  ;;  %v1971_v27 = vmax.f32 %v12113_v31, %v1955_v40  ;;  %v2064_v43 = vcombine.low %v1968_v47, %v1969_v54  ;;  %v2065_v23 = vcombine.high %v1968_v47, %v1969_v54  ;;  %4956 = vmatpush1.bf16.msra.mxu0 %v9797_v36 }
 0x23d   : > { %v11511_v33 = vmax.f32 %v12115_v35, %v1957_v60  ;;  %v9800_v46 = vcombine.high %v3385_v45, %v3389_v22  ;;  %v9805_v49 = vcombine.low %v3392_v42, %v3396_v14  ;;  %v9806_v18 = vcombine.high %v3392_v42, %v3396_v14 }
 0x23e   : > { %v2098_v61 = vcombine.low %v1970_v57, %v1971_v27  ;;  %v2099_v16 = vcombine.high %v1970_v57, %v1971_v27  ;;  %v2086_v17 = vrot.slane %v2064_v43, %v11216_v5  ;;  %v2093_v50 = vrot.slane %v2065_v23, %v11216_v5 }
 0x23f   : > { %v2100_v24 = vcombine.low %v11505_v58, %v11511_v33  ;;  %v2101_v25 = vcombine.high %v11505_v58, %v11511_v33  ;;  %5041 = vmatprep.subr.bf16.mxu1 %v9800_v46  ;;  %v9807_v20 = vcombine.low %v11513_v28, %v11515_v34  ;;  %4957 = vmatprep.subr.bf16.mxu0 %v9806_v18 }
 0x240   : > { %v11524_v48 = vrot.slane %v2098_v61, %v11216_v5  ;;  %v11527_v29 = vrot.slane %v2099_v16, %v11216_v5  ;;  %v2094_v9 = vcombine.low %v2072_v6, %v2086_v17  ;;  %v2095_v51 = vcombine.high %v2072_v6, %v2086_v17  ;;  %5042 = vmatpush1.bf16.msra.mxu1 %v9799_v56 }
 0x241   : > { %v2096_v47 = vcombine.low %v2079_v63, %v2093_v50  ;;  %v2097_v4 = vcombine.high %v2079_v63, %v2093_v50  ;;  %v9765_v8 = vcombine.low %v2086_v17, %v2086_v17  ;;  %v9766_v2 = vcombine.high %v2086_v17, %v2086_v17  ;;  %4958 = vmatpush1.bf16.msra.mxu0 %v9805_v49 }
 0x242   : > { %v9767_v1 = vcombine.low %v2093_v50, %v2093_v50  ;;  %v9768_v38 = vcombine.high %v2093_v50, %v2093_v50  ;;  %v2277_v7 = vrot.slane %v2094_v9, %v11216_v5  ;;  %v2294_v62 = vrot.slane %v2095_v51, %v11216_v5 }
 0x243   : > { %v11534_v39 = vrot.slane %v2096_v47, %v11216_v5  ;;  %v11537_v55 = vrot.slane %v2097_v4, %v11216_v5  ;;  %v2284_v13 = vrot.slane %v9765_v8, %v11216_v5  ;;  %v2301_v32 = vrot.slane %v9766_v2, %v11216_v5 }
 0x244   : > { %v11542_v10 = vrot.slane %v9767_v1, %v11216_v5  ;;  %v11545_v41 = vrot.slane %v9768_v38, %v11216_v5  ;;  %v2285_v11 = vcombine.high %v2277_v7, %v2277_v7  ;;  %v2302_v36 = vcombine.high %v2294_v62, %v2294_v62 }
 0x245   : > { %v2319_v3 = vcombine.high %v11534_v39, %v11534_v39  ;;  %v2336_v12 = vcombine.high %v11537_v55, %v11537_v55  ;;  %v2286_v26 = vcombine.high %v2284_v13, %v2284_v13  ;;  %v2303_v40 = vcombine.high %v2301_v32, %v2301_v32 }
 0x246   : > { %v2320_v45 = vcombine.high %v11542_v10, %v11542_v10  ;;  %v2337_v22 = vcombine.high %v11545_v41, %v11545_v41  ;;  %v2695_v0 = vsel %vm2470_vm1, %v2277_v7, -inf  ;;  %v2702_v54 = vsel %vm2470_vm1, %v2285_v11, -inf }
 0x247   : > { %v2709_v59 = vsel %vm2470_vm1, %v2284_v13, -inf  ;;  %v2723_v57 = vsel %vm2470_vm1, %v2294_v62, -inf  ;;  %v2696_v60 = vrot.slane %v2695_v0, 4  ;;  %v2703_v52 = vrot.slane %v2702_v54, 4 }
 0x248   : > { %v2710_v42 = vrot.slane %v2709_v59, 4  ;;  %v2716_v14 = vsel %vm2470_vm1, %v2286_v26, -inf  ;;  %v2724_v63 = vrot.slane %v2723_v57, 4  ;;  %v2730_v37 = vsel %vm2470_vm1, %v2302_v36, -inf }
 0x249   : > { %v2717_v6 = vrot.slane %v2716_v14, 4  ;;  %v2737_v21 = vsel %vm2470_vm1, %v2301_v32, -inf  ;;  %v2697_v31 = vmax.f32 %v2695_v0, %v2696_v60  ;;  %v2704_v27 = vmax.f32 %v2702_v54, %v2703_v52 }
 0x24a   : > { %v2711_v43 = vmax.f32 %v2709_v59, %v2710_v42  ;;  %v2731_v23 = vrot.slane %v2730_v37, 4  ;;  %v2725_v35 = vmax.f32 %v2723_v57, %v2724_v63  ;;  %v2738_v56 = vrot.slane %v2737_v21, 4 }
 0x24b   : > { %v2718_v15 = vmax.f32 %v2716_v14, %v2717_v6  ;;  %v2744_v61 = vsel %vm2470_vm1, %v2303_v40, -inf  ;;  %v2698_v16 = vrot.slane %v2697_v31, 2  ;;  %v2705_v46 = vrot.slane %v2704_v27, 2 }
 0x24c   : > { %v2712_v49 = vrot.slane %v2711_v43, 2  ;;  %v2732_v17 = vmax.f32 %v2730_v37, %v2731_v23  ;;  %v2726_v18 = vrot.slane %v2725_v35, 2  ;;  %v2739_v9 = vmax.f32 %v2737_v21, %v2738_v56 }
 0x24d   : > { %v2719_v50 = vrot.slane %v2718_v15, 2  ;;  %v2745_v51 = vrot.slane %v2744_v61, 4  ;;  %v2699_v47 = vmax.f32 %v2697_v31, %v2698_v16  ;;  %v2706_v4 = vmax.f32 %v2704_v27, %v2705_v46 }
 0x24e   : > { %v2713_v8 = vmax.f32 %v2711_v43, %v2712_v49  ;;  %v2733_v2 = vrot.slane %v2732_v17, 2  ;;  %v2727_v38 = vmax.f32 %v2725_v35, %v2726_v18  ;;  %v2740_v7 = vrot.slane %v2739_v9, 2 }
 0x24f   : > { %v2720_v1 = vmax.f32 %v2718_v15, %v2719_v50  ;;  %v2746_v62 = vmax.f32 %v2744_v61, %v2745_v51  ;;  %v2700_v13 = vrot.slane %v2699_v47, 1  ;;  %v2707_v32 = vrot.slane %v2706_v4, 1 }
 0x250   : > { %v2714_v11 = vrot.slane %v2713_v8, 1  ;;  %v2734_v36 = vmax.f32 %v2732_v17, %v2733_v2  ;;  %v2728_v40 = vrot.slane %v2727_v38, 1  ;;  %v2741_v0 = vmax.f32 %v2739_v9, %v2740_v7 }
 0x251   : > { %v2721_v26 = vrot.slane %v2720_v1, 1  ;;  %v2747_v54 = vrot.slane %v2746_v62, 2  ;;  %v11563_v59 = vmax.f32 %v2699_v47, %v2700_v13  ;;  %v11565_v57 = vmax.f32 %v2706_v4, %v2707_v32 }
 0x252   : > { %v11567_v60 = vmax.f32 %v2713_v8, %v2714_v11  ;;  %v2735_v52 = vrot.slane %v2734_v36, 1  ;;  %v11571_v14 = vmax.f32 %v2727_v38, %v2728_v40  ;;  %v2742_v6 = vrot.slane %v2741_v0, 1 }
 0x253   : > { %v11569_v42 = vmax.f32 %v2720_v1, %v2721_v26  ;;  %v2748_v63 = vmax.f32 %v2746_v62, %v2747_v54  ;;  %v2751_v21 = vsel %vm2470_vm1, %v11534_v39, -inf  ;;  %v2758_v31 = vsel %vm2470_vm1, %v2319_v3, -inf }
 0x254   : > { %v11573_v37 = vmax.f32 %v2734_v36, %v2735_v52  ;;  %v2765_v27 = vsel %vm2470_vm1, %v11542_v10, -inf  ;;  %v11580_v43 = vmax.f32 %v2741_v0, %v2742_v6  ;;  %v2752_v15 = vrot.slane %v2751_v21, 4 }
 0x255   : > { %v2749_v23 = vrot.slane %v2748_v63, 1  ;;  %v2759_v35 = vrot.slane %v2758_v31, 4  ;;  %v2766_v56 = vrot.slane %v2765_v27, 4  ;;  %v2772_v61 = vsel %vm2470_vm1, %v2320_v45, -inf }
 0x256   : > { %v2779_v16 = vsel %vm2470_vm1, %v11537_v55, -inf  ;;  %v2786_v39 = vsel %vm2470_vm1, %v2336_v12, -inf  ;;  %v2753_v46 = vmax.f32 %v2751_v21, %v2752_v15  ;;  %v2773_v17 = vrot.slane %v2772_v61, 4 }
 0x257   : > { %v11592_v3 = vmax.f32 %v2748_v63, %v2749_v23  ;;  %v2760_v49 = vmax.f32 %v2758_v31, %v2759_v35  ;;  %v2767_v50 = vmax.f32 %v2765_v27, %v2766_v56  ;;  %v2780_v18 = vrot.slane %v2779_v16, 4 }
 0x258   : > { %v2787_v9 = vrot.slane %v2786_v39, 4  ;;  %v2793_v10 = vsel %vm2470_vm1, %v11545_v41, -inf  ;;  %v2754_v45 = vrot.slane %v2753_v46, 2  ;;  %v2774_v47 = vmax.f32 %v2772_v61, %v2773_v17 }
 0x259   : > { %v2761_v51 = vrot.slane %v2760_v49, 2  ;;  %v2794_v4 = vrot.slane %v2793_v10, 4  ;;  %v2768_v8 = vrot.slane %v2767_v50, 2  ;;  %v2781_v55 = vmax.f32 %v2779_v16, %v2780_v18 }
 0x25a   : > { %v2788_v2 = vmax.f32 %v2786_v39, %v2787_v9  ;;  %v2800_v12 = vsel %vm2470_vm1, %v2337_v22, -inf  ;;  %v2755_v1 = vmax.f32 %v2753_v46, %v2754_v45  ;;  %v2775_v7 = vrot.slane %v2774_v47, 2 }
 0x25b   : > { %v2762_v38 = vmax.f32 %v2760_v49, %v2761_v51  ;;  %v2795_v62 = vmax.f32 %v2793_v10, %v2794_v4  ;;  %v2769_v13 = vmax.f32 %v2767_v50, %v2768_v8  ;;  %v2782_v32 = vrot.slane %v2781_v55, 2 }
 0x25c   : > { %v2789_v11 = vrot.slane %v2788_v2, 2  ;;  %v2801_v36 = vrot.slane %v2800_v12, 4  ;;  %v2756_v26 = vrot.slane %v2755_v1, 1  ;;  %v2776_v0 = vmax.f32 %v2774_v47, %v2775_v7 }
 0x25d   : > { %v2763_v40 = vrot.slane %v2762_v38, 1  ;;  %v2796_v54 = vrot.slane %v2795_v62, 2  ;;  %v2770_v52 = vrot.slane %v2769_v13, 1  ;;  %v2783_v6 = vmax.f32 %v2781_v55, %v2782_v32 }
 0x25e   : > { %v2790_v63 = vmax.f32 %v2788_v2, %v2789_v11  ;;  %v2802_v21 = vmax.f32 %v2800_v12, %v2801_v36  ;;  %v2757_v31 = vmax.f32 %v2755_v1, %v2756_v26  ;;  %v2777_v27 = vrot.slane %v2776_v0, 1 }
 0x25f   : > { %v2764_v41 = vmax.f32 %v2762_v38, %v2763_v40  ;;  %v2797_v22 = vmax.f32 %v2795_v62, %v2796_v54  ;;  %v2771_v23 = vmax.f32 %v2769_v13, %v2770_v52  ;;  %v2784_v15 = vrot.slane %v2783_v6, 1 }
 0x260   : > { %v2791_v35 = vrot.slane %v2790_v63, 1  ;;  %v2803_v56 = vrot.slane %v2802_v21, 2  ;;  %v2778_v61 = vmax.f32 %v2776_v0, %v2777_v27  ;;  %v3023_v39 = vsel %vm3022_vm8, %v11563_v59, %v11448_v53 }
 0x261   : > { %v2798_v16 = vrot.slane %v2797_v22, 1  ;;  %v3030_v46 = vsel %vm3022_vm8, %v11565_v57, %v11457_v30  ;;  %v2785_v49 = vmax.f32 %v2783_v6, %v2784_v15  ;;  %v3024_v18 = vsel %vm2992_vm2, %v11571_v14, %v3023_v39 }
 0x262   : > { %v2792_v17 = vmax.f32 %v2790_v63, %v2791_v35  ;;  %v2804_v50 = vmax.f32 %v2802_v21, %v2803_v56  ;;  %v3025_v10 = vsel %vm2994_vm3, %v2757_v31, %v3024_v18  ;;  %v3031_v45 = vsel %vm2992_vm2, %v11573_v37, %v3030_v46 }
 0x263   : > { %v2799_v9 = vmax.f32 %v2797_v22, %v2798_v16  ;;  %v3037_v53 = vsel %vm3022_vm8, %v11567_v60, %v11464_v19  ;;  %v11615_v51 = vsel %vm2996_vm4, %v2785_v49, %v3025_v10  ;;  %v3032_v30 = vsel %vm2994_vm3, %v2764_v41, %v3031_v45 }
 0x264   : > { %v2805_v59 = vrot.slane %v2804_v50, 1  ;;  %v3038_v57 = vsel %vm2992_vm2, %v11580_v43, %v3037_v53  ;;  %v11621_v14 = vsel %vm2996_vm4, %v2792_v17, %v3032_v30  ;;  %v3044_v37 = vsel %vm3022_vm8, %v11569_v42, %v11478_v44 }
 0x265   : > { %v3039_v47 = vsel %vm2994_vm3, %v2771_v23, %v3038_v57  ;;  %v2122_v19 = vrot.slane %v2100_v24, %v11216_v5  ;;  %v3045_v43 = vsel %vm2992_vm2, %v11592_v3, %v3044_v37  ;;  %v2129_v8 = vrot.slane %v2101_v25, %v11216_v5 }
 0x266   : > { %v2806_v60 = vmax.f32 %v2804_v50, %v2805_v59  ;;  %v11632_v4 = vsel %vm2996_vm4, %v2799_v9, %v3039_v47  ;;  %v3046_v55 = vsel %vm2994_vm3, %v2778_v61, %v3045_v43 }
 0x267   : > { %v2130_v44 = vcombine.low %v11524_v48, %v2122_v19  ;;  %v2131_v42 = vcombine.high %v11524_v48, %v2122_v19  ;;  %v9769_v2 = vcombine.low %v2122_v19, %v2122_v19  ;;  %v2132_v12 = vcombine.low %v11527_v29, %v2129_v8 }
 0x268   : > { %v11644_v24 = vsel %vm2996_vm4, %v2806_v60, %v3046_v55  ;;  %v2133_v1 = vcombine.high %v11527_v29, %v2129_v8  ;;  %v9770_v3 = vcombine.high %v2122_v19, %v2122_v19  ;;  %v9771_v25 = vcombine.low %v2129_v8, %v2129_v8 }
 0x269   : > { %v2345_v38 = vrot.slane %v2130_v44, %v11216_v5  ;;  %v2352_v58 = vrot.slane %v9769_v2, %v11216_v5  ;;  %v2362_v33 = vrot.slane %v2131_v42, %v11216_v5  ;;  %v11653_v48 = vrot.slane %v2132_v12, %v11216_v5 }
 0x26a   : > { %v2369_v7 = vrot.slane %v9770_v3, %v11216_v5  ;;  %v9772_v62 = vcombine.high %v2129_v8, %v2129_v8  ;;  %v11656_v13 = vrot.slane %v2133_v1, %v11216_v5  ;;  %v11659_v36 = vrot.slane %v9771_v25, %v11216_v5 }
 0x26b   : > { %v2353_v32 = vcombine.high %v2345_v38, %v2345_v38  ;;  %v2354_v11 = vcombine.high %v2352_v58, %v2352_v58  ;;  %v2370_v29 = vcombine.high %v2362_v33, %v2362_v33  ;;  %v2387_v40 = vcombine.high %v11653_v48, %v11653_v48 }
 0x26c   : > { %v2371_v26 = vcombine.high %v2369_v7, %v2369_v7  ;;  %v11664_v0 = vrot.slane %v9772_v62, %v11216_v5  ;;  %v2404_v54 = vcombine.high %v11656_v13, %v11656_v13  ;;  %v2388_v52 = vcombine.high %v11659_v36, %v11659_v36 }
 0x26d   : > { %v2807_v6 = vsel %vm2470_vm1, %v2345_v38, -inf  ;;  %v2814_v63 = vsel %vm2470_vm1, %v2353_v32, -inf  ;;  %v2821_v21 = vsel %vm2470_vm1, %v2352_v58, -inf  ;;  %v2828_v23 = vsel %vm2470_vm1, %v2354_v11, -inf }
 0x26e   : > { %v2405_v31 = vcombine.high %v11664_v0, %v11664_v0  ;;  %v2808_v41 = vrot.slane %v2807_v6, 4  ;;  %v2815_v27 = vrot.slane %v2814_v63, 4  ;;  %v2822_v22 = vrot.slane %v2821_v21, 4 }
 0x26f   : > { %v2835_v15 = vsel %vm2470_vm1, %v2362_v33, -inf  ;;  %v2842_v35 = vsel %vm2470_vm1, %v2370_v29, -inf  ;;  %v2849_v56 = vsel %vm2470_vm1, %v2369_v7, -inf  ;;  %v2829_v46 = vrot.slane %v2828_v23, 4 }
 0x270   : > { %v2809_v61 = vmax.f32 %v2807_v6, %v2808_v41  ;;  %v2816_v16 = vmax.f32 %v2814_v63, %v2815_v27  ;;  %v2823_v39 = vmax.f32 %v2821_v21, %v2822_v22  ;;  %v2836_v49 = vrot.slane %v2835_v15, 4 }
 0x271   : > { %v2843_v17 = vrot.slane %v2842_v35, 4  ;;  %v2850_v50 = vrot.slane %v2849_v56, 4  ;;  %v2856_v18 = vsel %vm2470_vm1, %v2371_v26, -inf  ;;  %v2830_v53 = vmax.f32 %v2828_v23, %v2829_v46 }
 0x272   : > { %v2810_v9 = vrot.slane %v2809_v61, 2  ;;  %v2817_v10 = vrot.slane %v2816_v16, 2  ;;  %v2824_v45 = vrot.slane %v2823_v39, 2  ;;  %v2837_v59 = vmax.f32 %v2835_v15, %v2836_v49 }
 0x273   : > { %v2844_v30 = vmax.f32 %v2842_v35, %v2843_v17  ;;  %v2851_v57 = vmax.f32 %v2849_v56, %v2850_v50  ;;  %v2857_v47 = vrot.slane %v2856_v18, 4  ;;  %v2831_v43 = vrot.slane %v2830_v53, 2 }
 0x274   : > { %v2811_v37 = vmax.f32 %v2809_v61, %v2810_v9  ;;  %v2818_v19 = vmax.f32 %v2816_v16, %v2817_v10  ;;  %v2825_v60 = vmax.f32 %v2823_v39, %v2824_v45  ;;  %v2838_v8 = vrot.slane %v2837_v59, 2 }
 0x275   : > { %v2845_v55 = vrot.slane %v2844_v30, 2  ;;  %v2852_v44 = vrot.slane %v2851_v57, 2  ;;  %v2858_v42 = vmax.f32 %v2856_v18, %v2857_v47  ;;  %v2832_v3 = vmax.f32 %v2830_v53, %v2831_v43 }
 0x276   : > { %v2812_v2 = vrot.slane %v2811_v37, 1  ;;  %v2819_v12 = vrot.slane %v2818_v19, 1  ;;  %v2826_v1 = vrot.slane %v2825_v60, 1  ;;  %v2839_v38 = vmax.f32 %v2837_v59, %v2838_v8 }
 0x277   : > { %v2846_v58 = vmax.f32 %v2844_v30, %v2845_v55  ;;  %v2853_v33 = vmax.f32 %v2851_v57, %v2852_v44  ;;  %v2859_v25 = vrot.slane %v2858_v42, 2  ;;  %v2833_v11 = vrot.slane %v2832_v3, 1 }
 0x278   : > { %v11680_v7 = vmax.f32 %v2811_v37, %v2812_v2  ;;  %v11682_v62 = vmax.f32 %v2818_v19, %v2819_v12  ;;  %v11684_v32 = vmax.f32 %v2825_v60, %v2826_v1  ;;  %v2840_v29 = vrot.slane %v2839_v38, 1 }
 0x279   : > { %v2847_v26 = vrot.slane %v2846_v58, 1  ;;  %v2854_v6 = vrot.slane %v2853_v33, 1  ;;  %v2860_v63 = vmax.f32 %v2858_v42, %v2859_v25  ;;  %v11686_v21 = vmax.f32 %v2832_v3, %v2833_v11 }
 0x27a   : > { %v2863_v41 = vsel %vm2470_vm1, %v11653_v48, -inf  ;;  %v2870_v27 = vsel %vm2470_vm1, %v2387_v40, -inf  ;;  %v2877_v22 = vsel %vm2470_vm1, %v11659_v36, -inf  ;;  %v2841_v23 = vmax.f32 %v2839_v38, %v2840_v29 }
 0x27b   : > { %v11693_v15 = vmax.f32 %v2846_v58, %v2847_v26  ;;  %v11695_v35 = vmax.f32 %v2853_v33, %v2854_v6  ;;  %v2861_v56 = vrot.slane %v2860_v63, 1  ;;  %v2864_v61 = vrot.slane %v2863_v41, 4 }
 0x27c   : > { %v2871_v16 = vrot.slane %v2870_v27, 4  ;;  %v2878_v39 = vrot.slane %v2877_v22, 4  ;;  %v2884_v46 = vsel %vm2470_vm1, %v2388_v52, -inf  ;;  %v2891_v49 = vsel %vm2470_vm1, %v11656_v13, -inf }
 0x27d   : > { %v11701_v48 = vmax.f32 %v2860_v63, %v2861_v56  ;;  %v2885_v40 = vrot.slane %v2884_v46, 4  ;;  %v2898_v17 = vsel %vm2470_vm1, %v2404_v54, -inf  ;;  %v2865_v50 = vmax.f32 %v2863_v41, %v2864_v61 }
 0x27e   : > { %v2872_v18 = vmax.f32 %v2870_v27, %v2871_v16  ;;  %v2879_v9 = vmax.f32 %v2877_v22, %v2878_v39  ;;  %v2892_v10 = vrot.slane %v2891_v49, 4  ;;  %v2899_v53 = vrot.slane %v2898_v17, 4 }
 0x27f   : > { %v2886_v45 = vmax.f32 %v2884_v46, %v2885_v40  ;;  %v2905_v36 = vsel %vm2470_vm1, %v11664_v0, -inf  ;;  %v2912_v52 = vsel %vm2470_vm1, %v2405_v31, -inf  ;;  %v2866_v59 = vrot.slane %v2865_v50, 2 }
 0x280   : > { %v2873_v30 = vrot.slane %v2872_v18, 2  ;;  %v2880_v57 = vrot.slane %v2879_v9, 2  ;;  %v2893_v13 = vmax.f32 %v2891_v49, %v2892_v10  ;;  %v2900_v54 = vmax.f32 %v2898_v17, %v2899_v53 }
 0x281   : > { %v2887_v47 = vrot.slane %v2886_v45, 2  ;;  %v2906_v37 = vrot.slane %v2905_v36, 4  ;;  %v2913_v19 = vrot.slane %v2912_v52, 4  ;;  %v2867_v60 = vmax.f32 %v2865_v50, %v2866_v59  ;;  %v3400_v50 = vld [vmem:[#allocation7 + $0x940] sm:$0xff] }
 0x282   : > { %v2874_v43 = vmax.f32 %v2872_v18, %v2873_v30  ;;  %v2881_v8 = vmax.f32 %v2879_v9, %v2880_v57  ;;  %v2894_v55 = vrot.slane %v2893_v13, 2  ;;  %v2901_v42 = vrot.slane %v2900_v54, 2  ;;  %v3404_v18 = vld [vmem:[#allocation7 + $0x960] sm:$0xff]  ;;  %v3413_v57 = vld [vmem:[#allocation7 + $0x9a8] sm:$0xff] }
 0x283   : > { %v2888_v44 = vmax.f32 %v2886_v45, %v2887_v47  ;;  %v2907_v2 = vmax.f32 %v2905_v36, %v2906_v37  ;;  %v2914_v12 = vmax.f32 %v2912_v52, %v2913_v19  ;;  %v2868_v1 = vrot.slane %v2867_v60, 1  ;;  %v3409_v52 = vld [vmem:[#allocation7 + $0x988] sm:$0xff]  ;;  %v3420_v47 = vld [vmem:[#allocation7 + $0x9e0] sm:$0xff] }
 0x284   : > { %v2875_v0 = vrot.slane %v2874_v43, 1  ;;  %v2882_v3 = vrot.slane %v2881_v8, 1  ;;  %v2895_v31 = vmax.f32 %v2893_v13, %v2894_v55  ;;  %v2902_v58 = vmax.f32 %v2900_v54, %v2901_v42  ;;  %v3416_v13 = vld [vmem:[#allocation7 + $0x9c0] sm:$0xff]  ;;  %v3421_v55 = vld [vmem:[#allocation7 + $0x9e8] sm:$0xff] }
 0x285   : > { %v2889_v38 = vrot.slane %v2888_v44, 1  ;;  %v2908_v33 = vrot.slane %v2907_v2, 2  ;;  %v2915_v25 = vrot.slane %v2914_v12, 2  ;;  %v2869_v11 = vmax.f32 %v2867_v60, %v2868_v1  ;;  %v3428_v42 = vld [vmem:[#allocation7 + $0xa20] sm:$0xff]  ;;  %v3425_v1 = vld [vmem:[#allocation7 + $0xa08] sm:$0xff] }
 0x286   : > { %v2876_v29 = vmax.f32 %v2874_v43, %v2875_v0  ;;  %v2883_v26 = vmax.f32 %v2881_v8, %v2882_v3  ;;  %v2896_v6 = vrot.slane %v2895_v31, 1  ;;  %v2903_v41 = vrot.slane %v2902_v58, 1  ;;  %v3417_v8 = vld [vmem:[#allocation7 + $0x9c8] sm:$0xff]  ;;  %v3432_v3 = vld [vmem:[#allocation7 + $0xa40] sm:$0xff] }
 0x287   : > { %v2890_v63 = vmax.f32 %v2888_v44, %v2889_v38  ;;  %v2909_v27 = vmax.f32 %v2907_v2, %v2908_v33  ;;  %v2916_v22 = vmax.f32 %v2914_v12, %v2915_v25  ;;  %v3027_v61 = vsel %vm2998_vm5, %v11680_v7, %v11615_v51  ;;  %v3401_v7 = vld [vmem:[#allocation7 + $0x948] sm:$0xff]  ;;  %v3424_v44 = vld [vmem:[#allocation7 + $0xa00] sm:$0xff] }
 0x288   : > { %v2897_v56 = vmax.f32 %v2895_v31, %v2896_v6  ;;  %v3034_v16 = vsel %vm2998_vm5, %v11682_v62, %v11621_v14  ;;  %v3041_v39 = vsel %vm2998_vm5, %v11684_v32, %v11632_v4  ;;  %v2904_v46 = vmax.f32 %v2902_v58, %v2903_v41  ;;  %v3405_v62 = vld [vmem:[#allocation7 + $0x968] sm:$0xff]  ;;  %v3436_v31 = vld [vmem:[#allocation7 + $0xa60] sm:$0xff] }
 0x289   : > { %v2910_v40 = vrot.slane %v2909_v27, 1  ;;  %v2917_v49 = vrot.slane %v2916_v22, 1  ;;  %v3028_v17 = vsel %vm3000_vm6, %v2841_v23, %v3027_v61  ;;  %v3035_v51 = vsel %vm3000_vm6, %v11693_v15, %v3034_v16  ;;  %v3408_v15 = vld [vmem:[#allocation7 + $0x980] sm:$0xff]  ;;  %v3429_v0 = vld [vmem:[#allocation7 + $0xa28] sm:$0xff] }
 0x28a   : > { %v11726_v9 = vsel %vm3002_vm7, %v2869_v11, %v3028_v17  ;;  %v3042_v14 = vsel %vm3000_vm6, %v11695_v35, %v3041_v39  ;;  %v3048_v4 = vsel %vm2998_vm5, %v11686_v21, %v11644_v24  ;;  %3071 = vst [vmem:[#allocation2 + $0x40] sm:$0x1] %v2897_v56  ;;  %v11736_v10 = vsel %vm3002_vm7, %v2876_v29, %v3035_v51  ;;  %v3412_v35 = vld [vmem:[#allocation7 + $0x9a0] sm:$0xff]  ;;  %v3437_v6 = vld [vmem:[#allocation7 + $0xa68] sm:$0xff] }
 0x28b   : > { %v2911_v32 = vmax.f32 %v2909_v27, %v2910_v40  ;;  %v2918_v23 = vmax.f32 %v2916_v22, %v2917_v49  ;;  %v11739_v45 = vsel %vm3002_vm7, %v2883_v26, %v3042_v14  ;;  %3067 = vst [vmem:[#allocation2 + $0x20] sm:$0xff] %v11726_v9  ;;  %3072 = vst [vmem:[#allocation2 + $0x48] sm:$0x1] %v2904_v46  ;;  %v12116_v19 = vlaneseq  ;;  %v3344_v38 = vld [vmem:[#allocation2 + $0x8] sm:$0xfe]  ;;  %v3433_v26 = vld [vmem:[#allocation7 + $0xa48] sm:$0xff] }
 0x28c   : > { %v3049_v53 = vsel %vm3000_vm6, %v11701_v48, %v3048_v4  ;;  %3068 = vst [vmem:[#allocation2 + $0x28] sm:$0xff] %v11736_v10  ;;  %3069 = vst [vmem:[#allocation2 + $0x30] sm:$0xff] %v11739_v45  ;;  %v9808_v24 = vcombine.high %v11513_v28, %v11515_v34  ;;  %v9813_v21 = vcombine.low %v3400_v50, %v3404_v18  ;;  %v10898_v2 = vmov 0.0   ;;  %v3444_v41 = vld [vmem:[#allocation7 + $0xaa0] sm:$0xff]  ;;  %v3441_v49 = vld [vmem:[#allocation7 + $0xa88] sm:$0xff] }
 0x28d   : > { %v9814_v36 = vcombine.high %v3400_v50, %v3404_v18  ;;  %v11749_v59 = vsel %vm3002_vm7, %v2890_v63, %v3049_v53  ;;  %3073 = vst [vmem:[#allocation2 + $0x50] sm:$0x1] %v2911_v32  ;;  %3074 = vst [vmem:[#allocation2 + $0x58] sm:$0x1] %v2918_v23  ;;  %v9816_v30 = vcombine.high %v3401_v7, %v3405_v62  ;;  %vm2921_vm9 = vcmp.lt.s32.totalorder %v12116_v19, 512  ;;  %v3440_v63 = vld [vmem:[#allocation7 + $0xa80] sm:$0xff] }
 0x28e   : > { %3070 = vst [vmem:[#allocation2 + $0x38] sm:$0xff] %v11749_v59  ;;  %5043 = vmatprep.subr.bf16.mxu1 %v9808_v24  ;;  %v9822_v48 = vcombine.high %v3408_v15, %v3412_v35  ;;  %v9815_v54 = vcombine.low %v3401_v7, %v3405_v62  ;;  %v9821_v37 = vcombine.low %v3408_v15, %v3412_v35  ;;  %2923 = vst.msk [vmem:[#allocation2] ss:$8 sm:$0xf] %vm2921_vm9, %v10898_v2  ;;  %v3445_v17 = vld [vmem:[#allocation7 + $0xaa8] sm:$0xff]  ;;  %v3448_v50 = vld [vmem:[#allocation7 + $0xac0] sm:$0xff] }
 0x28f   : > { %4959 = vmatprep.subr.bf16.mxu0 %v9814_v36  ;;  %5044 = vmatpush1.bf16.msra.mxu1 %v9807_v20  ;;  %v9824_v60 = vcombine.high %v3409_v52, %v3413_v57  ;;  %v9830_v43 = vcombine.high %v3416_v13, %v3420_v47  ;;  %2926 = vst.msk [vmem:[#allocation2 + $0x41] ss:$8 sm:$0xf] %vm2921_vm9, %v10898_v2  ;;  %v3452_v18 = vld [vmem:[#allocation7 + $0xae0] sm:$0xff]  ;;  %v3449_v15 = vld [vmem:[#allocation7 + $0xac8] sm:$0xff] }
 0x290   : > { %4960 = vmatpush1.bf16.msra.mxu0 %v9813_v21  ;;  %5045 = vmatprep.subr.bf16.mxu1 %v9816_v30  ;;  %v9823_v12 = vcombine.low %v3409_v52, %v3413_v57  ;;  %v9829_v28 = vcombine.low %v3416_v13, %v3420_v47  ;;  %v9832_v34 = vcombine.high %v3417_v8, %v3421_v55  ;;  %v3453_v35 = vld [vmem:[#allocation7 + $0xae8] sm:$0xff]  ;;  %v3456_v53 = vld [vmem:[#allocation7 + $0xb00] sm:$0xff] }
 0x291   : > { %4961 = vmatprep.subr.bf16.mxu0 %v9822_v48  ;;  %v9838_v20 = vcombine.high %v3424_v44, %v3428_v42  ;;  %v9831_v33 = vcombine.low %v3417_v8, %v3421_v55  ;;  %v9837_v25 = vcombine.low %v3424_v44, %v3428_v42  ;;  %v9840_v11 = vcombine.high %v3425_v1, %v3429_v0  ;;  %v3460_v24 = vld [vmem:[#allocation7 + $0xb20] sm:$0xff]  ;;  %v3457_v13 = vld [vmem:[#allocation7 + $0xb08] sm:$0xff]  ;;  %v3346_v44 = vld [vmem:[#allocation2 + $0x18] sm:$0xfe] }
 0x292   : > { %v3348_v58 = vld [vmem:[#allocation2 + $0x48] sm:$0x1]  ;;  %v9846_v29 = vcombine.high %v3432_v3, %v3436_v31  ;;  %v3352_v27 = vpack.c.bf16 %v11736_v10, %v3344_v38  ;;  %v9839_v56 = vcombine.low %v3425_v1, %v3429_v0  ;;  %v9845_v61 = vcombine.low %v3432_v3, %v3436_v31  ;;  %v3461_v47 = vld [vmem:[#allocation7 + $0xb28] sm:$0xff] }
 0x293   : > { %5046 = vmatpush1.bf16.msra.mxu1 %v9815_v54  ;;  %v3356_v22 = vpack.c.bf16 %v3348_v58, %v3348_v58  ;;  %v9848_v46 = vcombine.high %v3433_v26, %v3437_v6  ;;  %v9854_v40 = vcombine.high %v3440_v63, %v3444_v41  ;;  %v9847_v7 = vcombine.low %v3433_v26, %v3437_v6  ;;  %v3464_v48 = vld [vmem:[#allocation7 + $0xb40] sm:$0xff]  ;;  %v3465_v55 = vld [vmem:[#allocation7 + $0xb48] sm:$0xff] }
 0x294   : > { %4962 = vmatpush1.bf16.msra.mxu0 %v9821_v37  ;;  %5047 = vmatprep.subr.bf16.mxu1 %v9824_v60  ;;  %v3632_v16 = vshll.u32 %v3352_v27, 16  ;;  %v3630_v51 = vshrl.u32 %v3352_v27, 16  ;;  %v9853_v62 = vcombine.low %v3440_v63, %v3444_v41  ;;  %v9856_v23 = vcombine.high %v3441_v49, %v3445_v17  ;;  %v3468_v54 = vld [vmem:[#allocation7 + $0xb60] sm:$0xff]  ;;  %v3343_v37 = vld [vmem:[#allocation2] sm:$0xfe]  ;;  %v3469_v42 = vld [vmem:[#allocation7 + $0xb68] sm:$0xff] }
 0x295   : > { %4963 = vmatprep.subr.bf16.mxu0 %v9830_v43  ;;  %v3637_v39 = vshll.u32 %v3356_v22, 16  ;;  %v9862_v10 = vcombine.high %v3448_v50, %v3452_v18  ;;  %v9855_v36 = vcombine.low %v3441_v49, %v3445_v17  ;;  %v9861_v52 = vcombine.low %v3448_v50, %v3452_v18  ;;  %v3472_v2 = vld [vmem:[#allocation7 + $0xb80] sm:$0xff]  ;;  %v3473_v38 = vld [vmem:[#allocation7 + $0xb88] sm:$0xff]  ;;  %v3350_v58 = vld [vmem:[#allocation2 + $0x58] sm:$0x1] }
 0x296   : > { %v3634_v14 = vrot.slane %v3632_v16, 1  ;;  %v9864_v30 = vcombine.high %v3449_v15, %v3453_v35  ;;  %v9870_v57 = vcombine.high %v3456_v53, %v3460_v24  ;;  %v9863_v19 = vcombine.low %v3449_v15, %v3453_v35  ;;  %v3488_v16 = vld [vmem:[#allocation7 + $0xc00] sm:$0xff] }
 0x297   : > { %5048 = vmatpush1.bf16.msra.mxu1 %v9823_v12  ;;  %v3639_v4 = vrot.slane %v3637_v39, 1  ;;  %v9869_v60 = vcombine.low %v3456_v53, %v3460_v24  ;;  %v9872_v43 = vcombine.high %v3457_v13, %v3461_v47  ;;  %v9878_v8 = vcombine.high %v3464_v48, %v3468_v54  ;;  %v3476_v12 = vld [vmem:[#allocation7 + $0xba0] sm:$0xff] }
 0x298   : > { %4964 = vmatpush1.bf16.msra.mxu0 %v9829_v28  ;;  %5049 = vmatprep.subr.bf16.mxu1 %v9832_v34  ;;  %v3635_v32 = vor.u32 %v3634_v14, %v3630_v51  ;;  %v3351_v28 = vpack.c.bf16 %v11726_v9, %v3343_v37  ;;  %v3347_v34 = vld [vmem:[#allocation2 + $0x40] sm:$0x1]  ;;  %v9877_v1 = vcombine.low %v3464_v48, %v3468_v54  ;;  %v3492_v39 = vld [vmem:[#allocation7 + $0xc20] sm:$0xff]  ;;  %v3501_v48 = vld [vmem:[#allocation7 + $0xc68] sm:$0xff] }
 0x299   : > { %4965 = vmatprep.subr.bf16.mxu0 %v9838_v20  ;;  %v9871_v20 = vcombine.low %v3457_v13, %v3461_v47  ;;  %v3354_v0 = vpack.c.bf16 %v11749_v59, %v3346_v44  ;;  %v9880_v3 = vcombine.high %v3465_v55, %v3469_v42  ;;  %v9886_v31 = vcombine.high %v3472_v2, %v3476_v12  ;;  %v3496_v15 = vld [vmem:[#allocation7 + $0xc40] sm:$0xff]  ;;  %v3497_v47 = vld [vmem:[#allocation7 + $0xc48] sm:$0xff] }
 0x29a   : > { %v11758_v21 = vsel %vm3616_vm10, %v3635_v32, %v3639_v4  ;;  %v3620_v26 = vshll.u32 %v3351_v28, 16  ;;  %v9879_v9 = vcombine.low %v3465_v55, %v3469_v42  ;;  %v9885_v6 = vcombine.low %v3472_v2, %v3476_v12  ;;  %v3500_v35 = vld [vmem:[#allocation7 + $0xc60] sm:$0xff]  ;;  %v3505_v44 = vld [vmem:[#allocation7 + $0xc88] sm:$0xff] }
 0x29b   : > { %5050 = vmatpush1.bf16.msra.mxu1 %v9831_v33  ;;  %4981 = vmatprep.mubr.bf16.mxu0 %v11758_v21  ;;  %v3477_v33 = vld [vmem:[#allocation7 + $0xba8] sm:$0xff]  ;;  %v3358_v63 = vpack.c.bf16 %v3350_v58, %v3350_v58  ;;  %v3656_v41 = vshll.u32 %v3354_v0, 16  ;;  %v3618_v50 = vshrl.u32 %v3351_v28, 16  ;;  %v9902_v4 = vcombine.high %v3488_v16, %v3492_v39  ;;  %v3504_v54 = vld [vmem:[#allocation7 + $0xc80] sm:$0xff] }
 0x29c   : > { %4966 = vmatpush1.bf16.msra.mxu0 %v9837_v25  ;;  %5051 = vmatprep.subr.bf16.mxu1 %v9840_v11  ;;  %v3480_v25 = vld [vmem:[#allocation7 + $0xbc0] sm:$0xff]  ;;  %v9888_v27 = vcombine.high %v3473_v38, %v3477_v33  ;;  %v9887_v49 = vcombine.low %v3473_v38, %v3477_v33  ;;  %v9901_v24 = vcombine.low %v3488_v16, %v3492_v39  ;;  %v3509_v42 = vld [vmem:[#allocation7 + $0xca8] sm:$0xff] }
 0x29d   : > { %4967 = vmatprep.subr.bf16.mxu0 %v9846_v29  ;;  %5067 = vmatprep.mubr.bf16.mxu1 %v11758_v21  ;;  %v3484_v11 = vld [vmem:[#allocation7 + $0xbe0] sm:$0xff]  ;;  %v3355_v29 = vpack.c.bf16 %v3347_v34, %v3347_v34  ;;  %v3658_v18 = vrot.slane %v3656_v41, 1  ;;  %v3661_v51 = vshll.u32 %v3358_v63, 16  ;;  %v9910_v13 = vcombine.high %v3496_v15, %v3500_v35 }
 0x29e   : > { %v9894_v22 = vcombine.high %v3480_v25, %v3484_v11  ;;  %v9893_v17 = vcombine.low %v3480_v25, %v3484_v11  ;;  %v3508_v37 = vld [vmem:[#allocation7 + $0xca0] sm:$0xff]  ;;  %v9911_v28 = vcombine.low %v3497_v47, %v3501_v48  ;;  %v9919_v58 = vcombine.low %v3505_v44, %v3509_v42 }
 0x29f   : > { %5052 = vmatpush1.bf16.msra.mxu1 %v9839_v56  ;;  %v3481_v56 = vld [vmem:[#allocation7 + $0xbc8] sm:$0xff]  ;;  %v9918_v55 = vcombine.high %v3504_v54, %v3508_v37  ;;  %v3512_v2 = vld [vmem:[#allocation7 + $0xcc0] sm:$0xff]  ;;  %v9917_v34 = vcombine.low %v3504_v54, %v3508_v37 }
 0x2a0   : > { %4968 = vmatpush1.bf16.msra.mxu0 %v9845_v61  ;;  %5053 = vmatprep.subr.bf16.mxu1 %v9848_v46  ;;  %v3485_v61 = vld [vmem:[#allocation7 + $0xbe8] sm:$0xff]  ;;  %v3622_v46 = vrot.slane %v3620_v26, 1  ;;  %v3516_v12 = vld [vmem:[#allocation7 + $0xce0] sm:$0xff] }
 0x2a1   : > { %4969 = vmatprep.subr.bf16.mxu0 %v9854_v40  ;;  %v3625_v40 = vshll.u32 %v3355_v29, 16  ;;  %v9896_v14 = vcombine.high %v3481_v56, %v3485_v61  ;;  %v9895_v53 = vcombine.low %v3481_v56, %v3485_v61  ;;  %v3524_v38 = vld [vmem:[#allocation7 + $0xd20] sm:$0xff]  ;;  %v9925_v33 = vcombine.low %v3512_v2, %v3516_v12  ;;  %v3521_v29 = vld [vmem:[#allocation7 + $0xd08] sm:$0xff] }
 0x2a2   : > { %v3623_v32 = vor.u32 %v3622_v46, %v3618_v50  ;;  %v3525_v26 = vld [vmem:[#allocation7 + $0xd28] sm:$0xff]  ;;  %v3536_v16 = vld [vmem:[#allocation7 + $0xd80] sm:$0xff] }
 0x2a3   : > { %5054 = vmatpush1.bf16.msra.mxu1 %v9847_v7  ;;  %v3489_v7 = vld [vmem:[#allocation7 + $0xc08] sm:$0xff]  ;;  %v3540_v39 = vld [vmem:[#allocation7 + $0xda0] sm:$0xff]  ;;  %v9935_v46 = vcombine.low %v3521_v29, %v3525_v26 }
 0x2a4   : > { %4970 = vmatpush1.bf16.msra.mxu0 %v9853_v62  ;;  %5055 = vmatprep.subr.bf16.mxu1 %v9856_v23  ;;  %v3493_v62 = vld [vmem:[#allocation7 + $0xc28] sm:$0xff]  ;;  %v3627_v23 = vrot.slane %v3625_v40, 1  ;;  %v6920_v40 = vld [vmem:[#allocation2 + $0x18] sm:$0xfc] }
 0x2a5   : > { %4971 = vmatprep.subr.bf16.mxu0 %v9862_v10  ;;  %v3654_v10 = vshrl.u32 %v3354_v0, 16  ;;  %v3513_v0 = vld [vmem:[#allocation7 + $0xcc8] sm:$0xff] }
 0x2a6   : > { %v3529_v56 = vld [vmem:[#allocation7 + $0xd48] sm:$0xff] }
 0x2a7   : > { %5056 = vmatpush1.bf16.msra.mxu1 %v9855_v36  ;;  %v3659_v36 = vor.u32 %v3658_v18, %v3654_v10  ;;  %v3533_v61 = vld [vmem:[#allocation7 + $0xd68] sm:$0xff]  ;;  %v9950_v18 = vcombine.high %v3536_v16, %v3540_v39  ;;  %v9949_v10 = vcombine.low %v3536_v16, %v3540_v39 }
 0x2a8   : > { %4972 = vmatpush1.bf16.msra.mxu0 %v9861_v52  ;;  %5057 = vmatprep.subr.bf16.mxu1 %v9864_v30  ;;  %v3663_v52 = vrot.slane %v3661_v51, 1  ;;  %v9904_v30 = vcombine.high %v3489_v7, %v3493_v62  ;;  %v9944_v50 = vcombine.high %v3529_v56, %v3533_v61  ;;  %v3537_v51 = vld [vmem:[#allocation7 + $0xd88] sm:$0xff] }
 0x2a9   : > { %4973 = vmatprep.subr.bf16.mxu0 %v9870_v57  ;;  %v11765_v57 = vsel %vm3616_vm10, %v3623_v32, %v3627_v23  ;;  %v9943_v23 = vcombine.low %v3529_v56, %v3533_v61 }
 0x2ab   : > { %5058 = vmatpush1.bf16.msra.mxu1 %v9863_v19  ;;  %v9903_v19 = vcombine.low %v3489_v7, %v3493_v62  ;;  %v3548_v7 = vld [vmem:[#allocation7 + $0xde0] sm:$0xff]  ;;  %v6928_v62 = vpack.c.bf16 %v11749_v59, %v6920_v40  ;;  %v3589_v40 = vld [vmem:[#allocation7 + $0xf28] sm:$0xff] }
 0x2ac   : > { %4974 = vmatpush1.bf16.msra.mxu0 %v9869_v60  ;;  %5059 = vmatprep.subr.bf16.mxu1 %v9872_v43  ;;  %v11769_v60 = vsel %vm3616_vm10, %v3659_v36, %v3663_v52  ;;  %v9909_v43 = vcombine.low %v3496_v15, %v3500_v35 }
 0x2ad   : > { %4975 = vmatprep.subr.bf16.mxu0 %v9878_v8  ;;  %v9912_v8 = vcombine.high %v3497_v47, %v3501_v48  ;;  %v7208_v36 = vrot.slane %v6928_v62, 1  ;;  %v3597_v62 = vld [vmem:[#allocation7 + $0xf68] sm:$0xff] }
 0x2af   : > { %5060 = vmatpush1.bf16.msra.mxu1 %v9871_v20  ;;  %v9920_v20 = vcombine.high %v3505_v44, %v3509_v42 }
 0x2b0   : > { %4976 = vmatpush1.bf16.msra.mxu0 %v9877_v1  ;;  %5061 = vmatprep.subr.bf16.mxu1 %v9880_v3  ;;  %v9926_v1 = vcombine.high %v3512_v2, %v3516_v12  ;;  %v3517_v3 = vld [vmem:[#allocation7 + $0xce8] sm:$0xff] }
 0x2b1   : > { %4977 = vmatprep.subr.bf16.mxu0 %v9886_v31  ;;  %v3520_v31 = vld [vmem:[#allocation7 + $0xd00] sm:$0xff]  ;;  %v9928_v25 = vcombine.high %v3513_v0, %v3517_v3  ;;  %v9927_v63 = vcombine.low %v3513_v0, %v3517_v3 }
 0x2b2   : > { %v9934_v11 = vcombine.high %v3520_v31, %v3524_v38  ;;  %v9933_v41 = vcombine.low %v3520_v31, %v3524_v38 }
 0x2b3   : > { %5062 = vmatpush1.bf16.msra.mxu1 %v9879_v9  ;;  %v3528_v9 = vld [vmem:[#allocation7 + $0xd40] sm:$0xff] }
 0x2b4   : > { %4978 = vmatpush1.bf16.msra.mxu0 %v9885_v6  ;;  %5063 = vmatprep.subr.bf16.mxu1 %v9888_v27  ;;  %v3532_v6 = vld [vmem:[#allocation7 + $0xd60] sm:$0xff]  ;;  %v9936_v27 = vcombine.high %v3521_v29, %v3525_v26 }
 0x2b5   : > { %4979 = vmatprep.subr.bf16.mxu0 %v9894_v22  ;;  %v9942_v22 = vcombine.high %v3528_v9, %v3532_v6 }
 0x2b7   : > { %5064 = vmatpush1.bf16.msra.mxu1 %v9887_v49  ;;  %v6924_v49 = vld [vmem:[#allocation2 + $0x58] sm:$0x3] }
 0x2b8   : > { %4980 = vmatpush1.bf16.msra.mxu0 %v9893_v17  ;;  %5065 = vmatprep.subr.bf16.mxu1 %v9896_v14  ;;  %v9941_v17 = vcombine.low %v3528_v9, %v3532_v6  ;;  %v3541_v14 = vld [vmem:[#allocation7 + $0xda8] sm:$0xff]  ;;  %v6932_v32 = vpack.c.bf16 %v6924_v49, %v6924_v49  ;;  %v3592_v49 = vld [vmem:[#allocation7 + $0xf40] sm:$0xff] }
 0x2b9   : > { %4992 = vmatprep.subr.bf16.mxu0 %v9902_v4  ;;  %v3544_v4 = vld [vmem:[#allocation7 + $0xdc0] sm:$0xff]  ;;  %v9952_v15 = vcombine.high %v3537_v51, %v3541_v14  ;;  %v9951_v47 = vcombine.low %v3537_v51, %v3541_v14 }
 0x2ba   : > { %v9958_v35 = vcombine.high %v3544_v4, %v3548_v7  ;;  %v7209_v52 = vrot.slane %v6932_v32, 1  ;;  %v9957_v48 = vcombine.low %v3544_v4, %v3548_v7  ;;  %v3593_v7 = vld [vmem:[#allocation7 + $0xf48] sm:$0xff]  ;;  %v3600_v32 = vld [vmem:[#allocation7 + $0xf80] sm:$0xff] }
 0x2bb   : > { %4982 = vmatmul.mubr.bf16.vlgmr.msra.gmra.mrb[16].mxu0 %v11765_v57  ;;  %5066 = vmatpush1.bf16.msra.mxu1 %v9895_v53  ;;  %v3545_v53 = vld [vmem:[#allocation7 + $0xdc8] sm:$0xff] }
 0x2bc   : > { %4993 = vmatpush1.bf16.msra.mxu0 %v9901_v24  ;;  %5078 = vmatprep.subr.bf16.mxu1 %v9904_v30  ;;  %v3549_v24 = vld [vmem:[#allocation7 + $0xde8] sm:$0xff]  ;;  %v3552_v30 = vld [vmem:[#allocation7 + $0xe00] sm:$0xff]  ;;  %v11776_v59 = vsel %vm7198_vm11, %v7208_v36, %v7209_v52 }
 0x2bd   : > { %5024 = vmatprep.mubr.bf16.mxu0 %v11769_v60  ;;  %4994 = vmatprep.subr.bf16.mxu0 %v9910_v13  ;;  %v3556_v13 = vld [vmem:[#allocation7 + $0xe20] sm:$0xff]  ;;  %v9960_v54 = vcombine.high %v3545_v53, %v3549_v24  ;;  %v9959_v44 = vcombine.low %v3545_v53, %v3549_v24  ;;  %v10008_v24 = vcombine.high %v3593_v7, %v3597_v62  ;;  %v3601_v52 = vld [vmem:[#allocation7 + $0xf88] sm:$0xff] }
 0x2be   : > { %5068 = vmatmul.mubr.bf16.vlgmr.msra.gmra.mrb[16].mxu1 %v11765_v57  ;;  %v9966_v37 = vcombine.high %v3552_v30, %v3556_v13  ;;  %v9965_v42 = vcombine.low %v3552_v30, %v3556_v13  ;;  %v3605_v30 = vld [vmem:[#allocation7 + $0xfa8] sm:$0xff]  ;;  %v3608_v13 = vld [vmem:[#allocation7 + $0xfc0] sm:$0xff] }
 0x2bf   : > { %5079 = vmatpush1.bf16.msra.mxu1 %v9903_v19  ;;  %5110 = vmatprep.mubr.bf16.mxu1 %v11769_v60  ;;  %v3553_v19 = vld [vmem:[#allocation7 + $0xe08] sm:$0xff] }
 0x2c0   : > { %5080 = vmatprep.subr.bf16.mxu1 %v9912_v8  ;;  %4995 = vmatpush1.bf16.msra.mxu0 %v9909_v43  ;;  %v3557_v43 = vld [vmem:[#allocation7 + $0xe28] sm:$0xff]  ;;  %v3560_v8 = vld [vmem:[#allocation7 + $0xe40] sm:$0xff] }
 0x2c1   : > { %4996 = vmatprep.subr.bf16.mxu0 %v9918_v55  ;;  %v3564_v55 = vld [vmem:[#allocation7 + $0xe60] sm:$0xff]  ;;  %v9968_v2 = vcombine.high %v3553_v19, %v3557_v43  ;;  %v9967_v0 = vcombine.low %v3553_v19, %v3557_v43  ;;  %v10016_v19 = vcombine.high %v3601_v52, %v3605_v30 }
 0x2c2   : > { %v9974_v12 = vcombine.high %v3560_v8, %v3564_v55  ;;  %v9973_v3 = vcombine.low %v3560_v8, %v3564_v55  ;;  %v3609_v8 = vld [vmem:[#allocation7 + $0xfc8] sm:$0xff] }
 0x2c3   : > { %5081 = vmatpush1.bf16.msra.mxu1 %v9911_v28  ;;  %v3561_v28 = vld [vmem:[#allocation7 + $0xe48] sm:$0xff] }
 0x2c4   : > { %5082 = vmatprep.subr.bf16.mxu1 %v9920_v20  ;;  %4997 = vmatpush1.bf16.msra.mxu0 %v9917_v34  ;;  %v3565_v34 = vld [vmem:[#allocation7 + $0xe68] sm:$0xff]  ;;  %v3568_v20 = vld [vmem:[#allocation7 + $0xe80] sm:$0xff] }
 0x2c5   : > { %4998 = vmatprep.subr.bf16.mxu0 %v9926_v1  ;;  %v3572_v1 = vld [vmem:[#allocation7 + $0xea0] sm:$0xff]  ;;  %v9976_v31 = vcombine.high %v3561_v28, %v3565_v34  ;;  %v9975_v29 = vcombine.low %v3561_v28, %v3565_v34  ;;  %v3613_v55 = vld [vmem:[#allocation7 + $0xfe8] sm:$0xff]  ;;  %v10015_v28 = vcombine.low %v3601_v52, %v3605_v30 }
 0x2c6   : > { %v9982_v38 = vcombine.high %v3568_v20, %v3572_v1  ;;  %v9981_v26 = vcombine.low %v3568_v20, %v3572_v1  ;;  %v10024_v20 = vcombine.high %v3609_v8, %v3613_v55 }
 0x2c7   : > { %5083 = vmatpush1.bf16.msra.mxu1 %v9919_v58  ;;  %v3569_v58 = vld [vmem:[#allocation7 + $0xe88] sm:$0xff] }
 0x2c8   : > { %5084 = vmatprep.subr.bf16.mxu1 %v9928_v25  ;;  %4999 = vmatpush1.bf16.msra.mxu0 %v9925_v33  ;;  %v3573_v33 = vld [vmem:[#allocation7 + $0xea8] sm:$0xff]  ;;  %v3576_v25 = vld [vmem:[#allocation7 + $0xec0] sm:$0xff] }
 0x2c9   : > { %5000 = vmatprep.subr.bf16.mxu0 %v9934_v11  ;;  %v3580_v11 = vld [vmem:[#allocation7 + $0xee0] sm:$0xff]  ;;  %v9984_v9 = vcombine.high %v3569_v58, %v3573_v33  ;;  %v9983_v56 = vcombine.low %v3569_v58, %v3573_v33  ;;  %v3370_v33 = vld [vmem:[#allocation7 + $0x850] sm:$0xff] }
 0x2ca   : > { %v9990_v6 = vcombine.high %v3576_v25, %v3580_v11  ;;  %v9989_v61 = vcombine.low %v3576_v25, %v3580_v11  ;;  %v3374_v25 = vld [vmem:[#allocation7 + $0x870] sm:$0xff]  ;;  %v10023_v11 = vcombine.low %v3609_v8, %v3613_v55 }
 0x2cb   : > { %5085 = vmatpush1.bf16.msra.mxu1 %v9927_v63  ;;  %v3577_v63 = vld [vmem:[#allocation7 + $0xec8] sm:$0xff] }
 0x2cc   : > { %5086 = vmatprep.subr.bf16.mxu1 %v9936_v27  ;;  %5001 = vmatpush1.bf16.msra.mxu0 %v9933_v41  ;;  %v3581_v41 = vld [vmem:[#allocation7 + $0xee8] sm:$0xff]  ;;  %v3584_v27 = vld [vmem:[#allocation7 + $0xf00] sm:$0xff] }
 0x2cd   : > { %5002 = vmatprep.subr.bf16.mxu0 %v9942_v22  ;;  %v3588_v22 = vld [vmem:[#allocation7 + $0xf20] sm:$0xff]  ;;  %v9992_v16 = vcombine.high %v3577_v63, %v3581_v41 }
 0x2ce   : > { %v9998_v39 = vcombine.high %v3584_v27, %v3588_v22  ;;  %v9997_v51 = vcombine.low %v3584_v27, %v3588_v22  ;;  %v3378_v27 = vld [vmem:[#allocation7 + $0x890] sm:$0xff] }
 0x2cf   : > { %5087 = vmatpush1.bf16.msra.mxu1 %v9935_v46  ;;  %v3585_v46 = vld [vmem:[#allocation7 + $0xf08] sm:$0xff]  ;;  %v3382_v22 = vld [vmem:[#allocation7 + $0x8b0] sm:$0xff] }
 0x2d0   : > { %5088 = vmatprep.subr.bf16.mxu1 %v9944_v50  ;;  %5003 = vmatpush1.bf16.msra.mxu0 %v9941_v17  ;;  %v3596_v17 = vld [vmem:[#allocation7 + $0xf60] sm:$0xff]  ;;  %v9991_v50 = vcombine.low %v3577_v63, %v3581_v41  ;;  %v10000_v14 = vcombine.high %v3585_v46, %v3589_v40  ;;  %v3375_v63 = vld [vmem:[#allocation7 + $0x878] sm:$0xff] }
 0x2d1   : > { %5004 = vmatprep.subr.bf16.mxu0 %v9950_v18  ;;  %v3345_v18 = vld [vmem:[#allocation2 + $0x10] sm:$0xfe]  ;;  %v10006_v4 = vcombine.high %v3592_v49, %v3596_v17  ;;  %v10005_v53 = vcombine.low %v3592_v49, %v3596_v17  ;;  %v3386_v49 = vld [vmem:[#allocation7 + $0x8d0] sm:$0xff] }
 0x2d2   : > { %v3390_v17 = vld [vmem:[#allocation7 + $0x8f0] sm:$0xff] }
 0x2d3   : > { %5089 = vmatpush1.bf16.msra.mxu1 %v9943_v23  ;;  %v3604_v23 = vld [vmem:[#allocation7 + $0xfa0] sm:$0xff] }
 0x2d4   : > { %5090 = vmatprep.subr.bf16.mxu1 %v9952_v15  ;;  %5005 = vmatpush1.bf16.msra.mxu0 %v9949_v10  ;;  %v3353_v10 = vpack.c.bf16 %v11739_v45, %v3345_v18  ;;  %v9999_v15 = vcombine.low %v3585_v46, %v3589_v40  ;;  %v10014_v36 = vcombine.high %v3600_v32, %v3604_v23  ;;  %v3379_v46 = vld [vmem:[#allocation7 + $0x898] sm:$0xff] }
 0x2d5   : > { %5006 = vmatprep.subr.bf16.mxu0 %v9958_v35  ;;  %v3349_v35 = vld [vmem:[#allocation2 + $0x50] sm:$0x1]  ;;  %v10013_v45 = vcombine.low %v3600_v32, %v3604_v23  ;;  %v3383_v40 = vld [vmem:[#allocation7 + $0x8b8] sm:$0xff]  ;;  %v9793_v18 = vcombine.low %v3378_v27, %v3382_v22  ;;  %v3398_v32 = vld [vmem:[#allocation7 + $0x930] sm:$0xff] }
 0x2d6   : > { %v3642_v1 = vshrl.u32 %v3353_v10, 16  ;;  %v9795_v23 = vcombine.low %v3379_v46, %v3383_v40 }
 0x2d7   : > { %5091 = vmatpush1.bf16.msra.mxu1 %v9951_v47  ;;  %v3612_v47 = vld [vmem:[#allocation7 + $0xfe0] sm:$0xff] }
 0x2d8   : > { %5092 = vmatprep.subr.bf16.mxu1 %v9960_v54  ;;  %5007 = vmatpush1.bf16.msra.mxu0 %v9957_v48  ;;  %v3357_v48 = vpack.c.bf16 %v3349_v35, %v3349_v35  ;;  %v3644_v54 = vshll.u32 %v3353_v10, 16  ;;  %v10022_v43 = vcombine.high %v3608_v13, %v3612_v47  ;;  %v10021_v34 = vcombine.low %v3608_v13, %v3612_v47 }
 0x2d9   : > { %5008 = vmatprep.subr.bf16.mxu0 %v9966_v37  ;;  %v10007_v37 = vcombine.low %v3593_v7, %v3597_v62  ;;  %v3391_v7 = vld [vmem:[#allocation7 + $0x8f8] sm:$0xff]  ;;  %v3394_v62 = vld [vmem:[#allocation7 + $0x910] sm:$0xff]  ;;  %v9801_v10 = vcombine.low %v3386_v49, %v3390_v17 }
 0x2da   : > { %v9810_v35 = vcombine.high %v3394_v62, %v3398_v32  ;;  %v9809_v30 = vcombine.low %v3394_v62, %v3398_v32 }
 0x2db   : > { %5093 = vmatpush1.bf16.msra.mxu1 %v9959_v44  ;;  %v3646_v44 = vrot.slane %v3644_v54, 1  ;;  %v3407_v54 = vld [vmem:[#allocation7 + $0x978] sm:$0xff] }
 0x2dc   : > { %5094 = vmatprep.subr.bf16.mxu1 %v9968_v2  ;;  %5009 = vmatpush1.bf16.msra.mxu0 %v9965_v42  ;;  %v3649_v42 = vshll.u32 %v3357_v48, 16  ;;  %v3362_v2 = vld [vmem:[#allocation7 + $0x810] sm:$0xff]  ;;  %v3403_v48 = vld [vmem:[#allocation7 + $0x958] sm:$0xff] }
 0x2dd   : > { %5010 = vmatprep.subr.bf16.mxu0 %v9974_v12  ;;  %v3366_v12 = vld [vmem:[#allocation7 + $0x830] sm:$0xff]  ;;  %v9820_v8 = vcombine.high %v3403_v48, %v3407_v54 }
 0x2de   : > { %v3651_v58 = vrot.slane %v3649_v42, 1  ;;  %v3415_v42 = vld [vmem:[#allocation7 + $0x9b8] sm:$0xff] }
 0x2df   : > { %5095 = vmatpush1.bf16.msra.mxu1 %v9967_v0  ;;  %v9778_v0 = vcombine.high %v3362_v2, %v3366_v12 }
 0x2e0   : > { %5096 = vmatprep.subr.bf16.mxu1 %v9976_v31  ;;  %5011 = vmatpush1.bf16.msra.mxu0 %v9973_v3  ;;  %v3363_v3 = vld [vmem:[#allocation7 + $0x818] sm:$0xff] }
 0x2e1   : > { %5012 = vmatprep.subr.bf16.mxu0 %v9982_v38  ;;  %v3367_v31 = vld [vmem:[#allocation7 + $0x838] sm:$0xff]  ;;  %v3647_v38 = vor.u32 %v3646_v44, %v3642_v1 }
 0x2e2   : > { %v3411_v44 = vld [vmem:[#allocation7 + $0x998] sm:$0xff] }
 0x2e3   : > { %5097 = vmatpush1.bf16.msra.mxu1 %v9975_v29  ;;  %v9777_v29 = vcombine.low %v3362_v2, %v3366_v12  ;;  %v11780_v41 = vsel %vm3616_vm10, %v3647_v38, %v3651_v58  ;;  %v3418_v2 = vld [vmem:[#allocation7 + $0x9d0] sm:$0xff]  ;;  %v9827_v58 = vcombine.low %v3411_v44, %v3415_v42 }
 0x2e4   : > { %5098 = vmatprep.subr.bf16.mxu1 %v9984_v9  ;;  %5013 = vmatpush1.bf16.msra.mxu0 %v9981_v26  ;;  %v9780_v26 = vcombine.high %v3363_v3, %v3367_v31  ;;  %v9786_v9 = vcombine.high %v3370_v33, %v3374_v25  ;;  %v3422_v12 = vld [vmem:[#allocation7 + $0x9f0] sm:$0xff] }
 0x2e5   : > { %5014 = vmatprep.subr.bf16.mxu0 %v9990_v6  ;;  %v3371_v6 = vld [vmem:[#allocation7 + $0x858] sm:$0xff]  ;;  %v9834_v1 = vcombine.high %v3418_v2, %v3422_v12  ;;  %v3430_v38 = vld [vmem:[#allocation7 + $0xa30] sm:$0xff] }
 0x2e7   : > { %5099 = vmatpush1.bf16.msra.mxu1 %v9983_v56  ;;  %v9779_v56 = vcombine.low %v3363_v3, %v3367_v31  ;;  %v3423_v3 = vld [vmem:[#allocation7 + $0x9f8] sm:$0xff]  ;;  %v3426_v31 = vld [vmem:[#allocation7 + $0xa10] sm:$0xff] }
 0x2e8   : > { %5100 = vmatprep.subr.bf16.mxu1 %v9992_v16  ;;  %5015 = vmatpush1.bf16.msra.mxu0 %v9989_v61  ;;  %v9785_v61 = vcombine.low %v3370_v33, %v3374_v25  ;;  %v9788_v16 = vcombine.high %v3371_v6, %v3375_v63  ;;  %v9833_v33 = vcombine.low %v3418_v2, %v3422_v12 }
 0x2e9   : > { %5016 = vmatprep.subr.bf16.mxu0 %v9998_v39  ;;  %v9794_v39 = vcombine.high %v3378_v27, %v3382_v22  ;;  %v9841_v27 = vcombine.low %v3426_v31, %v3430_v38 }
 0x2eb   : > { %5101 = vmatpush1.bf16.msra.mxu1 %v9991_v50  ;;  %v9787_v50 = vcombine.low %v3371_v6, %v3375_v63  ;;  %v3438_v6 = vld [vmem:[#allocation7 + $0xa70] sm:$0xff] }
 0x2ec   : > { %5102 = vmatprep.subr.bf16.mxu1 %v10000_v14  ;;  %5017 = vmatpush1.bf16.msra.mxu0 %v9997_v51  ;;  %v9796_v51 = vcombine.high %v3379_v46, %v3383_v40  ;;  %v9802_v14 = vcombine.high %v3386_v49, %v3390_v17  ;;  %v3446_v46 = vld [vmem:[#allocation7 + $0xab0] sm:$0xff] }
 0x2ed   : > { %5018 = vmatprep.subr.bf16.mxu0 %v10006_v4  ;;  %v3387_v4 = vld [vmem:[#allocation7 + $0x8d8] sm:$0xff] }
 0x2ee   : > { %v9803_v52 = vcombine.low %v3387_v4, %v3391_v7 }
 0x2ef   : > { %5103 = vmatpush1.bf16.msra.mxu1 %v9999_v15  ;;  %v9804_v15 = vcombine.high %v3387_v4, %v3391_v7  ;;  %v3454_v4 = vld [vmem:[#allocation7 + $0xaf0] sm:$0xff] }
 0x2f0   : > { %5104 = vmatprep.subr.bf16.mxu1 %v10008_v24  ;;  %5019 = vmatpush1.bf16.msra.mxu0 %v10005_v53  ;;  %v3399_v53 = vld [vmem:[#allocation7 + $0x938] sm:$0xff]  ;;  %v3402_v24 = vld [vmem:[#allocation7 + $0x950] sm:$0xff] }
 0x2f1   : > { %5020 = vmatprep.subr.bf16.mxu0 %v10014_v36  ;;  %v3406_v36 = vld [vmem:[#allocation7 + $0x970] sm:$0xff] }
 0x2f2   : > { %v9818_v47 = vcombine.high %v3402_v24, %v3406_v36 }
 0x2f3   : > { %5105 = vmatpush1.bf16.msra.mxu1 %v10007_v37  ;;  %v3410_v37 = vld [vmem:[#allocation7 + $0x990] sm:$0xff] }
 0x2f4   : > { %5106 = vmatprep.subr.bf16.mxu1 %v10016_v19  ;;  %5021 = vmatpush1.bf16.msra.mxu0 %v10013_v45  ;;  %v3414_v45 = vld [vmem:[#allocation7 + $0x9b0] sm:$0xff] }
 0x2f5   : > { %5022 = vmatprep.subr.bf16.mxu0 %v10022_v43  ;;  %v9817_v43 = vcombine.low %v3402_v24, %v3406_v36  ;;  %v9826_v55 = vcombine.high %v3410_v37, %v3414_v45 }
 0x2f7   : > { %5107 = vmatpush1.bf16.msra.mxu1 %v10015_v28  ;;  %v9819_v28 = vcombine.low %v3403_v48, %v3407_v54  ;;  %v3470_v48 = vld [vmem:[#allocation7 + $0xb70] sm:$0xff] }
 0x2f8   : > { %5108 = vmatprep.subr.bf16.mxu1 %v10024_v20  ;;  %5023 = vmatpush1.bf16.msra.mxu0 %v10021_v34  ;;  %v9825_v34 = vcombine.low %v3410_v37, %v3414_v45  ;;  %v9828_v20 = vcombine.high %v3411_v44, %v3415_v42  ;;  %v3478_v44 = vld [vmem:[#allocation7 + $0xbb0] sm:$0xff] }
 0x2f9   : > { %5121 = vmatprep.subr.bf16.mxu0 %v9778_v0  ;;  %v3419_v0 = vld [vmem:[#allocation7 + $0x9d8] sm:$0xff] }
 0x2fa   : > { %v9836_v25 = vcombine.high %v3419_v0, %v3423_v3  ;;  %v9835_v63 = vcombine.low %v3419_v0, %v3423_v3  ;;  %v3486_v0 = vld [vmem:[#allocation7 + $0xbf0] sm:$0xff] }
 0x2fb   : > { %5109 = vmatpush1.bf16.msra.mxu1 %v10023_v11  ;;  %5025 = vmatmul.mubr.bf16.vlgmr.msra.gmra.mrb[16].mxu0 %v11780_v41  ;;  %v9842_v11 = vcombine.high %v3426_v31, %v3430_v38 }
 0x2fc   : > { %5207 = vmatprep.subr.bf16.mxu1 %v9780_v26  ;;  %5122 = vmatpush1.bf16.msra.mxu0 %v9777_v29  ;;  %v3427_v29 = vld [vmem:[#allocation7 + $0xa18] sm:$0xff] }
 0x2fd   : > { %5153 = vmatprep.mubr.bf16.mxu0 %v11758_v21  ;;  %5123 = vmatprep.subr.bf16.mxu0 %v9786_v9  ;;  %v3431_v26 = vld [vmem:[#allocation7 + $0xa38] sm:$0xff]  ;;  %v3434_v9 = vld [vmem:[#allocation7 + $0xa50] sm:$0xff] }
 0x2fe   : > { %5111 = vmatmul.mubr.bf16.vlgmr.msra.gmra.mrb[16].mxu1 %v11780_v41  ;;  %v9844_v22 = vcombine.high %v3427_v29, %v3431_v26  ;;  %v9843_v40 = vcombine.low %v3427_v29, %v3431_v26  ;;  %v9849_v49 = vcombine.low %v3434_v9, %v3438_v6  ;;  %v3494_v29 = vld [vmem:[#allocation7 + $0xc30] sm:$0xff] }
 0x2ff   : > { %5208 = vmatpush1.bf16.msra.mxu1 %v9779_v56  ;;  %5239 = vmatprep.mubr.bf16.mxu1 %v11758_v21  ;;  %v3395_v21 = vld [vmem:[#allocation7 + $0x918] sm:$0xff]  ;;  %v9850_v56 = vcombine.high %v3434_v9, %v3438_v6 }
 0x300   : > { %5209 = vmatprep.subr.bf16.mxu1 %v9788_v16  ;;  %5124 = vmatpush1.bf16.msra.mxu0 %v9785_v61  ;;  %v9812_v13 = vcombine.high %v3395_v21, %v3399_v53  ;;  %v9811_v19 = vcombine.low %v3395_v21, %v3399_v53  ;;  %v3435_v61 = vld [vmem:[#allocation7 + $0xa58] sm:$0xff]  ;;  %v3462_v21 = vld [vmem:[#allocation7 + $0xb30] sm:$0xff] }
 0x301   : > { %5125 = vmatprep.subr.bf16.mxu0 %v9794_v39  ;;  %v3439_v16 = vld [vmem:[#allocation7 + $0xa78] sm:$0xff]  ;;  %v3442_v39 = vld [vmem:[#allocation7 + $0xa90] sm:$0xff] }
 0x302   : > { %v9852_v17 = vcombine.high %v3435_v61, %v3439_v16  ;;  %v9851_v7 = vcombine.low %v3435_v61, %v3439_v16  ;;  %v9857_v62 = vcombine.low %v3442_v39, %v3446_v46  ;;  %v3502_v61 = vld [vmem:[#allocation7 + $0xc70] sm:$0xff] }
 0x303   : > { %5210 = vmatpush1.bf16.msra.mxu1 %v9787_v50  ;;  %v9858_v50 = vcombine.high %v3442_v39, %v3446_v46 }
 0x304   : > { %5211 = vmatprep.subr.bf16.mxu1 %v9796_v51  ;;  %5126 = vmatpush1.bf16.msra.mxu0 %v9793_v18  ;;  %v3443_v18 = vld [vmem:[#allocation7 + $0xa98] sm:$0xff] }
 0x305   : > { %5127 = vmatprep.subr.bf16.mxu0 %v9802_v14  ;;  %v3447_v51 = vld [vmem:[#allocation7 + $0xab8] sm:$0xff]  ;;  %v3450_v14 = vld [vmem:[#allocation7 + $0xad0] sm:$0xff] }
 0x306   : > { %v9860_v32 = vcombine.high %v3443_v18, %v3447_v51  ;;  %v9859_v53 = vcombine.low %v3443_v18, %v3447_v51  ;;  %v9865_v24 = vcombine.low %v3450_v14, %v3454_v4  ;;  %v3510_v18 = vld [vmem:[#allocation7 + $0xcb0] sm:$0xff] }
 0x307   : > { %5212 = vmatpush1.bf16.msra.mxu1 %v9795_v23  ;;  %v9866_v23 = vcombine.high %v3450_v14, %v3454_v4 }
 0x308   : > { %5213 = vmatprep.subr.bf16.mxu1 %v9804_v15  ;;  %5128 = vmatpush1.bf16.msra.mxu0 %v9801_v10  ;;  %v3451_v10 = vld [vmem:[#allocation7 + $0xad8] sm:$0xff] }
 0x309   : > { %5129 = vmatprep.subr.bf16.mxu0 %v9810_v35  ;;  %v3455_v15 = vld [vmem:[#allocation7 + $0xaf8] sm:$0xff]  ;;  %v3458_v35 = vld [vmem:[#allocation7 + $0xb10] sm:$0xff] }
 0x30a   : > { %v9868_v36 = vcombine.high %v3451_v10, %v3455_v15  ;;  %v9867_v54 = vcombine.low %v3451_v10, %v3455_v15  ;;  %v9873_v37 = vcombine.low %v3458_v35, %v3462_v21  ;;  %v3518_v10 = vld [vmem:[#allocation7 + $0xcf0] sm:$0xff] }
 0x30b   : > { %5214 = vmatpush1.bf16.msra.mxu1 %v9803_v52  ;;  %v9874_v52 = vcombine.high %v3458_v35, %v3462_v21 }
 0x30c   : > { %5215 = vmatprep.subr.bf16.mxu1 %v9812_v13  ;;  %5130 = vmatpush1.bf16.msra.mxu0 %v9809_v30  ;;  %v3459_v30 = vld [vmem:[#allocation7 + $0xb18] sm:$0xff] }
 0x30d   : > { %5131 = vmatprep.subr.bf16.mxu0 %v9818_v47  ;;  %v3463_v13 = vld [vmem:[#allocation7 + $0xb38] sm:$0xff]  ;;  %v3466_v47 = vld [vmem:[#allocation7 + $0xb50] sm:$0xff] }
 0x30e   : > { %v9876_v45 = vcombine.high %v3459_v30, %v3463_v13  ;;  %v9875_v42 = vcombine.low %v3459_v30, %v3463_v13  ;;  %v9881_v2 = vcombine.low %v3466_v47, %v3470_v48  ;;  %v3526_v30 = vld [vmem:[#allocation7 + $0xd30] sm:$0xff] }
 0x30f   : > { %5216 = vmatpush1.bf16.msra.mxu1 %v9811_v19  ;;  %v9882_v19 = vcombine.high %v3466_v47, %v3470_v48 }
 0x310   : > { %5217 = vmatprep.subr.bf16.mxu1 %v9820_v8  ;;  %5132 = vmatpush1.bf16.msra.mxu0 %v9817_v43  ;;  %v3467_v43 = vld [vmem:[#allocation7 + $0xb58] sm:$0xff] }
 0x311   : > { %5133 = vmatprep.subr.bf16.mxu0 %v9826_v55  ;;  %v3471_v8 = vld [vmem:[#allocation7 + $0xb78] sm:$0xff]  ;;  %v3474_v55 = vld [vmem:[#allocation7 + $0xb90] sm:$0xff] }
 0x312   : > { %v9884_v12 = vcombine.high %v3467_v43, %v3471_v8  ;;  %v9883_v3 = vcombine.low %v3467_v43, %v3471_v8  ;;  %v9889_v31 = vcombine.low %v3474_v55, %v3478_v44 }
 0x313   : > { %5218 = vmatpush1.bf16.msra.mxu1 %v9819_v28  ;;  %v9890_v28 = vcombine.high %v3474_v55, %v3478_v44  ;;  %v3531_v44 = vld [vmem:[#allocation7 + $0xd58] sm:$0xff] }
 0x314   : > { %5219 = vmatprep.subr.bf16.mxu1 %v9828_v20  ;;  %5134 = vmatpush1.bf16.msra.mxu0 %v9825_v34  ;;  %v3475_v34 = vld [vmem:[#allocation7 + $0xb98] sm:$0xff] }
 0x315   : > { %5135 = vmatprep.subr.bf16.mxu0 %v9834_v1  ;;  %v3479_v20 = vld [vmem:[#allocation7 + $0xbb8] sm:$0xff]  ;;  %v3482_v1 = vld [vmem:[#allocation7 + $0xbd0] sm:$0xff] }
 0x316   : > { %v9892_v38 = vcombine.high %v3475_v34, %v3479_v20  ;;  %v9891_v26 = vcombine.low %v3475_v34, %v3479_v20  ;;  %v9897_v9 = vcombine.low %v3482_v1, %v3486_v0 }
 0x317   : > { %5220 = vmatpush1.bf16.msra.mxu1 %v9827_v58  ;;  %v9898_v58 = vcombine.high %v3482_v1, %v3486_v0  ;;  %v3539_v0 = vld [vmem:[#allocation7 + $0xd98] sm:$0xff] }
 0x318   : > { %5221 = vmatprep.subr.bf16.mxu1 %v9836_v25  ;;  %5136 = vmatpush1.bf16.msra.mxu0 %v9833_v33  ;;  %v3483_v33 = vld [vmem:[#allocation7 + $0xbd8] sm:$0xff] }
 0x319   : > { %5137 = vmatprep.subr.bf16.mxu0 %v9842_v11  ;;  %v3487_v25 = vld [vmem:[#allocation7 + $0xbf8] sm:$0xff]  ;;  %v3490_v11 = vld [vmem:[#allocation7 + $0xc10] sm:$0xff] }
 0x31a   : > { %v9900_v6 = vcombine.high %v3483_v33, %v3487_v25  ;;  %v9899_v16 = vcombine.low %v3483_v33, %v3487_v25  ;;  %v9905_v39 = vcombine.low %v3490_v11, %v3494_v29 }
 0x31b   : > { %5222 = vmatpush1.bf16.msra.mxu1 %v9835_v63  ;;  %v9906_v63 = vcombine.high %v3490_v11, %v3494_v29  ;;  %v3547_v29 = vld [vmem:[#allocation7 + $0xdd8] sm:$0xff] }
 0x31c   : > { %5223 = vmatprep.subr.bf16.mxu1 %v9844_v22  ;;  %5138 = vmatpush1.bf16.msra.mxu0 %v9841_v27  ;;  %v3491_v27 = vld [vmem:[#allocation7 + $0xc18] sm:$0xff] }
 0x31d   : > { %5139 = vmatprep.subr.bf16.mxu0 %v9850_v56  ;;  %v3495_v22 = vld [vmem:[#allocation7 + $0xc38] sm:$0xff]  ;;  %v3498_v56 = vld [vmem:[#allocation7 + $0xc50] sm:$0xff] }
 0x31e   : > { %v9908_v46 = vcombine.high %v3491_v27, %v3495_v22  ;;  %v9907_v51 = vcombine.low %v3491_v27, %v3495_v22  ;;  %v9913_v14 = vcombine.low %v3498_v56, %v3502_v61 }
 0x31f   : > { %5224 = vmatpush1.bf16.msra.mxu1 %v9843_v40  ;;  %v9914_v40 = vcombine.high %v3498_v56, %v3502_v61  ;;  %v3555_v61 = vld [vmem:[#allocation7 + $0xe18] sm:$0xff] }
 0x320   : > { %5225 = vmatprep.subr.bf16.mxu1 %v9852_v17  ;;  %5140 = vmatpush1.bf16.msra.mxu0 %v9849_v49  ;;  %v3499_v49 = vld [vmem:[#allocation7 + $0xc58] sm:$0xff] }
 0x321   : > { %5141 = vmatprep.subr.bf16.mxu0 %v9858_v50  ;;  %v3503_v17 = vld [vmem:[#allocation7 + $0xc78] sm:$0xff]  ;;  %v3506_v50 = vld [vmem:[#allocation7 + $0xc90] sm:$0xff] }
 0x322   : > { %v9916_v4 = vcombine.high %v3499_v49, %v3503_v17  ;;  %v9915_v15 = vcombine.low %v3499_v49, %v3503_v17  ;;  %v9921_v35 = vcombine.low %v3506_v50, %v3510_v18 }
 0x323   : > { %5226 = vmatpush1.bf16.msra.mxu1 %v9851_v7  ;;  %v9922_v7 = vcombine.high %v3506_v50, %v3510_v18  ;;  %v3563_v18 = vld [vmem:[#allocation7 + $0xe58] sm:$0xff] }
 0x324   : > { %5227 = vmatprep.subr.bf16.mxu1 %v9860_v32  ;;  %5142 = vmatpush1.bf16.msra.mxu0 %v9857_v62  ;;  %v3507_v62 = vld [vmem:[#allocation7 + $0xc98] sm:$0xff] }
 0x325   : > { %5143 = vmatprep.subr.bf16.mxu0 %v9866_v23  ;;  %v3511_v32 = vld [vmem:[#allocation7 + $0xcb8] sm:$0xff]  ;;  %v3514_v23 = vld [vmem:[#allocation7 + $0xcd0] sm:$0xff] }
 0x326   : > { %v9924_v21 = vcombine.high %v3507_v62, %v3511_v32  ;;  %v9923_v13 = vcombine.low %v3507_v62, %v3511_v32 }
 0x327   : > { %5228 = vmatpush1.bf16.msra.mxu1 %v9859_v53  ;;  %v9930_v53 = vcombine.high %v3514_v23, %v3518_v10 }
 0x328   : > { %5229 = vmatprep.subr.bf16.mxu1 %v9868_v36  ;;  %5144 = vmatpush1.bf16.msra.mxu0 %v9865_v24  ;;  %v3515_v24 = vld [vmem:[#allocation7 + $0xcd8] sm:$0xff] }
 0x329   : > { %5145 = vmatprep.subr.bf16.mxu0 %v9874_v52  ;;  %v3519_v36 = vld [vmem:[#allocation7 + $0xcf8] sm:$0xff]  ;;  %v3522_v52 = vld [vmem:[#allocation7 + $0xd10] sm:$0xff] }
 0x32a   : > { %v9932_v47 = vcombine.high %v3515_v24, %v3519_v36  ;;  %v9938_v48 = vcombine.high %v3522_v52, %v3526_v30  ;;  %v9937_v43 = vcombine.low %v3522_v52, %v3526_v30  ;;  %v3579_v30 = vld [vmem:[#allocation7 + $0xed8] sm:$0xff] }
 0x32b   : > { %5230 = vmatpush1.bf16.msra.mxu1 %v9867_v54  ;;  %v3527_v54 = vld [vmem:[#allocation7 + $0xd38] sm:$0xff] }
 0x32c   : > { %5231 = vmatprep.subr.bf16.mxu1 %v9876_v45  ;;  %5146 = vmatpush1.bf16.msra.mxu0 %v9873_v37  ;;  %v3530_v37 = vld [vmem:[#allocation7 + $0xd50] sm:$0xff] }
 0x32d   : > { %5147 = vmatprep.subr.bf16.mxu0 %v9882_v19  ;;  %v3534_v45 = vld [vmem:[#allocation7 + $0xd70] sm:$0xff]  ;;  %v9931_v19 = vcombine.low %v3515_v24, %v3519_v36 }
 0x32e   : > { %v9946_v55 = vcombine.high %v3530_v37, %v3534_v45  ;;  %v9945_v34 = vcombine.low %v3530_v37, %v3534_v45  ;;  %v3587_v45 = vld [vmem:[#allocation7 + $0xf18] sm:$0xff] }
 0x32f   : > { %5232 = vmatpush1.bf16.msra.mxu1 %v9875_v42  ;;  %v3535_v42 = vld [vmem:[#allocation7 + $0xd78] sm:$0xff] }
 0x330   : > { %5233 = vmatprep.subr.bf16.mxu1 %v9884_v12  ;;  %5148 = vmatpush1.bf16.msra.mxu0 %v9881_v2  ;;  %v3538_v2 = vld [vmem:[#allocation7 + $0xd90] sm:$0xff]  ;;  %v9948_v20 = vcombine.high %v3531_v44, %v3535_v42 }
 0x331   : > { %5149 = vmatprep.subr.bf16.mxu0 %v9890_v28  ;;  %v3542_v12 = vld [vmem:[#allocation7 + $0xdb0] sm:$0xff] }
 0x332   : > { %v9954_v1 = vcombine.high %v3538_v2, %v3542_v12  ;;  %v9953_v33 = vcombine.low %v3538_v2, %v3542_v12  ;;  %v3595_v12 = vld [vmem:[#allocation7 + $0xf58] sm:$0xff] }
 0x333   : > { %5234 = vmatpush1.bf16.msra.mxu1 %v9883_v3  ;;  %v3543_v3 = vld [vmem:[#allocation7 + $0xdb8] sm:$0xff] }
 0x334   : > { %5235 = vmatprep.subr.bf16.mxu1 %v9892_v38  ;;  %5150 = vmatpush1.bf16.msra.mxu0 %v9889_v31  ;;  %v3546_v31 = vld [vmem:[#allocation7 + $0xdd0] sm:$0xff]  ;;  %v9956_v25 = vcombine.high %v3539_v0, %v3543_v3 }
 0x335   : > { %5151 = vmatprep.subr.bf16.mxu0 %v9898_v58  ;;  %v3550_v38 = vld [vmem:[#allocation7 + $0xdf0] sm:$0xff]  ;;  %v9947_v58 = vcombine.low %v3531_v44, %v3535_v42 }
 0x336   : > { %v9962_v11 = vcombine.high %v3546_v31, %v3550_v38  ;;  %v9961_v27 = vcombine.low %v3546_v31, %v3550_v38  ;;  %v3603_v38 = vld [vmem:[#allocation7 + $0xf98] sm:$0xff] }
 0x337   : > { %5236 = vmatpush1.bf16.msra.mxu1 %v9891_v26  ;;  %v3551_v26 = vld [vmem:[#allocation7 + $0xdf8] sm:$0xff] }
 0x338   : > { %5237 = vmatprep.subr.bf16.mxu1 %v9900_v6  ;;  %5152 = vmatpush1.bf16.msra.mxu0 %v9897_v9  ;;  %v3554_v9 = vld [vmem:[#allocation7 + $0xe10] sm:$0xff]  ;;  %v9964_v22 = vcombine.high %v3547_v29, %v3551_v26 }
 0x339   : > { %5164 = vmatprep.subr.bf16.mxu0 %v9906_v63  ;;  %v3558_v6 = vld [vmem:[#allocation7 + $0xe30] sm:$0xff]  ;;  %v9955_v63 = vcombine.low %v3539_v0, %v3543_v3 }
 0x33a   : > { %v9970_v56 = vcombine.high %v3554_v9, %v3558_v6  ;;  %v9969_v49 = vcombine.low %v3554_v9, %v3558_v6  ;;  %v3611_v6 = vld [vmem:[#allocation7 + $0xfd8] sm:$0xff] }
 0x33b   : > { %5238 = vmatpush1.bf16.msra.mxu1 %v9899_v16  ;;  %5154 = vmatmul.mubr.bf16.vlgmr.msra.gmra.mrb[20].mxu0 %v11765_v57  ;;  %v3559_v16 = vld [vmem:[#allocation7 + $0xe38] sm:$0xff] }
 0x33c   : > { %5250 = vmatprep.subr.bf16.mxu1 %v9908_v46  ;;  %5165 = vmatpush1.bf16.msra.mxu0 %v9905_v39  ;;  %v3562_v39 = vld [vmem:[#allocation7 + $0xe50] sm:$0xff]  ;;  %v9972_v17 = vcombine.high %v3555_v61, %v3559_v16 }
 0x33d   : > { %5196 = vmatprep.mubr.bf16.mxu0 %v11769_v60  ;;  %5166 = vmatprep.subr.bf16.mxu0 %v9914_v40  ;;  %v3566_v46 = vld [vmem:[#allocation7 + $0xe70] sm:$0xff]  ;;  %v9963_v40 = vcombine.low %v3547_v29, %v3551_v26 }
 0x33e   : > { %5240 = vmatmul.mubr.bf16.vlgmr.msra.gmra.mrb[20].mxu1 %v11765_v57  ;;  %v9929_v57 = vcombine.low %v3514_v23, %v3518_v10  ;;  %v9978_v50 = vcombine.high %v3562_v39, %v3566_v46  ;;  %v9977_v62 = vcombine.low %v3562_v39, %v3566_v46  ;;  %v3571_v10 = vld [vmem:[#allocation7 + $0xe98] sm:$0xff]  ;;  %v3088_v46 = vld [vmem:[#allocation7 + $0x8] sm:$0xff] }
 0x33f   : > { %5251 = vmatpush1.bf16.msra.mxu1 %v9907_v51  ;;  %5282 = vmatprep.mubr.bf16.mxu1 %v11769_v60  ;;  %v3523_v60 = vld [vmem:[#allocation7 + $0xd18] sm:$0xff] }
 0x340   : > { %5252 = vmatprep.subr.bf16.mxu1 %v9916_v4  ;;  %5167 = vmatpush1.bf16.msra.mxu0 %v9913_v14  ;;  %v9940_v8 = vcombine.high %v3523_v60, %v3527_v54  ;;  %v9939_v28 = vcombine.low %v3523_v60, %v3527_v54  ;;  %v3567_v51 = vld [vmem:[#allocation7 + $0xe78] sm:$0xff]  ;;  %v3570_v14 = vld [vmem:[#allocation7 + $0xe90] sm:$0xff] }
 0x341   : > { %5168 = vmatprep.subr.bf16.mxu0 %v9922_v7  ;;  %v3574_v4 = vld [vmem:[#allocation7 + $0xeb0] sm:$0xff]  ;;  %v9971_v7 = vcombine.low %v3555_v61, %v3559_v16  ;;  %v9980_v32 = vcombine.high %v3563_v18, %v3567_v51 }
 0x342   : > { %v9986_v23 = vcombine.high %v3570_v14, %v3574_v4  ;;  %v9985_v24 = vcombine.low %v3570_v14, %v3574_v4  ;;  %v3076_v14 = vld [vmem:[#allocation2 + $0x8] sm:$0xff] }
 0x343   : > { %5253 = vmatpush1.bf16.msra.mxu1 %v9915_v15  ;;  %v3575_v15 = vld [vmem:[#allocation7 + $0xeb8] sm:$0xff] }
 0x344   : > { %5254 = vmatprep.subr.bf16.mxu1 %v9924_v21  ;;  %5169 = vmatpush1.bf16.msra.mxu0 %v9921_v35  ;;  %v3578_v35 = vld [vmem:[#allocation7 + $0xed0] sm:$0xff]  ;;  %v9988_v36 = vcombine.high %v3571_v10, %v3575_v15 }
 0x345   : > { %5170 = vmatprep.subr.bf16.mxu0 %v9930_v53  ;;  %v3582_v21 = vld [vmem:[#allocation7 + $0xef0] sm:$0xff]  ;;  %v9979_v53 = vcombine.low %v3563_v18, %v3567_v51 }
 0x346   : > { %v9994_v52 = vcombine.high %v3578_v35, %v3582_v21  ;;  %v9993_v60 = vcombine.low %v3578_v35, %v3582_v21 }
 0x347   : > { %5255 = vmatpush1.bf16.msra.mxu1 %v9923_v13  ;;  %v3583_v13 = vld [vmem:[#allocation7 + $0xef8] sm:$0xff] }
 0x348   : > { %5256 = vmatprep.subr.bf16.mxu1 %v9932_v47  ;;  %5171 = vmatpush1.bf16.msra.mxu0 %v9929_v57  ;;  %v3586_v57 = vld [vmem:[#allocation7 + $0xf10] sm:$0xff]  ;;  %v9996_v54 = vcombine.high %v3579_v30, %v3583_v13 }
 0x349   : > { %5172 = vmatprep.subr.bf16.mxu0 %v9938_v48  ;;  %v3590_v47 = vld [vmem:[#allocation7 + $0xf30] sm:$0xff]  ;;  %v9987_v48 = vcombine.low %v3571_v10, %v3575_v15  ;;  %v10751_v15 = vld [vmem:[#allocation2 + $0x28] sm:$0xff] }
 0x34a   : > { %v10002_v37 = vcombine.high %v3586_v57, %v3590_v47  ;;  %v10001_v44 = vcombine.low %v3586_v57, %v3590_v47  ;;  %v11791_v35 = vpack.c.bf16 %v10751_v15, %v3076_v14  ;;  %v3159_v14 = vld [vmem:[#allocation7 + $0x240] sm:$0xff]  ;;  %v3164_v15 = vld [vmem:[#allocation7 + $0x268] sm:$0xff] }
 0x34b   : > { %5257 = vmatpush1.bf16.msra.mxu1 %v9931_v19  ;;  %v3591_v19 = vld [vmem:[#allocation7 + $0xf38] sm:$0xff] }
 0x34c   : > { %5258 = vmatprep.subr.bf16.mxu1 %v9940_v8  ;;  %5173 = vmatpush1.bf16.msra.mxu0 %v9937_v43  ;;  %v3594_v43 = vld [vmem:[#allocation7 + $0xf50] sm:$0xff]  ;;  %v10004_v42 = vcombine.high %v3587_v45, %v3591_v19 }
 0x34d   : > { %5174 = vmatprep.subr.bf16.mxu0 %v9946_v55  ;;  %v3598_v8 = vld [vmem:[#allocation7 + $0xf70] sm:$0xff]  ;;  %v9995_v55 = vcombine.low %v3579_v30, %v3583_v13  ;;  %v3111_v30 = vld [vmem:[#allocation7 + $0xc0] sm:$0xff] }
 0x34e   : > { %v10010_v2 = vcombine.high %v3594_v43, %v3598_v8  ;;  %v10009_v0 = vcombine.low %v3594_v43, %v3598_v8  ;;  %v3115_v13 = vld [vmem:[#allocation7 + $0xe0] sm:$0xff] }
 0x34f   : > { %5259 = vmatpush1.bf16.msra.mxu1 %v9939_v28  ;;  %v3599_v28 = vld [vmem:[#allocation7 + $0xf78] sm:$0xff] }
 0x350   : > { %5260 = vmatprep.subr.bf16.mxu1 %v9948_v20  ;;  %5175 = vmatpush1.bf16.msra.mxu0 %v9945_v34  ;;  %v3602_v34 = vld [vmem:[#allocation7 + $0xf90] sm:$0xff]  ;;  %v10012_v3 = vcombine.high %v3595_v12, %v3599_v28 }
 0x351   : > { %5176 = vmatprep.subr.bf16.mxu0 %v9954_v1  ;;  %v3606_v20 = vld [vmem:[#allocation7 + $0xfb0] sm:$0xff]  ;;  %v10003_v1 = vcombine.low %v3587_v45, %v3591_v19  ;;  %v3119_v45 = vld [vmem:[#allocation7 + $0x100] sm:$0xff] }
 0x352   : > { %v10018_v31 = vcombine.high %v3602_v34, %v3606_v20  ;;  %v10017_v29 = vcombine.low %v3602_v34, %v3606_v20  ;;  %v3123_v19 = vld [vmem:[#allocation7 + $0x120] sm:$0xff] }
 0x353   : > { %5261 = vmatpush1.bf16.msra.mxu1 %v9947_v58  ;;  %v3607_v58 = vld [vmem:[#allocation7 + $0xfb8] sm:$0xff]  ;;  %v10061_v34 = vcombine.low %v3119_v45, %v3123_v19 }
 0x354   : > { %5262 = vmatprep.subr.bf16.mxu1 %v9956_v25  ;;  %5177 = vmatpush1.bf16.msra.mxu0 %v9953_v33  ;;  %v3610_v33 = vld [vmem:[#allocation7 + $0xfd0] sm:$0xff]  ;;  %v10020_v26 = vcombine.high %v3603_v38, %v3607_v58 }
 0x355   : > { %5178 = vmatprep.subr.bf16.mxu0 %v9962_v11  ;;  %v3614_v25 = vld [vmem:[#allocation7 + $0xff0] sm:$0xff]  ;;  %v10011_v11 = vcombine.low %v3595_v12, %v3599_v28  ;;  %v3131_v12 = vld [vmem:[#allocation7 + $0x160] sm:$0xff] }
 0x356   : > { %v10026_v9 = vcombine.high %v3610_v33, %v3614_v25  ;;  %v10025_v61 = vcombine.low %v3610_v33, %v3614_v25 }
 0x357   : > { %5263 = vmatpush1.bf16.msra.mxu1 %v9955_v63  ;;  %v3615_v63 = vld [vmem:[#allocation7 + $0xff8] sm:$0xff] }
 0x358   : > { %5264 = vmatprep.subr.bf16.mxu1 %v9964_v22  ;;  %5179 = vmatpush1.bf16.msra.mxu0 %v9961_v27  ;;  %v3087_v27 = vld [vmem:[#allocation7] sm:$0xff]  ;;  %v10028_v16 = vcombine.high %v3611_v6, %v3615_v63 }
 0x359   : > { %5180 = vmatprep.subr.bf16.mxu0 %v9970_v56  ;;  %v3091_v22 = vld [vmem:[#allocation7 + $0x20] sm:$0xff]  ;;  %v10019_v56 = vcombine.low %v3603_v38, %v3607_v58 }
 0x35a   : > { %v10030_v39 = vcombine.high %v3087_v27, %v3091_v22  ;;  %v10029_v18 = vcombine.low %v3087_v27, %v3091_v22  ;;  %v3139_v38 = vld [vmem:[#allocation7 + $0x1a0] sm:$0xff] }
 0x35b   : > { %5265 = vmatpush1.bf16.msra.mxu1 %v9963_v40  ;;  %v3092_v40 = vld [vmem:[#allocation7 + $0x28] sm:$0xff] }
 0x35c   : > { %5266 = vmatprep.subr.bf16.mxu1 %v9972_v17  ;;  %5181 = vmatpush1.bf16.msra.mxu0 %v9969_v49  ;;  %v3095_v49 = vld [vmem:[#allocation7 + $0x40] sm:$0xff]  ;;  %v10032_v51 = vcombine.high %v3088_v46, %v3092_v40  ;;  %v10031_v10 = vcombine.low %v3088_v46, %v3092_v40 }
 0x35d   : > { %5182 = vmatprep.subr.bf16.mxu0 %v9978_v50  ;;  %v3099_v17 = vld [vmem:[#allocation7 + $0x60] sm:$0xff]  ;;  %v10027_v50 = vcombine.low %v3611_v6, %v3615_v63 }
 0x35e   : > { %v10038_v4 = vcombine.high %v3095_v49, %v3099_v17  ;;  %v10037_v21 = vcombine.low %v3095_v49, %v3099_v17  ;;  %v3147_v6 = vld [vmem:[#allocation7 + $0x1e0] sm:$0xff] }
 0x35f   : > { %5267 = vmatpush1.bf16.msra.mxu1 %v9971_v7  ;;  %v3096_v7 = vld [vmem:[#allocation7 + $0x48] sm:$0xff]  ;;  %v3155_v46 = vld [vmem:[#allocation7 + $0x220] sm:$0xff] }
 0x360   : > { %5268 = vmatprep.subr.bf16.mxu1 %v9980_v32  ;;  %5183 = vmatpush1.bf16.msra.mxu0 %v9977_v62  ;;  %v3100_v62 = vld [vmem:[#allocation7 + $0x68] sm:$0xff]  ;;  %v3103_v32 = vld [vmem:[#allocation7 + $0x80] sm:$0xff] }
 0x361   : > { %5184 = vmatprep.subr.bf16.mxu0 %v9986_v23  ;;  %v3107_v23 = vld [vmem:[#allocation7 + $0xa0] sm:$0xff]  ;;  %v10039_v57 = vcombine.low %v3096_v7, %v3100_v62 }
 0x362   : > { %v10045_v47 = vcombine.low %v3103_v32, %v3107_v23 }
 0x363   : > { %5269 = vmatpush1.bf16.msra.mxu1 %v9979_v53  ;;  %v10040_v53 = vcombine.high %v3096_v7, %v3100_v62 }
 0x364   : > { %5270 = vmatprep.subr.bf16.mxu1 %v9988_v36  ;;  %5185 = vmatpush1.bf16.msra.mxu0 %v9985_v24  ;;  %v10046_v24 = vcombine.high %v3103_v32, %v3107_v23  ;;  %v3104_v36 = vld [vmem:[#allocation7 + $0x88] sm:$0xff] }
 0x365   : > { %5186 = vmatprep.subr.bf16.mxu0 %v9994_v52  ;;  %v3108_v52 = vld [vmem:[#allocation7 + $0xa8] sm:$0xff] }
 0x366   : > { %v10047_v43 = vcombine.low %v3104_v36, %v3108_v52 }
 0x367   : > { %5271 = vmatpush1.bf16.msra.mxu1 %v9987_v48  ;;  %v10048_v48 = vcombine.high %v3104_v36, %v3108_v52 }
 0x368   : > { %5272 = vmatprep.subr.bf16.mxu1 %v9996_v54  ;;  %5187 = vmatpush1.bf16.msra.mxu0 %v9993_v60  ;;  %v10054_v60 = vcombine.high %v3111_v30, %v3115_v13  ;;  %v3112_v54 = vld [vmem:[#allocation7 + $0xc8] sm:$0xff] }
 0x369   : > { %5188 = vmatprep.subr.bf16.mxu0 %v10002_v37  ;;  %v3116_v37 = vld [vmem:[#allocation7 + $0xe8] sm:$0xff] }
 0x36a   : > { %v10056_v8 = vcombine.high %v3112_v54, %v3116_v37  ;;  %v10055_v28 = vcombine.low %v3112_v54, %v3116_v37 }
 0x36b   : > { %5273 = vmatpush1.bf16.msra.mxu1 %v9995_v55  ;;  %v10062_v55 = vcombine.high %v3119_v45, %v3123_v19  ;;  %v3176_v19 = vld [vmem:[#allocation7 + $0x2c8] sm:$0xff] }
 0x36c   : > { %5274 = vmatprep.subr.bf16.mxu1 %v10004_v42  ;;  %5189 = vmatpush1.bf16.msra.mxu0 %v10001_v44  ;;  %v3120_v44 = vld [vmem:[#allocation7 + $0x108] sm:$0xff] }
 0x36d   : > { %5190 = vmatprep.subr.bf16.mxu0 %v10010_v2  ;;  %v3124_v42 = vld [vmem:[#allocation7 + $0x128] sm:$0xff]  ;;  %v3127_v2 = vld [vmem:[#allocation7 + $0x140] sm:$0xff] }
 0x36e   : > { %v10064_v20 = vcombine.high %v3120_v44, %v3124_v42  ;;  %v10063_v58 = vcombine.low %v3120_v44, %v3124_v42  ;;  %v10069_v33 = vcombine.low %v3127_v2, %v3131_v12 }
 0x36f   : > { %5275 = vmatpush1.bf16.msra.mxu1 %v10003_v1  ;;  %v10070_v1 = vcombine.high %v3127_v2, %v3131_v12  ;;  %v3184_v12 = vld [vmem:[#allocation7 + $0x308] sm:$0xff] }
 0x370   : > { %5276 = vmatprep.subr.bf16.mxu1 %v10012_v3  ;;  %5191 = vmatpush1.bf16.msra.mxu0 %v10009_v0  ;;  %v3128_v0 = vld [vmem:[#allocation7 + $0x148] sm:$0xff] }
 0x371   : > { %5192 = vmatprep.subr.bf16.mxu0 %v10018_v31  ;;  %v3132_v3 = vld [vmem:[#allocation7 + $0x168] sm:$0xff]  ;;  %v3135_v31 = vld [vmem:[#allocation7 + $0x180] sm:$0xff] }
 0x372   : > { %v10072_v25 = vcombine.high %v3128_v0, %v3132_v3  ;;  %v10071_v63 = vcombine.low %v3128_v0, %v3132_v3  ;;  %v10077_v27 = vcombine.low %v3135_v31, %v3139_v38 }
 0x373   : > { %5277 = vmatpush1.bf16.msra.mxu1 %v10011_v11  ;;  %v10078_v11 = vcombine.high %v3135_v31, %v3139_v38  ;;  %v3192_v38 = vld [vmem:[#allocation7 + $0x348] sm:$0xff] }
 0x374   : > { %5278 = vmatprep.subr.bf16.mxu1 %v10020_v26  ;;  %5193 = vmatpush1.bf16.msra.mxu0 %v10017_v29  ;;  %v3136_v29 = vld [vmem:[#allocation7 + $0x188] sm:$0xff] }
 0x375   : > { %5194 = vmatprep.subr.bf16.mxu0 %v10026_v9  ;;  %v3140_v26 = vld [vmem:[#allocation7 + $0x1a8] sm:$0xff]  ;;  %v3143_v9 = vld [vmem:[#allocation7 + $0x1c0] sm:$0xff] }
 0x376   : > { %v10080_v22 = vcombine.high %v3136_v29, %v3140_v26  ;;  %v10079_v40 = vcombine.low %v3136_v29, %v3140_v26  ;;  %v10085_v49 = vcombine.low %v3143_v9, %v3147_v6 }
 0x377   : > { %5279 = vmatpush1.bf16.msra.mxu1 %v10019_v56  ;;  %v10086_v56 = vcombine.high %v3143_v9, %v3147_v6  ;;  %v3200_v6 = vld [vmem:[#allocation7 + $0x388] sm:$0xff] }
 0x378   : > { %5280 = vmatprep.subr.bf16.mxu1 %v10028_v16  ;;  %5195 = vmatpush1.bf16.msra.mxu0 %v10025_v61  ;;  %v3144_v61 = vld [vmem:[#allocation7 + $0x1c8] sm:$0xff] }
 0x379   : > { %6573 = vmatprep.subr.bf16.mxu0 %v10030_v39  ;;  %v3148_v16 = vld [vmem:[#allocation7 + $0x1e8] sm:$0xff]  ;;  %v3151_v39 = vld [vmem:[#allocation7 + $0x200] sm:$0xff] }
 0x37a   : > { %v10088_v17 = vcombine.high %v3144_v61, %v3148_v16  ;;  %v10087_v7 = vcombine.low %v3144_v61, %v3148_v16  ;;  %v10093_v62 = vcombine.low %v3151_v39, %v3155_v46 }
 0x37b   : > { %5281 = vmatpush1.bf16.msra.mxu1 %v10027_v50  ;;  %5197 = vmatmul.mubr.bf16.vlgmr.msra.gmra.mrb[20].mxu0 %v11780_v41  ;;  %v10094_v50 = vcombine.high %v3151_v39, %v3155_v46  ;;  %v3208_v46 = vld [vmem:[#allocation7 + $0x3c8] sm:$0xff] }
 0x37c   : > { %6659 = vmatprep.subr.bf16.mxu1 %v10032_v51  ;;  %6574 = vmatpush1.bf16.msra.mxu0 %v10029_v18  ;;  %v3152_v18 = vld [vmem:[#allocation7 + $0x208] sm:$0xff] }
 0x37d   : > { %6605 = vmatprep.mubr.bf16.mxu0 %v11791_v35  ;;  %6575 = vmatprep.subr.bf16.mxu0 %v10038_v4  ;;  %v3156_v51 = vld [vmem:[#allocation7 + $0x228] sm:$0xff]  ;;  %v3163_v4 = vld [vmem:[#allocation7 + $0x260] sm:$0xff] }
 0x37e   : > { %5283 = vmatmul.mubr.bf16.vlgmr.msra.gmra.mrb[20].mxu1 %v11780_v41  ;;  %v10053_v41 = vcombine.low %v3111_v30, %v3115_v13  ;;  %v10096_v32 = vcombine.high %v3152_v18, %v3156_v51  ;;  %v10102_v23 = vcombine.high %v3159_v14, %v3163_v4  ;;  %v10101_v36 = vcombine.low %v3159_v14, %v3163_v4  ;;  %v3168_v13 = vld [vmem:[#allocation7 + $0x288] sm:$0xff] }
 0x37f   : > { %6660 = vmatpush1.bf16.msra.mxu1 %v10031_v10  ;;  %6691 = vmatprep.mubr.bf16.mxu1 %v11791_v35  ;;  %v3160_v10 = vld [vmem:[#allocation7 + $0x248] sm:$0xff] }
 0x380   : > { %6661 = vmatprep.subr.bf16.mxu1 %v10040_v53  ;;  %6576 = vmatpush1.bf16.msra.mxu0 %v10037_v21  ;;  %v3167_v21 = vld [vmem:[#allocation7 + $0x280] sm:$0xff]  ;;  %v10104_v52 = vcombine.high %v3160_v10, %v3164_v15  ;;  %v3216_v4 = vld [vmem:[#allocation7 + $0x408] sm:$0xff] }
 0x381   : > { %6577 = vmatprep.subr.bf16.mxu0 %v10046_v24  ;;  %v3171_v53 = vld [vmem:[#allocation7 + $0x2a0] sm:$0xff]  ;;  %v10095_v24 = vcombine.low %v3152_v18, %v3156_v51 }
 0x382   : > { %v10110_v30 = vcombine.high %v3167_v21, %v3171_v53  ;;  %v10109_v54 = vcombine.low %v3167_v21, %v3171_v53  ;;  %v3078_v53 = vld [vmem:[#allocation2 + $0x18] sm:$0xff] }
 0x383   : > { %6662 = vmatpush1.bf16.msra.mxu1 %v10039_v57  ;;  %v3172_v57 = vld [vmem:[#allocation7 + $0x2a8] sm:$0xff] }
 0x384   : > { %6663 = vmatprep.subr.bf16.mxu1 %v10048_v48  ;;  %6578 = vmatpush1.bf16.msra.mxu0 %v10045_v47  ;;  %v3175_v47 = vld [vmem:[#allocation7 + $0x2c0] sm:$0xff]  ;;  %v10112_v37 = vcombine.high %v3168_v13, %v3172_v57 }
 0x385   : > { %6579 = vmatprep.subr.bf16.mxu0 %v10054_v60  ;;  %v3179_v48 = vld [vmem:[#allocation7 + $0x2e0] sm:$0xff]  ;;  %v10103_v60 = vcombine.low %v3160_v10, %v3164_v15 }
 0x386   : > { %v10118_v45 = vcombine.high %v3175_v47, %v3179_v48  ;;  %v10117_v44 = vcombine.low %v3175_v47, %v3179_v48  ;;  %v3235_v47 = vld [vmem:[#allocation7 + $0x4a0] sm:$0xff] }
 0x387   : > { %6664 = vmatpush1.bf16.msra.mxu1 %v10047_v43  ;;  %v3180_v43 = vld [vmem:[#allocation7 + $0x2e8] sm:$0xff] }
 0x388   : > { %6665 = vmatprep.subr.bf16.mxu1 %v10056_v8  ;;  %6580 = vmatpush1.bf16.msra.mxu0 %v10053_v41  ;;  %v3183_v41 = vld [vmem:[#allocation7 + $0x300] sm:$0xff]  ;;  %v10120_v42 = vcombine.high %v3176_v19, %v3180_v43 }
 0x389   : > { %6581 = vmatprep.subr.bf16.mxu0 %v10062_v55  ;;  %v3187_v8 = vld [vmem:[#allocation7 + $0x320] sm:$0xff]  ;;  %v10111_v55 = vcombine.low %v3168_v13, %v3172_v57  ;;  %v3228_v13 = vld [vmem:[#allocation7 + $0x468] sm:$0xff] }
 0x38a   : > { %v10126_v2 = vcombine.high %v3183_v41, %v3187_v8  ;;  %v10125_v0 = vcombine.low %v3183_v41, %v3187_v8  ;;  %v3231_v57 = vld [vmem:[#allocation7 + $0x480] sm:$0xff]  ;;  %v3236_v41 = vld [vmem:[#allocation7 + $0x4a8] sm:$0xff] }
 0x38b   : > { %6666 = vmatpush1.bf16.msra.mxu1 %v10055_v28  ;;  %v3188_v28 = vld [vmem:[#allocation7 + $0x328] sm:$0xff]  ;;  %v3239_v8 = vld [vmem:[#allocation7 + $0x4c0] sm:$0xff] }
 0x38c   : > { %6667 = vmatprep.subr.bf16.mxu1 %v10064_v20  ;;  %6582 = vmatpush1.bf16.msra.mxu0 %v10061_v34  ;;  %v3191_v34 = vld [vmem:[#allocation7 + $0x340] sm:$0xff]  ;;  %v10128_v3 = vcombine.high %v3184_v12, %v3188_v28 }
 0x38d   : > { %6583 = vmatprep.subr.bf16.mxu0 %v10070_v1  ;;  %v3195_v20 = vld [vmem:[#allocation7 + $0x360] sm:$0xff]  ;;  %v10119_v1 = vcombine.low %v3176_v19, %v3180_v43  ;;  %v10174_v19 = vcombine.high %v3231_v57, %v3235_v47  ;;  %v3232_v43 = vld [vmem:[#allocation7 + $0x488] sm:$0xff] }
 0x38e   : > { %v10134_v31 = vcombine.high %v3191_v34, %v3195_v20  ;;  %v10133_v29 = vcombine.low %v3191_v34, %v3195_v20  ;;  %v3244_v34 = vld [vmem:[#allocation7 + $0x4e8] sm:$0xff]  ;;  %v3247_v20 = vld [vmem:[#allocation7 + $0x500] sm:$0xff] }
 0x38f   : > { %6668 = vmatpush1.bf16.msra.mxu1 %v10063_v58  ;;  %v3196_v58 = vld [vmem:[#allocation7 + $0x368] sm:$0xff] }
 0x390   : > { %6669 = vmatprep.subr.bf16.mxu1 %v10072_v25  ;;  %6584 = vmatpush1.bf16.msra.mxu0 %v10069_v33  ;;  %v3199_v33 = vld [vmem:[#allocation7 + $0x380] sm:$0xff]  ;;  %v10136_v26 = vcombine.high %v3192_v38, %v3196_v58 }
 0x391   : > { %6585 = vmatprep.subr.bf16.mxu0 %v10078_v11  ;;  %v3203_v25 = vld [vmem:[#allocation7 + $0x3a0] sm:$0xff]  ;;  %v10127_v11 = vcombine.low %v3184_v12, %v3188_v28  ;;  %v3240_v28 = vld [vmem:[#allocation7 + $0x4c8] sm:$0xff] }
 0x392   : > { %v10142_v9 = vcombine.high %v3199_v33, %v3203_v25  ;;  %v10141_v61 = vcombine.low %v3199_v33, %v3203_v25  ;;  %v3252_v33 = vld [vmem:[#allocation7 + $0x528] sm:$0xff]  ;;  %v3255_v25 = vld [vmem:[#allocation7 + $0x540] sm:$0xff] }
 0x393   : > { %6670 = vmatpush1.bf16.msra.mxu1 %v10071_v63  ;;  %v3204_v63 = vld [vmem:[#allocation7 + $0x3a8] sm:$0xff] }
 0x394   : > { %6671 = vmatprep.subr.bf16.mxu1 %v10080_v22  ;;  %6586 = vmatpush1.bf16.msra.mxu0 %v10077_v27  ;;  %v3207_v27 = vld [vmem:[#allocation7 + $0x3c0] sm:$0xff]  ;;  %v10144_v16 = vcombine.high %v3200_v6, %v3204_v63 }
 0x395   : > { %6587 = vmatprep.subr.bf16.mxu0 %v10086_v56  ;;  %v3211_v22 = vld [vmem:[#allocation7 + $0x3e0] sm:$0xff]  ;;  %v10135_v56 = vcombine.low %v3192_v38, %v3196_v58  ;;  %v3248_v58 = vld [vmem:[#allocation7 + $0x508] sm:$0xff] }
 0x396   : > { %v10150_v39 = vcombine.high %v3207_v27, %v3211_v22  ;;  %v10149_v18 = vcombine.low %v3207_v27, %v3211_v22  ;;  %v3260_v27 = vld [vmem:[#allocation7 + $0x568] sm:$0xff]  ;;  %v3263_v22 = vld [vmem:[#allocation7 + $0x580] sm:$0xff] }
 0x397   : > { %6672 = vmatpush1.bf16.msra.mxu1 %v10079_v40  ;;  %v3212_v40 = vld [vmem:[#allocation7 + $0x3e8] sm:$0xff] }
 0x398   : > { %6673 = vmatprep.subr.bf16.mxu1 %v10088_v17  ;;  %6588 = vmatpush1.bf16.msra.mxu0 %v10085_v49  ;;  %v3215_v49 = vld [vmem:[#allocation7 + $0x400] sm:$0xff]  ;;  %v10152_v51 = vcombine.high %v3208_v46, %v3212_v40  ;;  %v10151_v10 = vcombine.low %v3208_v46, %v3212_v40  ;;  %v3264_v40 = vld [vmem:[#allocation7 + $0x588] sm:$0xff] }
 0x399   : > { %6589 = vmatprep.subr.bf16.mxu0 %v10094_v50  ;;  %v3219_v17 = vld [vmem:[#allocation7 + $0x420] sm:$0xff]  ;;  %v10143_v50 = vcombine.low %v3200_v6, %v3204_v63  ;;  %v3256_v63 = vld [vmem:[#allocation7 + $0x548] sm:$0xff] }
 0x39a   : > { %v10158_v14 = vcombine.high %v3215_v49, %v3219_v17  ;;  %v10157_v15 = vcombine.low %v3215_v49, %v3219_v17  ;;  %v3268_v49 = vld [vmem:[#allocation7 + $0x5a8] sm:$0xff]  ;;  %v3271_v17 = vld [vmem:[#allocation7 + $0x5c0] sm:$0xff] }
 0x39b   : > { %6674 = vmatpush1.bf16.msra.mxu1 %v10087_v7  ;;  %v3220_v7 = vld [vmem:[#allocation7 + $0x428] sm:$0xff] }
 0x39c   : > { %6675 = vmatprep.subr.bf16.mxu1 %v10096_v32  ;;  %6590 = vmatpush1.bf16.msra.mxu0 %v10093_v62  ;;  %v3075_v62 = vld [vmem:[#allocation2] sm:$0xff]  ;;  %v3223_v32 = vld [vmem:[#allocation7 + $0x440] sm:$0xff]  ;;  %v10160_v21 = vcombine.high %v3216_v4, %v3220_v7  ;;  %v10159_v48 = vcombine.low %v3216_v4, %v3220_v7  ;;  %v3272_v7 = vld [vmem:[#allocation7 + $0x5c8] sm:$0xff] }
 0x39d   : > { %6591 = vmatprep.subr.bf16.mxu0 %v10102_v23  ;;  %v3227_v23 = vld [vmem:[#allocation7 + $0x460] sm:$0xff] }
 0x39f   : > { %6676 = vmatpush1.bf16.msra.mxu1 %v10095_v24  ;;  %v10752_v24 = vld [vmem:[#allocation2 + $0x20] sm:$0xff] }
 0x3a0   : > { %6677 = vmatprep.subr.bf16.mxu1 %v10104_v52  ;;  %6592 = vmatpush1.bf16.msra.mxu0 %v10101_v36  ;;  %v11796_v36 = vpack.c.bf16 %v10752_v24, %v3075_v62  ;;  %v10166_v52 = vcombine.high %v3223_v32, %v3227_v23  ;;  %v3276_v62 = vld [vmem:[#allocation7 + $0x5e8] sm:$0xff] }
 0x3a1   : > { %6593 = vmatprep.subr.bf16.mxu0 %v10110_v30  ;;  %v3224_v30 = vld [vmem:[#allocation7 + $0x448] sm:$0xff] }
 0x3a2   : > { %v3280_v24 = vld [vmem:[#allocation7 + $0x608] sm:$0xff] }
 0x3a3   : > { %6678 = vmatpush1.bf16.msra.mxu1 %v10103_v60  ;;  %v10753_v60 = vld [vmem:[#allocation2 + $0x38] sm:$0xff] }
 0x3a4   : > { %6679 = vmatprep.subr.bf16.mxu1 %v10112_v37  ;;  %6594 = vmatpush1.bf16.msra.mxu0 %v10109_v54  ;;  %v11799_v54 = vpack.c.bf16 %v10753_v60, %v3078_v53  ;;  %v10165_v37 = vcombine.low %v3223_v32, %v3227_v23  ;;  %v3279_v32 = vld [vmem:[#allocation7 + $0x600] sm:$0xff] }
 0x3a5   : > { %6595 = vmatprep.subr.bf16.mxu0 %v10118_v45  ;;  %v10168_v45 = vcombine.high %v3224_v30, %v3228_v13  ;;  %v3283_v23 = vld [vmem:[#allocation7 + $0x620] sm:$0xff] }
 0x3a6   : > { %v10222_v53 = vcombine.high %v3279_v32, %v3283_v23 }
 0x3a7   : > { %6680 = vmatpush1.bf16.msra.mxu1 %v10111_v55  ;;  %v3243_v55 = vld [vmem:[#allocation7 + $0x4e0] sm:$0xff] }
 0x3a8   : > { %6681 = vmatprep.subr.bf16.mxu1 %v10120_v42  ;;  %6596 = vmatpush1.bf16.msra.mxu0 %v10117_v44  ;;  %v10167_v44 = vcombine.low %v3224_v30, %v3228_v13  ;;  %v10173_v42 = vcombine.low %v3231_v57, %v3235_v47  ;;  %v10182_v12 = vcombine.high %v3239_v8, %v3243_v55  ;;  %v3287_v30 = vld [vmem:[#allocation7 + $0x640] sm:$0xff] }
 0x3a9   : > { %6597 = vmatprep.subr.bf16.mxu0 %v10126_v2  ;;  %v10176_v2 = vcombine.high %v3232_v43, %v3236_v41  ;;  %v3291_v13 = vld [vmem:[#allocation7 + $0x660] sm:$0xff]  ;;  %v10215_v57 = vcombine.low %v3272_v7, %v3276_v62  ;;  %v10221_v47 = vcombine.low %v3279_v32, %v3283_v23 }
 0x3aa   : > { %v10230_v60 = vcombine.high %v3287_v30, %v3291_v13 }
 0x3ab   : > { %6682 = vmatpush1.bf16.msra.mxu1 %v10119_v1  ;;  %v3251_v1 = vld [vmem:[#allocation7 + $0x520] sm:$0xff] }
 0x3ac   : > { %6683 = vmatprep.subr.bf16.mxu1 %v10128_v3  ;;  %6598 = vmatpush1.bf16.msra.mxu0 %v10125_v0  ;;  %v10175_v0 = vcombine.low %v3232_v43, %v3236_v41  ;;  %v10181_v3 = vcombine.low %v3239_v8, %v3243_v55  ;;  %v10190_v38 = vcombine.high %v3247_v20, %v3251_v1  ;;  %v3299_v43 = vld [vmem:[#allocation7 + $0x6a0] sm:$0xff] }
 0x3ad   : > { %6599 = vmatprep.subr.bf16.mxu0 %v10134_v31  ;;  %v10184_v31 = vcombine.high %v3240_v28, %v3244_v34  ;;  %v10229_v8 = vcombine.low %v3287_v30, %v3291_v13 }
 0x3af   : > { %6684 = vmatpush1.bf16.msra.mxu1 %v10127_v11  ;;  %v3259_v11 = vld [vmem:[#allocation7 + $0x560] sm:$0xff] }
 0x3b0   : > { %6685 = vmatprep.subr.bf16.mxu1 %v10136_v26  ;;  %6600 = vmatpush1.bf16.msra.mxu0 %v10133_v29  ;;  %v10183_v29 = vcombine.low %v3240_v28, %v3244_v34  ;;  %v10189_v26 = vcombine.low %v3247_v20, %v3251_v1  ;;  %v10198_v6 = vcombine.high %v3255_v25, %v3259_v11  ;;  %v3307_v28 = vld [vmem:[#allocation7 + $0x6e0] sm:$0xff] }
 0x3b1   : > { %6601 = vmatprep.subr.bf16.mxu0 %v10142_v9  ;;  %v10192_v9 = vcombine.high %v3248_v58, %v3252_v33 }
 0x3b3   : > { %6686 = vmatpush1.bf16.msra.mxu1 %v10135_v56  ;;  %v3267_v56 = vld [vmem:[#allocation7 + $0x5a0] sm:$0xff] }
 0x3b4   : > { %6687 = vmatprep.subr.bf16.mxu1 %v10144_v16  ;;  %6602 = vmatpush1.bf16.msra.mxu0 %v10141_v61  ;;  %v10191_v61 = vcombine.low %v3248_v58, %v3252_v33  ;;  %v10197_v16 = vcombine.low %v3255_v25, %v3259_v11  ;;  %v10206_v46 = vcombine.high %v3263_v22, %v3267_v56  ;;  %v3315_v58 = vld [vmem:[#allocation7 + $0x720] sm:$0xff] }
 0x3b5   : > { %6603 = vmatprep.subr.bf16.mxu0 %v10150_v39  ;;  %v10200_v39 = vcombine.high %v3256_v63, %v3260_v27 }
 0x3b7   : > { %6688 = vmatpush1.bf16.msra.mxu1 %v10143_v50  ;;  %v3275_v50 = vld [vmem:[#allocation7 + $0x5e0] sm:$0xff] }
 0x3b8   : > { %6689 = vmatprep.subr.bf16.mxu1 %v10152_v51  ;;  %6604 = vmatpush1.bf16.msra.mxu0 %v10149_v18  ;;  %v10199_v18 = vcombine.low %v3256_v63, %v3260_v27  ;;  %v10205_v51 = vcombine.low %v3263_v22, %v3267_v56  ;;  %v10214_v4 = vcombine.high %v3271_v17, %v3275_v50  ;;  %v3323_v63 = vld [vmem:[#allocation7 + $0x760] sm:$0xff] }
 0x3b9   : > { %6616 = vmatprep.subr.bf16.mxu0 %v10158_v14  ;;  %v10208_v14 = vcombine.high %v3264_v40, %v3268_v49 }
 0x3bb   : > { %6690 = vmatpush1.bf16.msra.mxu1 %v10151_v10  ;;  %6606 = vmatmul.mubr.bf16.vlgmr.msra.gmra.mrb[16].mxu0 %v11796_v36  ;;  %v10207_v10 = vcombine.low %v3264_v40, %v3268_v49  ;;  %v3331_v40 = vld [vmem:[#allocation7 + $0x7a0] sm:$0xff] }
 0x3bc   : > { %6702 = vmatprep.subr.bf16.mxu1 %v10160_v21  ;;  %6617 = vmatpush1.bf16.msra.mxu0 %v10157_v15  ;;  %v10213_v15 = vcombine.low %v3271_v17, %v3275_v50  ;;  %v10216_v21 = vcombine.high %v3272_v7, %v3276_v62  ;;  %v3339_v7 = vld [vmem:[#allocation7 + $0x7e0] sm:$0xff] }
 0x3bd   : > { %6648 = vmatprep.mubr.bf16.mxu0 %v11799_v54  ;;  %6618 = vmatprep.subr.bf16.mxu0 %v10166_v52  ;;  %v3284_v52 = vld [vmem:[#allocation7 + $0x628] sm:$0xff] }
 0x3be   : > { %6692 = vmatmul.mubr.bf16.vlgmr.msra.gmra.mrb[16].mxu1 %v11796_v36  ;;  %v10223_v41 = vcombine.low %v3280_v24, %v3284_v52 }
 0x3bf   : > { %6703 = vmatpush1.bf16.msra.mxu1 %v10159_v48  ;;  %6734 = vmatprep.mubr.bf16.mxu1 %v11799_v54  ;;  %v10224_v48 = vcombine.high %v3280_v24, %v3284_v52  ;;  %v3093_v24 = vld [vmem:[#allocation7 + $0x30] sm:$0xff] }
 0x3c0   : > { %6704 = vmatprep.subr.bf16.mxu1 %v10168_v45  ;;  %6619 = vmatpush1.bf16.msra.mxu0 %v10165_v37  ;;  %v3288_v37 = vld [vmem:[#allocation7 + $0x648] sm:$0xff] }
 0x3c1   : > { %6620 = vmatprep.subr.bf16.mxu0 %v10174_v19  ;;  %v3292_v45 = vld [vmem:[#allocation7 + $0x668] sm:$0xff]  ;;  %v3295_v19 = vld [vmem:[#allocation7 + $0x680] sm:$0xff] }
 0x3c2   : > { %v10232_v55 = vcombine.high %v3288_v37, %v3292_v45  ;;  %v10231_v34 = vcombine.low %v3288_v37, %v3292_v45  ;;  %v10237_v20 = vcombine.low %v3295_v19, %v3299_v43  ;;  %v3097_v37 = vld [vmem:[#allocation7 + $0x50] sm:$0xff] }
 0x3c3   : > { %6705 = vmatpush1.bf16.msra.mxu1 %v10167_v44  ;;  %v10238_v44 = vcombine.high %v3295_v19, %v3299_v43  ;;  %v3101_v45 = vld [vmem:[#allocation7 + $0x70] sm:$0xff] }
 0x3c4   : > { %6706 = vmatprep.subr.bf16.mxu1 %v10176_v2  ;;  %6621 = vmatpush1.bf16.msra.mxu0 %v10173_v42  ;;  %v3296_v42 = vld [vmem:[#allocation7 + $0x688] sm:$0xff] }
 0x3c5   : > { %6622 = vmatprep.subr.bf16.mxu0 %v10182_v12  ;;  %v3300_v2 = vld [vmem:[#allocation7 + $0x6a8] sm:$0xff]  ;;  %v3303_v12 = vld [vmem:[#allocation7 + $0x6c0] sm:$0xff] }
 0x3c6   : > { %v10240_v1 = vcombine.high %v3296_v42, %v3300_v2  ;;  %v10239_v33 = vcombine.low %v3296_v42, %v3300_v2  ;;  %v10245_v25 = vcombine.low %v3303_v12, %v3307_v28  ;;  %v3098_v42 = vld [vmem:[#allocation7 + $0x58] sm:$0xff] }
 0x3c7   : > { %6707 = vmatpush1.bf16.msra.mxu1 %v10175_v0  ;;  %v10246_v0 = vcombine.high %v3303_v12, %v3307_v28  ;;  %v3102_v2 = vld [vmem:[#allocation7 + $0x78] sm:$0xff]  ;;  %v3105_v12 = vld [vmem:[#allocation7 + $0x90] sm:$0xff] }
 0x3c8   : > { %6708 = vmatprep.subr.bf16.mxu1 %v10184_v31  ;;  %6623 = vmatpush1.bf16.msra.mxu0 %v10181_v3  ;;  %v3304_v3 = vld [vmem:[#allocation7 + $0x6c8] sm:$0xff]  ;;  %v3109_v28 = vld [vmem:[#allocation7 + $0xb0] sm:$0xff] }
 0x3c9   : > { %6624 = vmatprep.subr.bf16.mxu0 %v10190_v38  ;;  %v3308_v31 = vld [vmem:[#allocation7 + $0x6e8] sm:$0xff]  ;;  %v3311_v38 = vld [vmem:[#allocation7 + $0x700] sm:$0xff] }
 0x3ca   : > { %v10248_v11 = vcombine.high %v3304_v3, %v3308_v31  ;;  %v10247_v27 = vcombine.low %v3304_v3, %v3308_v31  ;;  %v10253_v22 = vcombine.low %v3311_v38, %v3315_v58  ;;  %v3106_v3 = vld [vmem:[#allocation7 + $0x98] sm:$0xff] }
 0x3cb   : > { %6709 = vmatpush1.bf16.msra.mxu1 %v10183_v29  ;;  %v10254_v29 = vcombine.high %v3311_v38, %v3315_v58  ;;  %v3110_v31 = vld [vmem:[#allocation7 + $0xb8] sm:$0xff]  ;;  %v3113_v38 = vld [vmem:[#allocation7 + $0xd0] sm:$0xff] }
 0x3cc   : > { %6710 = vmatprep.subr.bf16.mxu1 %v10192_v9  ;;  %6625 = vmatpush1.bf16.msra.mxu0 %v10189_v26  ;;  %v3312_v26 = vld [vmem:[#allocation7 + $0x708] sm:$0xff]  ;;  %v3117_v58 = vld [vmem:[#allocation7 + $0xf0] sm:$0xff] }
 0x3cd   : > { %6626 = vmatprep.subr.bf16.mxu0 %v10198_v6  ;;  %v3316_v9 = vld [vmem:[#allocation7 + $0x728] sm:$0xff]  ;;  %v3319_v6 = vld [vmem:[#allocation7 + $0x740] sm:$0xff] }
 0x3ce   : > { %v10256_v56 = vcombine.high %v3312_v26, %v3316_v9  ;;  %v10255_v49 = vcombine.low %v3312_v26, %v3316_v9  ;;  %v10261_v17 = vcombine.low %v3319_v6, %v3323_v63  ;;  %v3114_v26 = vld [vmem:[#allocation7 + $0xd8] sm:$0xff] }
 0x3cf   : > { %6711 = vmatpush1.bf16.msra.mxu1 %v10191_v61  ;;  %v10262_v61 = vcombine.high %v3319_v6, %v3323_v63  ;;  %v3118_v9 = vld [vmem:[#allocation7 + $0xf8] sm:$0xff]  ;;  %v3121_v6 = vld [vmem:[#allocation7 + $0x110] sm:$0xff] }
 0x3d0   : > { %6712 = vmatprep.subr.bf16.mxu1 %v10200_v39  ;;  %6627 = vmatpush1.bf16.msra.mxu0 %v10197_v16  ;;  %v3320_v16 = vld [vmem:[#allocation7 + $0x748] sm:$0xff]  ;;  %v3125_v63 = vld [vmem:[#allocation7 + $0x130] sm:$0xff] }
 0x3d1   : > { %6628 = vmatprep.subr.bf16.mxu0 %v10206_v46  ;;  %v3324_v39 = vld [vmem:[#allocation7 + $0x768] sm:$0xff]  ;;  %v3327_v46 = vld [vmem:[#allocation7 + $0x780] sm:$0xff] }
 0x3d2   : > { %v10264_v50 = vcombine.high %v3320_v16, %v3324_v39  ;;  %v10263_v62 = vcombine.low %v3320_v16, %v3324_v39  ;;  %v10269_v32 = vcombine.low %v3327_v46, %v3331_v40  ;;  %v3126_v16 = vld [vmem:[#allocation7 + $0x138] sm:$0xff]  ;;  %v3129_v39 = vld [vmem:[#allocation7 + $0x150] sm:$0xff] }
 0x3d3   : > { %6713 = vmatpush1.bf16.msra.mxu1 %v10199_v18  ;;  %v10270_v18 = vcombine.high %v3327_v46, %v3331_v40  ;;  %v3133_v46 = vld [vmem:[#allocation7 + $0x170] sm:$0xff]  ;;  %v10059_v40 = vcombine.low %v3114_v26, %v3118_v9 }
 0x3d4   : > { %6714 = vmatprep.subr.bf16.mxu1 %v10208_v14  ;;  %6629 = vmatpush1.bf16.msra.mxu0 %v10205_v51  ;;  %v3328_v51 = vld [vmem:[#allocation7 + $0x788] sm:$0xff] }
 0x3d5   : > { %6630 = vmatprep.subr.bf16.mxu0 %v10214_v4  ;;  %v3332_v14 = vld [vmem:[#allocation7 + $0x7a8] sm:$0xff]  ;;  %v3335_v4 = vld [vmem:[#allocation7 + $0x7c0] sm:$0xff] }
 0x3d6   : > { %v10272_v23 = vcombine.high %v3328_v51, %v3332_v14  ;;  %v10271_v52 = vcombine.low %v3328_v51, %v3332_v14  ;;  %v10277_v30 = vcombine.low %v3335_v4, %v3339_v7  ;;  %v3134_v51 = vld [vmem:[#allocation7 + $0x178] sm:$0xff]  ;;  %v3137_v14 = vld [vmem:[#allocation7 + $0x190] sm:$0xff] }
 0x3d7   : > { %6715 = vmatpush1.bf16.msra.mxu1 %v10207_v10  ;;  %v10278_v10 = vcombine.high %v3335_v4, %v3339_v7  ;;  %v3141_v4 = vld [vmem:[#allocation7 + $0x1b0] sm:$0xff] }
 0x3d8   : > { %6716 = vmatprep.subr.bf16.mxu1 %v10216_v21  ;;  %6631 = vmatpush1.bf16.msra.mxu0 %v10213_v15  ;;  %v3336_v15 = vld [vmem:[#allocation7 + $0x7c8] sm:$0xff] }
 0x3d9   : > { %6632 = vmatprep.subr.bf16.mxu0 %v10222_v53  ;;  %v3340_v21 = vld [vmem:[#allocation7 + $0x7e8] sm:$0xff]  ;;  %v3089_v53 = vld [vmem:[#allocation7 + $0x10] sm:$0xff] }
 0x3da   : > { %v10280_v13 = vcombine.high %v3336_v15, %v3340_v21  ;;  %v10279_v19 = vcombine.low %v3336_v15, %v3340_v21  ;;  %v10033_v43 = vcombine.low %v3089_v53, %v3093_v24  ;;  %v3142_v15 = vld [vmem:[#allocation7 + $0x1b8] sm:$0xff]  ;;  %v3145_v21 = vld [vmem:[#allocation7 + $0x1d0] sm:$0xff] }
 0x3db   : > { %6717 = vmatpush1.bf16.msra.mxu1 %v10215_v57  ;;  %v10034_v57 = vcombine.high %v3089_v53, %v3093_v24  ;;  %v3149_v53 = vld [vmem:[#allocation7 + $0x1f0] sm:$0xff] }
 0x3dc   : > { %6718 = vmatprep.subr.bf16.mxu1 %v10224_v48  ;;  %6633 = vmatpush1.bf16.msra.mxu0 %v10221_v47  ;;  %v3090_v47 = vld [vmem:[#allocation7 + $0x18] sm:$0xff] }
 0x3dd   : > { %6634 = vmatprep.subr.bf16.mxu0 %v10230_v60  ;;  %v3094_v48 = vld [vmem:[#allocation7 + $0x38] sm:$0xff]  ;;  %v3077_v60 = vld [vmem:[#allocation2 + $0x10] sm:$0xff] }
 0x3df   : > { %6719 = vmatpush1.bf16.msra.mxu1 %v10223_v41  ;;  %v10036_v41 = vcombine.high %v3090_v47, %v3094_v48 }
 0x3e0   : > { %6720 = vmatprep.subr.bf16.mxu1 %v10232_v55  ;;  %6635 = vmatpush1.bf16.msra.mxu0 %v10229_v8  ;;  %v10754_v8 = vld [vmem:[#allocation2 + $0x30] sm:$0xff] }
 0x3e1   : > { %6636 = vmatprep.subr.bf16.mxu0 %v10238_v44  ;;  %v11804_v55 = vpack.c.bf16 %v10754_v8, %v3077_v60  ;;  %v10042_v44 = vcombine.high %v3097_v37, %v3101_v45  ;;  %v3157_v60 = vld [vmem:[#allocation7 + $0x230] sm:$0xff]  ;;  %v3158_v8 = vld [vmem:[#allocation7 + $0x238] sm:$0xff] }
 0x3e3   : > { %6721 = vmatpush1.bf16.msra.mxu1 %v10231_v34  ;;  %v10035_v34 = vcombine.low %v3090_v47, %v3094_v48  ;;  %v3150_v47 = vld [vmem:[#allocation7 + $0x1f8] sm:$0xff]  ;;  %v3153_v48 = vld [vmem:[#allocation7 + $0x210] sm:$0xff] }
 0x3e4   : > { %6722 = vmatprep.subr.bf16.mxu1 %v10240_v1  ;;  %6637 = vmatpush1.bf16.msra.mxu0 %v10237_v20  ;;  %v10041_v20 = vcombine.low %v3097_v37, %v3101_v45  ;;  %v10044_v1 = vcombine.high %v3098_v42, %v3102_v2  ;;  %v10089_v45 = vcombine.low %v3145_v21, %v3149_v53 }
 0x3e5   : > { %6638 = vmatprep.subr.bf16.mxu0 %v10246_v0  ;;  %v10050_v0 = vcombine.high %v3105_v12, %v3109_v28 }
 0x3e7   : > { %6723 = vmatpush1.bf16.msra.mxu1 %v10239_v33  ;;  %v10043_v33 = vcombine.low %v3098_v42, %v3102_v2  ;;  %v3165_v42 = vld [vmem:[#allocation7 + $0x270] sm:$0xff] }
 0x3e8   : > { %6724 = vmatprep.subr.bf16.mxu1 %v10248_v11  ;;  %6639 = vmatpush1.bf16.msra.mxu0 %v10245_v25  ;;  %v10049_v25 = vcombine.low %v3105_v12, %v3109_v28  ;;  %v10052_v11 = vcombine.high %v3106_v3, %v3110_v31  ;;  %v10097_v12 = vcombine.low %v3153_v48, %v3157_v60 }
 0x3e9   : > { %6640 = vmatprep.subr.bf16.mxu0 %v10254_v29  ;;  %v10058_v29 = vcombine.high %v3113_v38, %v3117_v58 }
 0x3eb   : > { %6725 = vmatpush1.bf16.msra.mxu1 %v10247_v27  ;;  %v10051_v27 = vcombine.low %v3106_v3, %v3110_v31  ;;  %v3173_v3 = vld [vmem:[#allocation7 + $0x2b0] sm:$0xff] }
 0x3ec   : > { %6726 = vmatprep.subr.bf16.mxu1 %v10256_v56  ;;  %6641 = vmatpush1.bf16.msra.mxu0 %v10253_v22  ;;  %v10057_v22 = vcombine.low %v3113_v38, %v3117_v58  ;;  %v10060_v56 = vcombine.high %v3114_v26, %v3118_v9  ;;  %v3181_v26 = vld [vmem:[#allocation7 + $0x2f0] sm:$0xff] }
 0x3ed   : > { %6642 = vmatprep.subr.bf16.mxu0 %v10262_v61  ;;  %v10066_v61 = vcombine.high %v3121_v6, %v3125_v63 }
 0x3ef   : > { %6727 = vmatpush1.bf16.msra.mxu1 %v10255_v49  ;;  %v10065_v49 = vcombine.low %v3121_v6, %v3125_v63 }
 0x3f0   : > { %6728 = vmatprep.subr.bf16.mxu1 %v10264_v50  ;;  %6643 = vmatpush1.bf16.msra.mxu0 %v10261_v17  ;;  %v10074_v50 = vcombine.high %v3129_v39, %v3133_v46 }
 0x3f1   : > { %6644 = vmatprep.subr.bf16.mxu0 %v10270_v18  ;;  %v3130_v18 = vld [vmem:[#allocation7 + $0x158] sm:$0xff] }
 0x3f2   : > { %v10075_v24 = vcombine.low %v3130_v18, %v3134_v51 }
 0x3f3   : > { %6729 = vmatpush1.bf16.msra.mxu1 %v10263_v62  ;;  %v10073_v62 = vcombine.low %v3129_v39, %v3133_v46 }
 0x3f4   : > { %6730 = vmatprep.subr.bf16.mxu1 %v10272_v23  ;;  %6645 = vmatpush1.bf16.msra.mxu0 %v10269_v32  ;;  %v10076_v32 = vcombine.high %v3130_v18, %v3134_v51  ;;  %v10082_v23 = vcombine.high %v3137_v14, %v3141_v4  ;;  %v3197_v18 = vld [vmem:[#allocation7 + $0x370] sm:$0xff] }
 0x3f5   : > { %6646 = vmatprep.subr.bf16.mxu0 %v10278_v10  ;;  %v3138_v10 = vld [vmem:[#allocation7 + $0x198] sm:$0xff] }
 0x3f6   : > { %v10083_v37 = vcombine.low %v3138_v10, %v3142_v15 }
 0x3f7   : > { %6731 = vmatpush1.bf16.msra.mxu1 %v10271_v52  ;;  %v10081_v52 = vcombine.low %v3137_v14, %v3141_v4 }
 0x3f8   : > { %6732 = vmatprep.subr.bf16.mxu1 %v10280_v13  ;;  %6647 = vmatpush1.bf16.msra.mxu0 %v10277_v30  ;;  %v10084_v30 = vcombine.high %v3138_v10, %v3142_v15  ;;  %v10090_v13 = vcombine.high %v3145_v21, %v3149_v53  ;;  %v3205_v10 = vld [vmem:[#allocation7 + $0x3b0] sm:$0xff] }
 0x3f9   : > { %6745 = vmatprep.subr.bf16.mxu0 %v10034_v57  ;;  %v3146_v57 = vld [vmem:[#allocation7 + $0x1d8] sm:$0xff] }
 0x3fa   : > { %v10091_v2 = vcombine.low %v3146_v57, %v3150_v47 }
 0x3fb   : > { %6733 = vmatpush1.bf16.msra.mxu1 %v10279_v19  ;;  %6649 = vmatmul.mubr.bf16.vlgmr.msra.gmra.mrb[16].mxu0 %v11804_v55  ;;  %v10092_v19 = vcombine.high %v3146_v57, %v3150_v47  ;;  %v3213_v57 = vld [vmem:[#allocation7 + $0x3f0] sm:$0xff] }
 0x3fc   : > { %6831 = vmatprep.subr.bf16.mxu1 %v10036_v41  ;;  %6746 = vmatpush1.bf16.msra.mxu0 %v10033_v43  ;;  %v10098_v43 = vcombine.high %v3153_v48, %v3157_v60  ;;  %v3154_v41 = vld [vmem:[#allocation7 + $0x218] sm:$0xff] }
 0x3fd   : > { %6777 = vmatprep.mubr.bf16.mxu0 %v11791_v35  ;;  %6747 = vmatprep.subr.bf16.mxu0 %v10042_v44  ;;  %v3161_v44 = vld [vmem:[#allocation7 + $0x250] sm:$0xff]  ;;  %v10100_v28 = vcombine.high %v3154_v41, %v3158_v8  ;;  %v10099_v31 = vcombine.low %v3154_v41, %v3158_v8 }
 0x3fe   : > { %6735 = vmatmul.mubr.bf16.vlgmr.msra.gmra.mrb[16].mxu1 %v11804_v55  ;;  %v10105_v38 = vcombine.low %v3161_v44, %v3165_v42  ;;  %v3221_v41 = vld [vmem:[#allocation7 + $0x430] sm:$0xff] }
 0x3ff   : > { %6832 = vmatpush1.bf16.msra.mxu1 %v10035_v34  ;;  %6863 = vmatprep.mubr.bf16.mxu1 %v11791_v35  ;;  %v3122_v35 = vld [vmem:[#allocation7 + $0x118] sm:$0xff]  ;;  %v10106_v34 = vcombine.high %v3161_v44, %v3165_v42 }
 0x400   : > { %6833 = vmatprep.subr.bf16.mxu1 %v10044_v1  ;;  %6748 = vmatpush1.bf16.msra.mxu0 %v10041_v20  ;;  %v10068_v17 = vcombine.high %v3122_v35, %v3126_v16  ;;  %v10067_v7 = vcombine.low %v3122_v35, %v3126_v16  ;;  %v3162_v20 = vld [vmem:[#allocation7 + $0x258] sm:$0xff]  ;;  %v3189_v35 = vld [vmem:[#allocation7 + $0x330] sm:$0xff] }
 0x401   : > { %6749 = vmatprep.subr.bf16.mxu0 %v10050_v0  ;;  %v3166_v1 = vld [vmem:[#allocation7 + $0x278] sm:$0xff]  ;;  %v3169_v0 = vld [vmem:[#allocation7 + $0x290] sm:$0xff] }
 0x402   : > { %v10108_v58 = vcombine.high %v3162_v20, %v3166_v1  ;;  %v10107_v9 = vcombine.low %v3162_v20, %v3166_v1  ;;  %v10113_v6 = vcombine.low %v3169_v0, %v3173_v3  ;;  %v3229_v20 = vld [vmem:[#allocation7 + $0x470] sm:$0xff] }
 0x403   : > { %6834 = vmatpush1.bf16.msra.mxu1 %v10043_v33  ;;  %v10114_v33 = vcombine.high %v3169_v0, %v3173_v3 }
 0x404   : > { %6835 = vmatprep.subr.bf16.mxu1 %v10052_v11  ;;  %6750 = vmatpush1.bf16.msra.mxu0 %v10049_v25  ;;  %v3170_v25 = vld [vmem:[#allocation7 + $0x298] sm:$0xff] }
 0x405   : > { %6751 = vmatprep.subr.bf16.mxu0 %v10058_v29  ;;  %v3174_v11 = vld [vmem:[#allocation7 + $0x2b8] sm:$0xff]  ;;  %v3177_v29 = vld [vmem:[#allocation7 + $0x2d0] sm:$0xff] }
 0x406   : > { %v10116_v63 = vcombine.high %v3170_v25, %v3174_v11  ;;  %v10115_v16 = vcombine.low %v3170_v25, %v3174_v11  ;;  %v10121_v39 = vcombine.low %v3177_v29, %v3181_v26  ;;  %v3237_v25 = vld [vmem:[#allocation7 + $0x4b0] sm:$0xff] }
 0x407   : > { %6836 = vmatpush1.bf16.msra.mxu1 %v10051_v27  ;;  %v10122_v27 = vcombine.high %v3177_v29, %v3181_v26 }
 0x408   : > { %6837 = vmatprep.subr.bf16.mxu1 %v10060_v56  ;;  %6752 = vmatpush1.bf16.msra.mxu0 %v10057_v22  ;;  %v3178_v22 = vld [vmem:[#allocation7 + $0x2d8] sm:$0xff] }
 0x409   : > { %6753 = vmatprep.subr.bf16.mxu0 %v10066_v61  ;;  %v3182_v56 = vld [vmem:[#allocation7 + $0x2f8] sm:$0xff]  ;;  %v3185_v61 = vld [vmem:[#allocation7 + $0x310] sm:$0xff] }
 0x40a   : > { %v10124_v46 = vcombine.high %v3178_v22, %v3182_v56  ;;  %v10123_v51 = vcombine.low %v3178_v22, %v3182_v56  ;;  %v10129_v14 = vcombine.low %v3185_v61, %v3189_v35  ;;  %v3245_v22 = vld [vmem:[#allocation7 + $0x4f0] sm:$0xff] }
 0x40b   : > { %6838 = vmatpush1.bf16.msra.mxu1 %v10059_v40  ;;  %v10130_v40 = vcombine.high %v3185_v61, %v3189_v35 }
 0x40c   : > { %6839 = vmatprep.subr.bf16.mxu1 %v10068_v17  ;;  %6754 = vmatpush1.bf16.msra.mxu0 %v10065_v49  ;;  %v3186_v49 = vld [vmem:[#allocation7 + $0x318] sm:$0xff] }
 0x40d   : > { %6755 = vmatprep.subr.bf16.mxu0 %v10074_v50  ;;  %v3190_v17 = vld [vmem:[#allocation7 + $0x338] sm:$0xff]  ;;  %v3193_v50 = vld [vmem:[#allocation7 + $0x350] sm:$0xff] }
 0x40e   : > { %v10132_v4 = vcombine.high %v3186_v49, %v3190_v17  ;;  %v10131_v15 = vcombine.low %v3186_v49, %v3190_v17  ;;  %v10137_v21 = vcombine.low %v3193_v50, %v3197_v18  ;;  %v3253_v49 = vld [vmem:[#allocation7 + $0x530] sm:$0xff] }
 0x40f   : > { %6840 = vmatpush1.bf16.msra.mxu1 %v10067_v7  ;;  %v10138_v7 = vcombine.high %v3193_v50, %v3197_v18 }
 0x410   : > { %6841 = vmatprep.subr.bf16.mxu1 %v10076_v32  ;;  %6756 = vmatpush1.bf16.msra.mxu0 %v10073_v62  ;;  %v3194_v62 = vld [vmem:[#allocation7 + $0x358] sm:$0xff] }
 0x411   : > { %6757 = vmatprep.subr.bf16.mxu0 %v10082_v23  ;;  %v3198_v32 = vld [vmem:[#allocation7 + $0x378] sm:$0xff]  ;;  %v3201_v23 = vld [vmem:[#allocation7 + $0x390] sm:$0xff] }
 0x412   : > { %v10140_v53 = vcombine.high %v3194_v62, %v3198_v32  ;;  %v10139_v47 = vcombine.low %v3194_v62, %v3198_v32  ;;  %v10145_v48 = vcombine.low %v3201_v23, %v3205_v10 }
 0x413   : > { %6842 = vmatpush1.bf16.msra.mxu1 %v10075_v24  ;;  %v10146_v24 = vcombine.high %v3201_v23, %v3205_v10  ;;  %v3258_v10 = vld [vmem:[#allocation7 + $0x558] sm:$0xff] }
 0x414   : > { %6843 = vmatprep.subr.bf16.mxu1 %v10084_v30  ;;  %6758 = vmatpush1.bf16.msra.mxu0 %v10081_v52  ;;  %v3202_v52 = vld [vmem:[#allocation7 + $0x398] sm:$0xff] }
 0x415   : > { %6759 = vmatprep.subr.bf16.mxu0 %v10090_v13  ;;  %v3206_v30 = vld [vmem:[#allocation7 + $0x3b8] sm:$0xff]  ;;  %v3209_v13 = vld [vmem:[#allocation7 + $0x3d0] sm:$0xff] }
 0x416   : > { %v10148_v60 = vcombine.high %v3202_v52, %v3206_v30  ;;  %v10147_v8 = vcombine.low %v3202_v52, %v3206_v30  ;;  %v10153_v44 = vcombine.low %v3209_v13, %v3213_v57 }
 0x417   : > { %6844 = vmatpush1.bf16.msra.mxu1 %v10083_v37  ;;  %v10154_v37 = vcombine.high %v3209_v13, %v3213_v57  ;;  %v3266_v57 = vld [vmem:[#allocation7 + $0x598] sm:$0xff] }
 0x418   : > { %6845 = vmatprep.subr.bf16.mxu1 %v10092_v19  ;;  %6760 = vmatpush1.bf16.msra.mxu0 %v10089_v45  ;;  %v3210_v45 = vld [vmem:[#allocation7 + $0x3d8] sm:$0xff] }
 0x419   : > { %6761 = vmatprep.subr.bf16.mxu0 %v10098_v43  ;;  %v3214_v19 = vld [vmem:[#allocation7 + $0x3f8] sm:$0xff]  ;;  %v3217_v43 = vld [vmem:[#allocation7 + $0x410] sm:$0xff] }
 0x41a   : > { %v10156_v42 = vcombine.high %v3210_v45, %v3214_v19  ;;  %v10155_v1 = vcombine.low %v3210_v45, %v3214_v19  ;;  %v10161_v0 = vcombine.low %v3217_v43, %v3221_v41 }
 0x41b   : > { %6846 = vmatpush1.bf16.msra.mxu1 %v10091_v2  ;;  %v10162_v2 = vcombine.high %v3217_v43, %v3221_v41  ;;  %v3274_v41 = vld [vmem:[#allocation7 + $0x5d8] sm:$0xff] }
 0x41c   : > { %6847 = vmatprep.subr.bf16.mxu1 %v10100_v28  ;;  %6762 = vmatpush1.bf16.msra.mxu0 %v10097_v12  ;;  %v3218_v12 = vld [vmem:[#allocation7 + $0x418] sm:$0xff] }
 0x41d   : > { %6763 = vmatprep.subr.bf16.mxu0 %v10106_v34  ;;  %v3222_v28 = vld [vmem:[#allocation7 + $0x438] sm:$0xff]  ;;  %v3225_v34 = vld [vmem:[#allocation7 + $0x450] sm:$0xff] }
 0x41e   : > { %v10164_v3 = vcombine.high %v3218_v12, %v3222_v28  ;;  %v10163_v11 = vcombine.low %v3218_v12, %v3222_v28  ;;  %v10169_v29 = vcombine.low %v3225_v34, %v3229_v20 }
 0x41f   : > { %6848 = vmatpush1.bf16.msra.mxu1 %v10099_v31  ;;  %v10170_v31 = vcombine.high %v3225_v34, %v3229_v20  ;;  %v3282_v20 = vld [vmem:[#allocation7 + $0x618] sm:$0xff] }
 0x420   : > { %6849 = vmatprep.subr.bf16.mxu1 %v10108_v58  ;;  %6764 = vmatpush1.bf16.msra.mxu0 %v10105_v38  ;;  %v3226_v38 = vld [vmem:[#allocation7 + $0x458] sm:$0xff] }
 0x421   : > { %6765 = vmatprep.subr.bf16.mxu0 %v10114_v33  ;;  %v3230_v58 = vld [vmem:[#allocation7 + $0x478] sm:$0xff]  ;;  %v3233_v33 = vld [vmem:[#allocation7 + $0x490] sm:$0xff] }
 0x422   : > { %v10172_v26 = vcombine.high %v3226_v38, %v3230_v58  ;;  %v10171_v56 = vcombine.low %v3226_v38, %v3230_v58  ;;  %v10177_v61 = vcombine.low %v3233_v33, %v3237_v25 }
 0x423   : > { %6850 = vmatpush1.bf16.msra.mxu1 %v10107_v9  ;;  %v10178_v9 = vcombine.high %v3233_v33, %v3237_v25  ;;  %v3290_v25 = vld [vmem:[#allocation7 + $0x658] sm:$0xff] }
 0x424   : > { %6851 = vmatprep.subr.bf16.mxu1 %v10116_v63  ;;  %6766 = vmatpush1.bf16.msra.mxu0 %v10113_v6  ;;  %v3234_v6 = vld [vmem:[#allocation7 + $0x498] sm:$0xff] }
 0x425   : > { %6767 = vmatprep.subr.bf16.mxu0 %v10122_v27  ;;  %v3238_v63 = vld [vmem:[#allocation7 + $0x4b8] sm:$0xff]  ;;  %v3241_v27 = vld [vmem:[#allocation7 + $0x4d0] sm:$0xff] }
 0x426   : > { %v10180_v35 = vcombine.high %v3234_v6, %v3238_v63  ;;  %v10179_v17 = vcombine.low %v3234_v6, %v3238_v63 }
 0x427   : > { %6852 = vmatpush1.bf16.msra.mxu1 %v10115_v16  ;;  %v10186_v16 = vcombine.high %v3241_v27, %v3245_v22 }
 0x428   : > { %6853 = vmatprep.subr.bf16.mxu1 %v10124_v46  ;;  %6768 = vmatpush1.bf16.msra.mxu0 %v10121_v39  ;;  %v3242_v39 = vld [vmem:[#allocation7 + $0x4d8] sm:$0xff] }
 0x429   : > { %6769 = vmatprep.subr.bf16.mxu0 %v10130_v40  ;;  %v3246_v46 = vld [vmem:[#allocation7 + $0x4f8] sm:$0xff]  ;;  %v3249_v40 = vld [vmem:[#allocation7 + $0x510] sm:$0xff] }
 0x42a   : > { %v10188_v50 = vcombine.high %v3242_v39, %v3246_v46  ;;  %v10194_v18 = vcombine.high %v3249_v40, %v3253_v49  ;;  %v10193_v62 = vcombine.low %v3249_v40, %v3253_v49  ;;  %v3306_v49 = vld [vmem:[#allocation7 + $0x6d8] sm:$0xff] }
 0x42b   : > { %6854 = vmatpush1.bf16.msra.mxu1 %v10123_v51  ;;  %v3254_v51 = vld [vmem:[#allocation7 + $0x538] sm:$0xff] }
 0x42c   : > { %6855 = vmatprep.subr.bf16.mxu1 %v10132_v4  ;;  %6770 = vmatpush1.bf16.msra.mxu0 %v10129_v14  ;;  %v3257_v14 = vld [vmem:[#allocation7 + $0x550] sm:$0xff] }
 0x42d   : > { %6771 = vmatprep.subr.bf16.mxu0 %v10138_v7  ;;  %v3261_v4 = vld [vmem:[#allocation7 + $0x570] sm:$0xff]  ;;  %v10187_v7 = vcombine.low %v3242_v39, %v3246_v46 }
 0x42e   : > { %v10202_v23 = vcombine.high %v3257_v14, %v3261_v4  ;;  %v10201_v52 = vcombine.low %v3257_v14, %v3261_v4  ;;  %v3314_v4 = vld [vmem:[#allocation7 + $0x718] sm:$0xff] }
 0x42f   : > { %6856 = vmatpush1.bf16.msra.mxu1 %v10131_v15  ;;  %v3262_v15 = vld [vmem:[#allocation7 + $0x578] sm:$0xff] }
 0x430   : > { %6857 = vmatprep.subr.bf16.mxu1 %v10140_v53  ;;  %6772 = vmatpush1.bf16.msra.mxu0 %v10137_v21  ;;  %v3265_v21 = vld [vmem:[#allocation7 + $0x590] sm:$0xff]  ;;  %v10204_v30 = vcombine.high %v3258_v10, %v3262_v15 }
 0x431   : > { %6773 = vmatprep.subr.bf16.mxu0 %v10146_v24  ;;  %v3269_v53 = vld [vmem:[#allocation7 + $0x5b0] sm:$0xff] }
 0x432   : > { %v10210_v13 = vcombine.high %v3265_v21, %v3269_v53  ;;  %v10209_v45 = vcombine.low %v3265_v21, %v3269_v53  ;;  %v3322_v53 = vld [vmem:[#allocation7 + $0x758] sm:$0xff] }
 0x433   : > { %6858 = vmatpush1.bf16.msra.mxu1 %v10139_v47  ;;  %v3270_v47 = vld [vmem:[#allocation7 + $0x5b8] sm:$0xff] }
 0x434   : > { %6859 = vmatprep.subr.bf16.mxu1 %v10148_v60  ;;  %6774 = vmatpush1.bf16.msra.mxu0 %v10145_v48  ;;  %v3273_v48 = vld [vmem:[#allocation7 + $0x5d0] sm:$0xff]  ;;  %v10212_v19 = vcombine.high %v3266_v57, %v3270_v47 }
 0x435   : > { %6775 = vmatprep.subr.bf16.mxu0 %v10154_v37  ;;  %v3277_v60 = vld [vmem:[#allocation7 + $0x5f0] sm:$0xff]  ;;  %v10203_v37 = vcombine.low %v3258_v10, %v3262_v15 }
 0x436   : > { %v10218_v43 = vcombine.high %v3273_v48, %v3277_v60  ;;  %v10217_v12 = vcombine.low %v3273_v48, %v3277_v60  ;;  %v3330_v60 = vld [vmem:[#allocation7 + $0x798] sm:$0xff] }
 0x437   : > { %6860 = vmatpush1.bf16.msra.mxu1 %v10147_v8  ;;  %v3278_v8 = vld [vmem:[#allocation7 + $0x5f8] sm:$0xff] }
 0x438   : > { %6861 = vmatprep.subr.bf16.mxu1 %v10156_v42  ;;  %6776 = vmatpush1.bf16.msra.mxu0 %v10153_v44  ;;  %v3281_v44 = vld [vmem:[#allocation7 + $0x610] sm:$0xff]  ;;  %v10220_v28 = vcombine.high %v3274_v41, %v3278_v8 }
 0x439   : > { %6788 = vmatprep.subr.bf16.mxu0 %v10162_v2  ;;  %v3285_v42 = vld [vmem:[#allocation7 + $0x630] sm:$0xff]  ;;  %v10211_v2 = vcombine.low %v3266_v57, %v3270_v47 }
 0x43a   : > { %v10226_v34 = vcombine.high %v3281_v44, %v3285_v42  ;;  %v10225_v38 = vcombine.low %v3281_v44, %v3285_v42  ;;  %v3338_v42 = vld [vmem:[#allocation7 + $0x7d8] sm:$0xff] }
 0x43b   : > { %6862 = vmatpush1.bf16.msra.mxu1 %v10155_v1  ;;  %6778 = vmatmul.mubr.bf16.vlgmr.msra.gmra.mrb[20].mxu0 %v11796_v36  ;;  %v3286_v1 = vld [vmem:[#allocation7 + $0x638] sm:$0xff] }
 0x43c   : > { %6874 = vmatprep.subr.bf16.mxu1 %v10164_v3  ;;  %6789 = vmatpush1.bf16.msra.mxu0 %v10161_v0  ;;  %v3289_v0 = vld [vmem:[#allocation7 + $0x650] sm:$0xff]  ;;  %v10228_v58 = vcombine.high %v3282_v20, %v3286_v1 }
 0x43d   : > { %6820 = vmatprep.mubr.bf16.mxu0 %v11799_v54  ;;  %6790 = vmatprep.subr.bf16.mxu0 %v10170_v31  ;;  %v3293_v3 = vld [vmem:[#allocation7 + $0x670] sm:$0xff]  ;;  %v10219_v31 = vcombine.low %v3274_v41, %v3278_v8 }
 0x43e   : > { %6864 = vmatmul.mubr.bf16.vlgmr.msra.gmra.mrb[20].mxu1 %v11796_v36  ;;  %v10185_v36 = vcombine.low %v3241_v27, %v3245_v22  ;;  %v10234_v33 = vcombine.high %v3289_v0, %v3293_v3  ;;  %v10233_v6 = vcombine.low %v3289_v0, %v3293_v3  ;;  %v3298_v22 = vld [vmem:[#allocation7 + $0x698] sm:$0xff] }
 0x43f   : > { %6875 = vmatpush1.bf16.msra.mxu1 %v10163_v11  ;;  %6906 = vmatprep.mubr.bf16.mxu1 %v11799_v54  ;;  %v3250_v54 = vld [vmem:[#allocation7 + $0x518] sm:$0xff] }
 0x440   : > { %6876 = vmatprep.subr.bf16.mxu1 %v10172_v26  ;;  %6791 = vmatpush1.bf16.msra.mxu0 %v10169_v29  ;;  %v10196_v32 = vcombine.high %v3250_v54, %v3254_v51  ;;  %v10195_v24 = vcombine.low %v3250_v54, %v3254_v51  ;;  %v3294_v11 = vld [vmem:[#allocation7 + $0x678] sm:$0xff]  ;;  %v3297_v29 = vld [vmem:[#allocation7 + $0x690] sm:$0xff] }
 0x441   : > { %6792 = vmatprep.subr.bf16.mxu0 %v10178_v9  ;;  %v3301_v26 = vld [vmem:[#allocation7 + $0x6b0] sm:$0xff]  ;;  %v10227_v9 = vcombine.low %v3282_v20, %v3286_v1  ;;  %v10236_v63 = vcombine.high %v3290_v25, %v3294_v11  ;;  %v6918_v1 = vld [vmem:[#allocation2 + $0x8] sm:$0xfc] }
 0x442   : > { %v10242_v27 = vcombine.high %v3297_v29, %v3301_v26  ;;  %v10241_v39 = vcombine.low %v3297_v29, %v3301_v26  ;;  %v6942_v29 = vld [vmem:[#allocation7 + $0x1040] sm:$0xff] }
 0x443   : > { %6877 = vmatpush1.bf16.msra.mxu1 %v10171_v56  ;;  %v3302_v56 = vld [vmem:[#allocation7 + $0x6b8] sm:$0xff]  ;;  %v6946_v26 = vld [vmem:[#allocation7 + $0x1060] sm:$0xff] }
 0x444   : > { %6878 = vmatprep.subr.bf16.mxu1 %v10180_v35  ;;  %6793 = vmatpush1.bf16.msra.mxu0 %v10177_v61  ;;  %v3305_v61 = vld [vmem:[#allocation7 + $0x6d0] sm:$0xff]  ;;  %v10244_v46 = vcombine.high %v3298_v22, %v3302_v56 }
 0x445   : > { %6794 = vmatprep.subr.bf16.mxu0 %v10186_v16  ;;  %v3309_v35 = vld [vmem:[#allocation7 + $0x6f0] sm:$0xff]  ;;  %v10235_v16 = vcombine.low %v3290_v25, %v3294_v11  ;;  %v10755_v25 = vld [vmem:[#allocation2 + $0x28] sm:$0xff] }
 0x446   : > { %v10250_v40 = vcombine.high %v3305_v61, %v3309_v35  ;;  %v10249_v54 = vcombine.low %v3305_v61, %v3309_v35  ;;  %v6926_v11 = vpack.c.bf16 %v10755_v25, %v6918_v1  ;;  %v6947_v61 = vld [vmem:[#allocation7 + $0x1068] sm:$0xff]  ;;  %v7002_v25 = vld [vmem:[#allocation7 + $0x1220] sm:$0xff] }
 0x447   : > { %6879 = vmatpush1.bf16.msra.mxu1 %v10179_v17  ;;  %v3310_v17 = vld [vmem:[#allocation7 + $0x6f8] sm:$0xff] }
 0x448   : > { %6880 = vmatprep.subr.bf16.mxu1 %v10188_v50  ;;  %6795 = vmatpush1.bf16.msra.mxu0 %v10185_v36  ;;  %v3313_v36 = vld [vmem:[#allocation7 + $0x710] sm:$0xff]  ;;  %v10252_v51 = vcombine.high %v3306_v49, %v3310_v17  ;;  %v7202_v35 = vrot.slane %v6926_v11, 1 }
 0x449   : > { %6796 = vmatprep.subr.bf16.mxu0 %v10194_v18  ;;  %v3317_v50 = vld [vmem:[#allocation7 + $0x730] sm:$0xff]  ;;  %v10243_v18 = vcombine.low %v3298_v22, %v3302_v56  ;;  %v10294_v22 = vcombine.high %v6942_v29, %v6946_v26  ;;  %v6943_v56 = vld [vmem:[#allocation7 + $0x1048] sm:$0xff] }
 0x44a   : > { %v10258_v14 = vcombine.high %v3313_v36, %v3317_v50  ;;  %v10257_v10 = vcombine.low %v3313_v36, %v3317_v50  ;;  %v6951_v50 = vld [vmem:[#allocation7 + $0x1088] sm:$0xff] }
 0x44b   : > { %6881 = vmatpush1.bf16.msra.mxu1 %v10187_v7  ;;  %v3318_v7 = vld [vmem:[#allocation7 + $0x738] sm:$0xff] }
 0x44c   : > { %6882 = vmatprep.subr.bf16.mxu1 %v10196_v32  ;;  %6797 = vmatpush1.bf16.msra.mxu0 %v10193_v62  ;;  %v3321_v62 = vld [vmem:[#allocation7 + $0x750] sm:$0xff]  ;;  %v10260_v15 = vcombine.high %v3314_v4, %v3318_v7 }
 0x44d   : > { %6798 = vmatprep.subr.bf16.mxu0 %v10202_v23  ;;  %v3325_v32 = vld [vmem:[#allocation7 + $0x770] sm:$0xff]  ;;  %v10251_v23 = vcombine.low %v3306_v49, %v3310_v17  ;;  %v10293_v49 = vcombine.low %v6942_v29, %v6946_v26  ;;  %v10296_v17 = vcombine.high %v6943_v56, %v6947_v61 }
 0x44e   : > { %v10266_v21 = vcombine.high %v3321_v62, %v3325_v32  ;;  %v10265_v57 = vcombine.low %v3321_v62, %v3325_v32  ;;  %v6959_v32 = vld [vmem:[#allocation7 + $0x10c8] sm:$0xff] }
 0x44f   : > { %6883 = vmatpush1.bf16.msra.mxu1 %v10195_v24  ;;  %v3326_v24 = vld [vmem:[#allocation7 + $0x778] sm:$0xff] }
 0x450   : > { %6884 = vmatprep.subr.bf16.mxu1 %v10204_v30  ;;  %6799 = vmatpush1.bf16.msra.mxu0 %v10201_v52  ;;  %v3329_v52 = vld [vmem:[#allocation7 + $0x790] sm:$0xff]  ;;  %v10268_v47 = vcombine.high %v3322_v53, %v3326_v24 }
 0x451   : > { %6800 = vmatprep.subr.bf16.mxu0 %v10210_v13  ;;  %v3333_v30 = vld [vmem:[#allocation7 + $0x7b0] sm:$0xff]  ;;  %v10259_v13 = vcombine.low %v3314_v4, %v3318_v7 }
 0x452   : > { %v10274_v48 = vcombine.high %v3329_v52, %v3333_v30  ;;  %v10273_v41 = vcombine.low %v3329_v52, %v3333_v30  ;;  %v6967_v52 = vld [vmem:[#allocation7 + $0x1108] sm:$0xff] }
 0x453   : > { %6885 = vmatpush1.bf16.msra.mxu1 %v10203_v37  ;;  %v3334_v37 = vld [vmem:[#allocation7 + $0x7b8] sm:$0xff]  ;;  %v6971_v30 = vld [vmem:[#allocation7 + $0x1128] sm:$0xff] }
 0x454   : > { %6886 = vmatprep.subr.bf16.mxu1 %v10212_v19  ;;  %6801 = vmatpush1.bf16.msra.mxu0 %v10209_v45  ;;  %v3337_v45 = vld [vmem:[#allocation7 + $0x7d0] sm:$0xff]  ;;  %v10276_v8 = vcombine.high %v3330_v60, %v3334_v37  ;;  %v10275_v20 = vcombine.low %v3330_v60, %v3334_v37  ;;  %v10320_v60 = vcombine.high %v6967_v52, %v6971_v30 }
 0x455   : > { %6802 = vmatprep.subr.bf16.mxu0 %v10218_v43  ;;  %v3341_v19 = vld [vmem:[#allocation7 + $0x7f0] sm:$0xff]  ;;  %v10267_v43 = vcombine.low %v3322_v53, %v3326_v24 }
 0x456   : > { %v10282_v44 = vcombine.high %v3337_v45, %v3341_v19  ;;  %v10281_v0 = vcombine.low %v3337_v45, %v3341_v19  ;;  %v6975_v45 = vld [vmem:[#allocation7 + $0x1148] sm:$0xff] }
 0x457   : > { %6887 = vmatpush1.bf16.msra.mxu1 %v10211_v2  ;;  %v3342_v2 = vld [vmem:[#allocation7 + $0x7f8] sm:$0xff]  ;;  %v6979_v19 = vld [vmem:[#allocation7 + $0x1168] sm:$0xff] }
 0x458   : > { %6888 = vmatprep.subr.bf16.mxu1 %v10220_v28  ;;  %6803 = vmatpush1.bf16.msra.mxu0 %v10217_v12  ;;  %v6922_v12 = vld [vmem:[#allocation2 + $0x48] sm:$0x3]  ;;  %v10284_v3 = vcombine.high %v3338_v42, %v3342_v2  ;;  %v10327_v1 = vcombine.low %v6975_v45, %v6979_v19 }
 0x459   : > { %6804 = vmatprep.subr.bf16.mxu0 %v10226_v34  ;;  %v6934_v28 = vld [vmem:[#allocation7 + $0x1000] sm:$0xff] }
 0x45a   : > { %v6938_v34 = vld [vmem:[#allocation7 + $0x1020] sm:$0xff] }
 0x45b   : > { %6889 = vmatpush1.bf16.msra.mxu1 %v10219_v31  ;;  %v6930_v31 = vpack.c.bf16 %v6922_v12, %v6922_v12  ;;  %v6983_v12 = vld [vmem:[#allocation7 + $0x1188] sm:$0xff] }
 0x45c   : > { %6890 = vmatprep.subr.bf16.mxu1 %v10228_v58  ;;  %6805 = vmatpush1.bf16.msra.mxu0 %v10225_v38  ;;  %v10286_v38 = vcombine.high %v6934_v28, %v6938_v34  ;;  %v6935_v58 = vld [vmem:[#allocation7 + $0x1008] sm:$0xff] }
 0x45d   : > { %6806 = vmatprep.subr.bf16.mxu0 %v10234_v33  ;;  %v6939_v33 = vld [vmem:[#allocation7 + $0x1028] sm:$0xff] }
 0x45f   : > { %6891 = vmatpush1.bf16.msra.mxu1 %v10227_v9  ;;  %v10283_v9 = vcombine.low %v3338_v42, %v3342_v2  ;;  %v10328_v42 = vcombine.high %v6975_v45, %v6979_v19 }
 0x460   : > { %6892 = vmatprep.subr.bf16.mxu1 %v10236_v63  ;;  %6807 = vmatpush1.bf16.msra.mxu0 %v10233_v6  ;;  %v10285_v6 = vcombine.low %v6934_v28, %v6938_v34  ;;  %v10288_v63 = vcombine.high %v6935_v58, %v6939_v33  ;;  %v6987_v28 = vld [vmem:[#allocation7 + $0x11a8] sm:$0xff]  ;;  %v6990_v34 = vld [vmem:[#allocation7 + $0x11c0] sm:$0xff] }
 0x461   : > { %6808 = vmatprep.subr.bf16.mxu0 %v10242_v27  ;;  %v7203_v27 = vrot.slane %v6930_v31, 1  ;;  %v10335_v11 = vcombine.low %v6983_v12, %v6987_v28 }
 0x463   : > { %6893 = vmatpush1.bf16.msra.mxu1 %v10235_v16  ;;  %v6950_v16 = vld [vmem:[#allocation7 + $0x1080] sm:$0xff] }
 0x464   : > { %6894 = vmatprep.subr.bf16.mxu1 %v10244_v46  ;;  %6809 = vmatpush1.bf16.msra.mxu0 %v10241_v39  ;;  %v6954_v39 = vld [vmem:[#allocation7 + $0x10a0] sm:$0xff]  ;;  %v10287_v46 = vcombine.low %v6935_v58, %v6939_v33  ;;  %v6995_v58 = vld [vmem:[#allocation7 + $0x11e8] sm:$0xff] }
 0x465   : > { %6810 = vmatprep.subr.bf16.mxu0 %v10250_v40  ;;  %v11816_v40 = vsel %vm7198_vm11, %v7202_v35, %v7203_v27  ;;  %v10302_v36 = vcombine.high %v6950_v16, %v6954_v39  ;;  %v10301_v4 = vcombine.low %v6950_v16, %v6954_v39  ;;  %v6998_v33 = vld [vmem:[#allocation7 + $0x1200] sm:$0xff]  ;;  %v7007_v39 = vld [vmem:[#allocation7 + $0x1248] sm:$0xff] }
 0x466   : > { %v7006_v27 = vld [vmem:[#allocation7 + $0x1240] sm:$0xff] }
 0x467   : > { %6895 = vmatpush1.bf16.msra.mxu1 %v10243_v18  ;;  %v6955_v18 = vld [vmem:[#allocation7 + $0x10a8] sm:$0xff] }
 0x468   : > { %6896 = vmatprep.subr.bf16.mxu1 %v10252_v51  ;;  %6811 = vmatpush1.bf16.msra.mxu0 %v10249_v54  ;;  %v6958_v54 = vld [vmem:[#allocation7 + $0x10c0] sm:$0xff]  ;;  %v10304_v7 = vcombine.high %v6951_v50, %v6955_v18 }
 0x469   : > { %6812 = vmatprep.subr.bf16.mxu0 %v10258_v14  ;;  %v6962_v51 = vld [vmem:[#allocation7 + $0x10e0] sm:$0xff]  ;;  %v10295_v14 = vcombine.low %v6943_v56, %v6947_v61  ;;  %v10349_v61 = vcombine.low %v6998_v33, %v7002_v25 }
 0x46a   : > { %v10310_v62 = vcombine.high %v6958_v54, %v6962_v51 }
 0x46b   : > { %6897 = vmatpush1.bf16.msra.mxu1 %v10251_v23  ;;  %v6963_v23 = vld [vmem:[#allocation7 + $0x10e8] sm:$0xff] }
 0x46c   : > { %6898 = vmatprep.subr.bf16.mxu1 %v10260_v15  ;;  %6813 = vmatpush1.bf16.msra.mxu0 %v10257_v10  ;;  %v6966_v10 = vld [vmem:[#allocation7 + $0x1100] sm:$0xff]  ;;  %v10312_v53 = vcombine.high %v6959_v32, %v6963_v23 }
 0x46d   : > { %6814 = vmatprep.subr.bf16.mxu0 %v10266_v21  ;;  %v6970_v15 = vld [vmem:[#allocation7 + $0x1120] sm:$0xff]  ;;  %v10303_v21 = vcombine.low %v6951_v50, %v6955_v18 }
 0x46e   : > { %v10318_v24 = vcombine.high %v6966_v10, %v6970_v15 }
 0x46f   : > { %6899 = vmatpush1.bf16.msra.mxu1 %v10259_v13  ;;  %v6974_v13 = vld [vmem:[#allocation7 + $0x1140] sm:$0xff] }
 0x470   : > { %6900 = vmatprep.subr.bf16.mxu1 %v10268_v47  ;;  %6815 = vmatpush1.bf16.msra.mxu0 %v10265_v57  ;;  %v6978_v57 = vld [vmem:[#allocation7 + $0x1160] sm:$0xff]  ;;  %v10311_v47 = vcombine.low %v6959_v32, %v6963_v23 }
 0x471   : > { %6816 = vmatprep.subr.bf16.mxu0 %v10274_v48  ;;  %v10317_v48 = vcombine.low %v6966_v10, %v6970_v15  ;;  %v10326_v37 = vcombine.high %v6974_v13, %v6978_v57  ;;  %v7023_v15 = vld [vmem:[#allocation7 + $0x12c8] sm:$0xff] }
 0x473   : > { %6901 = vmatpush1.bf16.msra.mxu1 %v10267_v43  ;;  %v6982_v43 = vld [vmem:[#allocation7 + $0x1180] sm:$0xff] }
 0x474   : > { %6902 = vmatprep.subr.bf16.mxu1 %v10276_v8  ;;  %6817 = vmatpush1.bf16.msra.mxu0 %v10273_v41  ;;  %v6986_v41 = vld [vmem:[#allocation7 + $0x11a0] sm:$0xff]  ;;  %v10319_v8 = vcombine.low %v6967_v52, %v6971_v30 }
 0x475   : > { %6818 = vmatprep.subr.bf16.mxu0 %v10282_v44  ;;  %v10325_v44 = vcombine.low %v6974_v13, %v6978_v57  ;;  %v10334_v2 = vcombine.high %v6982_v43, %v6986_v41  ;;  %v7031_v57 = vld [vmem:[#allocation7 + $0x1308] sm:$0xff] }
 0x477   : > { %6903 = vmatpush1.bf16.msra.mxu1 %v10275_v20  ;;  %v6994_v20 = vld [vmem:[#allocation7 + $0x11e0] sm:$0xff] }
 0x478   : > { %6904 = vmatprep.subr.bf16.mxu1 %v10284_v3  ;;  %6819 = vmatpush1.bf16.msra.mxu0 %v10281_v0  ;;  %v10333_v0 = vcombine.low %v6982_v43, %v6986_v41  ;;  %v10336_v3 = vcombine.high %v6983_v12, %v6987_v28  ;;  %v10342_v31 = vcombine.high %v6990_v34, %v6994_v20  ;;  %v7039_v41 = vld [vmem:[#allocation7 + $0x1348] sm:$0xff] }
 0x479   : > { %8495 = vmatprep.subr.bf16.mxu0 %v10286_v38  ;;  %v6991_v38 = vld [vmem:[#allocation7 + $0x11c8] sm:$0xff]  ;;  %v10341_v29 = vcombine.low %v6990_v34, %v6994_v20 }
 0x47a   : > { %v10344_v26 = vcombine.high %v6991_v38, %v6995_v58  ;;  %v10343_v56 = vcombine.low %v6991_v38, %v6995_v58  ;;  %v7047_v20 = vld [vmem:[#allocation7 + $0x1388] sm:$0xff]  ;;  %v6921_v38 = vld [vmem:[#allocation2 + $0x40] sm:$0x3] }
 0x47b   : > { %6905 = vmatpush1.bf16.msra.mxu1 %v10283_v9  ;;  %6821 = vmatmul.mubr.bf16.vlgmr.msra.gmra.mrb[20].mxu0 %v11804_v55  ;;  %v10350_v9 = vcombine.high %v6998_v33, %v7002_v25 }
 0x47c   : > { %8581 = vmatprep.subr.bf16.mxu1 %v10288_v63  ;;  %8496 = vmatpush1.bf16.msra.mxu0 %v10285_v6  ;;  %v6999_v6 = vld [vmem:[#allocation7 + $0x1208] sm:$0xff] }
 0x47d   : > { %8527 = vmatprep.mubr.bf16.mxu0 %v11816_v40  ;;  %8497 = vmatprep.subr.bf16.mxu0 %v10294_v22  ;;  %v7003_v63 = vld [vmem:[#allocation7 + $0x1228] sm:$0xff]  ;;  %v7010_v22 = vld [vmem:[#allocation7 + $0x1260] sm:$0xff] }
 0x47e   : > { %6907 = vmatmul.mubr.bf16.vlgmr.msra.gmra.mrb[20].mxu1 %v11804_v55  ;;  %v10309_v55 = vcombine.low %v6958_v54, %v6962_v51  ;;  %v10352_v35 = vcombine.high %v6999_v6, %v7003_v63  ;;  %v10358_v16 = vcombine.high %v7006_v27, %v7010_v22  ;;  %v10357_v50 = vcombine.low %v7006_v27, %v7010_v22  ;;  %v7015_v51 = vld [vmem:[#allocation7 + $0x1288] sm:$0xff] }
 0x47f   : > { %8582 = vmatpush1.bf16.msra.mxu1 %v10287_v46  ;;  %8613 = vmatprep.mubr.bf16.mxu1 %v11816_v40  ;;  %v7011_v46 = vld [vmem:[#allocation7 + $0x1268] sm:$0xff] }
 0x480   : > { %8583 = vmatprep.subr.bf16.mxu1 %v10296_v17  ;;  %8498 = vmatpush1.bf16.msra.mxu0 %v10293_v49  ;;  %v7014_v49 = vld [vmem:[#allocation7 + $0x1280] sm:$0xff]  ;;  %v10360_v18 = vcombine.high %v7007_v39, %v7011_v46 }
 0x481   : > { %8499 = vmatprep.subr.bf16.mxu0 %v10302_v36  ;;  %v7018_v17 = vld [vmem:[#allocation7 + $0x12a0] sm:$0xff]  ;;  %v10351_v36 = vcombine.low %v6999_v6, %v7003_v63 }
 0x482   : > { %v10366_v54 = vcombine.high %v7014_v49, %v7018_v17  ;;  %v10365_v32 = vcombine.low %v7014_v49, %v7018_v17  ;;  %v7062_v6 = vld [vmem:[#allocation7 + $0x1400] sm:$0xff] }
 0x483   : > { %8584 = vmatpush1.bf16.msra.mxu1 %v10295_v14  ;;  %v7019_v14 = vld [vmem:[#allocation7 + $0x12a8] sm:$0xff]  ;;  %v7066_v63 = vld [vmem:[#allocation7 + $0x1420] sm:$0xff] }
 0x484   : > { %8585 = vmatprep.subr.bf16.mxu1 %v10304_v7  ;;  %8500 = vmatpush1.bf16.msra.mxu0 %v10301_v4  ;;  %v7022_v4 = vld [vmem:[#allocation7 + $0x12c0] sm:$0xff]  ;;  %v10368_v23 = vcombine.high %v7015_v51, %v7019_v14 }
 0x485   : > { %8501 = vmatprep.subr.bf16.mxu0 %v10310_v62  ;;  %v7026_v7 = vld [vmem:[#allocation7 + $0x12e0] sm:$0xff]  ;;  %v10359_v62 = vcombine.low %v7007_v39, %v7011_v46  ;;  %v7063_v39 = vld [vmem:[#allocation7 + $0x1408] sm:$0xff] }
 0x486   : > { %v10374_v10 = vcombine.high %v7022_v4, %v7026_v7  ;;  %v10373_v52 = vcombine.low %v7022_v4, %v7026_v7  ;;  %v7067_v46 = vld [vmem:[#allocation7 + $0x1428] sm:$0xff]  ;;  %v7070_v17 = vld [vmem:[#allocation7 + $0x1440] sm:$0xff] }
 0x487   : > { %8586 = vmatpush1.bf16.msra.mxu1 %v10303_v21  ;;  %v7027_v21 = vld [vmem:[#allocation7 + $0x12e8] sm:$0xff] }
 0x488   : > { %8587 = vmatprep.subr.bf16.mxu1 %v10312_v53  ;;  %8502 = vmatpush1.bf16.msra.mxu0 %v10309_v55  ;;  %v7030_v55 = vld [vmem:[#allocation7 + $0x1300] sm:$0xff]  ;;  %v10376_v30 = vcombine.high %v7023_v15, %v7027_v21  ;;  %v7071_v4 = vld [vmem:[#allocation7 + $0x1448] sm:$0xff] }
 0x489   : > { %8503 = vmatprep.subr.bf16.mxu0 %v10318_v24  ;;  %v7034_v53 = vld [vmem:[#allocation7 + $0x1320] sm:$0xff]  ;;  %v10367_v24 = vcombine.low %v7015_v51, %v7019_v14  ;;  %v10416_v51 = vcombine.high %v7063_v39, %v7067_v46  ;;  %v7075_v7 = vld [vmem:[#allocation7 + $0x1468] sm:$0xff] }
 0x48a   : > { %v10382_v13 = vcombine.high %v7030_v55, %v7034_v53  ;;  %v10381_v45 = vcombine.low %v7030_v55, %v7034_v53  ;;  %v7079_v53 = vld [vmem:[#allocation7 + $0x1488] sm:$0xff] }
 0x48b   : > { %8588 = vmatpush1.bf16.msra.mxu1 %v10311_v47  ;;  %v7035_v47 = vld [vmem:[#allocation7 + $0x1328] sm:$0xff] }
 0x48c   : > { %8589 = vmatprep.subr.bf16.mxu1 %v10320_v60  ;;  %8504 = vmatpush1.bf16.msra.mxu0 %v10317_v48  ;;  %v7038_v48 = vld [vmem:[#allocation7 + $0x1340] sm:$0xff]  ;;  %v10384_v19 = vcombine.high %v7031_v57, %v7035_v47 }
 0x48d   : > { %8505 = vmatprep.subr.bf16.mxu0 %v10326_v37  ;;  %v7042_v60 = vld [vmem:[#allocation7 + $0x1360] sm:$0xff]  ;;  %v10375_v37 = vcombine.low %v7023_v15, %v7027_v21  ;;  %v10424_v21 = vcombine.high %v7071_v4, %v7075_v7 }
 0x48e   : > { %v10390_v43 = vcombine.high %v7038_v48, %v7042_v60  ;;  %v10389_v12 = vcombine.low %v7038_v48, %v7042_v60  ;;  %v7087_v60 = vld [vmem:[#allocation7 + $0x14c8] sm:$0xff] }
 0x48f   : > { %8590 = vmatpush1.bf16.msra.mxu1 %v10319_v8  ;;  %v7043_v8 = vld [vmem:[#allocation7 + $0x1368] sm:$0xff] }
 0x490   : > { %8591 = vmatprep.subr.bf16.mxu1 %v10328_v42  ;;  %8506 = vmatpush1.bf16.msra.mxu0 %v10325_v44  ;;  %v7046_v44 = vld [vmem:[#allocation7 + $0x1380] sm:$0xff]  ;;  %v10392_v28 = vcombine.high %v7039_v41, %v7043_v8 }
 0x491   : > { %8507 = vmatprep.subr.bf16.mxu0 %v10334_v2  ;;  %v7050_v42 = vld [vmem:[#allocation7 + $0x13a0] sm:$0xff]  ;;  %v10383_v2 = vcombine.low %v7031_v57, %v7035_v47 }
 0x492   : > { %v10398_v34 = vcombine.high %v7046_v44, %v7050_v42  ;;  %v10397_v58 = vcombine.low %v7046_v44, %v7050_v42  ;;  %v7095_v42 = vld [vmem:[#allocation7 + $0x1508] sm:$0xff] }
 0x493   : > { %8592 = vmatpush1.bf16.msra.mxu1 %v10327_v1  ;;  %v7051_v1 = vld [vmem:[#allocation7 + $0x13a8] sm:$0xff] }
 0x494   : > { %8593 = vmatprep.subr.bf16.mxu1 %v10336_v3  ;;  %8508 = vmatpush1.bf16.msra.mxu0 %v10333_v0  ;;  %v7054_v0 = vld [vmem:[#allocation7 + $0x13c0] sm:$0xff]  ;;  %v10400_v33 = vcombine.high %v7047_v20, %v7051_v1  ;;  %v10399_v27 = vcombine.low %v7047_v20, %v7051_v1 }
 0x495   : > { %8509 = vmatprep.subr.bf16.mxu0 %v10342_v31  ;;  %v7058_v3 = vld [vmem:[#allocation7 + $0x13e0] sm:$0xff]  ;;  %v10391_v31 = vcombine.low %v7039_v41, %v7043_v8 }
 0x496   : > { %v10406_v25 = vcombine.high %v7054_v0, %v7058_v3  ;;  %v10405_v22 = vcombine.low %v7054_v0, %v7058_v3  ;;  %v7103_v3 = vld [vmem:[#allocation7 + $0x1548] sm:$0xff] }
 0x497   : > { %8594 = vmatpush1.bf16.msra.mxu1 %v10335_v11  ;;  %v7055_v11 = vld [vmem:[#allocation7 + $0x13c8] sm:$0xff] }
 0x498   : > { %8595 = vmatprep.subr.bf16.mxu1 %v10344_v26  ;;  %8510 = vmatpush1.bf16.msra.mxu0 %v10341_v29  ;;  %v7059_v29 = vld [vmem:[#allocation7 + $0x13e8] sm:$0xff]  ;;  %v6917_v26 = vld [vmem:[#allocation2] sm:$0xfc] }
 0x499   : > { %8511 = vmatprep.subr.bf16.mxu0 %v10350_v9  ;;  %v6929_v9 = vpack.c.bf16 %v6921_v38, %v6921_v38  ;;  %v7110_v38 = vld [vmem:[#allocation7 + $0x1580] sm:$0xff] }
 0x49b   : > { %8596 = vmatpush1.bf16.msra.mxu1 %v10343_v56  ;;  %v10408_v56 = vcombine.high %v7055_v11, %v7059_v29  ;;  %v7200_v49 = vrot.slane %v6929_v9, 1  ;;  %v7115_v9 = vld [vmem:[#allocation7 + $0x15a8] sm:$0xff] }
 0x49c   : > { %8597 = vmatprep.subr.bf16.mxu1 %v10352_v35  ;;  %8512 = vmatpush1.bf16.msra.mxu0 %v10349_v61  ;;  %v10756_v61 = vld [vmem:[#allocation2 + $0x20] sm:$0xff] }
 0x49d   : > { %8513 = vmatprep.subr.bf16.mxu0 %v10358_v16  ;;  %v6925_v35 = vpack.c.bf16 %v10756_v61, %v6917_v26  ;;  %v10414_v16 = vcombine.high %v7062_v6, %v7066_v63  ;;  %v7111_v26 = vld [vmem:[#allocation7 + $0x1588] sm:$0xff] }
 0x49f   : > { %8598 = vmatpush1.bf16.msra.mxu1 %v10351_v36  ;;  %v7074_v36 = vld [vmem:[#allocation7 + $0x1460] sm:$0xff] }
 0x4a0   : > { %8599 = vmatprep.subr.bf16.mxu1 %v10360_v18  ;;  %8514 = vmatpush1.bf16.msra.mxu0 %v10357_v50  ;;  %v10407_v50 = vcombine.low %v7055_v11, %v7059_v29  ;;  %v7199_v18 = vrot.slane %v6925_v35, 1  ;;  %v10422_v14 = vcombine.high %v7070_v17, %v7074_v36  ;;  %v10421_v15 = vcombine.low %v7070_v17, %v7074_v36  ;;  %v7119_v35 = vld [vmem:[#allocation7 + $0x15c8] sm:$0xff] }
 0x4a1   : > { %8515 = vmatprep.subr.bf16.mxu0 %v10366_v54  ;;  %v10413_v54 = vcombine.low %v7062_v6, %v7066_v63  ;;  %v7118_v6 = vld [vmem:[#allocation7 + $0x15c0] sm:$0xff] }
 0x4a2   : > { %v7122_v63 = vld [vmem:[#allocation7 + $0x15e0] sm:$0xff] }
 0x4a3   : > { %8600 = vmatpush1.bf16.msra.mxu1 %v10359_v62  ;;  %v11822_v62 = vsel %vm7198_vm11, %v7199_v18, %v7200_v49  ;;  %v10470_v61 = vcombine.high %v7118_v6, %v7122_v63  ;;  %v10463_v49 = vcombine.low %v7111_v26, %v7115_v9  ;;  %v10469_v17 = vcombine.low %v7118_v6, %v7122_v63  ;;  %v7127_v18 = vld [vmem:[#allocation7 + $0x1608] sm:$0xff] }
 0x4a4   : > { %8601 = vmatprep.subr.bf16.mxu1 %v10368_v23  ;;  %8516 = vmatpush1.bf16.msra.mxu0 %v10365_v32  ;;  %v7078_v32 = vld [vmem:[#allocation7 + $0x1480] sm:$0xff] }
 0x4a5   : > { %8517 = vmatprep.subr.bf16.mxu0 %v10374_v10  ;;  %v7082_v23 = vld [vmem:[#allocation7 + $0x14a0] sm:$0xff]  ;;  %v10415_v10 = vcombine.low %v7063_v39, %v7067_v46 }
 0x4a6   : > { %v10430_v55 = vcombine.high %v7078_v32, %v7082_v23  ;;  %v10429_v57 = vcombine.low %v7078_v32, %v7082_v23  ;;  %v7126_v39 = vld [vmem:[#allocation7 + $0x1600] sm:$0xff] }
 0x4a7   : > { %8602 = vmatpush1.bf16.msra.mxu1 %v10367_v24  ;;  %v7083_v24 = vld [vmem:[#allocation7 + $0x14a8] sm:$0xff]  ;;  %v7130_v46 = vld [vmem:[#allocation7 + $0x1620] sm:$0xff] }
 0x4a8   : > { %8603 = vmatprep.subr.bf16.mxu1 %v10376_v30  ;;  %8518 = vmatpush1.bf16.msra.mxu0 %v10373_v52  ;;  %v7086_v52 = vld [vmem:[#allocation7 + $0x14c0] sm:$0xff]  ;;  %v10432_v47 = vcombine.high %v7079_v53, %v7083_v24 }
 0x4a9   : > { %8519 = vmatprep.subr.bf16.mxu0 %v10382_v13  ;;  %v7090_v30 = vld [vmem:[#allocation7 + $0x14e0] sm:$0xff]  ;;  %v10423_v13 = vcombine.low %v7071_v4, %v7075_v7  ;;  %v10477_v7 = vcombine.low %v7126_v39, %v7130_v46 }
 0x4aa   : > { %v10438_v48 = vcombine.high %v7086_v52, %v7090_v30  ;;  %v10437_v41 = vcombine.low %v7086_v52, %v7090_v30 }
 0x4ab   : > { %8604 = vmatpush1.bf16.msra.mxu1 %v10375_v37  ;;  %v7091_v37 = vld [vmem:[#allocation7 + $0x14e8] sm:$0xff] }
 0x4ac   : > { %8605 = vmatprep.subr.bf16.mxu1 %v10384_v19  ;;  %8520 = vmatpush1.bf16.msra.mxu0 %v10381_v45  ;;  %v7094_v45 = vld [vmem:[#allocation7 + $0x1500] sm:$0xff]  ;;  %v10440_v8 = vcombine.high %v7087_v60, %v7091_v37 }
 0x4ad   : > { %8521 = vmatprep.subr.bf16.mxu0 %v10390_v43  ;;  %v7098_v19 = vld [vmem:[#allocation7 + $0x1520] sm:$0xff]  ;;  %v10431_v43 = vcombine.low %v7079_v53, %v7083_v24 }
 0x4ae   : > { %v10446_v44 = vcombine.high %v7094_v45, %v7098_v19  ;;  %v10445_v20 = vcombine.low %v7094_v45, %v7098_v19 }
 0x4af   : > { %8606 = vmatpush1.bf16.msra.mxu1 %v10383_v2  ;;  %v7099_v2 = vld [vmem:[#allocation7 + $0x1528] sm:$0xff] }
 0x4b0   : > { %8607 = vmatprep.subr.bf16.mxu1 %v10392_v28  ;;  %8522 = vmatpush1.bf16.msra.mxu0 %v10389_v12  ;;  %v7102_v12 = vld [vmem:[#allocation7 + $0x1540] sm:$0xff]  ;;  %v10448_v1 = vcombine.high %v7095_v42, %v7099_v2 }
 0x4b1   : > { %8523 = vmatprep.subr.bf16.mxu0 %v10398_v34  ;;  %v7106_v28 = vld [vmem:[#allocation7 + $0x1560] sm:$0xff]  ;;  %v10439_v34 = vcombine.low %v7087_v60, %v7091_v37 }
 0x4b2   : > { %v10454_v0 = vcombine.high %v7102_v12, %v7106_v28 }
 0x4b3   : > { %8608 = vmatpush1.bf16.msra.mxu1 %v10391_v31  ;;  %v7107_v31 = vld [vmem:[#allocation7 + $0x1568] sm:$0xff] }
 0x4b4   : > { %8609 = vmatprep.subr.bf16.mxu1 %v10400_v33  ;;  %8524 = vmatpush1.bf16.msra.mxu0 %v10397_v58  ;;  %v7114_v58 = vld [vmem:[#allocation7 + $0x15a0] sm:$0xff]  ;;  %v10447_v33 = vcombine.low %v7095_v42, %v7099_v2  ;;  %v10456_v11 = vcombine.high %v7103_v3, %v7107_v31 }
 0x4b5   : > { %8525 = vmatprep.subr.bf16.mxu0 %v10406_v25  ;;  %v10453_v25 = vcombine.low %v7102_v12, %v7106_v28  ;;  %v10462_v29 = vcombine.high %v7110_v38, %v7114_v58 }
 0x4b7   : > { %8610 = vmatpush1.bf16.msra.mxu1 %v10399_v27  ;;  %v10455_v27 = vcombine.low %v7103_v3, %v7107_v31 }
 0x4b8   : > { %8611 = vmatprep.subr.bf16.mxu1 %v10408_v56  ;;  %8526 = vmatpush1.bf16.msra.mxu0 %v10405_v22  ;;  %v10461_v22 = vcombine.low %v7110_v38, %v7114_v58  ;;  %v10464_v56 = vcombine.high %v7111_v26, %v7115_v9 }
 0x4b9   : > { %8538 = vmatprep.subr.bf16.mxu0 %v10414_v16  ;;  %v7123_v16 = vld [vmem:[#allocation7 + $0x15e8] sm:$0xff] }
 0x4ba   : > { %v10472_v36 = vcombine.high %v7119_v35, %v7123_v16  ;;  %v10471_v4 = vcombine.low %v7119_v35, %v7123_v16  ;;  %v6923_v16 = vld [vmem:[#allocation2 + $0x50] sm:$0x3] }
 0x4bb   : > { %8612 = vmatpush1.bf16.msra.mxu1 %v10407_v50  ;;  %8528 = vmatmul.mubr.bf16.vlgmr.msra.gmra.mrb[16].mxu0 %v11822_v62  ;;  %v10478_v50 = vcombine.high %v7126_v39, %v7130_v46 }
 0x4bc   : > { %8624 = vmatprep.subr.bf16.mxu1 %v10416_v51  ;;  %8539 = vmatpush1.bf16.msra.mxu0 %v10413_v54  ;;  %v7131_v54 = vld [vmem:[#allocation7 + $0x1628] sm:$0xff]  ;;  %v7134_v51 = vld [vmem:[#allocation7 + $0x1640] sm:$0xff] }
 0x4bd   : > { %8570 = vmatprep.mubr.bf16.mxu0 %v11776_v59  ;;  %8540 = vmatprep.subr.bf16.mxu0 %v10422_v14  ;;  %v7138_v14 = vld [vmem:[#allocation7 + $0x1660] sm:$0xff]  ;;  %v10480_v32 = vcombine.high %v7127_v18, %v7131_v54  ;;  %v10479_v53 = vcombine.low %v7127_v18, %v7131_v54  ;;  %v6931_v18 = vpack.c.bf16 %v6923_v16, %v6923_v16  ;;  %v6936_v54 = vld [vmem:[#allocation7 + $0x1010] sm:$0xff] }
 0x4be   : > { %8614 = vmatmul.mubr.bf16.vlgmr.msra.gmra.mrb[16].mxu1 %v11822_v62  ;;  %v10486_v23 = vcombine.high %v7134_v51, %v7138_v14  ;;  %v10485_v24 = vcombine.low %v7134_v51, %v7138_v14  ;;  %v6940_v51 = vld [vmem:[#allocation7 + $0x1030] sm:$0xff] }
 0x4bf   : > { %8625 = vmatpush1.bf16.msra.mxu1 %v10415_v10  ;;  %8656 = vmatprep.mubr.bf16.mxu1 %v11776_v59  ;;  %v7135_v10 = vld [vmem:[#allocation7 + $0x1648] sm:$0xff]  ;;  %v6984_v16 = vld [vmem:[#allocation7 + $0x1190] sm:$0xff] }
 0x4c0   : > { %8626 = vmatprep.subr.bf16.mxu1 %v10424_v21  ;;  %8541 = vmatpush1.bf16.msra.mxu0 %v10421_v15  ;;  %v7139_v15 = vld [vmem:[#allocation7 + $0x1668] sm:$0xff]  ;;  %v7142_v21 = vld [vmem:[#allocation7 + $0x1680] sm:$0xff] }
 0x4c1   : > { %8542 = vmatprep.subr.bf16.mxu0 %v10430_v55  ;;  %v7146_v55 = vld [vmem:[#allocation7 + $0x16a0] sm:$0xff]  ;;  %v10488_v52 = vcombine.high %v7135_v10, %v7139_v15  ;;  %v10487_v60 = vcombine.low %v7135_v10, %v7139_v15  ;;  %v10290_v10 = vcombine.high %v6936_v54, %v6940_v51  ;;  %v6937_v15 = vld [vmem:[#allocation7 + $0x1018] sm:$0xff] }
 0x4c2   : > { %v10494_v30 = vcombine.high %v7142_v21, %v7146_v55  ;;  %v10493_v37 = vcombine.low %v7142_v21, %v7146_v55  ;;  %v6941_v21 = vld [vmem:[#allocation7 + $0x1038] sm:$0xff]  ;;  %v7206_v55 = vrot.slane %v6931_v18, 1 }
 0x4c3   : > { %8627 = vmatpush1.bf16.msra.mxu1 %v10423_v13  ;;  %v7143_v13 = vld [vmem:[#allocation7 + $0x1688] sm:$0xff]  ;;  %v6989_v18 = vld [vmem:[#allocation7 + $0x11b8] sm:$0xff] }
 0x4c4   : > { %8628 = vmatprep.subr.bf16.mxu1 %v10432_v47  ;;  %8543 = vmatpush1.bf16.msra.mxu0 %v10429_v57  ;;  %v7147_v57 = vld [vmem:[#allocation7 + $0x16a8] sm:$0xff]  ;;  %v7150_v47 = vld [vmem:[#allocation7 + $0x16c0] sm:$0xff] }
 0x4c5   : > { %8544 = vmatprep.subr.bf16.mxu0 %v10438_v48  ;;  %v7154_v48 = vld [vmem:[#allocation7 + $0x16e0] sm:$0xff]  ;;  %v10496_v45 = vcombine.high %v7143_v13, %v7147_v57  ;;  %v10495_v42 = vcombine.low %v7143_v13, %v7147_v57  ;;  %v10289_v13 = vcombine.low %v6936_v54, %v6940_v51  ;;  %v10292_v57 = vcombine.high %v6937_v15, %v6941_v21  ;;  %v6992_v54 = vld [vmem:[#allocation7 + $0x11d0] sm:$0xff] }
 0x4c6   : > { %v10502_v19 = vcombine.high %v7150_v47, %v7154_v48  ;;  %v10501_v2 = vcombine.low %v7150_v47, %v7154_v48  ;;  %v6945_v48 = vld [vmem:[#allocation7 + $0x1058] sm:$0xff]  ;;  %v6996_v51 = vld [vmem:[#allocation7 + $0x11f0] sm:$0xff] }
 0x4c7   : > { %8629 = vmatpush1.bf16.msra.mxu1 %v10431_v43  ;;  %v7151_v43 = vld [vmem:[#allocation7 + $0x16c8] sm:$0xff] }
 0x4c8   : > { %8630 = vmatprep.subr.bf16.mxu1 %v10440_v8  ;;  %8545 = vmatpush1.bf16.msra.mxu0 %v10437_v41  ;;  %v7155_v41 = vld [vmem:[#allocation7 + $0x16e8] sm:$0xff]  ;;  %v7158_v8 = vld [vmem:[#allocation7 + $0x1700] sm:$0xff] }
 0x4c9   : > { %8546 = vmatprep.subr.bf16.mxu0 %v10446_v44  ;;  %v7162_v44 = vld [vmem:[#allocation7 + $0x1720] sm:$0xff]  ;;  %v10504_v12 = vcombine.high %v7151_v43, %v7155_v41  ;;  %v10503_v3 = vcombine.low %v7151_v43, %v7155_v41  ;;  %v10291_v43 = vcombine.low %v6937_v15, %v6941_v21  ;;  %v7000_v15 = vld [vmem:[#allocation7 + $0x1210] sm:$0xff] }
 0x4ca   : > { %v10510_v28 = vcombine.high %v7158_v8, %v7162_v44  ;;  %v10509_v31 = vcombine.low %v7158_v8, %v7162_v44  ;;  %v7004_v21 = vld [vmem:[#allocation7 + $0x1230] sm:$0xff] }
 0x4cb   : > { %8631 = vmatpush1.bf16.msra.mxu1 %v10439_v34  ;;  %v7159_v34 = vld [vmem:[#allocation7 + $0x1708] sm:$0xff] }
 0x4cc   : > { %8632 = vmatprep.subr.bf16.mxu1 %v10448_v1  ;;  %8547 = vmatpush1.bf16.msra.mxu0 %v10445_v20  ;;  %v7163_v20 = vld [vmem:[#allocation7 + $0x1728] sm:$0xff]  ;;  %v7166_v1 = vld [vmem:[#allocation7 + $0x1740] sm:$0xff] }
 0x4cd   : > { %8548 = vmatprep.subr.bf16.mxu0 %v10454_v0  ;;  %v7170_v0 = vld [vmem:[#allocation7 + $0x1760] sm:$0xff]  ;;  %v10512_v38 = vcombine.high %v7159_v34, %v7163_v20  ;;  %v10511_v26 = vcombine.low %v7159_v34, %v7163_v20 }
 0x4ce   : > { %v10518_v58 = vcombine.high %v7166_v1, %v7170_v0  ;;  %v10517_v9 = vcombine.low %v7166_v1, %v7170_v0 }
 0x4cf   : > { %8633 = vmatpush1.bf16.msra.mxu1 %v10447_v33  ;;  %v7167_v33 = vld [vmem:[#allocation7 + $0x1748] sm:$0xff] }
 0x4d0   : > { %8634 = vmatprep.subr.bf16.mxu1 %v10456_v11  ;;  %8549 = vmatpush1.bf16.msra.mxu0 %v10453_v25  ;;  %v7171_v25 = vld [vmem:[#allocation7 + $0x1768] sm:$0xff]  ;;  %v7174_v11 = vld [vmem:[#allocation7 + $0x1780] sm:$0xff] }
 0x4d1   : > { %8550 = vmatprep.subr.bf16.mxu0 %v10462_v29  ;;  %v7178_v29 = vld [vmem:[#allocation7 + $0x17a0] sm:$0xff]  ;;  %v10520_v6 = vcombine.high %v7167_v33, %v7171_v25  ;;  %v10519_v35 = vcombine.low %v7167_v33, %v7171_v25 }
 0x4d2   : > { %v10526_v63 = vcombine.high %v7174_v11, %v7178_v29  ;;  %v10525_v39 = vcombine.low %v7174_v11, %v7178_v29 }
 0x4d3   : > { %8635 = vmatpush1.bf16.msra.mxu1 %v10455_v27  ;;  %v7175_v27 = vld [vmem:[#allocation7 + $0x1788] sm:$0xff] }
 0x4d4   : > { %8636 = vmatprep.subr.bf16.mxu1 %v10464_v56  ;;  %8551 = vmatpush1.bf16.msra.mxu0 %v10461_v22  ;;  %v7179_v22 = vld [vmem:[#allocation7 + $0x17a8] sm:$0xff]  ;;  %v7182_v56 = vld [vmem:[#allocation7 + $0x17c0] sm:$0xff] }
 0x4d5   : > { %8552 = vmatprep.subr.bf16.mxu0 %v10470_v61  ;;  %v7186_v61 = vld [vmem:[#allocation7 + $0x17e0] sm:$0xff]  ;;  %v10528_v46 = vcombine.high %v7175_v27, %v7179_v22  ;;  %v10527_v14 = vcombine.low %v7175_v27, %v7179_v22 }
 0x4d7   : > { %8637 = vmatpush1.bf16.msra.mxu1 %v10463_v49  ;;  %v10534_v49 = vcombine.high %v7182_v56, %v7186_v61 }
 0x4d8   : > { %8638 = vmatprep.subr.bf16.mxu1 %v10472_v36  ;;  %8553 = vmatpush1.bf16.msra.mxu0 %v10469_v17  ;;  %v7183_v17 = vld [vmem:[#allocation7 + $0x17c8] sm:$0xff] }
 0x4d9   : > { %8554 = vmatprep.subr.bf16.mxu0 %v10478_v50  ;;  %v7187_v36 = vld [vmem:[#allocation7 + $0x17e8] sm:$0xff] }
 0x4da   : > { %v6919_v50 = vld [vmem:[#allocation2 + $0x10] sm:$0xfc] }
 0x4db   : > { %8639 = vmatpush1.bf16.msra.mxu1 %v10471_v4  ;;  %v10533_v4 = vcombine.low %v7182_v56, %v7186_v61  ;;  %v6977_v61 = vld [vmem:[#allocation7 + $0x1158] sm:$0xff] }
 0x4dc   : > { %8640 = vmatprep.subr.bf16.mxu1 %v10480_v32  ;;  %8555 = vmatpush1.bf16.msra.mxu0 %v10477_v7  ;;  %v10536_v7 = vcombine.high %v7183_v17, %v7187_v36  ;;  %v10757_v32 = vld [vmem:[#allocation2 + $0x30] sm:$0xff] }
 0x4dd   : > { %8556 = vmatprep.subr.bf16.mxu0 %v10486_v23  ;;  %v6927_v23 = vpack.c.bf16 %v10757_v32, %v6919_v50  ;;  %v6985_v50 = vld [vmem:[#allocation7 + $0x1198] sm:$0xff]  ;;  %v10346_v32 = vcombine.high %v6992_v54, %v6996_v51 }
 0x4df   : > { %8641 = vmatpush1.bf16.msra.mxu1 %v10479_v53  ;;  %v6944_v53 = vld [vmem:[#allocation7 + $0x1050] sm:$0xff] }
 0x4e0   : > { %8642 = vmatprep.subr.bf16.mxu1 %v10488_v52  ;;  %8557 = vmatpush1.bf16.msra.mxu0 %v10485_v24  ;;  %v6948_v24 = vld [vmem:[#allocation7 + $0x1070] sm:$0xff]  ;;  %v10535_v52 = vcombine.low %v7183_v17, %v7187_v36 }
 0x4e1   : > { %8558 = vmatprep.subr.bf16.mxu0 %v10494_v30  ;;  %v7205_v30 = vrot.slane %v6927_v23, 1  ;;  %v10298_v47 = vcombine.high %v6944_v53, %v6948_v24  ;;  %v10297_v41 = vcombine.low %v6944_v53, %v6948_v24  ;;  %v6993_v23 = vld [vmem:[#allocation7 + $0x11d8] sm:$0xff]  ;;  %v10345_v53 = vcombine.low %v6992_v54, %v6996_v51 }
 0x4e3   : > { %8643 = vmatpush1.bf16.msra.mxu1 %v10487_v60  ;;  %v6949_v60 = vld [vmem:[#allocation7 + $0x1078] sm:$0xff] }
 0x4e4   : > { %8644 = vmatprep.subr.bf16.mxu1 %v10496_v45  ;;  %8559 = vmatpush1.bf16.msra.mxu0 %v10493_v37  ;;  %v11829_v37 = vsel %vm7198_vm11, %v7205_v30, %v7206_v55  ;;  %v6952_v45 = vld [vmem:[#allocation7 + $0x1090] sm:$0xff]  ;;  %v10300_v8 = vcombine.high %v6945_v48, %v6949_v60  ;;  %v10299_v34 = vcombine.low %v6945_v48, %v6949_v60  ;;  %v7001_v30 = vld [vmem:[#allocation7 + $0x1218] sm:$0xff] }
 0x4e5   : > { %8560 = vmatprep.subr.bf16.mxu0 %v10502_v19  ;;  %v6956_v19 = vld [vmem:[#allocation7 + $0x10b0] sm:$0xff]  ;;  %v10339_v55 = vcombine.low %v6985_v50, %v6989_v18  ;;  %v10353_v60 = vcombine.low %v7000_v15, %v7004_v21 }
 0x4e6   : > { %v10306_v44 = vcombine.high %v6952_v45, %v6956_v19  ;;  %v10305_v20 = vcombine.low %v6952_v45, %v6956_v19 }
 0x4e7   : > { %8645 = vmatpush1.bf16.msra.mxu1 %v10495_v42  ;;  %v6953_v42 = vld [vmem:[#allocation7 + $0x1098] sm:$0xff] }
 0x4e8   : > { %8646 = vmatprep.subr.bf16.mxu1 %v10504_v12  ;;  %8561 = vmatpush1.bf16.msra.mxu0 %v10501_v2  ;;  %v6957_v2 = vld [vmem:[#allocation7 + $0x10b8] sm:$0xff]  ;;  %v6960_v12 = vld [vmem:[#allocation7 + $0x10d0] sm:$0xff] }
 0x4e9   : > { %8562 = vmatprep.subr.bf16.mxu0 %v10510_v28  ;;  %v6964_v28 = vld [vmem:[#allocation7 + $0x10f0] sm:$0xff]  ;;  %v10308_v1 = vcombine.high %v6953_v42, %v6957_v2  ;;  %v10307_v33 = vcombine.low %v6953_v42, %v6957_v2 }
 0x4ea   : > { %v10314_v0 = vcombine.high %v6960_v12, %v6964_v28  ;;  %v10313_v25 = vcombine.low %v6960_v12, %v6964_v28 }
 0x4eb   : > { %8647 = vmatpush1.bf16.msra.mxu1 %v10503_v3  ;;  %v6961_v3 = vld [vmem:[#allocation7 + $0x10d8] sm:$0xff] }
 0x4ec   : > { %8648 = vmatprep.subr.bf16.mxu1 %v10512_v38  ;;  %8563 = vmatpush1.bf16.msra.mxu0 %v10509_v31  ;;  %v6965_v31 = vld [vmem:[#allocation7 + $0x10f8] sm:$0xff]  ;;  %v6968_v38 = vld [vmem:[#allocation7 + $0x1110] sm:$0xff] }
 0x4ed   : > { %8564 = vmatprep.subr.bf16.mxu0 %v10518_v58  ;;  %v6972_v58 = vld [vmem:[#allocation7 + $0x1130] sm:$0xff]  ;;  %v10316_v11 = vcombine.high %v6961_v3, %v6965_v31 }
 0x4ee   : > { %v10322_v29 = vcombine.high %v6968_v38, %v6972_v58  ;;  %v10321_v27 = vcombine.low %v6968_v38, %v6972_v58 }
 0x4ef   : > { %8649 = vmatpush1.bf16.msra.mxu1 %v10511_v26  ;;  %v6973_v26 = vld [vmem:[#allocation7 + $0x1138] sm:$0xff] }
 0x4f0   : > { %8650 = vmatprep.subr.bf16.mxu1 %v10520_v6  ;;  %8565 = vmatpush1.bf16.msra.mxu0 %v10517_v9  ;;  %v6976_v9 = vld [vmem:[#allocation7 + $0x1150] sm:$0xff] }
 0x4f1   : > { %8566 = vmatprep.subr.bf16.mxu0 %v10526_v63  ;;  %v6980_v6 = vld [vmem:[#allocation7 + $0x1170] sm:$0xff]  ;;  %v10315_v63 = vcombine.low %v6961_v3, %v6965_v31 }
 0x4f2   : > { %v10330_v56 = vcombine.high %v6976_v9, %v6980_v6 }
 0x4f3   : > { %8651 = vmatpush1.bf16.msra.mxu1 %v10519_v35  ;;  %v6981_v35 = vld [vmem:[#allocation7 + $0x1178] sm:$0xff] }
 0x4f4   : > { %8652 = vmatprep.subr.bf16.mxu1 %v10528_v46  ;;  %8567 = vmatpush1.bf16.msra.mxu0 %v10525_v39  ;;  %v6988_v39 = vld [vmem:[#allocation7 + $0x11b0] sm:$0xff]  ;;  %v10332_v17 = vcombine.high %v6977_v61, %v6981_v35 }
 0x4f5   : > { %8568 = vmatprep.subr.bf16.mxu0 %v10534_v49  ;;  %v10329_v49 = vcombine.low %v6976_v9, %v6980_v6  ;;  %v10338_v36 = vcombine.high %v6984_v16, %v6988_v39 }
 0x4f7   : > { %8653 = vmatpush1.bf16.msra.mxu1 %v10527_v14  ;;  %v10331_v14 = vcombine.low %v6977_v61, %v6981_v35 }
 0x4f8   : > { %8654 = vmatprep.subr.bf16.mxu1 %v10536_v7  ;;  %8569 = vmatpush1.bf16.msra.mxu0 %v10533_v4  ;;  %v10337_v4 = vcombine.low %v6984_v16, %v6988_v39  ;;  %v10340_v7 = vcombine.high %v6985_v50, %v6989_v18 }
 0x4f9   : > { %8667 = vmatprep.subr.bf16.mxu0 %v10290_v10  ;;  %v6997_v10 = vld [vmem:[#allocation7 + $0x11f8] sm:$0xff] }
 0x4fa   : > { %v10348_v24 = vcombine.high %v6993_v23, %v6997_v10  ;;  %v10347_v48 = vcombine.low %v6993_v23, %v6997_v10 }
 0x4fb   : > { %8655 = vmatpush1.bf16.msra.mxu1 %v10535_v52  ;;  %8571 = vmatmul.mubr.bf16.vlgmr.msra.gmra.mrb[16].mxu0 %v11829_v37  ;;  %v10354_v52 = vcombine.high %v7000_v15, %v7004_v21 }
 0x4fc   : > { %8753 = vmatprep.subr.bf16.mxu1 %v10292_v57  ;;  %8668 = vmatpush1.bf16.msra.mxu0 %v10289_v13  ;;  %v7005_v13 = vld [vmem:[#allocation7 + $0x1238] sm:$0xff]  ;;  %v7008_v57 = vld [vmem:[#allocation7 + $0x1250] sm:$0xff] }
 0x4fd   : > { %8699 = vmatprep.mubr.bf16.mxu0 %v11816_v40  ;;  %8669 = vmatprep.subr.bf16.mxu0 %v10298_v47  ;;  %v7012_v47 = vld [vmem:[#allocation7 + $0x1270] sm:$0xff]  ;;  %v10356_v45 = vcombine.high %v7001_v30, %v7005_v13  ;;  %v10355_v42 = vcombine.low %v7001_v30, %v7005_v13 }
 0x4fe   : > { %8657 = vmatmul.mubr.bf16.vlgmr.msra.gmra.mrb[16].mxu1 %v11829_v37  ;;  %v10362_v19 = vcombine.high %v7008_v57, %v7012_v47  ;;  %v10361_v2 = vcombine.low %v7008_v57, %v7012_v47 }
 0x4ff   : > { %8754 = vmatpush1.bf16.msra.mxu1 %v10291_v43  ;;  %8785 = vmatprep.mubr.bf16.mxu1 %v11816_v40  ;;  %v6969_v40 = vld [vmem:[#allocation7 + $0x1118] sm:$0xff] }
 0x500   : > { %8755 = vmatprep.subr.bf16.mxu1 %v10300_v8  ;;  %8670 = vmatpush1.bf16.msra.mxu0 %v10297_v41  ;;  %v10324_v22 = vcombine.high %v6969_v40, %v6973_v26  ;;  %v10323_v46 = vcombine.low %v6969_v40, %v6973_v26  ;;  %v7009_v43 = vld [vmem:[#allocation7 + $0x1258] sm:$0xff]  ;;  %v7016_v8 = vld [vmem:[#allocation7 + $0x1290] sm:$0xff] }
 0x501   : > { %8671 = vmatprep.subr.bf16.mxu0 %v10306_v44  ;;  %v7013_v41 = vld [vmem:[#allocation7 + $0x1278] sm:$0xff]  ;;  %v7020_v44 = vld [vmem:[#allocation7 + $0x12b0] sm:$0xff] }
 0x502   : > { %v10364_v12 = vcombine.high %v7009_v43, %v7013_v41  ;;  %v10370_v28 = vcombine.high %v7016_v8, %v7020_v44  ;;  %v10363_v3 = vcombine.low %v7009_v43, %v7013_v41  ;;  %v10369_v31 = vcombine.low %v7016_v8, %v7020_v44 }
 0x503   : > { %8756 = vmatpush1.bf16.msra.mxu1 %v10299_v34  ;;  %v7017_v34 = vld [vmem:[#allocation7 + $0x1298] sm:$0xff] }
 0x504   : > { %8757 = vmatprep.subr.bf16.mxu1 %v10308_v1  ;;  %8672 = vmatpush1.bf16.msra.mxu0 %v10305_v20  ;;  %v7021_v20 = vld [vmem:[#allocation7 + $0x12b8] sm:$0xff]  ;;  %v7024_v1 = vld [vmem:[#allocation7 + $0x12d0] sm:$0xff] }
 0x505   : > { %8673 = vmatprep.subr.bf16.mxu0 %v10314_v0  ;;  %v7028_v0 = vld [vmem:[#allocation7 + $0x12f0] sm:$0xff]  ;;  %v10372_v38 = vcombine.high %v7017_v34, %v7021_v20  ;;  %v10371_v40 = vcombine.low %v7017_v34, %v7021_v20 }
 0x506   : > { %v10378_v58 = vcombine.high %v7024_v1, %v7028_v0  ;;  %v10377_v26 = vcombine.low %v7024_v1, %v7028_v0 }
 0x507   : > { %8758 = vmatpush1.bf16.msra.mxu1 %v10307_v33  ;;  %v7025_v33 = vld [vmem:[#allocation7 + $0x12d8] sm:$0xff] }
 0x508   : > { %8759 = vmatprep.subr.bf16.mxu1 %v10316_v11  ;;  %8674 = vmatpush1.bf16.msra.mxu0 %v10313_v25  ;;  %v7029_v25 = vld [vmem:[#allocation7 + $0x12f8] sm:$0xff]  ;;  %v7032_v11 = vld [vmem:[#allocation7 + $0x1310] sm:$0xff] }
 0x509   : > { %8675 = vmatprep.subr.bf16.mxu0 %v10322_v29  ;;  %v7036_v29 = vld [vmem:[#allocation7 + $0x1330] sm:$0xff]  ;;  %v10380_v9 = vcombine.high %v7025_v33, %v7029_v25  ;;  %v10379_v61 = vcombine.low %v7025_v33, %v7029_v25 }
 0x50a   : > { %v10386_v6 = vcombine.high %v7032_v11, %v7036_v29  ;;  %v10385_v35 = vcombine.low %v7032_v11, %v7036_v29 }
 0x50b   : > { %8760 = vmatpush1.bf16.msra.mxu1 %v10315_v63  ;;  %v7033_v63 = vld [vmem:[#allocation7 + $0x1318] sm:$0xff] }
 0x50c   : > { %8761 = vmatprep.subr.bf16.mxu1 %v10324_v22  ;;  %8676 = vmatpush1.bf16.msra.mxu0 %v10321_v27  ;;  %v7037_v27 = vld [vmem:[#allocation7 + $0x1338] sm:$0xff]  ;;  %v7040_v22 = vld [vmem:[#allocation7 + $0x1350] sm:$0xff] }
 0x50d   : > { %8677 = vmatprep.subr.bf16.mxu0 %v10330_v56  ;;  %v7044_v56 = vld [vmem:[#allocation7 + $0x1370] sm:$0xff]  ;;  %v10388_v16 = vcombine.high %v7033_v63, %v7037_v27  ;;  %v10387_v50 = vcombine.low %v7033_v63, %v7037_v27 }
 0x50e   : > { %v10394_v39 = vcombine.high %v7040_v22, %v7044_v56  ;;  %v10393_v18 = vcombine.low %v7040_v22, %v7044_v56  ;;  %v7101_v56 = vld [vmem:[#allocation7 + $0x1538] sm:$0xff] }
 0x50f   : > { %8762 = vmatpush1.bf16.msra.mxu1 %v10323_v46  ;;  %v7041_v46 = vld [vmem:[#allocation7 + $0x1358] sm:$0xff] }
 0x510   : > { %8763 = vmatprep.subr.bf16.mxu1 %v10332_v17  ;;  %8678 = vmatpush1.bf16.msra.mxu0 %v10329_v49  ;;  %v7045_v49 = vld [vmem:[#allocation7 + $0x1378] sm:$0xff]  ;;  %v7048_v17 = vld [vmem:[#allocation7 + $0x1390] sm:$0xff] }
 0x511   : > { %8679 = vmatprep.subr.bf16.mxu0 %v10338_v36  ;;  %v7052_v36 = vld [vmem:[#allocation7 + $0x13b0] sm:$0xff]  ;;  %v10396_v54 = vcombine.high %v7041_v46, %v7045_v49  ;;  %v10395_v23 = vcombine.low %v7041_v46, %v7045_v49 }
 0x512   : > { %v10402_v51 = vcombine.high %v7048_v17, %v7052_v36  ;;  %v10401_v10 = vcombine.low %v7048_v17, %v7052_v36  ;;  %v7105_v17 = vld [vmem:[#allocation7 + $0x1558] sm:$0xff] }
 0x513   : > { %8764 = vmatpush1.bf16.msra.mxu1 %v10331_v14  ;;  %v7049_v14 = vld [vmem:[#allocation7 + $0x1398] sm:$0xff] }
 0x514   : > { %8765 = vmatprep.subr.bf16.mxu1 %v10340_v7  ;;  %8680 = vmatpush1.bf16.msra.mxu0 %v10337_v4  ;;  %v7053_v4 = vld [vmem:[#allocation7 + $0x13b8] sm:$0xff]  ;;  %v7056_v7 = vld [vmem:[#allocation7 + $0x13d0] sm:$0xff] }
 0x515   : > { %8681 = vmatprep.subr.bf16.mxu0 %v10346_v32  ;;  %v7060_v32 = vld [vmem:[#allocation7 + $0x13f0] sm:$0xff]  ;;  %v10404_v15 = vcombine.high %v7049_v14, %v7053_v4  ;;  %v10403_v30 = vcombine.low %v7049_v14, %v7053_v4  ;;  %v7109_v36 = vld [vmem:[#allocation7 + $0x1578] sm:$0xff] }
 0x516   : > { %v10410_v21 = vcombine.high %v7056_v7, %v7060_v32  ;;  %v10409_v13 = vcombine.low %v7056_v7, %v7060_v32  ;;  %v10460_v14 = vcombine.high %v7105_v17, %v7109_v36  ;;  %v7113_v7 = vld [vmem:[#allocation7 + $0x1598] sm:$0xff] }
 0x517   : > { %8766 = vmatpush1.bf16.msra.mxu1 %v10339_v55  ;;  %v7057_v55 = vld [vmem:[#allocation7 + $0x13d8] sm:$0xff] }
 0x518   : > { %8767 = vmatprep.subr.bf16.mxu1 %v10348_v24  ;;  %8682 = vmatpush1.bf16.msra.mxu0 %v10345_v53  ;;  %v7061_v53 = vld [vmem:[#allocation7 + $0x13f8] sm:$0xff]  ;;  %v7064_v24 = vld [vmem:[#allocation7 + $0x1410] sm:$0xff] }
 0x519   : > { %8683 = vmatprep.subr.bf16.mxu0 %v10354_v52  ;;  %v7068_v52 = vld [vmem:[#allocation7 + $0x1430] sm:$0xff]  ;;  %v10412_v57 = vcombine.high %v7057_v55, %v7061_v53  ;;  %v10411_v43 = vcombine.low %v7057_v55, %v7061_v53  ;;  %v7117_v32 = vld [vmem:[#allocation7 + $0x15b8] sm:$0xff] }
 0x51a   : > { %v10418_v47 = vcombine.high %v7064_v24, %v7068_v52  ;;  %v10417_v41 = vcombine.low %v7064_v24, %v7068_v52  ;;  %v10468_v55 = vcombine.high %v7113_v7, %v7117_v32  ;;  %v7121_v24 = vld [vmem:[#allocation7 + $0x15d8] sm:$0xff] }
 0x51b   : > { %8768 = vmatpush1.bf16.msra.mxu1 %v10347_v48  ;;  %v7065_v48 = vld [vmem:[#allocation7 + $0x1418] sm:$0xff] }
 0x51c   : > { %8769 = vmatprep.subr.bf16.mxu1 %v10356_v45  ;;  %8684 = vmatpush1.bf16.msra.mxu0 %v10353_v60  ;;  %v7069_v60 = vld [vmem:[#allocation7 + $0x1438] sm:$0xff]  ;;  %v7072_v45 = vld [vmem:[#allocation7 + $0x1450] sm:$0xff] }
 0x51d   : > { %8685 = vmatprep.subr.bf16.mxu0 %v10362_v19  ;;  %v7076_v19 = vld [vmem:[#allocation7 + $0x1470] sm:$0xff]  ;;  %v10420_v8 = vcombine.high %v7065_v48, %v7069_v60  ;;  %v10419_v34 = vcombine.low %v7065_v48, %v7069_v60  ;;  %v7125_v52 = vld [vmem:[#allocation7 + $0x15f8] sm:$0xff] }
 0x51e   : > { %v10426_v44 = vcombine.high %v7072_v45, %v7076_v19  ;;  %v10425_v20 = vcombine.low %v7072_v45, %v7076_v19  ;;  %v10476_v48 = vcombine.high %v7121_v24, %v7125_v52  ;;  %v7129_v45 = vld [vmem:[#allocation7 + $0x1618] sm:$0xff] }
 0x51f   : > { %8770 = vmatpush1.bf16.msra.mxu1 %v10355_v42  ;;  %v7073_v42 = vld [vmem:[#allocation7 + $0x1458] sm:$0xff] }
 0x520   : > { %8771 = vmatprep.subr.bf16.mxu1 %v10364_v12  ;;  %8686 = vmatpush1.bf16.msra.mxu0 %v10361_v2  ;;  %v7077_v2 = vld [vmem:[#allocation7 + $0x1478] sm:$0xff]  ;;  %v7080_v12 = vld [vmem:[#allocation7 + $0x1490] sm:$0xff] }
 0x521   : > { %8687 = vmatprep.subr.bf16.mxu0 %v10370_v28  ;;  %v7084_v28 = vld [vmem:[#allocation7 + $0x14b0] sm:$0xff]  ;;  %v10428_v1 = vcombine.high %v7073_v42, %v7077_v2  ;;  %v10427_v33 = vcombine.low %v7073_v42, %v7077_v2  ;;  %v7133_v19 = vld [vmem:[#allocation7 + $0x1638] sm:$0xff] }
 0x522   : > { %v10434_v0 = vcombine.high %v7080_v12, %v7084_v28  ;;  %v10433_v25 = vcombine.low %v7080_v12, %v7084_v28  ;;  %v10484_v42 = vcombine.high %v7129_v45, %v7133_v19  ;;  %v7137_v12 = vld [vmem:[#allocation7 + $0x1658] sm:$0xff] }
 0x523   : > { %8772 = vmatpush1.bf16.msra.mxu1 %v10363_v3  ;;  %v7081_v3 = vld [vmem:[#allocation7 + $0x1498] sm:$0xff] }
 0x524   : > { %8773 = vmatprep.subr.bf16.mxu1 %v10372_v38  ;;  %8688 = vmatpush1.bf16.msra.mxu0 %v10369_v31  ;;  %v7085_v31 = vld [vmem:[#allocation7 + $0x14b8] sm:$0xff]  ;;  %v7088_v38 = vld [vmem:[#allocation7 + $0x14d0] sm:$0xff] }
 0x525   : > { %8689 = vmatprep.subr.bf16.mxu0 %v10378_v58  ;;  %v7092_v58 = vld [vmem:[#allocation7 + $0x14f0] sm:$0xff]  ;;  %v10436_v11 = vcombine.high %v7081_v3, %v7085_v31  ;;  %v10435_v63 = vcombine.low %v7081_v3, %v7085_v31  ;;  %v7141_v28 = vld [vmem:[#allocation7 + $0x1678] sm:$0xff] }
 0x526   : > { %v10442_v29 = vcombine.high %v7088_v38, %v7092_v58  ;;  %v10492_v3 = vcombine.high %v7137_v12, %v7141_v28 }
 0x527   : > { %8774 = vmatpush1.bf16.msra.mxu1 %v10371_v40  ;;  %v7089_v40 = vld [vmem:[#allocation7 + $0x14d8] sm:$0xff] }
 0x528   : > { %8775 = vmatprep.subr.bf16.mxu1 %v10380_v9  ;;  %8690 = vmatpush1.bf16.msra.mxu0 %v10377_v26  ;;  %v7093_v26 = vld [vmem:[#allocation7 + $0x14f8] sm:$0xff]  ;;  %v7096_v9 = vld [vmem:[#allocation7 + $0x1510] sm:$0xff] }
 0x529   : > { %8691 = vmatprep.subr.bf16.mxu0 %v10386_v6  ;;  %v7100_v6 = vld [vmem:[#allocation7 + $0x1530] sm:$0xff]  ;;  %v10444_v27 = vcombine.high %v7089_v40, %v7093_v26 }
 0x52a   : > { %v10450_v22 = vcombine.high %v7096_v9, %v7100_v6 }
 0x52b   : > { %8776 = vmatpush1.bf16.msra.mxu1 %v10379_v61  ;;  %v7104_v61 = vld [vmem:[#allocation7 + $0x1550] sm:$0xff] }
 0x52c   : > { %8777 = vmatprep.subr.bf16.mxu1 %v10388_v16  ;;  %8692 = vmatpush1.bf16.msra.mxu0 %v10385_v35  ;;  %v7108_v35 = vld [vmem:[#allocation7 + $0x1570] sm:$0xff]  ;;  %v10443_v16 = vcombine.low %v7089_v40, %v7093_v26 }
 0x52d   : > { %8693 = vmatprep.subr.bf16.mxu0 %v10394_v39  ;;  %v10449_v39 = vcombine.low %v7096_v9, %v7100_v6  ;;  %v10458_v49 = vcombine.high %v7104_v61, %v7108_v35  ;;  %v7153_v9 = vld [vmem:[#allocation7 + $0x16d8] sm:$0xff] }
 0x52e   : > { %v7157_v6 = vld [vmem:[#allocation7 + $0x16f8] sm:$0xff] }
 0x52f   : > { %8778 = vmatpush1.bf16.msra.mxu1 %v10387_v50  ;;  %v7112_v50 = vld [vmem:[#allocation7 + $0x1590] sm:$0xff] }
 0x530   : > { %8779 = vmatprep.subr.bf16.mxu1 %v10396_v54  ;;  %8694 = vmatpush1.bf16.msra.mxu0 %v10393_v18  ;;  %v7116_v18 = vld [vmem:[#allocation7 + $0x15b0] sm:$0xff] }
 0x531   : > { %8695 = vmatprep.subr.bf16.mxu0 %v10402_v51  ;;  %v10457_v51 = vcombine.low %v7104_v61, %v7108_v35  ;;  %v10466_v4 = vcombine.high %v7112_v50, %v7116_v18  ;;  %v7161_v61 = vld [vmem:[#allocation7 + $0x1718] sm:$0xff] }
 0x532   : > { %v7165_v35 = vld [vmem:[#allocation7 + $0x1738] sm:$0xff] }
 0x533   : > { %8780 = vmatpush1.bf16.msra.mxu1 %v10395_v23  ;;  %v7120_v23 = vld [vmem:[#allocation7 + $0x15d0] sm:$0xff] }
 0x534   : > { %8781 = vmatprep.subr.bf16.mxu1 %v10404_v15  ;;  %8696 = vmatpush1.bf16.msra.mxu0 %v10401_v10  ;;  %v7124_v10 = vld [vmem:[#allocation7 + $0x15f0] sm:$0xff]  ;;  %v10459_v15 = vcombine.low %v7105_v17, %v7109_v36  ;;  %v10516_v17 = vcombine.high %v7161_v61, %v7165_v35 }
 0x535   : > { %8697 = vmatprep.subr.bf16.mxu0 %v10410_v21  ;;  %v10465_v21 = vcombine.low %v7112_v50, %v7116_v18  ;;  %v10474_v53 = vcombine.high %v7120_v23, %v7124_v10  ;;  %v7169_v50 = vld [vmem:[#allocation7 + $0x1758] sm:$0xff] }
 0x536   : > { %v7173_v18 = vld [vmem:[#allocation7 + $0x1778] sm:$0xff] }
 0x537   : > { %8782 = vmatpush1.bf16.msra.mxu1 %v10403_v30  ;;  %v7128_v30 = vld [vmem:[#allocation7 + $0x1610] sm:$0xff] }
 0x538   : > { %8783 = vmatprep.subr.bf16.mxu1 %v10412_v57  ;;  %8698 = vmatpush1.bf16.msra.mxu0 %v10409_v13  ;;  %v7132_v13 = vld [vmem:[#allocation7 + $0x1630] sm:$0xff]  ;;  %v10467_v57 = vcombine.low %v7113_v7, %v7117_v32  ;;  %v10524_v7 = vcombine.high %v7169_v50, %v7173_v18 }
 0x539   : > { %8710 = vmatprep.subr.bf16.mxu0 %v10418_v47  ;;  %v10473_v47 = vcombine.low %v7120_v23, %v7124_v10  ;;  %v10482_v60 = vcombine.high %v7128_v30, %v7132_v13  ;;  %v7177_v23 = vld [vmem:[#allocation7 + $0x1798] sm:$0xff] }
 0x53a   : > { %v7181_v10 = vld [vmem:[#allocation7 + $0x17b8] sm:$0xff] }
 0x53b   : > { %8784 = vmatpush1.bf16.msra.mxu1 %v10411_v43  ;;  %8700 = vmatmul.mubr.bf16.vlgmr.msra.gmra.mrb[20].mxu0 %v11822_v62  ;;  %v7136_v43 = vld [vmem:[#allocation7 + $0x1650] sm:$0xff] }
 0x53c   : > { %8796 = vmatprep.subr.bf16.mxu1 %v10420_v8  ;;  %8711 = vmatpush1.bf16.msra.mxu0 %v10417_v41  ;;  %v7140_v41 = vld [vmem:[#allocation7 + $0x1670] sm:$0xff]  ;;  %v10475_v8 = vcombine.low %v7121_v24, %v7125_v52  ;;  %v10532_v24 = vcombine.high %v7177_v23, %v7181_v10 }
 0x53d   : > { %8742 = vmatprep.mubr.bf16.mxu0 %v11776_v59  ;;  %8712 = vmatprep.subr.bf16.mxu0 %v10426_v44  ;;  %v10481_v44 = vcombine.low %v7128_v30, %v7132_v13  ;;  %v10490_v2 = vcombine.high %v7136_v43, %v7140_v41  ;;  %v7185_v30 = vld [vmem:[#allocation7 + $0x17d8] sm:$0xff] }
 0x53e   : > { %8786 = vmatmul.mubr.bf16.vlgmr.msra.gmra.mrb[20].mxu1 %v11822_v62  ;;  %v10441_v62 = vcombine.low %v7088_v38, %v7092_v58  ;;  %v7145_v38 = vld [vmem:[#allocation7 + $0x1698] sm:$0xff] }
 0x53f   : > { %8797 = vmatpush1.bf16.msra.mxu1 %v10419_v34  ;;  %8828 = vmatprep.mubr.bf16.mxu1 %v11776_v59  ;;  %v7097_v59 = vld [vmem:[#allocation7 + $0x1518] sm:$0xff]  ;;  %v7144_v34 = vld [vmem:[#allocation7 + $0x1690] sm:$0xff] }
 0x540   : > { %8798 = vmatprep.subr.bf16.mxu1 %v10428_v1  ;;  %8713 = vmatpush1.bf16.msra.mxu0 %v10425_v20  ;;  %v10452_v46 = vcombine.high %v7097_v59, %v7101_v56  ;;  %v10451_v54 = vcombine.low %v7097_v59, %v7101_v56  ;;  %v7148_v20 = vld [vmem:[#allocation7 + $0x16b0] sm:$0xff]  ;;  %v10483_v1 = vcombine.low %v7129_v45, %v7133_v19  ;;  %v7149_v58 = vld [vmem:[#allocation7 + $0x16b8] sm:$0xff] }
 0x541   : > { %8714 = vmatprep.subr.bf16.mxu0 %v10434_v0  ;;  %v10489_v0 = vcombine.low %v7136_v43, %v7140_v41  ;;  %v10498_v31 = vcombine.high %v7144_v34, %v7148_v20  ;;  %v10500_v40 = vcombine.high %v7145_v38, %v7149_v58  ;;  %v10508_v59 = vcombine.high %v7153_v9, %v7157_v6  ;;  %v7189_v13 = vld [vmem:[#allocation7 + $0x17f8] sm:$0xff] }
 0x543   : > { %8799 = vmatpush1.bf16.msra.mxu1 %v10427_v33  ;;  %v7152_v33 = vld [vmem:[#allocation7 + $0x16d0] sm:$0xff] }
 0x544   : > { %8800 = vmatprep.subr.bf16.mxu1 %v10436_v11  ;;  %8715 = vmatpush1.bf16.msra.mxu0 %v10433_v25  ;;  %v7156_v25 = vld [vmem:[#allocation7 + $0x16f0] sm:$0xff]  ;;  %v10491_v11 = vcombine.low %v7137_v12, %v7141_v28  ;;  %v8855_v12 = vld [vmem:[#allocation8] sm:$0xff]  ;;  %v12117_v28 = vld [vmem:[#allocation13_spill] sm:$0xff] }
 0x545   : > { %8716 = vmatprep.subr.bf16.mxu0 %v10442_v29  ;;  %v10497_v29 = vcombine.low %v7144_v34, %v7148_v20  ;;  %v10506_v26 = vcombine.high %v7152_v33, %v7156_v25  ;;  %v12118_v34 = vsub.s32 0, %v12117_v28 }
 0x547   : > { %8801 = vmatpush1.bf16.msra.mxu1 %v10435_v63  ;;  %v7160_v63 = vld [vmem:[#allocation7 + $0x1710] sm:$0xff]  ;;  %v8860_v20 = vrot.slane %v8855_v12, %v12118_v34 }
 0x548   : > { %8802 = vmatprep.subr.bf16.mxu1 %v10444_v27  ;;  %8717 = vmatpush1.bf16.msra.mxu0 %v10441_v62  ;;  %v7164_v62 = vld [vmem:[#allocation7 + $0x1730] sm:$0xff]  ;;  %v10499_v27 = vcombine.low %v7145_v38, %v7149_v58 }
 0x549   : > { %8718 = vmatprep.subr.bf16.mxu0 %v10450_v22  ;;  %v10505_v22 = vcombine.low %v7152_v33, %v7156_v25  ;;  %v10514_v56 = vcombine.high %v7160_v63, %v7164_v62  ;;  %v12122_v33 = vsub.s32 4, %v12117_v28 }
 0x54b   : > { %8803 = vmatpush1.bf16.msra.mxu1 %v10443_v16  ;;  %v7168_v16 = vld [vmem:[#allocation7 + $0x1750] sm:$0xff]  ;;  %v8876_v25 = vrot.slane %v8855_v12, %v12122_v33 }
 0x54c   : > { %8804 = vmatprep.subr.bf16.mxu1 %v10452_v46  ;;  %8719 = vmatpush1.bf16.msra.mxu0 %v10449_v39  ;;  %v7172_v39 = vld [vmem:[#allocation7 + $0x1770] sm:$0xff]  ;;  %v10507_v46 = vcombine.low %v7153_v9, %v7157_v6 }
 0x54d   : > { %8720 = vmatprep.subr.bf16.mxu0 %v10458_v49  ;;  %v10513_v49 = vcombine.low %v7160_v63, %v7164_v62  ;;  %v10522_v36 = vcombine.high %v7168_v16, %v7172_v39 }
 0x54f   : > { %8805 = vmatpush1.bf16.msra.mxu1 %v10451_v54  ;;  %v7176_v54 = vld [vmem:[#allocation7 + $0x1790] sm:$0xff] }
 0x550   : > { %8806 = vmatprep.subr.bf16.mxu1 %v10460_v14  ;;  %8721 = vmatpush1.bf16.msra.mxu0 %v10457_v51  ;;  %v7180_v51 = vld [vmem:[#allocation7 + $0x17b0] sm:$0xff]  ;;  %v10515_v14 = vcombine.low %v7161_v61, %v7165_v35  ;;  %v12125_v35 = vsub.s32 7, %v12117_v28 }
 0x551   : > { %8722 = vmatprep.subr.bf16.mxu0 %v10466_v4  ;;  %v10521_v4 = vcombine.low %v7168_v16, %v7172_v39  ;;  %v10530_v32 = vcombine.high %v7176_v54, %v7180_v51 }
 0x552   : > { %v8888_v16 = vrot.slane %v8855_v12, %v12125_v35 }
 0x553   : > { %8807 = vmatpush1.bf16.msra.mxu1 %v10459_v15  ;;  %v7184_v15 = vld [vmem:[#allocation7 + $0x17d0] sm:$0xff] }
 0x554   : > { %8808 = vmatprep.subr.bf16.mxu1 %v10468_v55  ;;  %8723 = vmatpush1.bf16.msra.mxu0 %v10465_v21  ;;  %v7188_v21 = vld [vmem:[#allocation7 + $0x17f0] sm:$0xff]  ;;  %v10523_v55 = vcombine.low %v7169_v50, %v7173_v18 }
 0x555   : > { %8724 = vmatprep.subr.bf16.mxu0 %v10474_v53  ;;  %v10529_v53 = vcombine.low %v7176_v54, %v7180_v51  ;;  %v10538_v52 = vcombine.high %v7184_v15, %v7188_v21 }
 0x557   : > { %8809 = vmatpush1.bf16.msra.mxu1 %v10467_v57  ;;  %v10531_v57 = vcombine.low %v7177_v23, %v7181_v10 }
 0x558   : > { %8810 = vmatprep.subr.bf16.mxu1 %v10476_v48  ;;  %8725 = vmatpush1.bf16.msra.mxu0 %v10473_v47  ;;  %v10537_v47 = vcombine.low %v7184_v15, %v7188_v21  ;;  %v10540_v48 = vcombine.high %v7185_v30, %v7189_v13 }
 0x559   : > { %8726 = vmatprep.subr.bf16.mxu0 %v10482_v60  ;;  %v10539_v60 = vcombine.low %v7185_v30, %v7189_v13 }
 0x55b   : > { %8811 = vmatpush1.bf16.msra.mxu1 %v10475_v8 }
 0x55c   : > { %8812 = vmatprep.subr.bf16.mxu1 %v10484_v42  ;;  %8727 = vmatpush1.bf16.msra.mxu0 %v10481_v44 }
 0x55d   : > { %8728 = vmatprep.subr.bf16.mxu0 %v10490_v2 }
 0x55f   : > { %8813 = vmatpush1.bf16.msra.mxu1 %v10483_v1  ;;  %v12119_v1 = vsub.s32 2, %v12117_v28 }
 0x560   : > { %8814 = vmatprep.subr.bf16.mxu1 %v10492_v3  ;;  %8729 = vmatpush1.bf16.msra.mxu0 %v10489_v0  ;;  %v12120_v3 = vsub.s32 1, %v12117_v28 }
 0x561   : > { %8730 = vmatprep.subr.bf16.mxu0 %v10498_v31  ;;  %v8868_v0 = vrot.slane %v8855_v12, %v12119_v1 }
 0x562   : > { %v8864_v31 = vrot.slane %v8855_v12, %v12120_v3 }
 0x563   : > { %8815 = vmatpush1.bf16.msra.mxu1 %v10491_v11 }
 0x564   : > { %8816 = vmatprep.subr.bf16.mxu1 %v10500_v40  ;;  %8731 = vmatpush1.bf16.msra.mxu0 %v10497_v29 }
 0x565   : > { %8732 = vmatprep.subr.bf16.mxu0 %v10506_v26  ;;  %v12123_v26 = vsub.s32 5, %v12117_v28 }
 0x567   : > { %8817 = vmatpush1.bf16.msra.mxu1 %v10499_v27  ;;  %v8880_v9 = vrot.slane %v8855_v12, %v12123_v26  ;;  %v12124_v27 = vsub.s32 6, %v12117_v28 }
 0x568   : > { %8818 = vmatprep.subr.bf16.mxu1 %v10508_v59  ;;  %8733 = vmatpush1.bf16.msra.mxu0 %v10505_v22 }
 0x569   : > { %8734 = vmatprep.subr.bf16.mxu0 %v10514_v56  ;;  %v8884_v22 = vrot.slane %v8855_v12, %v12124_v27 }
 0x56b   : > { %8819 = vmatpush1.bf16.msra.mxu1 %v10507_v46 }
 0x56c   : > { %8820 = vmatprep.subr.bf16.mxu1 %v10516_v17  ;;  %8735 = vmatpush1.bf16.msra.mxu0 %v10513_v49 }
 0x56d   : > { %8736 = vmatprep.subr.bf16.mxu0 %v10522_v36 }
 0x56f   : > { %8821 = vmatpush1.bf16.msra.mxu1 %v10515_v14 }
 0x570   : > { %8822 = vmatprep.subr.bf16.mxu1 %v10524_v7  ;;  %8737 = vmatpush1.bf16.msra.mxu0 %v10521_v4 }
 0x571   : > { %8738 = vmatprep.subr.bf16.mxu0 %v10530_v32 }
 0x573   : > { %8823 = vmatpush1.bf16.msra.mxu1 %v10523_v55 }
 0x574   : > { %8824 = vmatprep.subr.bf16.mxu1 %v10532_v24  ;;  %8739 = vmatpush1.bf16.msra.mxu0 %v10529_v53 }
 0x575   : > { %8740 = vmatprep.subr.bf16.mxu0 %v10538_v52 }
 0x577   : > { %8825 = vmatpush1.bf16.msra.mxu1 %v10531_v57 }
 0x578   : > { %8826 = vmatprep.subr.bf16.mxu1 %v10540_v48  ;;  %8741 = vmatpush1.bf16.msra.mxu0 %v10537_v47 }
 0x57b   : > { %8827 = vmatpush1.bf16.msra.mxu1 %v10539_v60  ;;  %8743 = vmatmul.mubr.bf16.vlgmr.msra.gmra.mrb[20].mxu0 %v11829_v37 }
 0x57e   : > { %8829 = vmatmul.mubr.bf16.vlgmr.msra.gmra.mrb[20].mxu1 %v11829_v37  ;;  %v12121_v37 = vsub.s32 3, %v12117_v28 }
 0x580   : > { %v8872_v38 = vrot.slane %v8855_v12, %v12121_v37 }
 0x5ce   : > { %v8572_v45 = vpop.f32.mrb[16].mxu0 }
 0x5cf   : > { %v8574_v19 = vpop.f32.mrb[17].mxu0  ;;  %v8897_v58 = vadd.f32 %v8860_v20, %v8572_v45 }
 0x5d0   : > { %v8576_v43 = vpop.f32.mrb[18].mxu0  ;;  %v8898_v29 = vadd.f32 %v8864_v31, %v8574_v19 }
 0x5d1   : > { %v8658_v41 = vpop.f32.mrb[16].mxu1  ;;  %v8578_v8 = vpop.f32.mrb[19].mxu0  ;;  %v8905_v40 = vadd.f32 %v8860_v20, %v8576_v43  ;;  %v8913_v59 = vmax.f32 %v8897_v58, 0.0 }
 0x5d2   : > { %v8660_v44 = vpop.f32.mrb[17].mxu1  ;;  %v8899_v11 = vadd.f32 %v8868_v0, %v8658_v41  ;;  %v8906_v6 = vadd.f32 %v8864_v31, %v8578_v8  ;;  %v8914_v46 = vmax.f32 %v8898_v29, 0.0 }
 0x5d3   : > { %v8662_v42 = vpop.f32.mrb[18].mxu1  ;;  %v8900_v63 = vadd.f32 %v8872_v38, %v8660_v44  ;;  %v8921_v49 = vmax.f32 %v8905_v40, 0.0 }
 0x5d4   : > { %v8664_v2 = vpop.f32.mrb[19].mxu1  ;;  %v8915_v39 = vmax.f32 %v8899_v11, 0.0  ;;  %v8907_v50 = vadd.f32 %v8868_v0, %v8662_v42  ;;  %v8922_v18 = vmax.f32 %v8906_v6, 0.0 }
 0x5d5   : > { %v8916_v7 = vmax.f32 %v8900_v63, 0.0  ;;  %v8908_v21 = vadd.f32 %v8872_v38, %v8664_v2 }
 0x5d6   : > { %v8923_v60 = vmax.f32 %v8907_v50, 0.0 }
 0x5d7   : > { %v8924_v34 = vmax.f32 %v8908_v21, 0.0 }
 0x64e   : > { %v8744_v62 = vpop.f32.mrb[20].mxu0 }
 0x64f   : > { %v8901_v56 = vadd.f32 %v8876_v25, %v8744_v62  ;;  %v8746_v61 = vpop.f32.mrb[21].mxu0 }
 0x650   : > { %v8902_v17 = vadd.f32 %v8880_v9, %v8746_v61  ;;  %v8748_v36 = vpop.f32.mrb[22].mxu0 }
 0x651   : > { %v8917_v54 = vmax.f32 %v8901_v56, 0.0  ;;  %v8830_v51 = vpop.f32.mrb[20].mxu1  ;;  %v8909_v14 = vadd.f32 %v8876_v25, %v8748_v36  ;;  %v8750_v4 = vpop.f32.mrb[23].mxu0 }
 0x652   : > { %v8903_v32 = vadd.f32 %v8884_v22, %v8830_v51  ;;  %v8918_v23 = vmax.f32 %v8902_v17, 0.0  ;;  %v8832_v10 = vpop.f32.mrb[21].mxu1  ;;  %v8910_v15 = vadd.f32 %v8880_v9, %v8750_v4 }
 0x653   : > { %v8929_v55 = vmax.f32 %v8913_v59, %v8917_v54  ;;  %v8904_v53 = vadd.f32 %v8888_v16, %v8832_v10  ;;  %v8925_v24 = vmax.f32 %v8909_v14, 0.0  ;;  %v8834_v52 = vpop.f32.mrb[22].mxu1 }
 0x654   : > { %v8919_v30 = vmax.f32 %v8903_v32, 0.0  ;;  %v8930_v13 = vmax.f32 %v8914_v46, %v8918_v23  ;;  %v8911_v57 = vadd.f32 %v8884_v22, %v8834_v52  ;;  %v8926_v47 = vmax.f32 %v8910_v15, 0.0  ;;  %v8836_v48 = vpop.f32.mrb[23].mxu1 }
 0x655   : > { %v8920_v45 = vmax.f32 %v8904_v53, 0.0  ;;  %v8933_v19 = vmax.f32 %v8921_v49, %v8925_v24  ;;  %v8912_v43 = vadd.f32 %v8888_v16, %v8836_v48 }
 0x656   : > { %v8931_v41 = vmax.f32 %v8915_v39, %v8919_v30  ;;  %v8945_v8 = vcombine.low %v8929_v55, %v8930_v13  ;;  %v8946_v44 = vcombine.high %v8929_v55, %v8930_v13  ;;  %v8927_v42 = vmax.f32 %v8911_v57, 0.0 }
 0x657   : > { %v8932_v12 = vmax.f32 %v8916_v7, %v8920_v45  ;;  %v8934_v28 = vmax.f32 %v8922_v18, %v8926_v47  ;;  %v8928_v2 = vmax.f32 %v8912_v43, 0.0 }
 0x658   : > { %v8955_v20 = vrot.slane %v8945_v8, %v11216_v5  ;;  %v8962_v1 = vrot.slane %v8946_v44, %v11216_v5  ;;  %v11859_v0 = vmax.f32 %v8923_v60, %v8927_v42 }
 0x659   : > { %v8947_v3 = vcombine.low %v8931_v41, %v8932_v12  ;;  %v8948_v31 = vcombine.high %v8931_v41, %v8932_v12  ;;  %v8981_v37 = vcombine.low %v8933_v19, %v8934_v28  ;;  %v8982_v38 = vcombine.high %v8933_v19, %v8934_v28 }
 0x65a   : > { %v11861_v58 = vmax.f32 %v8924_v34, %v8928_v2 }
 0x65b   : > { %v8969_v33 = vrot.slane %v8947_v3, %v11216_v5  ;;  %v8976_v25 = vrot.slane %v8948_v31, %v11216_v5  ;;  %v11866_v11 = vrot.slane %v8981_v37, %v11216_v5  ;;  %v11869_v29 = vrot.slane %v8982_v38, %v11216_v5 }
 0x65c   : > { %v8983_v40 = vcombine.low %v11859_v0, %v11861_v58  ;;  %v8984_v26 = vcombine.high %v11859_v0, %v11861_v58 }
 0x65d   : > { %v8977_v9 = vcombine.low %v8955_v20, %v8969_v33  ;;  %v8978_v6 = vcombine.high %v8955_v20, %v8969_v33  ;;  %v8979_v63 = vcombine.low %v8962_v1, %v8976_v25  ;;  %v8980_v62 = vcombine.high %v8962_v1, %v8976_v25 }
 0x65e   : > { %v10541_v27 = vcombine.low %v8969_v33, %v8969_v33  ;;  %v10542_v22 = vcombine.high %v8969_v33, %v8969_v33  ;;  %v10543_v59 = vcombine.low %v8976_v25, %v8976_v25  ;;  %v10544_v56 = vcombine.high %v8976_v25, %v8976_v25 }
 0x65f   : > { %v9024_v61 = vrot.slane %v8977_v9, %v11216_v5  ;;  %v9041_v35 = vrot.slane %v8978_v6, %v11216_v5  ;;  %v11878_v16 = vrot.slane %v8979_v63, %v11216_v5  ;;  %v11881_v39 = vrot.slane %v8980_v62, %v11216_v5 }
 0x660   : > { %v9031_v46 = vrot.slane %v10541_v27, %v11216_v5  ;;  %v9048_v49 = vrot.slane %v10542_v22, %v11216_v5  ;;  %v11886_v17 = vrot.slane %v10543_v59, %v11216_v5  ;;  %v11889_v36 = vrot.slane %v10544_v56, %v11216_v5 }
 0x661   : > { %v9032_v50 = vcombine.high %v9024_v61, %v9024_v61  ;;  %v9049_v18 = vcombine.high %v9041_v35, %v9041_v35  ;;  %v9066_v54 = vcombine.high %v11878_v16, %v11878_v16  ;;  %v9083_v51 = vcombine.high %v11881_v39, %v11881_v39 }
 0x662   : > { %v9033_v14 = vcombine.high %v9031_v46, %v9031_v46  ;;  %v9050_v4 = vcombine.high %v9048_v49, %v9048_v49  ;;  %v9067_v7 = vcombine.high %v11886_v17, %v11886_v17  ;;  %v9084_v32 = vcombine.high %v11889_v36, %v11889_v36 }
 0x663   : > { %v9185_v23 = vsel %vm2470_vm1, %v9024_v61, -inf  ;;  %v9192_v10 = vsel %vm2470_vm1, %v9032_v50, -inf  ;;  %v9199_v15 = vsel %vm2470_vm1, %v9031_v46, -inf  ;;  %v9213_v21 = vsel %vm2470_vm1, %v9041_v35, -inf }
 0x664   : > { %v9186_v55 = vrot.slane %v9185_v23, 4  ;;  %v9193_v53 = vrot.slane %v9192_v10, 4  ;;  %v9200_v24 = vrot.slane %v9199_v15, 4  ;;  %v9206_v52 = vsel %vm2470_vm1, %v9033_v14, -inf }
 0x665   : > { %v9207_v30 = vrot.slane %v9206_v52, 4  ;;  %v9214_v13 = vrot.slane %v9213_v21, 4  ;;  %v9220_v57 = vsel %vm2470_vm1, %v9049_v18, -inf  ;;  %v9227_v47 = vsel %vm2470_vm1, %v9048_v49, -inf }
 0x666   : > { %v9187_v48 = vmax.f32 %v9185_v23, %v9186_v55  ;;  %v9194_v60 = vmax.f32 %v9192_v10, %v9193_v53  ;;  %v9201_v45 = vmax.f32 %v9199_v15, %v9200_v24  ;;  %v9221_v19 = vrot.slane %v9220_v57, 4 }
 0x667   : > { %v9208_v43 = vmax.f32 %v9206_v52, %v9207_v30  ;;  %v9215_v41 = vmax.f32 %v9213_v21, %v9214_v13  ;;  %v9228_v8 = vrot.slane %v9227_v47, 4  ;;  %v9234_v44 = vsel %vm2470_vm1, %v9050_v4, -inf }
 0x668   : > { %v9188_v42 = vrot.slane %v9187_v48, 2  ;;  %v9195_v12 = vrot.slane %v9194_v60, 2  ;;  %v9202_v28 = vrot.slane %v9201_v45, 2  ;;  %v9222_v2 = vmax.f32 %v9220_v57, %v9221_v19 }
 0x669   : > { %v9209_v34 = vrot.slane %v9208_v43, 2  ;;  %v9216_v20 = vrot.slane %v9215_v41, 2  ;;  %v9229_v1 = vmax.f32 %v9227_v47, %v9228_v8  ;;  %v9235_v3 = vrot.slane %v9234_v44, 4 }
 0x66a   : > { %v9189_v31 = vmax.f32 %v9187_v48, %v9188_v42  ;;  %v9196_v37 = vmax.f32 %v9194_v60, %v9195_v12  ;;  %v9203_v38 = vmax.f32 %v9201_v45, %v9202_v28  ;;  %v9223_v33 = vrot.slane %v9222_v2, 2 }
 0x66b   : > { %v9210_v25 = vmax.f32 %v9208_v43, %v9209_v34  ;;  %v9217_v9 = vmax.f32 %v9215_v41, %v9216_v20  ;;  %v9230_v6 = vrot.slane %v9229_v1, 2  ;;  %v9236_v63 = vmax.f32 %v9234_v44, %v9235_v3 }
 0x66c   : > { %v9190_v62 = vrot.slane %v9189_v31, 1  ;;  %v9197_v27 = vrot.slane %v9196_v37, 1  ;;  %v9204_v22 = vrot.slane %v9203_v38, 1  ;;  %v9224_v59 = vmax.f32 %v9222_v2, %v9223_v33 }
 0x66d   : > { %v9211_v56 = vrot.slane %v9210_v25, 1  ;;  %v9218_v61 = vrot.slane %v9217_v9, 1  ;;  %v9231_v35 = vmax.f32 %v9229_v1, %v9230_v6  ;;  %v9237_v46 = vrot.slane %v9236_v63, 2 }
 0x66e   : > { %v11907_v49 = vmax.f32 %v9189_v31, %v9190_v62  ;;  %v11909_v50 = vmax.f32 %v9196_v37, %v9197_v27  ;;  %v11911_v18 = vmax.f32 %v9203_v38, %v9204_v22  ;;  %v9225_v14 = vrot.slane %v9224_v59, 1 }
 0x66f   : > { %v11913_v4 = vmax.f32 %v9210_v25, %v9211_v56  ;;  %v9219_v23 = vmax.f32 %v9217_v9, %v9218_v61  ;;  %v9232_v10 = vrot.slane %v9231_v35, 1  ;;  %v9238_v15 = vmax.f32 %v9236_v63, %v9237_v46 }
 0x670   : > { %v9226_v21 = vmax.f32 %v9224_v59, %v9225_v14  ;;  %v9241_v55 = vsel %vm2470_vm1, %v11878_v16, -inf  ;;  %v9248_v53 = vsel %vm2470_vm1, %v9066_v54, -inf  ;;  %v9255_v24 = vsel %vm2470_vm1, %v11886_v17, -inf }
 0x671   : > { %v9233_v52 = vmax.f32 %v9231_v35, %v9232_v10  ;;  %v9239_v30 = vrot.slane %v9238_v15, 1  ;;  %v9242_v13 = vrot.slane %v9241_v55, 4  ;;  %v9249_v57 = vrot.slane %v9248_v53, 4 }
 0x672   : > { %v9256_v47 = vrot.slane %v9255_v24, 4  ;;  %v9262_v48 = vsel %vm2470_vm1, %v9067_v7, -inf  ;;  %v9269_v60 = vsel %vm2470_vm1, %v11881_v39, -inf  ;;  %v9276_v16 = vsel %vm2470_vm1, %v9083_v51, -inf }
 0x673   : > { %v9240_v54 = vmax.f32 %v9238_v15, %v9239_v30  ;;  %v9243_v45 = vmax.f32 %v9241_v55, %v9242_v13  ;;  %v9250_v19 = vmax.f32 %v9248_v53, %v9249_v57  ;;  %v9263_v43 = vrot.slane %v9262_v48, 4 }
 0x674   : > { %v9257_v41 = vmax.f32 %v9255_v24, %v9256_v47  ;;  %v9270_v8 = vrot.slane %v9269_v60, 4  ;;  %v9277_v44 = vrot.slane %v9276_v16, 4  ;;  %v9283_v17 = vsel %vm2470_vm1, %v11889_v36, -inf }
 0x675   : > { %v9244_v42 = vrot.slane %v9243_v45, 2  ;;  %v9251_v7 = vrot.slane %v9250_v19, 2  ;;  %v9264_v12 = vmax.f32 %v9262_v48, %v9263_v43  ;;  %v9284_v28 = vrot.slane %v9283_v17, 4 }
 0x676   : > { %v9258_v2 = vrot.slane %v9257_v41, 2  ;;  %v9271_v34 = vmax.f32 %v9269_v60, %v9270_v8  ;;  %v9278_v20 = vmax.f32 %v9276_v16, %v9277_v44  ;;  %v9290_v39 = vsel %vm2470_vm1, %v9084_v32, -inf }
 0x677   : > { %v9245_v51 = vmax.f32 %v9243_v45, %v9244_v42  ;;  %v9252_v1 = vmax.f32 %v9250_v19, %v9251_v7  ;;  %v9265_v3 = vrot.slane %v9264_v12, 2  ;;  %v9285_v31 = vmax.f32 %v9283_v17, %v9284_v28 }
 0x678   : > { %v9259_v37 = vmax.f32 %v9257_v41, %v9258_v2  ;;  %v9272_v38 = vrot.slane %v9271_v34, 2  ;;  %v9279_v33 = vrot.slane %v9278_v20, 2  ;;  %v9291_v25 = vrot.slane %v9290_v39, 4 }
 0x679   : > { %v9246_v9 = vrot.slane %v9245_v51, 1  ;;  %v9253_v6 = vrot.slane %v9252_v1, 1  ;;  %v9266_v63 = vmax.f32 %v9264_v12, %v9265_v3  ;;  %v9286_v62 = vrot.slane %v9285_v31, 2 }
 0x67a   : > { %v9260_v27 = vrot.slane %v9259_v37, 1  ;;  %v9273_v22 = vmax.f32 %v9271_v34, %v9272_v38  ;;  %v9280_v59 = vmax.f32 %v9278_v20, %v9279_v33  ;;  %v9292_v56 = vmax.f32 %v9290_v39, %v9291_v25 }
 0x67b   : > { %v9247_v61 = vmax.f32 %v9245_v51, %v9246_v9  ;;  %v9254_v36 = vmax.f32 %v9252_v1, %v9253_v6  ;;  %v9267_v35 = vrot.slane %v9266_v63, 1  ;;  %v9287_v32 = vmax.f32 %v9285_v31, %v9286_v62 }
 0x67c   : > { %v9261_v46 = vmax.f32 %v9259_v37, %v9260_v27  ;;  %v9274_v14 = vrot.slane %v9273_v22, 1  ;;  %v9281_v10 = vrot.slane %v9280_v59, 1  ;;  %v9293_v15 = vrot.slane %v9292_v56, 2 }
 0x67d   : > { %v9268_v55 = vmax.f32 %v9266_v63, %v9267_v35  ;;  %v9288_v53 = vrot.slane %v9287_v32, 1  ;;  %v9441_v24 = vsel %vm3022_vm8, %v9219_v23, %v11907_v49  ;;  %v9448_v30 = vsel %vm3022_vm8, %v9226_v21, %v11909_v50 }
 0x67e   : > { %v9275_v13 = vmax.f32 %v9273_v22, %v9274_v14  ;;  %v9282_v57 = vmax.f32 %v9280_v59, %v9281_v10  ;;  %v9294_v47 = vmax.f32 %v9292_v56, %v9293_v15  ;;  %v9442_v48 = vsel %vm2992_vm2, %v9247_v61, %v9441_v24 }
 0x67f   : > { %v9289_v60 = vmax.f32 %v9287_v32, %v9288_v53  ;;  %v9449_v16 = vsel %vm2992_vm2, %v9254_v36, %v9448_v30  ;;  %v9455_v45 = vsel %vm3022_vm8, %v9233_v52, %v11911_v18  ;;  %v9462_v19 = vsel %vm3022_vm8, %v9240_v54, %v11913_v4 }
 0x680   : > { %v9295_v43 = vrot.slane %v9294_v47, 1  ;;  %v11947_v49 = vsel %vm2994_vm3, %v9275_v13, %v9442_v48  ;;  %v11950_v50 = vsel %vm2994_vm3, %v9282_v57, %v9449_v16  ;;  %v9456_v23 = vsel %vm2992_vm2, %v9261_v46, %v9455_v45 }
 0x681   : > { %v11954_v21 = vsel %vm2994_vm3, %v9289_v60, %v9456_v23  ;;  %v9463_v41 = vsel %vm2992_vm2, %v9268_v55, %v9462_v19  ;;  %v9005_v18 = vrot.slane %v8983_v40, %v11216_v5  ;;  %v9012_v4 = vrot.slane %v8984_v26, %v11216_v5 }
 0x682   : > { %v9296_v52 = vmax.f32 %v9294_v47, %v9295_v43 }
 0x683   : > { %v9013_v54 = vcombine.low %v11866_v11, %v9005_v18  ;;  %v9014_v8 = vcombine.high %v11866_v11, %v9005_v18  ;;  %v9015_v44 = vcombine.low %v11869_v29, %v9012_v4  ;;  %v9016_v17 = vcombine.high %v11869_v29, %v9012_v4 }
 0x684   : > { %v11970_v42 = vsel %vm2994_vm3, %v9296_v52, %v9463_v41  ;;  %v10545_v7 = vcombine.low %v9005_v18, %v9005_v18  ;;  %v10546_v12 = vcombine.high %v9005_v18, %v9005_v18  ;;  %v10547_v40 = vcombine.low %v9012_v4, %v9012_v4 }
 0x685   : > { %v9092_v28 = vrot.slane %v9013_v54, %v11216_v5  ;;  %v9109_v0 = vrot.slane %v9014_v8, %v11216_v5  ;;  %v11975_v58 = vrot.slane %v9015_v44, %v11216_v5  ;;  %v10548_v26 = vcombine.high %v9012_v4, %v9012_v4 }
 0x686   : > { %v9099_v11 = vrot.slane %v10545_v7, %v11216_v5  ;;  %v9116_v2 = vrot.slane %v10546_v12, %v11216_v5  ;;  %v11980_v29 = vrot.slane %v10547_v40, %v11216_v5  ;;  %v11983_v34 = vrot.slane %v9016_v17, %v11216_v5 }
 0x687   : > { %v9100_v20 = vcombine.high %v9092_v28, %v9092_v28  ;;  %v9117_v39 = vcombine.high %v9109_v0, %v9109_v0  ;;  %v9134_v51 = vcombine.high %v11975_v58, %v11975_v58  ;;  %v11990_v37 = vrot.slane %v10548_v26, %v11216_v5 }
 0x688   : > { %v9101_v1 = vcombine.high %v9099_v11, %v9099_v11  ;;  %v9118_v3 = vcombine.high %v9116_v2, %v9116_v2  ;;  %v9135_v31 = vcombine.high %v11980_v29, %v11980_v29  ;;  %v9151_v38 = vcombine.high %v11983_v34, %v11983_v34 }
 0x689   : > { %v9297_v33 = vsel %vm2470_vm1, %v9092_v28, -inf  ;;  %v9304_v25 = vsel %vm2470_vm1, %v9100_v20, -inf  ;;  %v9311_v9 = vsel %vm2470_vm1, %v9099_v11, -inf  ;;  %v9325_v59 = vsel %vm2470_vm1, %v9109_v0, -inf }
 0x68a   : > { %v9298_v6 = vrot.slane %v9297_v33, 4  ;;  %v9305_v63 = vrot.slane %v9304_v25, 4  ;;  %v9312_v62 = vrot.slane %v9311_v9, 4  ;;  %v9318_v27 = vsel %vm2470_vm1, %v9101_v1, -inf }
 0x68b   : > { %v9319_v22 = vrot.slane %v9318_v27, 4  ;;  %v9332_v5 = vsel %vm2470_vm1, %v9117_v39, -inf  ;;  %v9339_v56 = vsel %vm2470_vm1, %v9116_v2, -inf  ;;  %v9326_v32 = vrot.slane %v9325_v59, 4 }
 0x68c   : > { %v9299_v61 = vmax.f32 %v9297_v33, %v9298_v6  ;;  %v9306_v36 = vmax.f32 %v9304_v25, %v9305_v63  ;;  %v9313_v35 = vmax.f32 %v9311_v9, %v9312_v62  ;;  %v9333_v14 = vrot.slane %v9332_v5, 4 }
 0x68d   : > { %v9320_v46 = vmax.f32 %v9318_v27, %v9319_v22  ;;  %v9340_v10 = vrot.slane %v9339_v56, 4  ;;  %v9346_v15 = vsel %vm2470_vm1, %v9118_v3, -inf  ;;  %v9327_v30 = vmax.f32 %v9325_v59, %v9326_v32 }
 0x68e   : > { %v9300_v55 = vrot.slane %v9299_v61, 2  ;;  %v9307_v53 = vrot.slane %v9306_v36, 2  ;;  %v9314_v24 = vrot.slane %v9313_v35, 2  ;;  %v9334_v57 = vmax.f32 %v9332_v5, %v9333_v14 }
 0x68f   : > { %v9321_v13 = vrot.slane %v9320_v46, 2  ;;  %v9341_v47 = vmax.f32 %v9339_v56, %v9340_v10  ;;  %v9347_v48 = vrot.slane %v9346_v15, 4  ;;  %v9328_v19 = vrot.slane %v9327_v30, 2 }
 0x690   : > { %v9301_v60 = vmax.f32 %v9299_v61, %v9300_v55  ;;  %v9308_v16 = vmax.f32 %v9306_v36, %v9307_v53  ;;  %v9315_v45 = vmax.f32 %v9313_v35, %v9314_v24  ;;  %v9335_v23 = vrot.slane %v9334_v57, 2 }
 0x691   : > { %v9322_v43 = vmax.f32 %v9320_v46, %v9321_v13  ;;  %v9342_v41 = vrot.slane %v9341_v47, 2  ;;  %v9348_v18 = vmax.f32 %v9346_v15, %v9347_v48  ;;  %v9329_v8 = vmax.f32 %v9327_v30, %v9328_v19 }
 0x692   : > { %v9302_v4 = vrot.slane %v9301_v60, 1  ;;  %v9309_v52 = vrot.slane %v9308_v16, 1  ;;  %v9316_v54 = vrot.slane %v9315_v45, 1  ;;  %v9336_v17 = vmax.f32 %v9334_v57, %v9335_v23 }
 0x693   : > { %v9323_v44 = vrot.slane %v9322_v43, 1  ;;  %v9343_v7 = vmax.f32 %v9341_v47, %v9342_v41  ;;  %v9349_v12 = vrot.slane %v9348_v18, 2  ;;  %v9152_v40 = vcombine.high %v11990_v37, %v11990_v37 }
 0x694   : > { %v12004_v28 = vmax.f32 %v9301_v60, %v9302_v4  ;;  %v12006_v0 = vmax.f32 %v9308_v16, %v9309_v52  ;;  %v9330_v26 = vrot.slane %v9329_v8, 1  ;;  %v12008_v11 = vmax.f32 %v9315_v45, %v9316_v54 }
 0x695   : > { %v9337_v2 = vrot.slane %v9336_v17, 1  ;;  %v9344_v20 = vrot.slane %v9343_v7, 1  ;;  %v9350_v39 = vmax.f32 %v9348_v18, %v9349_v12  ;;  %v12010_v1 = vmax.f32 %v9322_v43, %v9323_v44 }
 0x696   : > { %v9353_v3 = vsel %vm2470_vm1, %v11975_v58, -inf  ;;  %v9360_v33 = vsel %vm2470_vm1, %v9134_v51, -inf  ;;  %v9367_v25 = vsel %vm2470_vm1, %v11980_v29, -inf  ;;  %v9331_v9 = vmax.f32 %v9329_v8, %v9330_v26 }
 0x697   : > { %v9338_v6 = vmax.f32 %v9336_v17, %v9337_v2  ;;  %v12017_v63 = vmax.f32 %v9343_v7, %v9344_v20  ;;  %v9354_v62 = vrot.slane %v9353_v3, 4  ;;  %v9361_v27 = vrot.slane %v9360_v33, 4 }
 0x698   : > { %v9368_v22 = vrot.slane %v9367_v25, 4  ;;  %v9374_v59 = vsel %vm2470_vm1, %v9135_v31, -inf  ;;  %v9381_v58 = vsel %vm2470_vm1, %v11983_v34, -inf  ;;  %v9351_v5 = vrot.slane %v9350_v39, 1 }
 0x699   : > { %v9355_v51 = vmax.f32 %v9353_v3, %v9354_v62  ;;  %v9375_v56 = vrot.slane %v9374_v59, 4  ;;  %v9382_v61 = vrot.slane %v9381_v58, 4  ;;  %v9362_v36 = vmax.f32 %v9360_v33, %v9361_v27 }
 0x69a   : > { %v9369_v35 = vmax.f32 %v9367_v25, %v9368_v22  ;;  %v9388_v32 = vsel %vm2470_vm1, %v9151_v38, -inf  ;;  %v9395_v46 = vsel %vm2470_vm1, %v11990_v37, -inf  ;;  %v9402_v24 = vsel %vm2470_vm1, %v9152_v40, -inf }
 0x69b   : > { %v9356_v29 = vrot.slane %v9355_v51, 2  ;;  %v9376_v14 = vmax.f32 %v9374_v59, %v9375_v56  ;;  %v9383_v31 = vmax.f32 %v9381_v58, %v9382_v61  ;;  %v9389_v10 = vrot.slane %v9388_v32, 4 }
 0x69c   : > { %v9363_v15 = vrot.slane %v9362_v36, 2  ;;  %v9370_v55 = vrot.slane %v9369_v35, 2  ;;  %v9396_v53 = vrot.slane %v9395_v46, 4  ;;  %v9403_v60 = vrot.slane %v9402_v24, 4 }
 0x69d   : > { %v9357_v30 = vmax.f32 %v9355_v51, %v9356_v29  ;;  %v9377_v13 = vrot.slane %v9376_v14, 2  ;;  %v9384_v57 = vrot.slane %v9383_v31, 2  ;;  %v9390_v47 = vmax.f32 %v9388_v32, %v9389_v10 }
 0x69e   : > { %v9364_v34 = vmax.f32 %v9362_v36, %v9363_v15  ;;  %v9371_v48 = vmax.f32 %v9369_v35, %v9370_v55  ;;  %v9397_v38 = vmax.f32 %v9395_v46, %v9396_v53  ;;  %v9404_v18 = vmax.f32 %v9402_v24, %v9403_v60 }
 0x69f   : > { %v9358_v16 = vrot.slane %v9357_v30, 1  ;;  %v9378_v37 = vmax.f32 %v9376_v14, %v9377_v13  ;;  %v9385_v45 = vmax.f32 %v9383_v31, %v9384_v57  ;;  %v9391_v19 = vrot.slane %v9390_v47, 2 }
 0x6a0   : > { %v9365_v43 = vrot.slane %v9364_v34, 1  ;;  %v9372_v23 = vrot.slane %v9371_v48, 1  ;;  %v9398_v41 = vrot.slane %v9397_v38, 2  ;;  %v9352_v4 = vmax.f32 %v9350_v39, %v9351_v5 }
 0x6a1   : > { %v9359_v52 = vmax.f32 %v9357_v30, %v9358_v16  ;;  %v9386_v54 = vrot.slane %v9385_v45, 1  ;;  %v9392_v8 = vmax.f32 %v9390_v47, %v9391_v19  ;;  %v9379_v17 = vrot.slane %v9378_v37, 1 }
 0x6a2   : > { %v9366_v44 = vmax.f32 %v9364_v34, %v9365_v43  ;;  %v9399_v7 = vmax.f32 %v9397_v38, %v9398_v41  ;;  %v9405_v12 = vrot.slane %v9404_v18, 2  ;;  %v9373_v40 = vmax.f32 %v9371_v48, %v9372_v23 }
 0x6a3   : > { %v9387_v26 = vmax.f32 %v9385_v45, %v9386_v54  ;;  %v9393_v2 = vrot.slane %v9392_v8, 1  ;;  %v9444_v20 = vsel %vm2996_vm4, %v12004_v28, %v11947_v49  ;;  %v9451_v25 = vsel %vm2996_vm4, %v12006_v0, %v11950_v50 }
 0x6a4   : > { %v9400_v3 = vrot.slane %v9399_v7, 1  ;;  %v9406_v39 = vmax.f32 %v9404_v18, %v9405_v12  ;;  %v9445_v33 = vsel %vm2998_vm5, %v9331_v9, %v9444_v20  ;;  %v9452_v22 = vsel %vm2998_vm5, %v9338_v6, %v9451_v25 }
 0x6a5   : > { %v9394_v62 = vmax.f32 %v9392_v8, %v9393_v2  ;;  %v9446_v27 = vsel %vm3000_vm6, %v9359_v52, %v9445_v33  ;;  %v9458_v49 = vsel %vm2996_vm4, %v12008_v11, %v11954_v21  ;;  %v9380_v28 = vmax.f32 %v9378_v37, %v9379_v17 }
 0x6a6   : > { %v9407_v59 = vrot.slane %v9406_v39, 1  ;;  %v9447_v58 = vsel %vm3002_vm7, %v9387_v26, %v9446_v27  ;;  %v9453_v5 = vsel %vm3000_vm6, %v9366_v44, %v9452_v22  ;;  %v9401_v9 = vmax.f32 %v9399_v7, %v9400_v3 }
 0x6a7   : > { %v9454_v51 = vsel %vm3002_vm7, %v9394_v62, %v9453_v5  ;;  %v9459_v50 = vsel %vm2998_vm5, %v12017_v63, %v9458_v49  ;;  %v9465_v0 = vsel %vm2996_vm4, %v12010_v1, %v11970_v42  ;;  %9473 = vst [vmem:[%s279_s15] sm:$0xff] %v9447_v58 }
 0x6a8   : > { %v9408_v6 = vmax.f32 %v9406_v39, %v9407_v59  ;;  %v9460_v21 = vsel %vm3000_vm6, %v9373_v40, %v9459_v50  ;;  %v9466_v11 = vsel %vm2998_vm5, %v9352_v4, %v9465_v0  ;;  %9474 = vst [vmem:[%s279_s15 + $0x8] sm:$0xff] %v9454_v51 }
 0x6a9   : > { %v9461_v56 = vsel %vm3002_vm7, %v9401_v9, %v9460_v21  ;;  %v9467_v61 = vsel %vm3000_vm6, %v9380_v28, %v9466_v11 }
 0x6aa   : > { %v9468_v36 = vsel %vm3002_vm7, %v9408_v6, %v9467_v61  ;;  %9475 = vst [vmem:[%s279_s15 + $0x10] sm:$0xff] %v9461_v56 }
 0x6ab   : > { %9476 = vst [vmem:[%s279_s15 + $0x18] sm:$0xff] %v9468_v36 }
 0x6ac PF: > { %s18_s18 = sadd.s32 1, %s10888_s18  }
 0x6ad   : > { %p15_p6 = scmp.ge.s32.totalorder %s18_s18, 4  }
 0x6af   :  { %17 = sbr.rel (!%p15_p6) target bundleno = 3 (0x3), region = 92 }
 0x6b6   :  { %9498 = vsyncpa [#allocation4], 1 }
 0x6b7   :  { %9500 = vsyncpa [#allocation4 + $0x1], 1 }
 0x6b8   :  { %9501 = vsyncpa [#allocation6], 1 }
 0x6b9   :  { %9502 = vsyncpa [#allocation9], 1 }

</bundles_post_ra>
